<compile_context>
chip_gen: v7x
topology: tpu7x:2x2x1
jax: 0.10.0
libtpu: 0.0.40
codegen_flags: <defaults>
</compile_context>

<pallas_src>
import math
import numpy as np
import jax
import jax.numpy as jnp
from jax.experimental import pallas as pl
from jax.experimental.pallas import tpu as pltpu

H = 768          # bert_dim (fixed by the module's __init__)
NUM_LABELS = 16  # self.num_labels


# -----------------------------------------------------------------------------
# Pallas kernel: 3 x (GraphConvolution + ReLU) fused, G sentences per grid step
# -----------------------------------------------------------------------------
def fused_gcn3_relu_kernel(x_ref, adj_ref, w_ref, b_ref, o_ref):
    """x = relu(gc3(relu(gc2(relu(gc1(x, adj)), adj)), adj)) for G sentences.

    x_ref   : (G, N, H)  f32   node features (block of G sentences)
    adj_ref : (G, N, N)  f32   adjacency (zero-padded rows/cols beyond real N)
    w_ref   : (3, H, H)  bf16  stacked GCN weights (grid-invariant, VMEM-resident)
    b_ref   : (3, 1, H)  f32   stacked GCN biases
    o_ref   : (G, N, H)  f32
    """
    G, N, Hd = x_ref.shape

    # adj is layer-invariant: normalize ONCE (exact division for torch parity)
    # instead of rescaling every layer's output; bf16 for the MXU contraction.
    adj = adj_ref[...]
    denom = jnp.sum(adj, axis=2, keepdims=True) + 1.0            # (G, N, 1)
    adj_n = (adj / denom).astype(jnp.bfloat16)                   # (G, N, N)

    x = x_ref[...]                                               # f32, stays on-chip
    for l in range(3):                                           # unrolled layer loop
        w = w_ref[l]                                             # (H, H) bf16
        b = b_ref[l]                                             # (1, H) f32
        # feature transform as ONE (G*N, H) @ (H, H) matmul -> full MXU rows
        hidden = jnp.dot(x.reshape(G * N, Hd).astype(jnp.bfloat16), w,
                         preferred_element_type=jnp.float32)     # (G*N, H) f32
        hidden = hidden.reshape(G, N, Hd).astype(jnp.bfloat16)
        # per-sentence aggregation with the pre-normalized adjacency
        out = jnp.einsum("gij,gjh->gih", adj_n, hidden,
                         preferred_element_type=jnp.float32)     # (G, N, H) f32
        x = jnp.maximum(out + b, 0.0)                            # + bias, F.relu
    o_ref[...] = x


def _build_gcn_call(B_pad, G, N, Hd, single_buffer_weights):
    """Build the pallas_call for a given batch blocking."""
    grid = (B_pad // G,)

    def const_spec(shape):
        idx = lambda i: (0,) * len(shape)
        if single_buffer_weights:
            # grid-invariant -> single-buffered: reclaims ~3.4 MiB of VMEM
            return pl.BlockSpec(shape, idx, pipeline_mode=pl.Buffered(1))
        return pl.BlockSpec(shape, idx)

    # Explicit VMEM budget (matters on v5e's 16 MiB default scoped VMEM):
    # weights (worst case double-buffered) + double-buffered in/out blocks.
    weight_bytes = 3 * Hd * Hd * 2 + 3 * Hd * 4
    io_bytes = 4 * (G * N * Hd * 4) + 2 * (G * N * N * 4)
    vmem_limit = int(min(max(2 * weight_bytes + io_bytes + (8 << 20), 32 << 20),
                         48 << 20))

    return pl.pallas_call(
        fused_gcn3_relu_kernel,
        out_shape=jax.ShapeDtypeStruct((B_pad, N, Hd), jnp.float32),
        grid=grid,
        in_specs=[
            pl.BlockSpec((G, N, Hd), lambda i: (i, 0, 0)),   # x block
            pl.BlockSpec((G, N, N), lambda i: (i, 0, 0)),    # adj block
            const_spec((3, Hd, Hd)),                         # stacked GCN weights
            const_spec((3, 1, Hd)),                          # stacked GCN biases
        ],
        out_specs=pl.BlockSpec((G, N, Hd), lambda i: (i, 0, 0)),
        compiler_params=pltpu.CompilerParams(
            # Weight-DMA bound at these sizes: do NOT shard the batch axis
            # across v7x's two TensorCores (would duplicate the weight fetch
            # per core for trivial per-core compute).
            dimension_semantics=("arbitrary",),
            vmem_limit_bytes=vmem_limit),
    )


def gcn3_relu(x, adj, params, *, rows_target=256):
    """x: (B, N, H) f32, adj: (B, N, N) f32 -> (B, N, H) f32."""
    B, N, Hd = x.shape

    # Pad the word axis to a sublane multiple (8): dense vreg loads/stores and
    # a free (G,N,H)->(G*N,H) relayout in-kernel.  Padded adj rows/cols are
    # zero, so results for real rows are unchanged.
    N_pad = max(8, -(-N // 8) * 8)
    if N_pad != N:
        x = jnp.pad(x, ((0, 0), (0, N_pad - N), (0, 0)))
        adj = jnp.pad(adj, ((0, 0), (0, N_pad - N), (0, N_pad - N)))

    # Block the batch so each grid step feeds ~rows_target rows to the MXU.
    G = min(B, max(1, -(-rows_target // N_pad)))
    B_pad = -(-B // G) * G
    if B_pad != B:
        x = jnp.pad(x, ((0, B_pad - B), (0, 0), (0, 0)))
        adj = jnp.pad(adj, ((0, B_pad - B), (0, 0), (0, 0)))

    args = (x, adj, params["gc_w"], params["gc_b"])
    try:
        out = _build_gcn_call(B_pad, G, N_pad, Hd, True)(*args)
        out = jax.block_until_ready(out)
    except Exception:
        # pipeline_mode=pl.Buffered(1) unsupported on this jax build: fall back
        # to default double-buffering (results identical).
        out = _build_gcn_call(B_pad, G, N_pad, Hd, False)(*args)
    return out[:B, :N, :]


# -----------------------------------------------------------------------------
# Model (parameters + forward glue)
# -----------------------------------------------------------------------------
def init_params(key):
    ks = jax.random.split(key, 8)
    stdv = 1.0 / math.sqrt(H)          # GraphConvolution.reset_parameters
    fc_bound = 1.0 / math.sqrt(H)      # nn.Linear default init
    u = lambda k, shape, bound: jax.random.uniform(
        k, shape, jnp.float32, minval=-bound, maxval=bound)
    # GCN weights stacked + bf16: one DMA stream, bf16-native MXU (f32 accum).
    gc_w = jnp.stack([u(ks[0], (H, H), stdv),
                      u(ks[2], (H, H), stdv),
                      u(ks[4], (H, H), stdv)]).astype(jnp.bfloat16)   # (3, H, H)
    gc_b = jnp.stack([u(ks[1], (H,), stdv),
                      u(ks[3], (H,), stdv),
                      u(ks[5], (H,), stdv)]).reshape(3, 1, H)         # (3, 1, H)
    return {
        "gc_w": gc_w,
        "gc_b": gc_b,
        "fc_w": u(ks[6], (H, NUM_LABELS), fc_bound),   # stored (in, out)
        "fc_b": u(ks[7], (NUM_LABELS,), fc_bound),
    }


def forward(sequence_output, clause_position_np, words_L, words_num_in_sentence,
            words_num_in_clause, adj, params, pad_key):
    B, S, Hd = sequence_output.shape

    # masked_select(sequence_output, clause_position==1).view(-1, 768)
    flat = sequence_output.reshape(B * S, Hd)
    sel_idx = np.nonzero(clause_position_np.reshape(-1) == 1)[0]
    clause_token_output = flat[jnp.asarray(sel_idx)]                 # (T, H)

    # torch.split(..., words_L) + per-word max-pool
    word_outs, off = [], 0
    for l in words_L:
        word_outs.append(jnp.max(clause_token_output[off:off + l], axis=0))
        off += l
    word_output = jnp.stack(word_outs)                               # (W_total, H)

    # torch.split(..., words_num_in_sentence) + pad_word2sentence (random pad)
    max_words = max(words_num_in_sentence)
    sents, off = [], 0
    for i, l in enumerate(words_num_in_sentence):
        s = word_output[off:off + l]
        if max_words - l > 0:
            pad = jax.random.normal(jax.random.fold_in(pad_key, i),
                                    (max_words - l, Hd), jnp.float32)
            s = jnp.concatenate([s, pad], axis=0)
        sents.append(s)
        off += l
    x = jnp.stack(sents).reshape(-1, max_words, Hd)                  # (B, max_words, H)

    # relu(gc1) -> relu(gc2) -> relu(gc3), fused in one Pallas call.
    x = gcn3_relu(x, adj, params)

    # cat([x[i, :l]]) over sentences
    words_sentence_output = jnp.concatenate(
        [x[i, :l, :] for i, l in enumerate(words_num_in_sentence)], axis=0)

    # split by words_num_in_clause + per-clause max-pool
    clause_outs, off = [], 0
    for l in words_num_in_clause:
        clause_outs.append(jnp.max(words_sentence_output[off:off + l], axis=0))
        off += l
    words_clause_output = jnp.stack(clause_outs)                     # (C, H)

    # self.fc: (C, 768) @ (768, 16) -> plain XLA (16-wide lane output in a
    # kernel would force masked partial stores; pure dispatch overhead).
    logits = words_clause_output @ params["fc_w"] + params["fc_b"]
    return logits                                                    # labels=None path


# -----------------------------------------------------------------------------
if __name__ == "__main__":
    key = jax.random.PRNGKey(0)
    k_seq, k_adj, k_params, k_pad = jax.random.split(key, 4)

    # Small shapes consistent with the module's forward:
    B, S = 2, 16                       # batch of sentences, BERT seq length
    # clause token mask: sentence 0 has 8 clause tokens, sentence 1 has 6
    clause_position = np.zeros((B, S), dtype=np.int32)
    clause_position[0, 2:10] = 1
    clause_position[1, 1:7] = 1
    words_L = [2, 2, 2, 2, 3, 2, 1]    # tokens per word (sums: 8 + 6)
    words_num_in_sentence = [4, 3]     # words per sentence -> max_words = 4
    words_num_in_clause = [3, 2, 2]    # words per clause   -> 3 clauses
    N = max(words_num_in_sentence)

    # TODO(synk): stand-in for BERT last hidden state.
    sequence_output = jax.random.normal(k_seq, (B, S, H), jnp.float32)
    adj = (jax.random.uniform(k_adj, (B, N, N), jnp.float32) > 0.5).astype(jnp.float32)

    params = init_params(k_params)

    logits = forward(sequence_output, clause_position, words_L,
                     words_num_in_sentence, words_num_in_clause, adj,
                     params, k_pad)
    logits = jax.block_until_ready(logits)
    assert logits.shape == (len(words_num_in_clause), NUM_LABELS)
    assert bool(jnp.all(jnp.isfinite(logits)))
    print("KERNEL_OK")
</pallas_src>

<mosaic_0001>
module attributes {stable_mosaic.version = 11 : i64} {
  func.func @fused_gcn3_relu_kernel(%arg0: i32, %arg1: memref<2x8x768xf32, #tpu.memory_space<vmem>>, %arg2: memref<2x8x8xf32, #tpu.memory_space<vmem>>, %arg3: memref<3x768x768xbf16, #tpu.memory_space<vmem>>, %arg4: memref<3x1x768xf32, #tpu.memory_space<vmem>>, %arg5: memref<2x8x768xf32, #tpu.memory_space<vmem>>) attributes {dimension_semantics = [#tpu.dimension_semantics<arbitrary>], iteration_bounds = array<i64: 1>, scalar_prefetch = 0 : i64, scratch_operands = 0 : i64, tpu.core_type = #tpu.core_type<tc>, window_params = [{transform_indices = @transform_0, window_bounds = array<i64: 2, 8, 768>}, {transform_indices = @transform_1, window_bounds = array<i64: 2, 8, 8>}, {pipeline_mode = #tpu.pipeline_mode<synchronous>, transform_indices = @transform_2, window_bounds = array<i64: 3, 768, 768>}, {pipeline_mode = #tpu.pipeline_mode<synchronous>, transform_indices = @transform_3, window_bounds = array<i64: 3, 1, 768>}, {transform_indices = @transform_4, window_bounds = array<i64: 2, 8, 768>}]} {
    %c0 = arith.constant 0 : index
    %c0_0 = arith.constant 0 : index
    %c0_1 = arith.constant 0 : index
    %0 = vector.load %arg2[%c0, %c0_0, %c0_1] : memref<2x8x8xf32, #tpu.memory_space<vmem>>, vector<2x8x8xf32>
    %cst = arith.constant dense<0.000000e+00> : vector<2x8xf32>
    %1 = vector.multi_reduction <add>, %0, %cst [2] : vector<2x8x8xf32> to vector<2x8xf32>
    %2 = vector.shape_cast %1 : vector<2x8xf32> to vector<2x8x1xf32>
    %cst_2 = arith.constant 1.000000e+00 : f32
    %3 = vector.broadcast %cst_2 : f32 to vector<2x8x1xf32>
    %4 = arith.addf %2, %3 : vector<2x8x1xf32>
    %5 = vector.broadcast %4 : vector<2x8x1xf32> to vector<2x8x8xf32>
    %6 = arith.divf %0, %5 : vector<2x8x8xf32>
    %7 = arith.truncf %6 : vector<2x8x8xf32> to vector<2x8x8xbf16>
    %c0_3 = arith.constant 0 : index
    %c0_4 = arith.constant 0 : index
    %c0_5 = arith.constant 0 : index
    %8 = vector.load %arg1[%c0_3, %c0_4, %c0_5] : memref<2x8x768xf32, #tpu.memory_space<vmem>>, vector<2x8x768xf32>
    %c0_6 = arith.constant 0 : index
    %c0_7 = arith.constant 0 : index
    %c0_8 = arith.constant 0 : index
    %9 = vector.load %arg3[%c0_6, %c0_7, %c0_8] : memref<3x768x768xbf16, #tpu.memory_space<vmem>>, vector<1x768x768xbf16>
    %10 = vector.shape_cast %9 : vector<1x768x768xbf16> to vector<768x768xbf16>
    %c0_9 = arith.constant 0 : index
    %c0_10 = arith.constant 0 : index
    %c0_11 = arith.constant 0 : index
    %11 = vector.load %arg4[%c0_9, %c0_10, %c0_11] : memref<3x1x768xf32, #tpu.memory_space<vmem>>, vector<1x1x768xf32>
    %12 = vector.shape_cast %11 : vector<1x1x768xf32> to vector<1x768xf32>
    %13 = vector.shape_cast %8 : vector<2x8x768xf32> to vector<16x768xf32>
    %14 = arith.truncf %13 : vector<16x768xf32> to vector<16x768xbf16>
    %cst_12 = arith.constant dense<0.000000e+00> : vector<16x768xf32>
    %15 = tpu.matmul %14, %10, %cst_12 {dimension_numbers = #tpu.dot_dimension_numbers<[1], [0], [0], [1], [0, 0, 1, 1], [], []>} : vector<16x768xbf16>, vector<768x768xbf16>, vector<16x768xf32> -> vector<16x768xf32>
    %16 = vector.shape_cast %15 : vector<16x768xf32> to vector<2x8x768xf32>
    %17 = arith.truncf %16 : vector<2x8x768xf32> to vector<2x8x768xbf16>
    "tpu.trace_start"() <{level = 10 : i32, message = "gij,gjh->gih"}> : () -> ()
    %cst_13 = arith.constant dense<0.000000e+00> : vector<2x8x768xf32>
    %18 = tpu.matmul %7, %17, %cst_13 {dimension_numbers = #tpu.dot_dimension_numbers<[2], [1], [1], [2], [0, 0, 0, 1, 1, 2], [0], [0]>} : vector<2x8x8xbf16>, vector<2x8x768xbf16>, vector<2x8x768xf32> -> vector<2x8x768xf32>
    "tpu.trace_stop"() : () -> ()
    %19 = vector.shape_cast %12 : vector<1x768xf32> to vector<1x1x768xf32>
    %20 = vector.broadcast %19 : vector<1x1x768xf32> to vector<2x8x768xf32>
    %21 = arith.addf %18, %20 : vector<2x8x768xf32>
    %cst_14 = arith.constant 0.000000e+00 : f32
    %22 = vector.broadcast %cst_14 : f32 to vector<2x8x768xf32>
    %23 = arith.maximumf %21, %22 : vector<2x8x768xf32>
    %c1 = arith.constant 1 : index
    %c0_15 = arith.constant 0 : index
    %c0_16 = arith.constant 0 : index
    %24 = vector.load %arg3[%c1, %c0_15, %c0_16] : memref<3x768x768xbf16, #tpu.memory_space<vmem>>, vector<1x768x768xbf16>
    %25 = vector.shape_cast %24 : vector<1x768x768xbf16> to vector<768x768xbf16>
    %c1_17 = arith.constant 1 : index
    %c0_18 = arith.constant 0 : index
    %c0_19 = arith.constant 0 : index
    %26 = vector.load %arg4[%c1_17, %c0_18, %c0_19] : memref<3x1x768xf32, #tpu.memory_space<vmem>>, vector<1x1x768xf32>
    %27 = vector.shape_cast %26 : vector<1x1x768xf32> to vector<1x768xf32>
    %28 = vector.shape_cast %23 : vector<2x8x768xf32> to vector<16x768xf32>
    %29 = arith.truncf %28 : vector<16x768xf32> to vector<16x768xbf16>
    %cst_20 = arith.constant dense<0.000000e+00> : vector<16x768xf32>
    %30 = tpu.matmul %29, %25, %cst_20 {dimension_numbers = #tpu.dot_dimension_numbers<[1], [0], [0], [1], [0, 0, 1, 1], [], []>} : vector<16x768xbf16>, vector<768x768xbf16>, vector<16x768xf32> -> vector<16x768xf32>
    %31 = vector.shape_cast %30 : vector<16x768xf32> to vector<2x8x768xf32>
    %32 = arith.truncf %31 : vector<2x8x768xf32> to vector<2x8x768xbf16>
    "tpu.trace_start"() <{level = 10 : i32, message = "gij,gjh->gih"}> : () -> ()
    %cst_21 = arith.constant dense<0.000000e+00> : vector<2x8x768xf32>
    %33 = tpu.matmul %7, %32, %cst_21 {dimension_numbers = #tpu.dot_dimension_numbers<[2], [1], [1], [2], [0, 0, 0, 1, 1, 2], [0], [0]>} : vector<2x8x8xbf16>, vector<2x8x768xbf16>, vector<2x8x768xf32> -> vector<2x8x768xf32>
    "tpu.trace_stop"() : () -> ()
    %34 = vector.shape_cast %27 : vector<1x768xf32> to vector<1x1x768xf32>
    %35 = vector.broadcast %34 : vector<1x1x768xf32> to vector<2x8x768xf32>
    %36 = arith.addf %33, %35 : vector<2x8x768xf32>
    %cst_22 = arith.constant 0.000000e+00 : f32
    %37 = vector.broadcast %cst_22 : f32 to vector<2x8x768xf32>
    %38 = arith.maximumf %36, %37 : vector<2x8x768xf32>
    %c2 = arith.constant 2 : index
    %c0_23 = arith.constant 0 : index
    %c0_24 = arith.constant 0 : index
    %39 = vector.load %arg3[%c2, %c0_23, %c0_24] : memref<3x768x768xbf16, #tpu.memory_space<vmem>>, vector<1x768x768xbf16>
    %40 = vector.shape_cast %39 : vector<1x768x768xbf16> to vector<768x768xbf16>
    %c2_25 = arith.constant 2 : index
    %c0_26 = arith.constant 0 : index
    %c0_27 = arith.constant 0 : index
    %41 = vector.load %arg4[%c2_25, %c0_26, %c0_27] : memref<3x1x768xf32, #tpu.memory_space<vmem>>, vector<1x1x768xf32>
    %42 = vector.shape_cast %41 : vector<1x1x768xf32> to vector<1x768xf32>
    %43 = vector.shape_cast %38 : vector<2x8x768xf32> to vector<16x768xf32>
    %44 = arith.truncf %43 : vector<16x768xf32> to vector<16x768xbf16>
    %cst_28 = arith.constant dense<0.000000e+00> : vector<16x768xf32>
    %45 = tpu.matmul %44, %40, %cst_28 {dimension_numbers = #tpu.dot_dimension_numbers<[1], [0], [0], [1], [0, 0, 1, 1], [], []>} : vector<16x768xbf16>, vector<768x768xbf16>, vector<16x768xf32> -> vector<16x768xf32>
    %46 = vector.shape_cast %45 : vector<16x768xf32> to vector<2x8x768xf32>
    %47 = arith.truncf %46 : vector<2x8x768xf32> to vector<2x8x768xbf16>
    "tpu.trace_start"() <{level = 10 : i32, message = "gij,gjh->gih"}> : () -> ()
    %cst_29 = arith.constant dense<0.000000e+00> : vector<2x8x768xf32>
    %48 = tpu.matmul %7, %47, %cst_29 {dimension_numbers = #tpu.dot_dimension_numbers<[2], [1], [1], [2], [0, 0, 0, 1, 1, 2], [0], [0]>} : vector<2x8x8xbf16>, vector<2x8x768xbf16>, vector<2x8x768xf32> -> vector<2x8x768xf32>
    "tpu.trace_stop"() : () -> ()
    %49 = vector.shape_cast %42 : vector<1x768xf32> to vector<1x1x768xf32>
    %50 = vector.broadcast %49 : vector<1x1x768xf32> to vector<2x8x768xf32>
    %51 = arith.addf %48, %50 : vector<2x8x768xf32>
    %cst_30 = arith.constant 0.000000e+00 : f32
    %52 = vector.broadcast %cst_30 : f32 to vector<2x8x768xf32>
    %53 = arith.maximumf %51, %52 : vector<2x8x768xf32>
    %c0_31 = arith.constant 0 : index
    %c0_32 = arith.constant 0 : index
    %c0_33 = arith.constant 0 : index
    %54 = vector.load %arg5[%c0_31, %c0_32, %c0_33] : memref<2x8x768xf32, #tpu.memory_space<vmem>>, vector<2x8x768xf32>
    tpu.vector_store %arg5[%c0_31, %c0_32, %c0_33], %53 {strides = array<i32>} : memref<2x8x768xf32, #tpu.memory_space<vmem>>, vector<2x8x768xf32>,
    return
  }
  func.func @transform_0(%arg0: i32) -> (i32, i32, i32) {
    %c0_i32 = arith.constant 0 : i32
    %c0_i32_0 = arith.constant 0 : i32
    %c0_i32_1 = arith.constant 0 : i32
    return %arg0, %c0_i32, %c0_i32_0 : i32, i32, i32
  }
  func.func @transform_1(%arg0: i32) -> (i32, i32, i32) {
    %c0_i32 = arith.constant 0 : i32
    %c0_i32_0 = arith.constant 0 : i32
    %c0_i32_1 = arith.constant 0 : i32
    return %arg0, %c0_i32, %c0_i32_0 : i32, i32, i32
  }
  func.func @transform_2(%arg0: i32) -> (i32, i32, i32) {
    %c0_i32 = arith.constant 0 : i32
    %c0_i32_0 = arith.constant 0 : i32
    %c0_i32_1 = arith.constant 0 : i32
    %c0_i32_2 = arith.constant 0 : i32
    return %c0_i32, %c0_i32_0, %c0_i32_1 : i32, i32, i32
  }
  func.func @transform_3(%arg0: i32) -> (i32, i32, i32) {
    %c0_i32 = arith.constant 0 : i32
    %c0_i32_0 = arith.constant 0 : i32
    %c0_i32_1 = arith.constant 0 : i32
    %c0_i32_2 = arith.constant 0 : i32
    return %c0_i32, %c0_i32_0, %c0_i32_1 : i32, i32, i32
  }
  func.func @transform_4(%arg0: i32) -> (i32, i32, i32) {
    %c0_i32 = arith.constant 0 : i32
    %c0_i32_0 = arith.constant 0 : i32
    %c0_i32_1 = arith.constant 0 : i32
    return %arg0, %c0_i32, %c0_i32_0 : i32, i32, i32
  }
}

module attributes {stable_mosaic.version = 11 : i64} {
  func.func @fused_gcn3_relu_kernel(%arg0: i32, %arg1: memref<2x8x768xf32, #tpu.memory_space<vmem>>, %arg2: memref<2x8x8xf32, #tpu.memory_space<vmem>>, %arg3: memref<3x768x768xbf16, #tpu.memory_space<vmem>>, %arg4: memref<3x1x768xf32, #tpu.memory_space<vmem>>, %arg5: memref<2x8x768xf32, #tpu.memory_space<vmem>>) attributes {dimension_semantics = [#tpu.dimension_semantics<arbitrary>], iteration_bounds = array<i64: 1>, scalar_prefetch = 0 : i64, scratch_operands = 0 : i64, tpu.core_type = #tpu.core_type<tc>, window_params = [{transform_indices = @transform_0, window_bounds = array<i64: 2, 8, 768>}, {transform_indices = @transform_1, window_bounds = array<i64: 2, 8, 8>}, {pipeline_mode = #tpu.pipeline_mode<synchronous>, transform_indices = @transform_2, window_bounds = array<i64: 3, 768, 768>}, {pipeline_mode = #tpu.pipeline_mode<synchronous>, transform_indices = @transform_3, window_bounds = array<i64: 3, 1, 768>}, {transform_indices = @transform_4, window_bounds = array<i64: 2, 8, 768>}]} {
    %c0 = arith.constant 0 : index
    %c0_0 = arith.constant 0 : index
    %c0_1 = arith.constant 0 : index
    %0 = vector.load %arg2[%c0, %c0_0, %c0_1] : memref<2x8x8xf32, #tpu.memory_space<vmem>>, vector<2x8x8xf32>
    %cst = arith.constant dense<0.000000e+00> : vector<2x8xf32>
    %1 = vector.multi_reduction <add>, %0, %cst [2] : vector<2x8x8xf32> to vector<2x8xf32>
    %2 = vector.shape_cast %1 : vector<2x8xf32> to vector<2x8x1xf32>
    %cst_2 = arith.constant 1.000000e+00 : f32
    %3 = vector.broadcast %cst_2 : f32 to vector<2x8x1xf32>
    %4 = arith.addf %2, %3 : vector<2x8x1xf32>
    %5 = vector.broadcast %4 : vector<2x8x1xf32> to vector<2x8x8xf32>
    %6 = arith.divf %0, %5 : vector<2x8x8xf32>
    %7 = arith.truncf %6 : vector<2x8x8xf32> to vector<2x8x8xbf16>
    %c0_3 = arith.constant 0 : index
    %c0_4 = arith.constant 0 : index
    %c0_5 = arith.constant 0 : index
    %8 = vector.load %arg1[%c0_3, %c0_4, %c0_5] : memref<2x8x768xf32, #tpu.memory_space<vmem>>, vector<2x8x768xf32>
    %c0_6 = arith.constant 0 : index
    %c0_7 = arith.constant 0 : index
    %c0_8 = arith.constant 0 : index
    %9 = vector.load %arg3[%c0_6, %c0_7, %c0_8] : memref<3x768x768xbf16, #tpu.memory_space<vmem>>, vector<1x768x768xbf16>
    %10 = vector.shape_cast %9 : vector<1x768x768xbf16> to vector<768x768xbf16>
    %c0_9 = arith.constant 0 : index
    %c0_10 = arith.constant 0 : index
    %c0_11 = arith.constant 0 : index
    %11 = vector.load %arg4[%c0_9, %c0_10, %c0_11] : memref<3x1x768xf32, #tpu.memory_space<vmem>>, vector<1x1x768xf32>
    %12 = vector.shape_cast %11 : vector<1x1x768xf32> to vector<1x768xf32>
    %13 = vector.shape_cast %8 : vector<2x8x768xf32> to vector<16x768xf32>
    %14 = arith.truncf %13 : vector<16x768xf32> to vector<16x768xbf16>
    %cst_12 = arith.constant dense<0.000000e+00> : vector<16x768xf32>
    %15 = tpu.matmul %14, %10, %cst_12 {dimension_numbers = #tpu.dot_dimension_numbers<[1], [0], [0], [1], [0, 0, 1, 1], [], []>} : vector<16x768xbf16>, vector<768x768xbf16>, vector<16x768xf32> -> vector<16x768xf32>
    %16 = vector.shape_cast %15 : vector<16x768xf32> to vector<2x8x768xf32>
    %17 = arith.truncf %16 : vector<2x8x768xf32> to vector<2x8x768xbf16>
    "tpu.trace_start"() <{level = 10 : i32, message = "gij,gjh->gih"}> : () -> ()
    %cst_13 = arith.constant dense<0.000000e+00> : vector<2x8x768xf32>
    %18 = tpu.matmul %7, %17, %cst_13 {dimension_numbers = #tpu.dot_dimension_numbers<[2], [1], [1], [2], [0, 0, 0, 1, 1, 2], [0], [0]>} : vector<2x8x8xbf16>, vector<2x8x768xbf16>, vector<2x8x768xf32> -> vector<2x8x768xf32>
    "tpu.trace_stop"() : () -> ()
    %19 = vector.shape_cast %12 : vector<1x768xf32> to vector<1x1x768xf32>
    %20 = vector.broadcast %19 : vector<1x1x768xf32> to vector<2x8x768xf32>
    %21 = arith.addf %18, %20 : vector<2x8x768xf32>
    %cst_14 = arith.constant 0.000000e+00 : f32
    %22 = vector.broadcast %cst_14 : f32 to vector<2x8x768xf32>
    %23 = arith.maximumf %21, %22 : vector<2x8x768xf32>
    %c1 = arith.constant 1 : index
    %c0_15 = arith.constant 0 : index
    %c0_16 = arith.constant 0 : index
    %24 = vector.load %arg3[%c1, %c0_15, %c0_16] : memref<3x768x768xbf16, #tpu.memory_space<vmem>>, vector<1x768x768xbf16>
    %25 = vector.shape_cast %24 : vector<1x768x768xbf16> to vector<768x768xbf16>
    %c1_17 = arith.constant 1 : index
    %c0_18 = arith.constant 0 : index
    %c0_19 = arith.constant 0 : index
    %26 = vector.load %arg4[%c1_17, %c0_18, %c0_19] : memref<3x1x768xf32, #tpu.memory_space<vmem>>, vector<1x1x768xf32>
    %27 = vector.shape_cast %26 : vector<1x1x768xf32> to vector<1x768xf32>
    %28 = vector.shape_cast %23 : vector<2x8x768xf32> to vector<16x768xf32>
    %29 = arith.truncf %28 : vector<16x768xf32> to vector<16x768xbf16>
    %cst_20 = arith.constant dense<0.000000e+00> : vector<16x768xf32>
    %30 = tpu.matmul %29, %25, %cst_20 {dimension_numbers = #tpu.dot_dimension_numbers<[1], [0], [0], [1], [0, 0, 1, 1], [], []>} : vector<16x768xbf16>, vector<768x768xbf16>, vector<16x768xf32> -> vector<16x768xf32>
    %31 = vector.shape_cast %30 : vector<16x768xf32> to vector<2x8x768xf32>
    %32 = arith.truncf %31 : vector<2x8x768xf32> to vector<2x8x768xbf16>
    "tpu.trace_start"() <{level = 10 : i32, message = "gij,gjh->gih"}> : () -> ()
    %cst_21 = arith.constant dense<0.000000e+00> : vector<2x8x768xf32>
    %33 = tpu.matmul %7, %32, %cst_21 {dimension_numbers = #tpu.dot_dimension_numbers<[2], [1], [1], [2], [0, 0, 0, 1, 1, 2], [0], [0]>} : vector<2x8x8xbf16>, vector<2x8x768xbf16>, vector<2x8x768xf32> -> vector<2x8x768xf32>
    "tpu.trace_stop"() : () -> ()
    %34 = vector.shape_cast %27 : vector<1x768xf32> to vector<1x1x768xf32>
    %35 = vector.broadcast %34 : vector<1x1x768xf32> to vector<2x8x768xf32>
    %36 = arith.addf %33, %35 : vector<2x8x768xf32>
    %cst_22 = arith.constant 0.000000e+00 : f32
    %37 = vector.broadcast %cst_22 : f32 to vector<2x8x768xf32>
    %38 = arith.maximumf %36, %37 : vector<2x8x768xf32>
    %c2 = arith.constant 2 : index
    %c0_23 = arith.constant 0 : index
    %c0_24 = arith.constant 0 : index
    %39 = vector.load %arg3[%c2, %c0_23, %c0_24] : memref<3x768x768xbf16, #tpu.memory_space<vmem>>, vector<1x768x768xbf16>
    %40 = vector.shape_cast %39 : vector<1x768x768xbf16> to vector<768x768xbf16>
    %c2_25 = arith.constant 2 : index
    %c0_26 = arith.constant 0 : index
    %c0_27 = arith.constant 0 : index
    %41 = vector.load %arg4[%c2_25, %c0_26, %c0_27] : memref<3x1x768xf32, #tpu.memory_space<vmem>>, vector<1x1x768xf32>
    %42 = vector.shape_cast %41 : vector<1x1x768xf32> to vector<1x768xf32>
    %43 = vector.shape_cast %38 : vector<2x8x768xf32> to vector<16x768xf32>
    %44 = arith.truncf %43 : vector<16x768xf32> to vector<16x768xbf16>
    %cst_28 = arith.constant dense<0.000000e+00> : vector<16x768xf32>
    %45 = tpu.matmul %44, %40, %cst_28 {dimension_numbers = #tpu.dot_dimension_numbers<[1], [0], [0], [1], [0, 0, 1, 1], [], []>} : vector<16x768xbf16>, vector<768x768xbf16>, vector<16x768xf32> -> vector<16x768xf32>
    %46 = vector.shape_cast %45 : vector<16x768xf32> to vector<2x8x768xf32>
    %47 = arith.truncf %46 : vector<2x8x768xf32> to vector<2x8x768xbf16>
    "tpu.trace_start"() <{level = 10 : i32, message = "gij,gjh->gih"}> : () -> ()
    %cst_29 = arith.constant dense<0.000000e+00> : vector<2x8x768xf32>
    %48 = tpu.matmul %7, %47, %cst_29 {dimension_numbers = #tpu.dot_dimension_numbers<[2], [1], [1], [2], [0, 0, 0, 1, 1, 2], [0], [0]>} : vector<2x8x8xbf16>, vector<2x8x768xbf16>, vector<2x8x768xf32> -> vector<2x8x768xf32>
    "tpu.trace_stop"() : () -> ()
    %49 = vector.shape_cast %42 : vector<1x768xf32> to vector<1x1x768xf32>
    %50 = vector.broadcast %49 : vector<1x1x768xf32> to vector<2x8x768xf32>
    %51 = arith.addf %48, %50 : vector<2x8x768xf32>
    %cst_30 = arith.constant 0.000000e+00 : f32
    %52 = vector.broadcast %cst_30 : f32 to vector<2x8x768xf32>
    %53 = arith.maximumf %51, %52 : vector<2x8x768xf32>
    %c0_31 = arith.constant 0 : index
    %c0_32 = arith.constant 0 : index
    %c0_33 = arith.constant 0 : index
    %54 = vector.load %arg5[%c0_31, %c0_32, %c0_33] : memref<2x8x768xf32, #tpu.memory_space<vmem>>, vector<2x8x768xf32>
    tpu.vector_store %arg5[%c0_31, %c0_32, %c0_33], %53 {strides = array<i32>} : memref<2x8x768xf32, #tpu.memory_space<vmem>>, vector<2x8x768xf32>,
    return
  }
  func.func @transform_0(%arg0: i32) -> (i32, i32, i32) {
    %c0_i32 = arith.constant 0 : i32
    %c0_i32_0 = arith.constant 0 : i32
    %c0_i32_1 = arith.constant 0 : i32
    return %arg0, %c0_i32, %c0_i32_0 : i32, i32, i32
  }
  func.func @transform_1(%arg0: i32) -> (i32, i32, i32) {
    %c0_i32 = arith.constant 0 : i32
    %c0_i32_0 = arith.constant 0 : i32
    %c0_i32_1 = arith.constant 0 : i32
    return %arg0, %c0_i32, %c0_i32_0 : i32, i32, i32
  }
  func.func @transform_2(%arg0: i32) -> (i32, i32, i32) {
    %c0_i32 = arith.constant 0 : i32
    %c0_i32_0 = arith.constant 0 : i32
    %c0_i32_1 = arith.constant 0 : i32
    %c0_i32_2 = arith.constant 0 : i32
    return %c0_i32, %c0_i32_0, %c0_i32_1 : i32, i32, i32
  }
  func.func @transform_3(%arg0: i32) -> (i32, i32, i32) {
    %c0_i32 = arith.constant 0 : i32
    %c0_i32_0 = arith.constant 0 : i32
    %c0_i32_1 = arith.constant 0 : i32
    %c0_i32_2 = arith.constant 0 : i32
    return %c0_i32, %c0_i32_0, %c0_i32_1 : i32, i32, i32
  }
  func.func @transform_4(%arg0: i32) -> (i32, i32, i32) {
    %c0_i32 = arith.constant 0 : i32
    %c0_i32_0 = arith.constant 0 : i32
    %c0_i32_1 = arith.constant 0 : i32
    return %arg0, %c0_i32, %c0_i32_0 : i32, i32, i32
  }
}

</mosaic_0001>

<bundles_post_ra>
// kernel: tpu_custom_call.1
= control target key start
LH: loop header
LB: loop body
LE: loop exit
PB: predicated region body
PF: predicated region fallthrough
CT: control target
= control target key end

     0   :  { %9 = vsyncpa [#allocation3], 0  ;;  %s10294_s0 = inlined_call_operand.hbm [shape: f32[2,8,768], index: 0, kind: input, shape index: {}]   ;;  %s10295_s1 = inlined_call_operand.hbm [shape: f32[2,8,8], index: 1, kind: input, shape index: {}]   ;;  %s10296_s2 = inlined_call_operand.hbm [shape: bf16[3,768,768], index: 2, kind: input, shape index: {}]   ;;  %s10297_s3 = inlined_call_operand.hbm [shape: f32[3,1,768], index: 3, kind: input, shape index: {}]   ;;  %s10298_s4 = inlined_call_operand.hbm [shape: f32[2,8,768], index: 4, kind: output, shape index: {}]  }
   0x1   :  { %10 = vsyncpa [#allocation6], 0 }
   0x2   :  { %11 = vsyncpa [#allocation9], 0 }
   0x3   :  { %12 = vsyncpa [#allocation4], 0  ;;  %s9928_s15 = smov [#allocation5]   ;;  %s9810_s19 = scalar_lea.hbm %s10295_s1, 256 }
   0x4   :  { %s30_s16 = sshll.u32 %s9928_s15, 4  ;;  %p9811_p0 = scmp.ne.s32.totalorder %s10295_s1, %s9810_s19  ;;  %s31_s16 = int_to_ptr.vmem [resolvable:$true] %s30_s16 }
   0x5   :  { %p9814_p1 = scmp.lt.u32.totalorder %s9810_s19, %s10295_s1 }
   0x7   :  { %p9816_p2 = pnand %p9814_p1, %p9811_p0 }
   0x9   :  { %9819 = shalt.err (!%p9816_p2)
}
   0xa   :  { %s9820_s24 = scalar_lea.vmem %s31_s16, 256  ;;  %p9825_p4 = scmp.lt.s32.totalorder %s31_s16, %s31_s16 }
   0xb   :  { %p9821_p3 = scmp.ne.s32.totalorder %s31_s16, %s9820_s24  ;;  %p9826_p5 = scmp.lt.s32.totalorder %s9820_s24, %s9820_s24 }
   0xd   :  { %p9827_p6 = por %p9826_p5, %p9825_p4 }
   0xf   :  { %p9828_p7 = pnand %p9827_p6, %p9821_p3 }
  0x11   :  { %9831 = shalt.err (!%p9828_p7)
}
  0x12   :  { %s9929_s25 = smov 128   ;;  %s9930_s26 = smov 8  }
  0x13   :  { %36 = dma.hbm_to_vmem [thread:$0]  %s10295_s1, 256, %s31_s16, [#allocation6], %s9929_s25, %s9929_s25, %s9930_s26  }
  0x14   :  { %s9931_s29 = smov [#allocation2]   ;;  %s9832_s7 = scalar_lea.hbm %s10294_s0, 1536 }
  0x15   :  { %s18_s30 = sshll.u32 %s9931_s29, 4  ;;  %p9833_p8 = scmp.ne.s32.totalorder %s10294_s0, %s9832_s7  ;;  %s19_s30 = int_to_ptr.vmem [resolvable:$true] %s18_s30 }
  0x16   :  { %p9836_p9 = scmp.lt.u32.totalorder %s9832_s7, %s10294_s0 }
  0x18   :  { %p9838_p10 = pnand %p9836_p9, %p9833_p8 }
  0x1a   :  { %9841 = shalt.err (!%p9838_p10)
}
  0x1b   :  { %s9842_s12 = scalar_lea.vmem %s19_s30, 1536  ;;  %p9847_p12 = scmp.lt.s32.totalorder %s19_s30, %s19_s30 }
  0x1c   :  { %p9843_p11 = scmp.ne.s32.totalorder %s19_s30, %s9842_s12  ;;  %p9848_p13 = scmp.lt.s32.totalorder %s9842_s12, %s9842_s12 }
  0x1e   :  { %p9849_p0 = por %p9848_p13, %p9847_p12 }
  0x20   :  { %p9850_p1 = pnand %p9849_p0, %p9843_p11 }
  0x22   :  { %9853 = shalt.err (!%p9850_p1)
}
  0x23   :  { %s9932_s1 = smov 768   ;;  %s9933_s13 = smov 48  }
  0x24   :  { %24 = dma.hbm_to_vmem [thread:$0]  %s10294_s0, 1536, %s19_s30, [#allocation3], %s9932_s1, %s9932_s1, %s9933_s13  }
  0x25   :  { %s9934_s16 = smov [#allocation7]   ;;  %s9854_s20 = scalar_lea.hbm %s10296_s2, 110592 }
  0x26   :  { %s42_s17 = sshll.u32 %s9934_s16, 4  ;;  %p9855_p2 = scmp.ne.s32.totalorder %s10296_s2, %s9854_s20  ;;  %s43_s17 = int_to_ptr.vmem [resolvable:$true] %s42_s17 }
  0x27   :  { %p9858_p3 = scmp.lt.u32.totalorder %s9854_s20, %s10296_s2 }
  0x29   :  { %p9860_p4 = pnand %p9858_p3, %p9855_p2 }
  0x2b   :  { %9863 = shalt.err (!%p9860_p4)
}
  0x2c   :  { %s9864_s25 = scalar_lea.vmem %s43_s17, 110592  ;;  %p9869_p6 = scmp.lt.s32.totalorder %s43_s17, %s43_s17 }
  0x2d   :  { %p9865_p5 = scmp.ne.s32.totalorder %s43_s17, %s9864_s25  ;;  %p9870_p7 = scmp.lt.s32.totalorder %s9864_s25, %s9864_s25 }
  0x2f   :  { %p9871_p8 = por %p9870_p7, %p9869_p6 }
  0x31   :  { %p9872_p9 = pnand %p9871_p8, %p9865_p5 }
  0x33   :  { %9875 = shalt.err (!%p9872_p9)
}
  0x34   :  { %s9935_s0 = smov 384   ;;  %s9936_s26 = smov 24  }
  0x35   :  { %48 = dma.hbm_to_vmem [thread:$0]  %s10296_s2, 110592, %s43_s17, [#allocation6], %s9935_s0, %s9935_s0, %s9936_s26  }
  0x36   :  { %s9937_s29 = smov [#allocation8]   ;;  %s9876_s7 = scalar_lea.hbm %s10297_s3, 288 }
  0x37   :  { %s54_s30 = sshll.u32 %s9937_s29, 4  ;;  %p9877_p10 = scmp.ne.s32.totalorder %s10297_s3, %s9876_s7  ;;  %s55_s30 = int_to_ptr.vmem [resolvable:$true] %s54_s30 }
  0x38   :  { %p9880_p11 = scmp.lt.u32.totalorder %s9876_s7, %s10297_s3 }
  0x3a   :  { %p9882_p12 = pnand %p9880_p11, %p9877_p10 }
  0x3c   :  { %9885 = shalt.err (!%p9882_p12)
}
  0x3d   :  { %s9886_s12 = scalar_lea.vmem %s55_s30, 288  ;;  %p9891_p0 = scmp.lt.s32.totalorder %s55_s30, %s55_s30 }
  0x3e   :  { %p9887_p13 = scmp.ne.s32.totalorder %s55_s30, %s9886_s12  ;;  %p9892_p1 = scmp.lt.s32.totalorder %s9886_s12, %s9886_s12 }
  0x40   :  { %p9893_p2 = por %p9892_p1, %p9891_p0 }
  0x42   :  { %p9894_p3 = pnand %p9893_p2, %p9887_p13 }
  0x44   :  { %9897 = shalt.err (!%p9894_p3)
}
  0x45   :  { %s9938_s2 = smov 96   ;;  %s9939_s14 = smov 6  }
  0x46   :  { %60 = dma.hbm_to_vmem [thread:$0]  %s10297_s3, 288, %s55_s30, [#allocation9], %s9938_s2, %s9938_s2, %s9939_s14  }
  0x47   :  { %9920 = dma.done.wait [#allocation3], 1536  }
  0x48   :  { %9921 = vsyncadd [#allocation3], 4294965760 }
  0x49   :  { %9922 = dma.done.wait [#allocation6], 110848  }
  0x4a   :  { %9923 = vsyncadd [#allocation6], 4294856448 }
  0x4b   :  { %9924 = dma.done.wait [#allocation9], 288  }
  0x4c   :  { %9925 = vsyncadd [#allocation9], 4294967008  ;;  %v8508_v0 = vld [vmem:[#allocation7 + $0x4] ss:$24 sps:$4 sm:$0xff]   ;;  %v8512_v2 = vld [vmem:[#allocation7] ss:$24 sps:$4 sm:$0xff]  }
  0x4d   :  { %v8510_v1 = vld [vmem:[#allocation7 + $0x304] ss:$24 sps:$4 sm:$0xff]   ;;  %1838 = vmatprep.subr.bf16.mxu1 %v8508_v0  ;;  %v8513_v3 = vld [vmem:[#allocation7 + $0x300] ss:$24 sps:$4 sm:$0xff]   ;;  %v8514_v4 = vld [vmem:[#allocation7 + $0x34] ss:$24 sps:$4 sm:$0xff]  }
  0x4e   :  { %1881 = vmatprep.subr.bf16.mxu0 %v8510_v1  ;;  %1839 = vmatpush1.bf16.msra.mxu1 %v8512_v2  ;;  %v8516_v5 = vld [vmem:[#allocation7 + $0x334] ss:$24 sps:$4 sm:$0xff]   ;;  %v8518_v6 = vld [vmem:[#allocation7 + $0x30] ss:$24 sps:$4 sm:$0xff]   ;;  %v8520_v8 = vld [vmem:[#allocation7 + $0x64] ss:$24 sps:$4 sm:$0xff]  }
  0x4f   :  { %1882 = vmatpush1.bf16.msra.mxu0 %v8513_v3  ;;  %1840 = vmatprep.subr.bf16.mxu1 %v8514_v4  ;;  %v8519_v7 = vld [vmem:[#allocation7 + $0x330] ss:$24 sps:$4 sm:$0xff]   ;;  %v8522_v9 = vld [vmem:[#allocation7 + $0x364] ss:$24 sps:$4 sm:$0xff]   ;;  %v8524_v10 = vld [vmem:[#allocation7 + $0x60] ss:$24 sps:$4 sm:$0xff]  }
  0x50   :  { %1883 = vmatprep.subr.bf16.mxu0 %v8516_v5  ;;  %v8525_v11 = vld [vmem:[#allocation7 + $0x360] ss:$24 sps:$4 sm:$0xff]   ;;  %v8526_v12 = vld [vmem:[#allocation7 + $0x94] ss:$24 sps:$4 sm:$0xff]   ;;  %v8530_v14 = vld [vmem:[#allocation7 + $0x90] ss:$24 sps:$4 sm:$0xff]  }
  0x51   :  { %v8528_v13 = vld [vmem:[#allocation7 + $0x394] ss:$24 sps:$4 sm:$0xff]   ;;  %v8531_v15 = vld [vmem:[#allocation7 + $0x390] ss:$24 sps:$4 sm:$0xff]   ;;  %v8532_v16 = vld [vmem:[#allocation7 + $0xc4] ss:$24 sps:$4 sm:$0xff]  }
  0x52   :  { %1841 = vmatpush1.bf16.msra.mxu1 %v8518_v6  ;;  %v8534_v17 = vld [vmem:[#allocation7 + $0x3c4] ss:$24 sps:$4 sm:$0xff]   ;;  %v8536_v18 = vld [vmem:[#allocation7 + $0xc0] ss:$24 sps:$4 sm:$0xff]   ;;  %v8538_v20 = vld [vmem:[#allocation7 + $0xf4] ss:$24 sps:$4 sm:$0xff]  }
  0x53   :  { %1884 = vmatpush1.bf16.msra.mxu0 %v8519_v7  ;;  %1842 = vmatprep.subr.bf16.mxu1 %v8520_v8  ;;  %v8537_v19 = vld [vmem:[#allocation7 + $0x3c0] ss:$24 sps:$4 sm:$0xff]   ;;  %v8540_v21 = vld [vmem:[#allocation7 + $0x3f4] ss:$24 sps:$4 sm:$0xff]   ;;  %v8542_v22 = vld [vmem:[#allocation7 + $0xf0] ss:$24 sps:$4 sm:$0xff]  }
  0x54   :  { %1885 = vmatprep.subr.bf16.mxu0 %v8522_v9  ;;  %v8543_v23 = vld [vmem:[#allocation7 + $0x3f0] ss:$24 sps:$4 sm:$0xff]   ;;  %v8544_v24 = vld [vmem:[#allocation7 + $0x124] ss:$24 sps:$4 sm:$0xff]   ;;  %v8548_v26 = vld [vmem:[#allocation7 + $0x120] ss:$24 sps:$4 sm:$0xff]  }
  0x55   :  { %v8546_v25 = vld [vmem:[#allocation7 + $0x424] ss:$24 sps:$4 sm:$0xff]   ;;  %v8549_v27 = vld [vmem:[#allocation7 + $0x420] ss:$24 sps:$4 sm:$0xff]   ;;  %v8550_v28 = vld [vmem:[#allocation7 + $0x154] ss:$24 sps:$4 sm:$0xff]  }
  0x56   :  { %1843 = vmatpush1.bf16.msra.mxu1 %v8524_v10  ;;  %v8552_v29 = vld [vmem:[#allocation7 + $0x454] ss:$24 sps:$4 sm:$0xff]   ;;  %v8554_v30 = vld [vmem:[#allocation7 + $0x150] ss:$24 sps:$4 sm:$0xff]   ;;  %v8556_v32 = vld [vmem:[#allocation7 + $0x184] ss:$24 sps:$4 sm:$0xff]  }
  0x57   :  { %1886 = vmatpush1.bf16.msra.mxu0 %v8525_v11  ;;  %1844 = vmatprep.subr.bf16.mxu1 %v8526_v12  ;;  %v8555_v31 = vld [vmem:[#allocation7 + $0x450] ss:$24 sps:$4 sm:$0xff]   ;;  %v8558_v33 = vld [vmem:[#allocation7 + $0x484] ss:$24 sps:$4 sm:$0xff]   ;;  %v8560_v34 = vld [vmem:[#allocation7 + $0x180] ss:$24 sps:$4 sm:$0xff]  }
  0x58   :  { %1887 = vmatprep.subr.bf16.mxu0 %v8528_v13  ;;  %v8561_v35 = vld [vmem:[#allocation7 + $0x480] ss:$24 sps:$4 sm:$0xff]   ;;  %v8562_v36 = vld [vmem:[#allocation7 + $0x1b4] ss:$24 sps:$4 sm:$0xff]   ;;  %v8566_v38 = vld [vmem:[#allocation7 + $0x1b0] ss:$24 sps:$4 sm:$0xff]  }
  0x59   :  { %v8564_v37 = vld [vmem:[#allocation7 + $0x4b4] ss:$24 sps:$4 sm:$0xff]   ;;  %v8567_v39 = vld [vmem:[#allocation7 + $0x4b0] ss:$24 sps:$4 sm:$0xff]   ;;  %v8568_v40 = vld [vmem:[#allocation7 + $0x1e4] ss:$24 sps:$4 sm:$0xff]  }
  0x5a   :  { %1845 = vmatpush1.bf16.msra.mxu1 %v8530_v14  ;;  %v8570_v41 = vld [vmem:[#allocation7 + $0x4e4] ss:$24 sps:$4 sm:$0xff]   ;;  %v8572_v42 = vld [vmem:[#allocation7 + $0x1e0] ss:$24 sps:$4 sm:$0xff]   ;;  %v8574_v44 = vld [vmem:[#allocation7 + $0x214] ss:$24 sps:$4 sm:$0xff]  }
  0x5b   :  { %1888 = vmatpush1.bf16.msra.mxu0 %v8531_v15  ;;  %1846 = vmatprep.subr.bf16.mxu1 %v8532_v16  ;;  %v8573_v43 = vld [vmem:[#allocation7 + $0x4e0] ss:$24 sps:$4 sm:$0xff]   ;;  %v8576_v45 = vld [vmem:[#allocation7 + $0x514] ss:$24 sps:$4 sm:$0xff]   ;;  %v8578_v46 = vld [vmem:[#allocation7 + $0x210] ss:$24 sps:$4 sm:$0xff]  }
  0x5c   :  { %1889 = vmatprep.subr.bf16.mxu0 %v8534_v17  ;;  %v8579_v47 = vld [vmem:[#allocation7 + $0x510] ss:$24 sps:$4 sm:$0xff]   ;;  %v92_v48 = vld [vmem:[#allocation2 + $0x8] sm:$0xff]  ;;  %v8586_v58 = vld [vmem:[#allocation7 + $0x274] ss:$24 sps:$4 sm:$0xff]   ;;  %vm76_vm0 = vcmask 64512  }
  0x5d   :  { %v98_v49 = vld [vmem:[#allocation2 + $0x38] sm:$0xff]  ;;  %v100_v51 = vld [vmem:[#allocation2 + $0x48] sm:$0xff]  ;;  %v91_v6 = vld [vmem:[#allocation2] sm:$0xff]  ;;  %vm2271_vm1 = vcmask 1043456   ;;  %s9941_s3 = smov [#allocation10]  }
  0x5e   :  { %1847 = vmatpush1.bf16.msra.mxu1 %v8536_v18  ;;  %v94_v50 = vld [vmem:[#allocation2 + $0x18] sm:$0xff]  ;;  %v8580_v52 = vld [vmem:[#allocation7 + $0x244] ss:$24 sps:$4 sm:$0xff]   ;;  %v10018_v53 = vpack.c.bf16 %v98_v49, %v92_v48  ;;  %v8584_v56 = vld [vmem:[#allocation7 + $0x240] ss:$24 sps:$4 sm:$0xff]   ;;  %s7508_s17 = sshll.u32 %s9941_s3, 4  ;;  %s7509_s17 = int_to_ptr.vmem [resolvable:$true] %s7508_s17 }
  0x5f   :  { %1890 = vmatpush1.bf16.msra.mxu0 %v8537_v19  ;;  %1848 = vmatprep.subr.bf16.mxu1 %v8538_v20  ;;  %v10020_v54 = vpack.c.bf16 %v100_v51, %v94_v50  ;;  %v8582_v55 = vld [vmem:[#allocation7 + $0x544] ss:$24 sps:$4 sm:$0xff]   ;;  %v8585_v57 = vld [vmem:[#allocation7 + $0x540] ss:$24 sps:$4 sm:$0xff]   ;;  %v8588_v59 = vld [vmem:[#allocation7 + $0x574] ss:$24 sps:$4 sm:$0xff]   ;;  %p9903_p5 = scmp.lt.s32.totalorder %s7509_s17, %s7509_s17 }
  0x60   :  { %1891 = vmatprep.subr.bf16.mxu0 %v8540_v21  ;;  %1870 = vmatprep.mubr.bf16.mxu1 %v10018_v53  ;;  %v8590_v60 = vld [vmem:[#allocation7 + $0x270] ss:$24 sps:$4 sm:$0xff]   ;;  %v8592_v62 = vld [vmem:[#allocation7 + $0x2a4] ss:$24 sps:$4 sm:$0xff]   ;;  %v8596_v0 = vld [vmem:[#allocation7 + $0x2a0] ss:$24 sps:$4 sm:$0xff]  }
  0x61   :  { %1913 = vmatprep.mubr.bf16.mxu0 %v10020_v54  ;;  %v8591_v61 = vld [vmem:[#allocation7 + $0x570] ss:$24 sps:$4 sm:$0xff]   ;;  %v8594_v63 = vld [vmem:[#allocation7 + $0x5a4] ss:$24 sps:$4 sm:$0xff]   ;;  %v8597_v1 = vld [vmem:[#allocation7 + $0x5a0] ss:$24 sps:$4 sm:$0xff]  }
  0x62   :  { %1849 = vmatpush1.bf16.msra.mxu1 %v8542_v22  ;;  %v8598_v2 = vld [vmem:[#allocation7 + $0x2d4] ss:$24 sps:$4 sm:$0xff]   ;;  %v8602_v4 = vld [vmem:[#allocation7 + $0x2d0] ss:$24 sps:$4 sm:$0xff]   ;;  %v8606_v7 = vld [vmem:[#allocation7 + $0x604] ss:$24 sps:$4 sm:$0xff]  }
  0x63   :  { %1892 = vmatpush1.bf16.msra.mxu0 %v8543_v23  ;;  %1850 = vmatprep.subr.bf16.mxu1 %v8544_v24  ;;  %v8600_v3 = vld [vmem:[#allocation7 + $0x5d4] ss:$24 sps:$4 sm:$0xff]   ;;  %v8603_v5 = vld [vmem:[#allocation7 + $0x5d0] ss:$24 sps:$4 sm:$0xff]   ;;  %v97_v8 = vld [vmem:[#allocation2 + $0x30] sm:$0xff]  ;;  %s9898_s18 = scalar_lea.vmem %s7509_s17, 1536 }
  0x64   :  { %1893 = vmatprep.subr.bf16.mxu0 %v8546_v25  ;;  %v93_v9 = vld [vmem:[#allocation2 + $0x10] sm:$0xff]  ;;  %v99_v10 = vld [vmem:[#allocation2 + $0x40] sm:$0xff]  ;;  %v10024_v14 = vpack.c.bf16 %v97_v8, %v91_v6  ;;  %p9899_p4 = scmp.ne.s32.totalorder %s7509_s17, %s9898_s18  ;;  %p9904_p6 = scmp.lt.s32.totalorder %s9898_s18, %s9898_s18 }
  0x65   :  { %v8609_v11 = vld [vmem:[#allocation7 + $0xc] ss:$24 sps:$4 sm:$0xff]   ;;  %v8604_v12 = vld [vmem:[#allocation7 + $0x600] ss:$24 sps:$4 sm:$0xff]   ;;  %v10026_v15 = vpack.c.bf16 %v99_v10, %v93_v9  ;;  %v8615_v17 = vld [vmem:[#allocation7 + $0x3c] ss:$24 sps:$4 sm:$0xff]  }
  0x66   :  { %1851 = vmatpush1.bf16.msra.mxu1 %v8548_v26  ;;  %v8607_v13 = vld [vmem:[#allocation7 + $0x8] ss:$24 sps:$4 sm:$0xff]   ;;  %v8612_v16 = vld [vmem:[#allocation7 + $0x634] ss:$24 sps:$4 sm:$0xff]   ;;  %v8613_v19 = vld [vmem:[#allocation7 + $0x38] ss:$24 sps:$4 sm:$0xff]   ;;  %p9905_p7 = por %p9904_p6, %p9903_p5 }
  0x67   :  { %1894 = vmatpush1.bf16.msra.mxu0 %v8549_v27  ;;  %1852 = vmatprep.subr.bf16.mxu1 %v8550_v28  ;;  %v8610_v18 = vld [vmem:[#allocation7 + $0x630] ss:$24 sps:$4 sm:$0xff]   ;;  %v8618_v20 = vld [vmem:[#allocation7 + $0x664] ss:$24 sps:$4 sm:$0xff]   ;;  %v8616_v22 = vld [vmem:[#allocation7 + $0x660] ss:$24 sps:$4 sm:$0xff]  }
  0x68   :  { %1895 = vmatprep.subr.bf16.mxu0 %v8552_v29  ;;  %v8621_v21 = vld [vmem:[#allocation7 + $0x6c] ss:$24 sps:$4 sm:$0xff]   ;;  %v8619_v23 = vld [vmem:[#allocation7 + $0x68] ss:$24 sps:$4 sm:$0xff]   ;;  %v8627_v25 = vld [vmem:[#allocation7 + $0x9c] ss:$24 sps:$4 sm:$0xff]   ;;  %p9906_p8 = pnand %p9905_p7, %p9899_p4 }
  0x69   :  { %v8624_v24 = vld [vmem:[#allocation7 + $0x694] ss:$24 sps:$4 sm:$0xff]   ;;  %v8622_v26 = vld [vmem:[#allocation7 + $0x690] ss:$24 sps:$4 sm:$0xff]   ;;  %v8630_v28 = vld [vmem:[#allocation7 + $0x6c4] ss:$24 sps:$4 sm:$0xff]  }
  0x6a   :  { %1853 = vmatpush1.bf16.msra.mxu1 %v8554_v30  ;;  %v8625_v27 = vld [vmem:[#allocation7 + $0x98] ss:$24 sps:$4 sm:$0xff]   ;;  %v8633_v29 = vld [vmem:[#allocation7 + $0xcc] ss:$24 sps:$4 sm:$0xff]   ;;  %v8655_v50 = vld [vmem:[#allocation7 + $0x188] ss:$24 sps:$4 sm:$0xff]  }
  0x6b   :  { %1896 = vmatpush1.bf16.msra.mxu0 %v8555_v31  ;;  %1854 = vmatprep.subr.bf16.mxu1 %v8556_v32  ;;  %v8628_v30 = vld [vmem:[#allocation7 + $0x6c0] ss:$24 sps:$4 sm:$0xff]   ;;  %v8636_v32 = vld [vmem:[#allocation7 + $0x6f4] ss:$24 sps:$4 sm:$0xff]   ;;  %v8690_v9 = vld [vmem:[#allocation7 + $0x8a4] ss:$24 sps:$4 sm:$0xff]  }
  0x6c   :  { %1897 = vmatprep.subr.bf16.mxu0 %v8558_v33  ;;  %v8631_v31 = vld [vmem:[#allocation7 + $0xc8] ss:$24 sps:$4 sm:$0xff]   ;;  %v8639_v33 = vld [vmem:[#allocation7 + $0xfc] ss:$24 sps:$4 sm:$0xff]   ;;  %v8657_v48 = vld [vmem:[#allocation7 + $0x18c] ss:$24 sps:$4 sm:$0xff]  }
  0x6d   :  { %v8652_v49 = vld [vmem:[#allocation7 + $0x780] ss:$24 sps:$4 sm:$0xff]   ;;  %v8660_v51 = vld [vmem:[#allocation7 + $0x7b4] ss:$24 sps:$4 sm:$0xff]  }
  0x6e   :  { %1855 = vmatpush1.bf16.msra.mxu1 %v8560_v34  ;;  %v8634_v34 = vld [vmem:[#allocation7 + $0x6f0] ss:$24 sps:$4 sm:$0xff]   ;;  %v8687_v6 = vld [vmem:[#allocation7 + $0x27c] ss:$24 sps:$4 sm:$0xff]   ;;  %v8693_v10 = vld [vmem:[#allocation7 + $0x2ac] ss:$24 sps:$4 sm:$0xff]  }
  0x6f   :  { %1898 = vmatpush1.bf16.msra.mxu0 %v8561_v35  ;;  %1856 = vmatprep.subr.bf16.mxu1 %v8562_v36  ;;  %v8637_v35 = vld [vmem:[#allocation7 + $0xf8] ss:$24 sps:$4 sm:$0xff]   ;;  %v8642_v36 = vld [vmem:[#allocation7 + $0x724] ss:$24 sps:$4 sm:$0xff]  }
  0x70   :  { %1899 = vmatprep.subr.bf16.mxu0 %v8564_v37  ;;  %v8645_v37 = vld [vmem:[#allocation7 + $0x12c] ss:$24 sps:$4 sm:$0xff]   ;;  %v8685_v8 = vld [vmem:[#allocation7 + $0x278] ss:$24 sps:$4 sm:$0xff]  }
  0x72   :  { %1857 = vmatpush1.bf16.msra.mxu1 %v8566_v38  ;;  %v8640_v38 = vld [vmem:[#allocation7 + $0x720] ss:$24 sps:$4 sm:$0xff]  }
  0x73   :  { %1900 = vmatpush1.bf16.msra.mxu0 %v8567_v39  ;;  %1858 = vmatprep.subr.bf16.mxu1 %v8568_v40  ;;  %v8643_v39 = vld [vmem:[#allocation7 + $0x128] ss:$24 sps:$4 sm:$0xff]   ;;  %v8648_v40 = vld [vmem:[#allocation7 + $0x754] ss:$24 sps:$4 sm:$0xff]  }
  0x74   :  { %1901 = vmatprep.subr.bf16.mxu0 %v8570_v41  ;;  %v96_v41 = vld [vmem:[#allocation2 + $0x28] sm:$0xff] }
  0x76   :  { %1859 = vmatpush1.bf16.msra.mxu1 %v8572_v42  ;;  %v102_v42 = vld [vmem:[#allocation2 + $0x58] sm:$0xff] }
  0x77   :  { %1902 = vmatpush1.bf16.msra.mxu0 %v8573_v43  ;;  %1860 = vmatprep.subr.bf16.mxu1 %v8574_v44  ;;  %v8651_v43 = vld [vmem:[#allocation7 + $0x15c] ss:$24 sps:$4 sm:$0xff]   ;;  %v10031_v44 = vpack.c.bf16 %v102_v42, %v96_v41  ;;  %v8727_v41 = vld [vmem:[#allocation7 + $0xd0] ss:$24 sps:$4 sm:$0xff]  }
  0x78   :  { %1903 = vmatprep.subr.bf16.mxu0 %v8576_v45  ;;  %v8646_v45 = vld [vmem:[#allocation7 + $0x750] ss:$24 sps:$4 sm:$0xff]   ;;  %v8735_v42 = vld [vmem:[#allocation7 + $0x104] ss:$24 sps:$4 sm:$0xff]  }
  0x7a   :  { %1861 = vmatpush1.bf16.msra.mxu1 %v8578_v46  ;;  %v8649_v46 = vld [vmem:[#allocation7 + $0x158] ss:$24 sps:$4 sm:$0xff]  }
  0x7b   :  { %1904 = vmatpush1.bf16.msra.mxu0 %v8579_v47  ;;  %1862 = vmatprep.subr.bf16.mxu1 %v8580_v52  ;;  %v8654_v47 = vld [vmem:[#allocation7 + $0x784] ss:$24 sps:$4 sm:$0xff]  }
  0x7c   :  { %1905 = vmatprep.subr.bf16.mxu0 %v8582_v55  ;;  %v8663_v52 = vld [vmem:[#allocation7 + $0x1bc] ss:$24 sps:$4 sm:$0xff]   ;;  %v8658_v55 = vld [vmem:[#allocation7 + $0x7b0] ss:$24 sps:$4 sm:$0xff]  }
  0x7e   :  { %1863 = vmatpush1.bf16.msra.mxu1 %v8584_v56  ;;  %v8661_v56 = vld [vmem:[#allocation7 + $0x1b8] ss:$24 sps:$4 sm:$0xff]  }
  0x7f   :  { %1906 = vmatpush1.bf16.msra.mxu0 %v8585_v57  ;;  %1864 = vmatprep.subr.bf16.mxu1 %v8586_v58  ;;  %v8666_v57 = vld [vmem:[#allocation7 + $0x7e4] ss:$24 sps:$4 sm:$0xff]  }
  0x80   :  { %1907 = vmatprep.subr.bf16.mxu0 %v8588_v59  ;;  %v8669_v58 = vld [vmem:[#allocation7 + $0x1ec] ss:$24 sps:$4 sm:$0xff]   ;;  %v8664_v59 = vld [vmem:[#allocation7 + $0x7e0] ss:$24 sps:$4 sm:$0xff]  }
  0x82   :  { %1865 = vmatpush1.bf16.msra.mxu1 %v8590_v60  ;;  %v8667_v60 = vld [vmem:[#allocation7 + $0x1e8] ss:$24 sps:$4 sm:$0xff]  }
  0x83   :  { %1908 = vmatpush1.bf16.msra.mxu0 %v8591_v61  ;;  %1866 = vmatprep.subr.bf16.mxu1 %v8592_v62  ;;  %v8672_v61 = vld [vmem:[#allocation7 + $0x814] ss:$24 sps:$4 sm:$0xff]  }
  0x84   :  { %1909 = vmatprep.subr.bf16.mxu0 %v8594_v63  ;;  %v8675_v62 = vld [vmem:[#allocation7 + $0x21c] ss:$24 sps:$4 sm:$0xff]   ;;  %v8670_v63 = vld [vmem:[#allocation7 + $0x810] ss:$24 sps:$4 sm:$0xff]  }
  0x86   :  { %1867 = vmatpush1.bf16.msra.mxu1 %v8596_v0  ;;  %v8673_v0 = vld [vmem:[#allocation7 + $0x218] ss:$24 sps:$4 sm:$0xff]  }
  0x87   :  { %1910 = vmatpush1.bf16.msra.mxu0 %v8597_v1  ;;  %1868 = vmatprep.subr.bf16.mxu1 %v8598_v2  ;;  %v8678_v1 = vld [vmem:[#allocation7 + $0x844] ss:$24 sps:$4 sm:$0xff]  }
  0x88   :  { %1911 = vmatprep.subr.bf16.mxu0 %v8600_v3  ;;  %v8681_v2 = vld [vmem:[#allocation7 + $0x24c] ss:$24 sps:$4 sm:$0xff]   ;;  %v8676_v3 = vld [vmem:[#allocation7 + $0x840] ss:$24 sps:$4 sm:$0xff]  }
  0x8a   :  { %1869 = vmatpush1.bf16.msra.mxu1 %v8602_v4  ;;  %v8679_v4 = vld [vmem:[#allocation7 + $0x248] ss:$24 sps:$4 sm:$0xff]  }
  0x8b   :  { %1912 = vmatpush1.bf16.msra.mxu0 %v8603_v5  ;;  %1967 = vmatprep.subr.bf16.mxu1 %v8609_v11  ;;  %v8684_v5 = vld [vmem:[#allocation7 + $0x874] ss:$24 sps:$4 sm:$0xff]   ;;  %v8688_v11 = vld [vmem:[#allocation7 + $0x8a0] ss:$24 sps:$4 sm:$0xff]  }
  0x8c   :  { %1924 = vmatprep.subr.bf16.mxu0 %v8606_v7  ;;  %v8682_v7 = vld [vmem:[#allocation7 + $0x870] ss:$24 sps:$4 sm:$0xff]  }
  0x8d   :  { %1871 = vmatmul.mubr.bf16.vlgmr.msra.gmra.mrb[0].mxu1 %v10024_v14 }
  0x8e   :  { %1914 = vmatmul.mubr.bf16.vlgmr.msra.gmra.mrb[0].mxu0 %v10026_v15  ;;  %1968 = vmatpush1.bf16.msra.mxu1 %v8607_v13  ;;  %v8696_v13 = vld [vmem:[#allocation7 + $0x8d4] ss:$24 sps:$4 sm:$0xff]  }
  0x8f   :  { %1925 = vmatpush1.bf16.msra.mxu0 %v8604_v12  ;;  %1969 = vmatprep.subr.bf16.mxu1 %v8615_v17  ;;  %v8691_v12 = vld [vmem:[#allocation7 + $0x2a8] ss:$24 sps:$4 sm:$0xff]  }
  0x90   :  { %1926 = vmatprep.subr.bf16.mxu0 %v8612_v16  ;;  %1999 = vmatprep.mubr.bf16.mxu1 %v10018_v53  ;;  %v8699_v16 = vld [vmem:[#allocation7 + $0x2dc] ss:$24 sps:$4 sm:$0xff]   ;;  %v8694_v17 = vld [vmem:[#allocation7 + $0x8d0] ss:$24 sps:$4 sm:$0xff]  }
  0x91   :  { %1956 = vmatprep.mubr.bf16.mxu0 %v10031_v44 }
  0x92   :  { %1970 = vmatpush1.bf16.msra.mxu1 %v8613_v19  ;;  %v95_v19 = vld [vmem:[#allocation2 + $0x20] sm:$0xff] }
  0x93   :  { %1927 = vmatpush1.bf16.msra.mxu0 %v8610_v18  ;;  %1971 = vmatprep.subr.bf16.mxu1 %v8621_v21  ;;  %v8697_v18 = vld [vmem:[#allocation7 + $0x2d8] ss:$24 sps:$4 sm:$0xff]   ;;  %v8702_v21 = vld [vmem:[#allocation7 + $0x30c] ss:$24 sps:$4 sm:$0xff]  }
  0x94   :  { %1928 = vmatprep.subr.bf16.mxu0 %v8618_v20  ;;  %v101_v20 = vld [vmem:[#allocation2 + $0x50] sm:$0xff] }
  0x96   :  { %1972 = vmatpush1.bf16.msra.mxu1 %v8619_v23  ;;  %v10034_v23 = vpack.c.bf16 %v101_v20, %v95_v19  ;;  %v8789_v19 = vld [vmem:[#allocation7 + $0x2b4] ss:$24 sps:$4 sm:$0xff]   ;;  %v8784_v20 = vld [vmem:[#allocation7 + $0x5a8] ss:$24 sps:$4 sm:$0xff]  }
  0x97   :  { %1929 = vmatpush1.bf16.msra.mxu0 %v8616_v22  ;;  %1973 = vmatprep.subr.bf16.mxu1 %v8627_v25  ;;  %v8705_v22 = vld [vmem:[#allocation7 + $0x14] ss:$24 sps:$4 sm:$0xff]   ;;  %v8703_v25 = vld [vmem:[#allocation7 + $0x10] ss:$24 sps:$4 sm:$0xff]  }
  0x98   :  { %1930 = vmatprep.subr.bf16.mxu0 %v8624_v24  ;;  %v8700_v24 = vld [vmem:[#allocation7 + $0x308] ss:$24 sps:$4 sm:$0xff]  }
  0x9a   :  { %1974 = vmatpush1.bf16.msra.mxu1 %v8625_v27  ;;  %v8711_v27 = vld [vmem:[#allocation7 + $0x44] ss:$24 sps:$4 sm:$0xff]  }
  0x9b   :  { %1931 = vmatpush1.bf16.msra.mxu0 %v8622_v26  ;;  %1975 = vmatprep.subr.bf16.mxu1 %v8633_v29  ;;  %v8708_v26 = vld [vmem:[#allocation7 + $0x33c] ss:$24 sps:$4 sm:$0xff]   ;;  %v8709_v29 = vld [vmem:[#allocation7 + $0x40] ss:$24 sps:$4 sm:$0xff]  }
  0x9c   :  { %1932 = vmatprep.subr.bf16.mxu0 %v8630_v28  ;;  %v8706_v28 = vld [vmem:[#allocation7 + $0x338] ss:$24 sps:$4 sm:$0xff]  }
  0x9e   :  { %1976 = vmatpush1.bf16.msra.mxu1 %v8631_v31  ;;  %v8717_v31 = vld [vmem:[#allocation7 + $0x74] ss:$24 sps:$4 sm:$0xff]  }
  0x9f   :  { %1933 = vmatpush1.bf16.msra.mxu0 %v8628_v30  ;;  %1977 = vmatprep.subr.bf16.mxu1 %v8639_v33  ;;  %v8714_v30 = vld [vmem:[#allocation7 + $0x36c] ss:$24 sps:$4 sm:$0xff]   ;;  %v8715_v33 = vld [vmem:[#allocation7 + $0x70] ss:$24 sps:$4 sm:$0xff]  }
  0xa0   :  { %1934 = vmatprep.subr.bf16.mxu0 %v8636_v32  ;;  %v8712_v32 = vld [vmem:[#allocation7 + $0x368] ss:$24 sps:$4 sm:$0xff]  }
  0xa2   :  { %1978 = vmatpush1.bf16.msra.mxu1 %v8637_v35  ;;  %v8723_v35 = vld [vmem:[#allocation7 + $0xa4] ss:$24 sps:$4 sm:$0xff]  }
  0xa3   :  { %1935 = vmatpush1.bf16.msra.mxu0 %v8634_v34  ;;  %1979 = vmatprep.subr.bf16.mxu1 %v8645_v37  ;;  %v8720_v34 = vld [vmem:[#allocation7 + $0x39c] ss:$24 sps:$4 sm:$0xff]   ;;  %v8721_v37 = vld [vmem:[#allocation7 + $0xa0] ss:$24 sps:$4 sm:$0xff]  }
  0xa4   :  { %1936 = vmatprep.subr.bf16.mxu0 %v8642_v36  ;;  %v8718_v36 = vld [vmem:[#allocation7 + $0x398] ss:$24 sps:$4 sm:$0xff]  }
  0xa6   :  { %1980 = vmatpush1.bf16.msra.mxu1 %v8643_v39  ;;  %v8729_v39 = vld [vmem:[#allocation7 + $0xd4] ss:$24 sps:$4 sm:$0xff]  }
  0xa7   :  { %1937 = vmatpush1.bf16.msra.mxu0 %v8640_v38  ;;  %1981 = vmatprep.subr.bf16.mxu1 %v8651_v43  ;;  %v8726_v38 = vld [vmem:[#allocation7 + $0x3cc] ss:$24 sps:$4 sm:$0xff]   ;;  %v8730_v43 = vld [vmem:[#allocation7 + $0x3f8] ss:$24 sps:$4 sm:$0xff]  }
  0xa8   :  { %1938 = vmatprep.subr.bf16.mxu0 %v8648_v40  ;;  %v8724_v40 = vld [vmem:[#allocation7 + $0x3c8] ss:$24 sps:$4 sm:$0xff]  }
  0xaa   :  { %1982 = vmatpush1.bf16.msra.mxu1 %v8649_v46  ;;  %v8738_v46 = vld [vmem:[#allocation7 + $0x42c] ss:$24 sps:$4 sm:$0xff]  }
  0xab   :  { %1939 = vmatpush1.bf16.msra.mxu0 %v8646_v45  ;;  %1983 = vmatprep.subr.bf16.mxu1 %v8657_v48  ;;  %v8733_v45 = vld [vmem:[#allocation7 + $0x100] ss:$24 sps:$4 sm:$0xff]  }
  0xac   :  { %1940 = vmatprep.subr.bf16.mxu0 %v8654_v47  ;;  %v8741_v47 = vld [vmem:[#allocation7 + $0x134] ss:$24 sps:$4 sm:$0xff]   ;;  %v8736_v48 = vld [vmem:[#allocation7 + $0x428] ss:$24 sps:$4 sm:$0xff]  }
  0xae   :  { %1984 = vmatpush1.bf16.msra.mxu1 %v8655_v50  ;;  %v8744_v50 = vld [vmem:[#allocation7 + $0x45c] ss:$24 sps:$4 sm:$0xff]  }
  0xaf   :  { %1941 = vmatpush1.bf16.msra.mxu0 %v8652_v49  ;;  %1985 = vmatprep.subr.bf16.mxu1 %v8663_v52  ;;  %v8739_v49 = vld [vmem:[#allocation7 + $0x130] ss:$24 sps:$4 sm:$0xff]  }
  0xb0   :  { %1942 = vmatprep.subr.bf16.mxu0 %v8660_v51  ;;  %v8747_v51 = vld [vmem:[#allocation7 + $0x164] ss:$24 sps:$4 sm:$0xff]   ;;  %v8742_v52 = vld [vmem:[#allocation7 + $0x458] ss:$24 sps:$4 sm:$0xff]  }
  0xb2   :  { %1986 = vmatpush1.bf16.msra.mxu1 %v8661_v56  ;;  %v8750_v56 = vld [vmem:[#allocation7 + $0x48c] ss:$24 sps:$4 sm:$0xff]  }
  0xb3   :  { %1943 = vmatpush1.bf16.msra.mxu0 %v8658_v55  ;;  %1987 = vmatprep.subr.bf16.mxu1 %v8669_v58  ;;  %v8745_v55 = vld [vmem:[#allocation7 + $0x160] ss:$24 sps:$4 sm:$0xff]  }
  0xb4   :  { %1944 = vmatprep.subr.bf16.mxu0 %v8666_v57  ;;  %v8753_v57 = vld [vmem:[#allocation7 + $0x194] ss:$24 sps:$4 sm:$0xff]   ;;  %v8748_v58 = vld [vmem:[#allocation7 + $0x488] ss:$24 sps:$4 sm:$0xff]  }
  0xb6   :  { %1988 = vmatpush1.bf16.msra.mxu1 %v8667_v60  ;;  %v8756_v60 = vld [vmem:[#allocation7 + $0x4bc] ss:$24 sps:$4 sm:$0xff]  }
  0xb7   :  { %1945 = vmatpush1.bf16.msra.mxu0 %v8664_v59  ;;  %1989 = vmatprep.subr.bf16.mxu1 %v8675_v62  ;;  %v8751_v59 = vld [vmem:[#allocation7 + $0x190] ss:$24 sps:$4 sm:$0xff]  }
  0xb8   :  { %1946 = vmatprep.subr.bf16.mxu0 %v8672_v61  ;;  %v8759_v61 = vld [vmem:[#allocation7 + $0x1c4] ss:$24 sps:$4 sm:$0xff]   ;;  %v8754_v62 = vld [vmem:[#allocation7 + $0x4b8] ss:$24 sps:$4 sm:$0xff]  }
  0xba   :  { %1990 = vmatpush1.bf16.msra.mxu1 %v8673_v0  ;;  %v8762_v0 = vld [vmem:[#allocation7 + $0x4ec] ss:$24 sps:$4 sm:$0xff]  }
  0xbb   :  { %1947 = vmatpush1.bf16.msra.mxu0 %v8670_v63  ;;  %1991 = vmatprep.subr.bf16.mxu1 %v8681_v2  ;;  %v8757_v63 = vld [vmem:[#allocation7 + $0x1c0] ss:$24 sps:$4 sm:$0xff]  }
  0xbc   :  { %1948 = vmatprep.subr.bf16.mxu0 %v8678_v1  ;;  %v8765_v1 = vld [vmem:[#allocation7 + $0x1f4] ss:$24 sps:$4 sm:$0xff]   ;;  %v8760_v2 = vld [vmem:[#allocation7 + $0x4e8] ss:$24 sps:$4 sm:$0xff]  }
  0xbe   :  { %1992 = vmatpush1.bf16.msra.mxu1 %v8679_v4  ;;  %v8768_v4 = vld [vmem:[#allocation7 + $0x51c] ss:$24 sps:$4 sm:$0xff]  }
  0xbf   :  { %1949 = vmatpush1.bf16.msra.mxu0 %v8676_v3  ;;  %1993 = vmatprep.subr.bf16.mxu1 %v8687_v6  ;;  %v8763_v3 = vld [vmem:[#allocation7 + $0x1f0] ss:$24 sps:$4 sm:$0xff]  }
  0xc0   :  { %1950 = vmatprep.subr.bf16.mxu0 %v8684_v5  ;;  %v8771_v5 = vld [vmem:[#allocation7 + $0x224] ss:$24 sps:$4 sm:$0xff]   ;;  %v8766_v6 = vld [vmem:[#allocation7 + $0x518] ss:$24 sps:$4 sm:$0xff]  }
  0xc2   :  { %1994 = vmatpush1.bf16.msra.mxu1 %v8685_v8  ;;  %v8774_v8 = vld [vmem:[#allocation7 + $0x54c] ss:$24 sps:$4 sm:$0xff]  }
  0xc3   :  { %1951 = vmatpush1.bf16.msra.mxu0 %v8682_v7  ;;  %1995 = vmatprep.subr.bf16.mxu1 %v8693_v10  ;;  %v8769_v7 = vld [vmem:[#allocation7 + $0x220] ss:$24 sps:$4 sm:$0xff]  }
  0xc4   :  { %1952 = vmatprep.subr.bf16.mxu0 %v8690_v9  ;;  %v8777_v9 = vld [vmem:[#allocation7 + $0x254] ss:$24 sps:$4 sm:$0xff]   ;;  %v8772_v10 = vld [vmem:[#allocation7 + $0x548] ss:$24 sps:$4 sm:$0xff]  }
  0xc6   :  { %1996 = vmatpush1.bf16.msra.mxu1 %v8691_v12  ;;  %v8780_v12 = vld [vmem:[#allocation7 + $0x57c] ss:$24 sps:$4 sm:$0xff]  }
  0xc7   :  { %1953 = vmatpush1.bf16.msra.mxu0 %v8688_v11  ;;  %1997 = vmatprep.subr.bf16.mxu1 %v8699_v16  ;;  %v8775_v11 = vld [vmem:[#allocation7 + $0x250] ss:$24 sps:$4 sm:$0xff]  }
  0xc8   :  { %1954 = vmatprep.subr.bf16.mxu0 %v8696_v13  ;;  %v8783_v13 = vld [vmem:[#allocation7 + $0x284] ss:$24 sps:$4 sm:$0xff]   ;;  %v8778_v16 = vld [vmem:[#allocation7 + $0x578] ss:$24 sps:$4 sm:$0xff]  }
  0xca   :  { %1998 = vmatpush1.bf16.msra.mxu1 %v8697_v18  ;;  %v8786_v18 = vld [vmem:[#allocation7 + $0x5ac] ss:$24 sps:$4 sm:$0xff]  }
  0xcb   :  { %1955 = vmatpush1.bf16.msra.mxu0 %v8694_v17  ;;  %2010 = vmatprep.subr.bf16.mxu1 %v8702_v21  ;;  %v8781_v17 = vld [vmem:[#allocation7 + $0x280] ss:$24 sps:$4 sm:$0xff]   ;;  %v8787_v21 = vld [vmem:[#allocation7 + $0x2b0] ss:$24 sps:$4 sm:$0xff]  }
  0xcc   :  { %2096 = vmatprep.subr.bf16.mxu0 %v8705_v22  ;;  %v8792_v22 = vld [vmem:[#allocation7 + $0x5dc] ss:$24 sps:$4 sm:$0xff]  }
  0xcd   :  { %2000 = vmatmul.mubr.bf16.vlgmr.msra.gmra.mrb[4].mxu1 %v10024_v14 }
  0xce   :  { %1957 = vmatmul.mubr.bf16.vlgmr.msra.gmra.mrb[0].mxu0 %v10034_v23  ;;  %2011 = vmatpush1.bf16.msra.mxu1 %v8700_v24  ;;  %v8795_v24 = vld [vmem:[#allocation7 + $0x2e4] ss:$24 sps:$4 sm:$0xff]  }
  0xcf   :  { %2097 = vmatpush1.bf16.msra.mxu0 %v8703_v25  ;;  %2012 = vmatprep.subr.bf16.mxu1 %v8708_v26  ;;  %v8790_v25 = vld [vmem:[#allocation7 + $0x5d8] ss:$24 sps:$4 sm:$0xff]  }
  0xd0   :  { %2098 = vmatprep.subr.bf16.mxu0 %v8711_v27  ;;  %2042 = vmatprep.mubr.bf16.mxu1 %v10020_v54  ;;  %v8793_v26 = vld [vmem:[#allocation7 + $0x2e0] ss:$24 sps:$4 sm:$0xff]   ;;  %v8798_v27 = vld [vmem:[#allocation7 + $0x60c] ss:$24 sps:$4 sm:$0xff]  }
  0xd1   :  { %2128 = vmatprep.mubr.bf16.mxu0 %v10018_v53  ;;  %v8732_v53 = vld [vmem:[#allocation7 + $0x3fc] ss:$24 sps:$4 sm:$0xff]  }
  0xd2   :  { %2013 = vmatpush1.bf16.msra.mxu1 %v8706_v28  ;;  %v8801_v28 = vld [vmem:[#allocation7 + $0x314] ss:$24 sps:$4 sm:$0xff]  }
  0xd3   :  { %2099 = vmatpush1.bf16.msra.mxu0 %v8709_v29  ;;  %2014 = vmatprep.subr.bf16.mxu1 %v8714_v30  ;;  %v8796_v29 = vld [vmem:[#allocation7 + $0x608] ss:$24 sps:$4 sm:$0xff]  }
  0xd4   :  { %2100 = vmatprep.subr.bf16.mxu0 %v8717_v31  ;;  %v8799_v30 = vld [vmem:[#allocation7 + $0x310] ss:$24 sps:$4 sm:$0xff]   ;;  %v8804_v31 = vld [vmem:[#allocation7 + $0x63c] ss:$24 sps:$4 sm:$0xff]  }
  0xd6   :  { %2015 = vmatpush1.bf16.msra.mxu1 %v8712_v32  ;;  %v8807_v32 = vld [vmem:[#allocation7 + $0x344] ss:$24 sps:$4 sm:$0xff]  }
  0xd7   :  { %2101 = vmatpush1.bf16.msra.mxu0 %v8715_v33  ;;  %2016 = vmatprep.subr.bf16.mxu1 %v8720_v34  ;;  %v8802_v33 = vld [vmem:[#allocation7 + $0x638] ss:$24 sps:$4 sm:$0xff]  }
  0xd8   :  { %2102 = vmatprep.subr.bf16.mxu0 %v8723_v35  ;;  %v8805_v34 = vld [vmem:[#allocation7 + $0x340] ss:$24 sps:$4 sm:$0xff]   ;;  %v74_v35 = vld [vmem:[#allocation5] sm:$0xff] }
  0xda   :  { %2017 = vmatpush1.bf16.msra.mxu1 %v8718_v36  ;;  %v8810_v36 = vld [vmem:[#allocation7 + $0x66c] ss:$24 sps:$4 sm:$0xff]  }
  0xdb   :  { %2103 = vmatpush1.bf16.msra.mxu0 %v8721_v37  ;;  %2018 = vmatprep.subr.bf16.mxu1 %v8726_v38  ;;  %v8813_v37 = vld [vmem:[#allocation7 + $0x374] ss:$24 sps:$4 sm:$0xff]   ;;  %v77_v38 = vsel %vm76_vm0, %v74_v35, 0.0  ;;  %v8892_v35 = vld [vmem:[#allocation7 + $0x610] ss:$24 sps:$4 sm:$0xff]  }
  0xdc   :  { %2104 = vmatprep.subr.bf16.mxu0 %v8729_v39  ;;  %v8808_v39 = vld [vmem:[#allocation7 + $0x668] ss:$24 sps:$4 sm:$0xff]   ;;  %78 = vadd.xlane.f32.xlu0 %v77_v38  ;;  %v8900_v38 = vld [vmem:[#allocation7 + $0x674] ss:$24 sps:$4 sm:$0xff]  }
  0xde   :  { %2019 = vmatpush1.bf16.msra.mxu1 %v8724_v40  ;;  %v8811_v40 = vld [vmem:[#allocation7 + $0x370] ss:$24 sps:$4 sm:$0xff]  }
  0xdf   :  { %2105 = vmatpush1.bf16.msra.mxu0 %v8727_v41  ;;  %2020 = vmatprep.subr.bf16.mxu1 %v8732_v53  ;;  %v8816_v41 = vld [vmem:[#allocation7 + $0x69c] ss:$24 sps:$4 sm:$0xff]  }
  0xe0   :  { %2106 = vmatprep.subr.bf16.mxu0 %v8735_v42  ;;  %v8819_v53 = vld [vmem:[#allocation7 + $0x3a4] ss:$24 sps:$4 sm:$0xff]   ;;  %v8817_v42 = vld [vmem:[#allocation7 + $0x3a0] ss:$24 sps:$4 sm:$0xff]  }
  0xe2   :  { %2021 = vmatpush1.bf16.msra.mxu1 %v8730_v43  ;;  %v8822_v43 = vld [vmem:[#allocation7 + $0x6cc] ss:$24 sps:$4 sm:$0xff]  }
  0xe3   :  { %2107 = vmatpush1.bf16.msra.mxu0 %v8733_v45  ;;  %2022 = vmatprep.subr.bf16.mxu1 %v8738_v46  ;;  %v8825_v45 = vld [vmem:[#allocation7 + $0x3d4] ss:$24 sps:$4 sm:$0xff]   ;;  %v8820_v46 = vld [vmem:[#allocation7 + $0x6c8] ss:$24 sps:$4 sm:$0xff]  }
  0xe4   :  { %2108 = vmatprep.subr.bf16.mxu0 %v8741_v47  ;;  %v8823_v47 = vld [vmem:[#allocation7 + $0x3d0] ss:$24 sps:$4 sm:$0xff]  }
  0xe6   :  { %2023 = vmatpush1.bf16.msra.mxu1 %v8736_v48  ;;  %v8828_v48 = vld [vmem:[#allocation7 + $0x6fc] ss:$24 sps:$4 sm:$0xff]  }
  0xe7   :  { %2109 = vmatpush1.bf16.msra.mxu0 %v8739_v49  ;;  %2024 = vmatprep.subr.bf16.mxu1 %v8744_v50  ;;  %v8831_v49 = vld [vmem:[#allocation7 + $0x404] ss:$24 sps:$4 sm:$0xff]   ;;  %v8829_v50 = vld [vmem:[#allocation7 + $0x400] ss:$24 sps:$4 sm:$0xff]  }
  0xe8   :  { %2110 = vmatprep.subr.bf16.mxu0 %v8747_v51  ;;  %v8834_v51 = vld [vmem:[#allocation7 + $0x72c] ss:$24 sps:$4 sm:$0xff]  }
  0xea   :  { %2025 = vmatpush1.bf16.msra.mxu1 %v8742_v52  ;;  %v8837_v52 = vld [vmem:[#allocation7 + $0x434] ss:$24 sps:$4 sm:$0xff]  }
  0xeb   :  { %2111 = vmatpush1.bf16.msra.mxu0 %v8745_v55  ;;  %2026 = vmatprep.subr.bf16.mxu1 %v8750_v56  ;;  %v8832_v55 = vld [vmem:[#allocation7 + $0x728] ss:$24 sps:$4 sm:$0xff]  }
  0xec   :  { %2112 = vmatprep.subr.bf16.mxu0 %v8753_v57  ;;  %v8835_v56 = vld [vmem:[#allocation7 + $0x430] ss:$24 sps:$4 sm:$0xff]   ;;  %v8840_v57 = vld [vmem:[#allocation7 + $0x75c] ss:$24 sps:$4 sm:$0xff]  }
  0xee   :  { %2027 = vmatpush1.bf16.msra.mxu1 %v8748_v58  ;;  %v8843_v58 = vld [vmem:[#allocation7 + $0x464] ss:$24 sps:$4 sm:$0xff]  }
  0xef   :  { %2113 = vmatpush1.bf16.msra.mxu0 %v8751_v59  ;;  %2028 = vmatprep.subr.bf16.mxu1 %v8756_v60  ;;  %v8838_v59 = vld [vmem:[#allocation7 + $0x758] ss:$24 sps:$4 sm:$0xff]  }
  0xf0   :  { %2114 = vmatprep.subr.bf16.mxu0 %v8759_v61  ;;  %v8841_v60 = vld [vmem:[#allocation7 + $0x460] ss:$24 sps:$4 sm:$0xff]   ;;  %v8846_v61 = vld [vmem:[#allocation7 + $0x78c] ss:$24 sps:$4 sm:$0xff]  }
  0xf2   :  { %2029 = vmatpush1.bf16.msra.mxu1 %v8754_v62  ;;  %v8849_v62 = vld [vmem:[#allocation7 + $0x494] ss:$24 sps:$4 sm:$0xff]  }
  0xf3   :  { %2115 = vmatpush1.bf16.msra.mxu0 %v8757_v63  ;;  %2030 = vmatprep.subr.bf16.mxu1 %v8762_v0  ;;  %v75_v63 = vld [vmem:[#allocation5 + $0x8] sm:$0xff]  ;;  %v8844_v0 = vld [vmem:[#allocation7 + $0x788] ss:$24 sps:$4 sm:$0xff]  }
  0xf4   :  { %2116 = vmatprep.subr.bf16.mxu0 %v8765_v1  ;;  %v8847_v1 = vld [vmem:[#allocation7 + $0x490] ss:$24 sps:$4 sm:$0xff]  }
  0xf6   :  { %2031 = vmatpush1.bf16.msra.mxu1 %v8760_v2  ;;  %v80_v2 = vsel %vm76_vm0, %v75_v63, 0.0  ;;  %v8931_v63 = vld [vmem:[#allocation7 + $0x880] ss:$24 sps:$4 sm:$0xff]  }
  0xf7   :  { %2117 = vmatpush1.bf16.msra.mxu0 %v8763_v3  ;;  %2032 = vmatprep.subr.bf16.mxu1 %v8768_v4  ;;  %v8852_v3 = vld [vmem:[#allocation7 + $0x7bc] ss:$24 sps:$4 sm:$0xff]  }
  0xf8   :  { %2118 = vmatprep.subr.bf16.mxu0 %v8771_v5  ;;  %v8855_v4 = vld [vmem:[#allocation7 + $0x4c4] ss:$24 sps:$4 sm:$0xff]   ;;  %81 = vadd.xlane.f32.xlu0 %v80_v2  ;;  %v8850_v5 = vld [vmem:[#allocation7 + $0x7b8] ss:$24 sps:$4 sm:$0xff]  }
  0xf9   :  { %v8939_v2 = vld [vmem:[#allocation7 + $0x8e4] ss:$24 sps:$4 sm:$0xff]  }
  0xfa   :  { %2033 = vmatpush1.bf16.msra.mxu1 %v8766_v6  ;;  %v8853_v6 = vld [vmem:[#allocation7 + $0x4c0] ss:$24 sps:$4 sm:$0xff]  }
  0xfb   :  { %2119 = vmatpush1.bf16.msra.mxu0 %v8769_v7  ;;  %2034 = vmatprep.subr.bf16.mxu1 %v8774_v8  ;;  %v8858_v7 = vld [vmem:[#allocation7 + $0x7ec] ss:$24 sps:$4 sm:$0xff]  }
  0xfc   :  { %2120 = vmatprep.subr.bf16.mxu0 %v8777_v9  ;;  %v8861_v8 = vld [vmem:[#allocation7 + $0x4f4] ss:$24 sps:$4 sm:$0xff]   ;;  %v8856_v9 = vld [vmem:[#allocation7 + $0x7e8] ss:$24 sps:$4 sm:$0xff]  }
  0xfe   :  { %2035 = vmatpush1.bf16.msra.mxu1 %v8772_v10  ;;  %v8859_v10 = vld [vmem:[#allocation7 + $0x4f0] ss:$24 sps:$4 sm:$0xff]  }
  0xff   :  { %2121 = vmatpush1.bf16.msra.mxu0 %v8775_v11  ;;  %2036 = vmatprep.subr.bf16.mxu1 %v8780_v12  ;;  %v8864_v11 = vld [vmem:[#allocation7 + $0x81c] ss:$24 sps:$4 sm:$0xff]  }
 0x100   :  { %2122 = vmatprep.subr.bf16.mxu0 %v8783_v13  ;;  %v8867_v12 = vld [vmem:[#allocation7 + $0x524] ss:$24 sps:$4 sm:$0xff]   ;;  %v8862_v13 = vld [vmem:[#allocation7 + $0x818] ss:$24 sps:$4 sm:$0xff]  }
 0x102   :  { %2037 = vmatpush1.bf16.msra.mxu1 %v8778_v16  ;;  %v8865_v16 = vld [vmem:[#allocation7 + $0x520] ss:$24 sps:$4 sm:$0xff]  }
 0x103   :  { %2123 = vmatpush1.bf16.msra.mxu0 %v8781_v17  ;;  %2038 = vmatprep.subr.bf16.mxu1 %v8786_v18  ;;  %v8870_v17 = vld [vmem:[#allocation7 + $0x84c] ss:$24 sps:$4 sm:$0xff]  }
 0x104   :  { %2124 = vmatprep.subr.bf16.mxu0 %v8789_v19  ;;  %v8873_v18 = vld [vmem:[#allocation7 + $0x554] ss:$24 sps:$4 sm:$0xff]   ;;  %v8868_v19 = vld [vmem:[#allocation7 + $0x848] ss:$24 sps:$4 sm:$0xff]  }
 0x106   :  { %2039 = vmatpush1.bf16.msra.mxu1 %v8784_v20  ;;  %v8871_v20 = vld [vmem:[#allocation7 + $0x550] ss:$24 sps:$4 sm:$0xff]  }
 0x107   :  { %2125 = vmatpush1.bf16.msra.mxu0 %v8787_v21  ;;  %2040 = vmatprep.subr.bf16.mxu1 %v8792_v22  ;;  %v8876_v21 = vld [vmem:[#allocation7 + $0x87c] ss:$24 sps:$4 sm:$0xff]  }
 0x108   :  { %2126 = vmatprep.subr.bf16.mxu0 %v8795_v24  ;;  %v8879_v22 = vld [vmem:[#allocation7 + $0x584] ss:$24 sps:$4 sm:$0xff]   ;;  %v8874_v24 = vld [vmem:[#allocation7 + $0x878] ss:$24 sps:$4 sm:$0xff]  }
 0x10a   :  { %2041 = vmatpush1.bf16.msra.mxu1 %v8790_v25  ;;  %v8877_v25 = vld [vmem:[#allocation7 + $0x580] ss:$24 sps:$4 sm:$0xff]  }
 0x10b   :  { %2127 = vmatpush1.bf16.msra.mxu0 %v8793_v26  ;;  %2053 = vmatprep.subr.bf16.mxu1 %v8798_v27  ;;  %v8882_v26 = vld [vmem:[#allocation7 + $0x8ac] ss:$24 sps:$4 sm:$0xff]  }
 0x10c   :  { %2139 = vmatprep.subr.bf16.mxu0 %v8801_v28  ;;  %v8885_v27 = vld [vmem:[#allocation7 + $0x5b4] ss:$24 sps:$4 sm:$0xff]   ;;  %v8880_v28 = vld [vmem:[#allocation7 + $0x8a8] ss:$24 sps:$4 sm:$0xff]  }
 0x10d   :  { %2043 = vmatmul.mubr.bf16.vlgmr.msra.gmra.mrb[4].mxu1 %v10026_v15 }
 0x10e   :  { %2129 = vmatmul.mubr.bf16.vlgmr.msra.gmra.mrb[4].mxu0 %v10024_v14  ;;  %2054 = vmatpush1.bf16.msra.mxu1 %v8796_v29  ;;  %v8814_v14 = vld [vmem:[#allocation7 + $0x698] ss:$24 sps:$4 sm:$0xff]  }
 0x10f   :  { %2140 = vmatpush1.bf16.msra.mxu0 %v8799_v30  ;;  %2055 = vmatprep.subr.bf16.mxu1 %v8804_v31  ;;  %v8883_v29 = vld [vmem:[#allocation7 + $0x5b0] ss:$24 sps:$4 sm:$0xff]   ;;  %v8888_v30 = vld [vmem:[#allocation7 + $0x8dc] ss:$24 sps:$4 sm:$0xff]  }
 0x110   :  { %2141 = vmatprep.subr.bf16.mxu0 %v8807_v32  ;;  %2085 = vmatprep.mubr.bf16.mxu1 %v10031_v44  ;;  %v8891_v31 = vld [vmem:[#allocation7 + $0x5e4] ss:$24 sps:$4 sm:$0xff]   ;;  %v8886_v32 = vld [vmem:[#allocation7 + $0x8d8] ss:$24 sps:$4 sm:$0xff]  }
 0x111   :  { %2171 = vmatprep.mubr.bf16.mxu0 %v10020_v54  ;;  %v8826_v54 = vld [vmem:[#allocation7 + $0x6f8] ss:$24 sps:$4 sm:$0xff]  }
 0x112   :  { %2056 = vmatpush1.bf16.msra.mxu1 %v8802_v33  ;;  %v8889_v33 = vld [vmem:[#allocation7 + $0x5e0] ss:$24 sps:$4 sm:$0xff]  }
 0x113   :  { %2142 = vmatpush1.bf16.msra.mxu0 %v8805_v34  ;;  %2057 = vmatprep.subr.bf16.mxu1 %v8810_v36  ;;  %v8894_v34 = vld [vmem:[#allocation7 + $0x614] ss:$24 sps:$4 sm:$0xff]   ;;  %v8897_v36 = vld [vmem:[#allocation7 + $0x644] ss:$24 sps:$4 sm:$0xff]  }
 0x114   :  { %2143 = vmatprep.subr.bf16.mxu0 %v8813_v37  ;;  %v8895_v37 = vld [vmem:[#allocation7 + $0x640] ss:$24 sps:$4 sm:$0xff]  }
 0x116   :  { %2058 = vmatpush1.bf16.msra.mxu1 %v8808_v39  ;;  %v8898_v39 = vld [vmem:[#allocation7 + $0x670] ss:$24 sps:$4 sm:$0xff]  }
 0x117   :  { %2144 = vmatpush1.bf16.msra.mxu0 %v8811_v40  ;;  %2059 = vmatprep.subr.bf16.mxu1 %v8816_v41  ;;  %v8903_v40 = vld [vmem:[#allocation7 + $0x6a4] ss:$24 sps:$4 sm:$0xff]   ;;  %v8901_v41 = vld [vmem:[#allocation7 + $0x6a0] ss:$24 sps:$4 sm:$0xff]  }
 0x118   :  { %2145 = vmatprep.subr.bf16.mxu0 %v8819_v53  ;;  %v8906_v53 = vld [vmem:[#allocation7 + $0x6d4] ss:$24 sps:$4 sm:$0xff]  }
 0x11a   :  { %2060 = vmatpush1.bf16.msra.mxu1 %v8814_v14  ;;  %v8904_v14 = vld [vmem:[#allocation7 + $0x6d0] ss:$24 sps:$4 sm:$0xff]  }
 0x11b   :  { %2146 = vmatpush1.bf16.msra.mxu0 %v8817_v42  ;;  %2061 = vmatprep.subr.bf16.mxu1 %v8822_v43  ;;  %v8909_v42 = vld [vmem:[#allocation7 + $0x704] ss:$24 sps:$4 sm:$0xff]   ;;  %v8907_v43 = vld [vmem:[#allocation7 + $0x700] ss:$24 sps:$4 sm:$0xff]  }
 0x11c   :  { %2147 = vmatprep.subr.bf16.mxu0 %v8825_v45  ;;  %v8912_v45 = vld [vmem:[#allocation7 + $0x734] ss:$24 sps:$4 sm:$0xff]  }
 0x11e   :  { %2062 = vmatpush1.bf16.msra.mxu1 %v8820_v46 }
 0x11f   :  { %2148 = vmatpush1.bf16.msra.mxu0 %v8823_v47  ;;  %2063 = vmatprep.subr.bf16.mxu1 %v8828_v48 }
 0x120   :  { %2149 = vmatprep.subr.bf16.mxu0 %v8831_v49 }
 0x122   :  { %2064 = vmatpush1.bf16.msra.mxu1 %v8826_v54  ;;  %v8913_v54 = vld [vmem:[#allocation7 + $0x760] ss:$24 sps:$4 sm:$0xff]  }
 0x123   :  { %2150 = vmatpush1.bf16.msra.mxu0 %v8829_v50  ;;  %2065 = vmatprep.subr.bf16.mxu1 %v8834_v51  ;;  %v8918_v50 = vld [vmem:[#allocation7 + $0x794] ss:$24 sps:$4 sm:$0xff]   ;;  %v8916_v51 = vld [vmem:[#allocation7 + $0x790] ss:$24 sps:$4 sm:$0xff]  }
 0x124   :  { %2151 = vmatprep.subr.bf16.mxu0 %v8837_v52  ;;  %v8921_v52 = vld [vmem:[#allocation7 + $0x7c4] ss:$24 sps:$4 sm:$0xff]  }
 0x126   :  { %2066 = vmatpush1.bf16.msra.mxu1 %v8832_v55  ;;  %v8919_v55 = vld [vmem:[#allocation7 + $0x7c0] ss:$24 sps:$4 sm:$0xff]  }
 0x127   :  { %2152 = vmatpush1.bf16.msra.mxu0 %v8835_v56  ;;  %2067 = vmatprep.subr.bf16.mxu1 %v8840_v57  ;;  %v8924_v56 = vld [vmem:[#allocation7 + $0x7f4] ss:$24 sps:$4 sm:$0xff]   ;;  %v8922_v57 = vld [vmem:[#allocation7 + $0x7f0] ss:$24 sps:$4 sm:$0xff]  }
 0x128   :  { %2153 = vmatprep.subr.bf16.mxu0 %v8843_v58  ;;  %v8927_v58 = vld [vmem:[#allocation7 + $0x824] ss:$24 sps:$4 sm:$0xff]  }
 0x12a   :  { %2068 = vmatpush1.bf16.msra.mxu1 %v8838_v59  ;;  %v8925_v59 = vld [vmem:[#allocation7 + $0x820] ss:$24 sps:$4 sm:$0xff]  }
 0x12b   :  { %2154 = vmatpush1.bf16.msra.mxu0 %v8841_v60  ;;  %2069 = vmatprep.subr.bf16.mxu1 %v8846_v61  ;;  %v8930_v60 = vld [vmem:[#allocation7 + $0x854] ss:$24 sps:$4 sm:$0xff]   ;;  %v8928_v61 = vld [vmem:[#allocation7 + $0x850] ss:$24 sps:$4 sm:$0xff]  }
 0x12c   :  { %2155 = vmatprep.subr.bf16.mxu0 %v8849_v62  ;;  %v8933_v62 = vld [vmem:[#allocation7 + $0x884] ss:$24 sps:$4 sm:$0xff]  }
 0x12e   :  { %2070 = vmatpush1.bf16.msra.mxu1 %v8844_v0  ;;  %v8936_v0 = vld [vmem:[#allocation7 + $0x8b4] ss:$24 sps:$4 sm:$0xff]  }
 0x12f   :  { %2156 = vmatpush1.bf16.msra.mxu0 %v8847_v1  ;;  %2071 = vmatprep.subr.bf16.mxu1 %v8852_v3  ;;  %v8934_v1 = vld [vmem:[#allocation7 + $0x8b0] ss:$24 sps:$4 sm:$0xff]   ;;  %v8937_v3 = vld [vmem:[#allocation7 + $0x8e0] ss:$24 sps:$4 sm:$0xff]  }
 0x130   :  { %2157 = vmatprep.subr.bf16.mxu0 %v8855_v4 }
 0x132   :  { %2072 = vmatpush1.bf16.msra.mxu1 %v8850_v5 }
 0x133   :  { %2158 = vmatpush1.bf16.msra.mxu0 %v8853_v6  ;;  %2073 = vmatprep.subr.bf16.mxu1 %v8858_v7 }
 0x134   :  { %2159 = vmatprep.subr.bf16.mxu0 %v8861_v8 }
 0x136   :  { %2074 = vmatpush1.bf16.msra.mxu1 %v8856_v9 }
 0x137   :  { %2160 = vmatpush1.bf16.msra.mxu0 %v8859_v10  ;;  %2075 = vmatprep.subr.bf16.mxu1 %v8864_v11 }
 0x138   :  { %2161 = vmatprep.subr.bf16.mxu0 %v8867_v12 }
 0x13a   :  { %2076 = vmatpush1.bf16.msra.mxu1 %v8862_v13 }
 0x13b   :  { %2162 = vmatpush1.bf16.msra.mxu0 %v8865_v16  ;;  %2077 = vmatprep.subr.bf16.mxu1 %v8870_v17 }
 0x13c   :  { %2163 = vmatprep.subr.bf16.mxu0 %v8873_v18  ;;  %v9940_v18 = vmov 0  }
 0x13e   :  { %2078 = vmatpush1.bf16.msra.mxu1 %v8868_v19 }
 0x13f   :  { %2164 = vmatpush1.bf16.msra.mxu0 %v8871_v20  ;;  %2079 = vmatprep.subr.bf16.mxu1 %v8876_v21  ;;  %v9808_v20 = vld [vmem:[#allocation5] sm:$0xff] }
 0x140   :  { %2165 = vmatprep.subr.bf16.mxu0 %v8879_v22 }
 0x142   :  { %2080 = vmatpush1.bf16.msra.mxu1 %v8874_v24  ;;  %v8943_v24 = vld [vmem:[#allocation7 + $0x908] ss:$24 sps:$4 sm:$0xff]  }
 0x143   :  { %2166 = vmatpush1.bf16.msra.mxu0 %v8877_v25  ;;  %2081 = vmatprep.subr.bf16.mxu1 %v8882_v26  ;;  %v8945_v25 = vld [vmem:[#allocation7 + $0x90c] ss:$24 sps:$4 sm:$0xff]   ;;  %v8951_v26 = vld [vmem:[#allocation7 + $0x93c] ss:$24 sps:$4 sm:$0xff]  }
 0x144   :  { %2167 = vmatprep.subr.bf16.mxu0 %v8885_v27  ;;  %v8949_v27 = vld [vmem:[#allocation7 + $0x938] ss:$24 sps:$4 sm:$0xff]  }
 0x146   :  { %2082 = vmatpush1.bf16.msra.mxu1 %v8880_v28  ;;  %v8957_v28 = vld [vmem:[#allocation7 + $0x96c] ss:$24 sps:$4 sm:$0xff]  }
 0x147   :  { %2168 = vmatpush1.bf16.msra.mxu0 %v8883_v29  ;;  %2083 = vmatprep.subr.bf16.mxu1 %v8888_v30  ;;  %v8955_v29 = vld [vmem:[#allocation7 + $0x968] ss:$24 sps:$4 sm:$0xff]   ;;  %v8963_v30 = vld [vmem:[#allocation7 + $0x99c] ss:$24 sps:$4 sm:$0xff]  }
 0x148   :  { %2169 = vmatprep.subr.bf16.mxu0 %v8891_v31  ;;  %v8961_v31 = vld [vmem:[#allocation7 + $0x998] ss:$24 sps:$4 sm:$0xff]  }
 0x14a   :  { %2084 = vmatpush1.bf16.msra.mxu1 %v8886_v32  ;;  %v8969_v32 = vld [vmem:[#allocation7 + $0x9cc] ss:$24 sps:$4 sm:$0xff]  }
 0x14b   :  { %2170 = vmatpush1.bf16.msra.mxu0 %v8889_v33  ;;  %v8967_v33 = vld [vmem:[#allocation7 + $0x9c8] ss:$24 sps:$4 sm:$0xff]  }
 0x14c   :  { %2182 = vmatprep.subr.bf16.mxu0 %v8894_v34  ;;  %v8975_v34 = vld [vmem:[#allocation7 + $0x9fc] ss:$24 sps:$4 sm:$0xff]  }
 0x14d   :  { %2086 = vmatmul.mubr.bf16.vlgmr.msra.gmra.mrb[4].mxu1 %v10034_v23 }
 0x14e   :  { %2172 = vmatmul.mubr.bf16.vlgmr.msra.gmra.mrb[4].mxu0 %v10026_v15  ;;  %v8910_v15 = vld [vmem:[#allocation7 + $0x730] ss:$24 sps:$4 sm:$0xff]   ;;  %2322 = vmatprep.mubr.bf16.mxu1 %v9940_v18 }
 0x14f   :  { %2183 = vmatpush1.bf16.msra.mxu0 %v8892_v35  ;;  %2214 = vmatprep.mubr.bf16.mxu0 %v10031_v44  ;;  %v8915_v44 = vld [vmem:[#allocation7 + $0x764] ss:$24 sps:$4 sm:$0xff]   ;;  %v8973_v35 = vld [vmem:[#allocation7 + $0x9f8] ss:$24 sps:$4 sm:$0xff]  }
 0x150   :  { %2184 = vmatprep.subr.bf16.mxu0 %v8897_v36  ;;  %v8981_v36 = vld [vmem:[#allocation7 + $0xa2c] ss:$24 sps:$4 sm:$0xff]  }
 0x153   :  { %2185 = vmatpush1.bf16.msra.mxu0 %v8895_v37  ;;  %v8979_v37 = vld [vmem:[#allocation7 + $0xa28] ss:$24 sps:$4 sm:$0xff]  }
 0x154   :  { %2186 = vmatprep.subr.bf16.mxu0 %v8900_v38  ;;  %v8987_v38 = vld [vmem:[#allocation7 + $0xa5c] ss:$24 sps:$4 sm:$0xff]  }
 0x157   :  { %2187 = vmatpush1.bf16.msra.mxu0 %v8898_v39  ;;  %v8985_v39 = vld [vmem:[#allocation7 + $0xa58] ss:$24 sps:$4 sm:$0xff]  }
 0x158   :  { %2188 = vmatprep.subr.bf16.mxu0 %v8903_v40 }
 0x15b   :  { %2189 = vmatpush1.bf16.msra.mxu0 %v8901_v41 }
 0x15c   :  { %2190 = vmatprep.subr.bf16.mxu0 %v8906_v53 }
 0x15f   :  { %2191 = vmatpush1.bf16.msra.mxu0 %v8904_v14 }
 0x160   :  { %2192 = vmatprep.subr.bf16.mxu0 %v8909_v42  ;;  %v1872_v46 = vpop.f32.mrb[0].mxu1 }
 0x161   :  { %v1874_v47 = vpop.f32.mrb[1].mxu1 }
 0x162   :  { %v1876_v48 = vpop.f32.mrb[2].mxu1 }
 0x163   :  { %2193 = vmatpush1.bf16.msra.mxu0 %v8907_v43  ;;  %v1878_v49 = vpop.f32.mrb[3].mxu1 }
 0x164   :  { %2194 = vmatprep.subr.bf16.mxu0 %v8912_v45 }
 0x167   :  { %2195 = vmatpush1.bf16.msra.mxu0 %v8910_v15 }
 0x168   :  { %2196 = vmatprep.subr.bf16.mxu0 %v8915_v44 }
 0x169   :  { %v79_v4 = vpop.xlane.xlu0 %78 }
 0x16a   :  { %v83_v5 = vadd.f32 1.0, %v79_v4  ;;  %v8940_v4 = vld [vmem:[#allocation7 + $0x900] ss:$24 sps:$4 sm:$0xff]  }
 0x16b   :  { %2197 = vmatpush1.bf16.msra.mxu0 %v8913_v54 }
 0x16c   :  { %2198 = vmatprep.subr.bf16.mxu0 %v8918_v50  ;;  %9804 = vrcp.f32 %v83_v5  ;;  %v8948_v5 = vld [vmem:[#allocation7 + $0x934] ss:$24 sps:$4 sm:$0xff]  }
 0x16f   :  { %2199 = vmatpush1.bf16.msra.mxu0 %v8916_v51 }
 0x170   :  { %2200 = vmatprep.subr.bf16.mxu0 %v8921_v52 }
 0x173   :  { %2201 = vmatpush1.bf16.msra.mxu0 %v8919_v55 }
 0x174   :  { %2202 = vmatprep.subr.bf16.mxu0 %v8924_v56 }
 0x176   :  { %v9805_v19 = vpop.eup %9804 }
 0x177   :  { %2203 = vmatpush1.bf16.msra.mxu0 %v8922_v57  ;;  %v86_v21 = vmul.f32 %v9808_v20, %v9805_v19  ;;  %v8960_v19 = vld [vmem:[#allocation7 + $0x994] ss:$24 sps:$4 sm:$0xff]  }
 0x178   :  { %2204 = vmatprep.subr.bf16.mxu0 %v8927_v58 }
 0x179   :  { %v10057_v22 = vpack.c.bf16 %v86_v21, %v86_v21  ;;  %v9003_v21 = vld [vmem:[#allocation7 + $0xae8] ss:$24 sps:$4 sm:$0xff]  }
 0x17b   :  { %2205 = vmatpush1.bf16.msra.mxu0 %v8925_v59  ;;  %v9809_v59 = vld [vmem:[#allocation5 + $0x8] sm:$0xff] }
 0x17c   :  { %2206 = vmatprep.subr.bf16.mxu0 %v8930_v60 }
 0x17f   :  { %2207 = vmatpush1.bf16.msra.mxu0 %v8928_v61 }
 0x180   :  { %2208 = vmatprep.subr.bf16.mxu0 %v8933_v62 }
 0x183   :  { %2209 = vmatpush1.bf16.msra.mxu0 %v8931_v63 }
 0x184   :  { %2210 = vmatprep.subr.bf16.mxu0 %v8936_v0 }
 0x185   :  { %v82_v15 = vpop.xlane.xlu0 %81 }
 0x187   :  { %2211 = vmatpush1.bf16.msra.mxu0 %v8934_v1 }
 0x188   :  { %2212 = vmatprep.subr.bf16.mxu0 %v8939_v2  ;;  %v8942_v2 = vld [vmem:[#allocation7 + $0x904] ss:$24 sps:$4 sm:$0xff]  }
 0x18b   :  { %2213 = vmatpush1.bf16.msra.mxu0 %v8937_v3 }
 0x18c   :  { %4435 = vmatprep.subr.bf16.mxu0 %v8945_v25  ;;  %v8958_v25 = vld [vmem:[#allocation7 + $0x990] ss:$24 sps:$4 sm:$0xff]  }
 0x18e   :  { %2215 = vmatmul.mubr.bf16.vlgmr.msra.gmra.mrb[4].mxu0 %v10034_v23 }
 0x18f   :  { %4436 = vmatpush1.bf16.msra.mxu0 %v8943_v24  ;;  %v9011_v24 = vld [vmem:[#allocation7 + $0xb1c] ss:$24 sps:$4 sm:$0xff]  }
 0x190   :  { %4437 = vmatprep.subr.bf16.mxu0 %v8951_v26  ;;  %v8966_v26 = vld [vmem:[#allocation7 + $0x9c4] ss:$24 sps:$4 sm:$0xff]  }
 0x193   :  { %4438 = vmatpush1.bf16.msra.mxu0 %v8949_v27  ;;  %v9009_v27 = vld [vmem:[#allocation7 + $0xb18] ss:$24 sps:$4 sm:$0xff]  }
 0x194   :  { %4439 = vmatprep.subr.bf16.mxu0 %v8957_v28  ;;  %v8964_v28 = vld [vmem:[#allocation7 + $0x9c0] ss:$24 sps:$4 sm:$0xff]  }
 0x197   :  { %4440 = vmatpush1.bf16.msra.mxu0 %v8955_v29  ;;  %v8972_v29 = vld [vmem:[#allocation7 + $0x9f4] ss:$24 sps:$4 sm:$0xff]  }
 0x198   :  { %4441 = vmatprep.subr.bf16.mxu0 %v8963_v30  ;;  %v8970_v30 = vld [vmem:[#allocation7 + $0x9f0] ss:$24 sps:$4 sm:$0xff]  }
 0x19b   :  { %4442 = vmatpush1.bf16.msra.mxu0 %v8961_v31  ;;  %v8978_v31 = vld [vmem:[#allocation7 + $0xa24] ss:$24 sps:$4 sm:$0xff]  }
 0x19c   :  { %4443 = vmatprep.subr.bf16.mxu0 %v8969_v32  ;;  %v8976_v32 = vld [vmem:[#allocation7 + $0xa20] ss:$24 sps:$4 sm:$0xff]  }
 0x19f   :  { %4444 = vmatpush1.bf16.msra.mxu0 %v8967_v33  ;;  %v8984_v33 = vld [vmem:[#allocation7 + $0xa54] ss:$24 sps:$4 sm:$0xff]  }
 0x1a0   :  { %4445 = vmatprep.subr.bf16.mxu0 %v8975_v34  ;;  %v8982_v34 = vld [vmem:[#allocation7 + $0xa50] ss:$24 sps:$4 sm:$0xff]  }
 0x1a1   :  { %v1958_v6 = vpop.f32.mrb[0].mxu0 }
 0x1a2   :  { %v8422_v7 = vadd.f32 %v1958_v6, %v1872_v46  ;;  %v1960_v8 = vpop.f32.mrb[1].mxu0  ;;  %v84_v46 = vadd.f32 1.0, %v82_v15  ;;  %v8991_v6 = vld [vmem:[#allocation7 + $0xa88] ss:$24 sps:$4 sm:$0xff]   ;;  %v9020_v15 = vld [vmem:[#allocation7 + $0xb74] ss:$24 sps:$4 sm:$0xff]  }
 0x1a3   :  { %v8423_v9 = vadd.f32 %v1960_v8, %v1874_v47  ;;  %v1962_v10 = vpop.f32.mrb[2].mxu0  ;;  %4446 = vmatpush1.bf16.msra.mxu0 %v8973_v35  ;;  %v8946_v8 = vld [vmem:[#allocation7 + $0x930] ss:$24 sps:$4 sm:$0xff]   ;;  %v8990_v35 = vld [vmem:[#allocation7 + $0xa84] ss:$24 sps:$4 sm:$0xff]  }
 0x1a4   :  { %v2225_v11 = vpack.c.bf16 %v8422_v7, %v8422_v7  ;;  %v10050_v12 = vadd.f32 %v1962_v10, %v1876_v48  ;;  %v1964_v13 = vpop.f32.mrb[3].mxu0  ;;  %4447 = vmatprep.subr.bf16.mxu0 %v8981_v36  ;;  %9806 = vrcp.f32 %v84_v46  ;;  %v8993_v7 = vld [vmem:[#allocation7 + $0xa8c] ss:$24 sps:$4 sm:$0xff]   ;;  %v8988_v36 = vld [vmem:[#allocation7 + $0xa80] ss:$24 sps:$4 sm:$0xff]  }
 0x1a5   :  { %v2226_v16 = vpack.c.bf16 %v8423_v9, %v8423_v9  ;;  %v10052_v17 = vadd.f32 %v1964_v13, %v1878_v49  ;;  %v8999_v9 = vld [vmem:[#allocation7 + $0xabc] ss:$24 sps:$4 sm:$0xff]  }
 0x1a6   :  { %v2273_v23 = vsel %vm2271_vm1, %v2225_v11, 0  ;;  %v2231_v52 = vpack.c.bf16 %v10050_v12, %v10050_v12  ;;  %v8954_v10 = vld [vmem:[#allocation7 + $0x964] ss:$24 sps:$4 sm:$0xff]   ;;  %v8997_v12 = vld [vmem:[#allocation7 + $0xab8] ss:$24 sps:$4 sm:$0xff]  }
 0x1a7   :  { %7810 = vmatprep.subr.msk.bf16.mxu1 %vm2271_vm1, %v2226_v16  ;;  %4448 = vmatpush1.bf16.msra.mxu0 %v8979_v37  ;;  %v2232_v55 = vpack.c.bf16 %v10052_v17, %v10052_v17  ;;  %v9005_v16 = vld [vmem:[#allocation7 + $0xaec] ss:$24 sps:$4 sm:$0xff]   ;;  %v8952_v17 = vld [vmem:[#allocation7 + $0x960] ss:$24 sps:$4 sm:$0xff]   ;;  %v9023_v46 = vld [vmem:[#allocation7 + $0xb7c] ss:$24 sps:$4 sm:$0xff]  }
 0x1a8   :  { %2291 = vmatpush1.bf16.msra.mxu1 %v2273_v23  ;;  %4449 = vmatprep.subr.bf16.mxu0 %v8987_v38  ;;  %v2417_v57 = vsel %vm2271_vm1, %v2231_v52, 0  ;;  %v8996_v37 = vld [vmem:[#allocation7 + $0xab4] ss:$24 sps:$4 sm:$0xff]   ;;  %v8994_v38 = vld [vmem:[#allocation7 + $0xab0] ss:$24 sps:$4 sm:$0xff]  }
 0x1a9   :  { %v9035_v52 = vld [vmem:[#allocation7 + $0xbdc] ss:$24 sps:$4 sm:$0xff]  }
 0x1ab   :  { %7811 = vmatmul.mubr.msk.bf16.vlgmr.msra.gmra.mrb[8].mxu1 %vm76_vm0, %v10057_v22  ;;  %4450 = vmatpush1.bf16.msra.mxu0 %v8985_v39  ;;  %v9002_v39 = vld [vmem:[#allocation7 + $0xae4] ss:$24 sps:$4 sm:$0xff]  }
 0x1ac   :  { %2363 = vmatprep.mubr.bf16.mxu1 %v9940_v18  ;;  %4451 = vmatprep.subr.bf16.mxu0 %v8993_v7 }
 0x1ae   :  { %v9807_v56 = vpop.eup %9806 }
 0x1af   :  { %v88_v60 = vmul.f32 %v9809_v59, %v9807_v56  ;;  %4452 = vmatpush1.bf16.msra.mxu0 %v8991_v6  ;;  %v9033_v56 = vld [vmem:[#allocation7 + $0xbd8] ss:$24 sps:$4 sm:$0xff]  }
 0x1b0   :  { %4453 = vmatprep.subr.bf16.mxu0 %v8999_v9 }
 0x1b1   :  { %v10079_v62 = vpack.c.bf16 %v88_v60, %v88_v60 }
 0x1b3   :  { %4454 = vmatpush1.bf16.msra.mxu0 %v8997_v12 }
 0x1b4   :  { %4455 = vmatprep.subr.bf16.mxu0 %v9005_v16 }
 0x1b7   :  { %4456 = vmatpush1.bf16.msra.mxu0 %v9003_v21 }
 0x1b8   :  { %4457 = vmatprep.subr.bf16.mxu0 %v9011_v24 }
 0x1bb   :  { %4458 = vmatpush1.bf16.msra.mxu0 %v9009_v27 }
 0x220   :  { %v2087_v40 = vpop.f32.mrb[4].mxu1 }
 0x221   :  { %v2227_v41 = vpack.c.bf16 %v2087_v40, %v2087_v40  ;;  %v2089_v53 = vpop.f32.mrb[5].mxu1  ;;  %v9000_v40 = vld [vmem:[#allocation7 + $0xae0] ss:$24 sps:$4 sm:$0xff]  }
 0x222   :  { %v2228_v14 = vpack.c.bf16 %v2089_v53, %v2089_v53  ;;  %v2091_v42 = vpop.f32.mrb[6].mxu1  ;;  %v9006_v53 = vld [vmem:[#allocation7 + $0xb10] ss:$24 sps:$4 sm:$0xff]  }
 0x223   :  { %v2279_v43 = vsel %vm2271_vm1, %v2227_v41, 0  ;;  %v2093_v45 = vpop.f32.mrb[7].mxu1  ;;  %v2233_v61 = vpack.c.bf16 %v2091_v42, %v2091_v42  ;;  %v9008_v41 = vld [vmem:[#allocation7 + $0xb14] ss:$24 sps:$4 sm:$0xff]  }
 0x224   :  { %7812 = vmatprep.subr.msk.bf16.mxu1 %vm2271_vm1, %v2228_v14  ;;  %v2234_v58 = vpack.c.bf16 %v2093_v45, %v2093_v45  ;;  %v9014_v14 = vld [vmem:[#allocation7 + $0xb44] ss:$24 sps:$4 sm:$0xff]   ;;  %v9015_v45 = vld [vmem:[#allocation7 + $0xb48] ss:$24 sps:$4 sm:$0xff]  }
 0x225   :  { %2332 = vmatpush1.bf16.msra.mxu1 %v2279_v43  ;;  %v2423_v63 = vsel %vm2271_vm1, %v2233_v61, 0  ;;  %v9017_v42 = vld [vmem:[#allocation7 + $0xb4c] ss:$24 sps:$4 sm:$0xff]   ;;  %v9012_v43 = vld [vmem:[#allocation7 + $0xb40] ss:$24 sps:$4 sm:$0xff]  }
 0x226   :  { %4459 = vmatprep.subr.bf16.mxu0 %v9017_v42  ;;  %v9042_v42 = vld [vmem:[#allocation7 + $0xc30] ss:$24 sps:$4 sm:$0xff]  }
 0x227   :  { %4460 = vmatpush1.bf16.msra.mxu0 %v9015_v45 }
 0x228   :  { %7813 = vmatmul.mubr.msk.bf16.vlgmr.msra.gmra.mrb[12].mxu1 %vm76_vm0, %v10057_v22  ;;  %4461 = vmatprep.subr.bf16.mxu0 %v9023_v46  ;;  %v9050_v46 = vld [vmem:[#allocation7 + $0xc64] ss:$24 sps:$4 sm:$0xff]  }
 0x229   :  { %2404 = vmatprep.mubr.bf16.mxu1 %v9940_v18 }
 0x261   :  { %v2216_v44 = vpop.f32.mrb[4].mxu0 }
 0x262   :  { %v2229_v47 = vpack.c.bf16 %v2216_v44, %v2216_v44  ;;  %v2218_v48 = vpop.f32.mrb[5].mxu0  ;;  %v9018_v44 = vld [vmem:[#allocation7 + $0xb70] ss:$24 sps:$4 sm:$0xff]  }
 0x263   :  { %v2230_v49 = vpack.c.bf16 %v2218_v48, %v2218_v48  ;;  %v2220_v54 = vpop.f32.mrb[6].mxu0  ;;  %v9026_v48 = vld [vmem:[#allocation7 + $0xba4] ss:$24 sps:$4 sm:$0xff]  }
 0x264   :  { %v2285_v50 = vsel %vm2271_vm1, %v2229_v47, 0  ;;  %v2222_v51 = vpop.f32.mrb[7].mxu0  ;;  %v2235_v1 = vpack.c.bf16 %v2220_v54, %v2220_v54  ;;  %v9021_v47 = vld [vmem:[#allocation7 + $0xb78] ss:$24 sps:$4 sm:$0xff]  }
 0x265   :  { %7814 = vmatprep.subr.msk.bf16.mxu1 %vm2271_vm1, %v2230_v49  ;;  %v2236_v0 = vpack.c.bf16 %v2222_v51, %v2222_v51  ;;  %4462 = vmatpush1.bf16.msra.mxu0 %v9021_v47  ;;  %v9029_v49 = vld [vmem:[#allocation7 + $0xbac] ss:$24 sps:$4 sm:$0xff]   ;;  %v9024_v54 = vld [vmem:[#allocation7 + $0xba0] ss:$24 sps:$4 sm:$0xff]  }
 0x266   :  { %2373 = vmatpush1.bf16.msra.mxu1 %v2285_v50  ;;  %v2429_v3 = vsel %vm2271_vm1, %v2235_v1, 0  ;;  %v9027_v50 = vld [vmem:[#allocation7 + $0xba8] ss:$24 sps:$4 sm:$0xff]   ;;  %4463 = vmatprep.subr.bf16.mxu0 %v9029_v49  ;;  %v9032_v51 = vld [vmem:[#allocation7 + $0xbd4] ss:$24 sps:$4 sm:$0xff]  }
 0x267   :  { %7816 = vmatprep.subr.msk.bf16.mxu1 %vm2271_vm1, %v2232_v55  ;;  %v9030_v55 = vld [vmem:[#allocation7 + $0xbd0] ss:$24 sps:$4 sm:$0xff]  }
 0x269   :  { %7815 = vmatmul.mubr.msk.bf16.vlgmr.msra.gmra.mrb[16].mxu1 %vm76_vm0, %v10057_v22  ;;  %4464 = vmatpush1.bf16.msra.mxu0 %v9027_v50 }
 0x26a   :  { %2435 = vmatpush1.bf16.msra.mxu1 %v2417_v57  ;;  %2466 = vmatprep.mubr.bf16.mxu1 %v9940_v18  ;;  %v9038_v57 = vld [vmem:[#allocation7 + $0xc04] ss:$24 sps:$4 sm:$0xff]  }
 0x26b   :  { %7818 = vmatprep.subr.msk.bf16.mxu1 %vm2271_vm1, %v2234_v58  ;;  %4465 = vmatprep.subr.bf16.mxu0 %v9035_v52  ;;  %v9041_v58 = vld [vmem:[#allocation7 + $0xc0c] ss:$24 sps:$4 sm:$0xff]  }
 0x26d   :  { %4466 = vmatpush1.bf16.msra.mxu0 %v9033_v56 }
 0x26e   :  { %4478 = vmatprep.subr.bf16.mxu0 %v9041_v58  ;;  %v9051_v58 = vld [vmem:[#allocation7 + $0xc68] ss:$24 sps:$4 sm:$0xff]  }
 0x271   :  { %7817 = vmatmul.mubr.msk.bf16.vlgmr.msra.gmra.mrb[20].mxu1 %vm76_vm0, %v10079_v62 }
 0x272   :  { %2476 = vmatpush1.bf16.msra.mxu1 %v2423_v63  ;;  %2507 = vmatprep.mubr.bf16.mxu1 %v9940_v18 }
 0x273   :  { %7820 = vmatprep.subr.msk.bf16.mxu1 %vm2271_vm1, %v2236_v0  ;;  %v2238_v0 = vlaneseq }
 0x275   :  { %v2239_v1 = vshrl.u32 %v2238_v0, 7 }
 0x277   :  { %v10105_v16 = vsub.s32 2, %v2239_v1 }
 0x279   :  { %7819 = vmatmul.mubr.msk.bf16.vlgmr.msra.gmra.mrb[24].mxu1 %vm76_vm0, %v10079_v62 }
 0x27a   :  { %2517 = vmatpush1.bf16.msra.mxu1 %v2429_v3  ;;  %2548 = vmatprep.mubr.bf16.mxu1 %v9940_v18  ;;  %v391_v3 = vld [vmem:[#allocation8] sm:$0x3f] }
 0x27b   :  { %4306 = vmatprep.subr.bf16.mxu1 %v8942_v2  ;;  %v10096_v2 = vsub.s32 0, %v2239_v1  ;;  %v2249_v27 = vrot.slane %v391_v3, %v10105_v16 }
 0x27e   :  { %v10092_v11 = vpop.f32.mrb[8].mxu1 }
 0x27f   :  { %v10094_v13 = vpop.f32.mrb[9].mxu1 }
 0x280   :  { %v2328_v23 = vpop.f32.mrb[10].mxu1 }
 0x281   :  { %7821 = vmatmul.mubr.msk.bf16.vlgmr.msra.gmra.mrb[28].mxu1 %vm76_vm0, %v10079_v62  ;;  %v2329_v20 = vpop.f32.mrb[11].mxu1  ;;  %v10108_v23 = vsub.s32 3, %v2239_v1 }
 0x282   :  { %4307 = vmatpush1.bf16.msra.mxu1 %v8940_v4  ;;  %v10098_v4 = vsub.s32 1, %v2239_v1 }
 0x283   :  { %4308 = vmatprep.subr.bf16.mxu1 %v8948_v5 }
 0x286   :  { %4309 = vmatpush1.bf16.msra.mxu1 %v8946_v8  ;;  %v2241_v8 = vrot.slane %v391_v3, %v10096_v2 }
 0x287   :  { %4310 = vmatprep.subr.bf16.mxu1 %v8954_v10  ;;  %v2245_v10 = vrot.slane %v391_v3, %v10098_v4 }
 0x288   :  { %v2325_v12 = vadd.f32 %v10092_v11, %v2241_v8 }
 0x28a   :  { %4311 = vmatpush1.bf16.msra.mxu1 %v8952_v17  ;;  %v2327_v17 = vadd.f32 %v10094_v13, %v2245_v10  ;;  %v9036_v13 = vld [vmem:[#allocation7 + $0xc00] ss:$24 sps:$4 sm:$0xff]  }
 0x28b   :  { %4312 = vmatprep.subr.bf16.mxu1 %v8960_v19 }
 0x28e   :  { %4313 = vmatpush1.bf16.msra.mxu1 %v8958_v25 }
 0x28f   :  { %4314 = vmatprep.subr.bf16.mxu1 %v8966_v26  ;;  %v2557_v26 = vmax.f32 %v2325_v12, 0.0 }
 0x292   :  { %4315 = vmatpush1.bf16.msra.mxu1 %v8964_v28 }
 0x293   :  { %4316 = vmatprep.subr.bf16.mxu1 %v8972_v29 }
 0x296   :  { %4317 = vmatpush1.bf16.msra.mxu1 %v8970_v30  ;;  %v2558_v30 = vmax.f32 %v2327_v17, 0.0 }
 0x297   :  { %4318 = vmatprep.subr.bf16.mxu1 %v8978_v31  ;;  %v2253_v31 = vrot.slane %v391_v3, %v10108_v23 }
 0x29a   :  { %4319 = vmatpush1.bf16.msra.mxu1 %v8976_v32 }
 0x29b   :  { %4320 = vmatprep.subr.bf16.mxu1 %v8984_v33 }
 0x29e   :  { %4321 = vmatpush1.bf16.msra.mxu1 %v8982_v34  ;;  %v9039_v34 = vld [vmem:[#allocation7 + $0xc08] ss:$24 sps:$4 sm:$0xff]  }
 0x29f   :  { %4322 = vmatprep.subr.bf16.mxu1 %v8990_v35 }
 0x2a2   :  { %4323 = vmatpush1.bf16.msra.mxu1 %v8988_v36  ;;  %v10116_v36 = vsub.s32 4, %v2239_v1 }
 0x2a3   :  { %4324 = vmatprep.subr.bf16.mxu1 %v8996_v37  ;;  %v9044_v37 = vld [vmem:[#allocation7 + $0xc34] ss:$24 sps:$4 sm:$0xff]  }
 0x2a4   :  { %v2257_v47 = vrot.slane %v391_v3, %v10116_v36 }
 0x2a6   :  { %4325 = vmatpush1.bf16.msra.mxu1 %v8994_v38  ;;  %v9047_v38 = vld [vmem:[#allocation7 + $0xc3c] ss:$24 sps:$4 sm:$0xff]  }
 0x2a7   :  { %4326 = vmatprep.subr.bf16.mxu1 %v9002_v39 }
 0x2aa   :  { %4327 = vmatpush1.bf16.msra.mxu1 %v9000_v40  ;;  %v10118_v40 = vsub.s32 5, %v2239_v1 }
 0x2ab   :  { %4328 = vmatprep.subr.bf16.mxu1 %v9008_v41 }
 0x2ae   :  { %4329 = vmatpush1.bf16.msra.mxu1 %v9006_v53 }
 0x2af   :  { %4330 = vmatprep.subr.bf16.mxu1 %v9014_v14 }
 0x2b2   :  { %4331 = vmatpush1.bf16.msra.mxu1 %v9012_v43 }
 0x2b3   :  { %4332 = vmatprep.subr.bf16.mxu1 %v9020_v15  ;;  %v9045_v15 = vld [vmem:[#allocation7 + $0xc38] ss:$24 sps:$4 sm:$0xff]  }
 0x2b6   :  { %4333 = vmatpush1.bf16.msra.mxu1 %v9018_v44 }
 0x2b7   :  { %4334 = vmatprep.subr.bf16.mxu1 %v9026_v48 }
 0x2ba   :  { %4335 = vmatpush1.bf16.msra.mxu1 %v9024_v54  ;;  %v9053_v54 = vld [vmem:[#allocation7 + $0xc6c] ss:$24 sps:$4 sm:$0xff]  }
 0x2bb   :  { %4336 = vmatprep.subr.bf16.mxu1 %v9032_v51  ;;  %v2261_v51 = vrot.slane %v391_v3, %v10118_v40 }
 0x2be   :  { %4337 = vmatpush1.bf16.msra.mxu1 %v9030_v55 }
 0x2bf   :  { %4349 = vmatprep.subr.bf16.mxu1 %v9038_v57  ;;  %v9048_v57 = vld [vmem:[#allocation7 + $0xc60] ss:$24 sps:$4 sm:$0xff]  }
 0x2fb   :  { %v2365_v59 = vpop.f32.mrb[12].mxu1 }
 0x2fc   :  { %v2367_v60 = vpop.f32.mrb[13].mxu1  ;;  %v2366_v35 = vadd.f32 %v2365_v59, %v2249_v27 }
 0x2fd   :  { %v2369_v61 = vpop.f32.mrb[14].mxu1  ;;  %v2368_v39 = vadd.f32 %v2367_v60, %v2253_v31  ;;  %v9056_v60 = vld [vmem:[#allocation7 + $0xc94] ss:$24 sps:$4 sm:$0xff]  }
 0x2fe   :  { %v2370_v63 = vpop.f32.mrb[15].mxu1  ;;  %v2559_v44 = vmax.f32 %v2366_v35, 0.0  ;;  %v9059_v61 = vld [vmem:[#allocation7 + $0xc9c] ss:$24 sps:$4 sm:$0xff]   ;;  %v9075_v35 = vld [vmem:[#allocation7 + $0xd28] ss:$24 sps:$4 sm:$0xff]  }
 0x2ff   :  { %v2560_v50 = vmax.f32 %v2368_v39, 0.0  ;;  %v9078_v39 = vld [vmem:[#allocation7 + $0xd50] ss:$24 sps:$4 sm:$0xff]  }
 0x33c   :  { %v2406_v5 = vpop.f32.mrb[16].mxu1 }
 0x33d   :  { %v10100_v6 = vpop.f32.mrb[17].mxu1  ;;  %v2407_v59 = vadd.f32 %v2406_v5, %v2257_v47  ;;  %v9062_v5 = vld [vmem:[#allocation7 + $0xcc4] ss:$24 sps:$4 sm:$0xff]  }
 0x33e   :  { %v2410_v7 = vpop.f32.mrb[18].mxu1  ;;  %v2409_v63 = vadd.f32 %v10100_v6, %v2261_v51  ;;  %v9065_v6 = vld [vmem:[#allocation7 + $0xccc] ss:$24 sps:$4 sm:$0xff]  }
 0x33f   :  { %v2411_v9 = vpop.f32.mrb[19].mxu1  ;;  %v9054_v7 = vld [vmem:[#allocation7 + $0xc90] ss:$24 sps:$4 sm:$0xff]   ;;  %v2561_v12 = vmax.f32 %v2407_v59, 0.0  ;;  %v9113_v59 = vld [vmem:[#allocation7 + $0xe4c] ss:$24 sps:$4 sm:$0xff]  }
 0x344   :  { %v2468_v19 = vpop.f32.mrb[20].mxu1 }
 0x345   :  { %v2469_v20 = vadd.f32 %v2468_v19, %v2241_v8  ;;  %v2470_v21 = vpop.f32.mrb[21].mxu1 }
 0x346   :  { %v2471_v24 = vadd.f32 %v2470_v21, %v2245_v10  ;;  %v2472_v25 = vpop.f32.mrb[22].mxu1  ;;  %v9057_v10 = vld [vmem:[#allocation7 + $0xc98] ss:$24 sps:$4 sm:$0xff]  }
 0x347   :  { %v2563_v28 = vmax.f32 %v2469_v20, 0.0  ;;  %v2473_v29 = vpop.f32.mrb[23].mxu1  ;;  %v2562_v20 = vmax.f32 %v2409_v63, 0.0  ;;  %v9116_v63 = vld [vmem:[#allocation7 + $0xe74] ss:$24 sps:$4 sm:$0xff]  }
 0x348   :  { %v2564_v11 = vmax.f32 %v2471_v24, 0.0  ;;  %v9071_v29 = vld [vmem:[#allocation7 + $0xcfc] ss:$24 sps:$4 sm:$0xff]  }
 0x349   :  { %v10112_v32 = vpack.c.bf16 %v2563_v28, %v2557_v26  ;;  %v9060_v26 = vld [vmem:[#allocation7 + $0xcc0] ss:$24 sps:$4 sm:$0xff]   ;;  %v9068_v28 = vld [vmem:[#allocation7 + $0xcf4] ss:$24 sps:$4 sm:$0xff]  }
 0x34a   :  { %v10114_v33 = vpack.c.bf16 %v2564_v11, %v2558_v30  ;;  %v9066_v30 = vld [vmem:[#allocation7 + $0xcf0] ss:$24 sps:$4 sm:$0xff]   ;;  %v9074_v11 = vld [vmem:[#allocation7 + $0xd24] ss:$24 sps:$4 sm:$0xff]  }
 0x34c   :  { %v2509_v41 = vpop.f32.mrb[24].mxu1  ;;  %4338 = vmatprep.mubr.bf16.mxu1 %v10114_v33  ;;  %4467 = vmatprep.mubr.bf16.mxu0 %v10114_v33 }
 0x34d   :  { %v2510_v53 = vadd.f32 %v2509_v41, %v2249_v27  ;;  %v2511_v14 = vpop.f32.mrb[25].mxu1  ;;  %4339 = vmatmul.mubr.bf16.vlgmr.msra.gmra.mrb[32].mxu1 %v10112_v32  ;;  %4468 = vmatmul.mubr.bf16.vlgmr.msra.gmra.mrb[8].mxu0 %v10112_v32  ;;  %v9063_v27 = vld [vmem:[#allocation7 + $0xcc8] ss:$24 sps:$4 sm:$0xff]   ;;  %v9081_v41 = vld [vmem:[#allocation7 + $0xd58] ss:$24 sps:$4 sm:$0xff]  }
 0x34e   :  { %v2512_v43 = vadd.f32 %v2511_v14, %v2253_v31  ;;  %4350 = vmatpush1.bf16.msra.mxu1 %v9036_v13  ;;  %4479 = vmatpush1.bf16.msra.mxu0 %v9039_v34  ;;  %v2513_v45 = vpop.f32.mrb[26].mxu1  ;;  %v9069_v31 = vld [vmem:[#allocation7 + $0xcf8] ss:$24 sps:$4 sm:$0xff]   ;;  %v9077_v13 = vld [vmem:[#allocation7 + $0xd2c] ss:$24 sps:$4 sm:$0xff]  }
 0x34f   :  { %v2565_v48 = vmax.f32 %v2510_v53, 0.0  ;;  %v2514_v49 = vpop.f32.mrb[27].mxu1  ;;  %4351 = vmatprep.subr.bf16.mxu1 %v9044_v37  ;;  %4480 = vmatprep.subr.bf16.mxu0 %v9047_v38  ;;  %v9072_v34 = vld [vmem:[#allocation7 + $0xd20] ss:$24 sps:$4 sm:$0xff]   ;;  %v9080_v37 = vld [vmem:[#allocation7 + $0xd54] ss:$24 sps:$4 sm:$0xff]  }
 0x350   :  { %v2566_v52 = vmax.f32 %v2512_v43, 0.0  ;;  %v9083_v38 = vld [vmem:[#allocation7 + $0xd5c] ss:$24 sps:$4 sm:$0xff]   ;;  %v9089_v14 = vld [vmem:[#allocation7 + $0xd8c] ss:$24 sps:$4 sm:$0xff]  }
 0x351   :  { %v10126_v55 = vpack.c.bf16 %v2565_v48, %v2559_v44  ;;  %v9086_v53 = vld [vmem:[#allocation7 + $0xd84] ss:$24 sps:$4 sm:$0xff]   ;;  %v9087_v43 = vld [vmem:[#allocation7 + $0xd88] ss:$24 sps:$4 sm:$0xff]   ;;  %v9092_v45 = vld [vmem:[#allocation7 + $0xdb4] ss:$24 sps:$4 sm:$0xff]  }
 0x352   :  { %v10128_v56 = vpack.c.bf16 %v2566_v52, %v2560_v50  ;;  %4352 = vmatpush1.bf16.msra.mxu1 %v9042_v42  ;;  %4481 = vmatpush1.bf16.msra.mxu0 %v9045_v15  ;;  %v9084_v42 = vld [vmem:[#allocation7 + $0xd80] ss:$24 sps:$4 sm:$0xff]   ;;  %v9095_v15 = vld [vmem:[#allocation7 + $0xdbc] ss:$24 sps:$4 sm:$0xff]   ;;  %v9101_v48 = vld [vmem:[#allocation7 + $0xdec] ss:$24 sps:$4 sm:$0xff]  }
 0x353   :  { %4353 = vmatprep.subr.bf16.mxu1 %v9050_v46  ;;  %4482 = vmatprep.subr.bf16.mxu0 %v9053_v54  ;;  %v9090_v46 = vld [vmem:[#allocation7 + $0xdb0] ss:$24 sps:$4 sm:$0xff]   ;;  %v9096_v49 = vld [vmem:[#allocation7 + $0xde0] ss:$24 sps:$4 sm:$0xff]   ;;  %v9104_v50 = vld [vmem:[#allocation7 + $0xe14] ss:$24 sps:$4 sm:$0xff]  }
 0x354   :  { %v2550_v0 = vpop.f32.mrb[28].mxu1  ;;  %4381 = vmatprep.mubr.bf16.mxu1 %v10128_v56  ;;  %4510 = vmatprep.mubr.bf16.mxu0 %v10128_v56  ;;  %v9093_v44 = vld [vmem:[#allocation7 + $0xdb8] ss:$24 sps:$4 sm:$0xff]   ;;  %v9099_v54 = vld [vmem:[#allocation7 + $0xde8] ss:$24 sps:$4 sm:$0xff]  }
 0x355   :  { %v2551_v1 = vadd.f32 %v2550_v0, %v2257_v47  ;;  %v2552_v3 = vpop.f32.mrb[29].mxu1  ;;  %v9098_v47 = vld [vmem:[#allocation7 + $0xde4] ss:$24 sps:$4 sm:$0xff]   ;;  %v9102_v52 = vld [vmem:[#allocation7 + $0xe10] ss:$24 sps:$4 sm:$0xff]  }
 0x356   :  { %v2553_v8 = vadd.f32 %v2552_v3, %v2261_v51  ;;  %4354 = vmatpush1.bf16.msra.mxu1 %v9048_v57  ;;  %4483 = vmatpush1.bf16.msra.mxu0 %v9051_v58  ;;  %v2554_v9 = vpop.f32.mrb[30].mxu1  ;;  %v9107_v51 = vld [vmem:[#allocation7 + $0xe1c] ss:$24 sps:$4 sm:$0xff]   ;;  %v9105_v57 = vld [vmem:[#allocation7 + $0xe18] ss:$24 sps:$4 sm:$0xff]  }
 0x357   :  { %v2567_v17 = vmax.f32 %v2551_v1, 0.0  ;;  %v2555_v19 = vpop.f32.mrb[31].mxu1  ;;  %4355 = vmatprep.subr.bf16.mxu1 %v9056_v60  ;;  %4484 = vmatprep.subr.bf16.mxu0 %v9059_v61  ;;  %v9110_v58 = vld [vmem:[#allocation7 + $0xe44] ss:$24 sps:$4 sm:$0xff]   ;;  %v9108_v60 = vld [vmem:[#allocation7 + $0xe40] ss:$24 sps:$4 sm:$0xff]  }
 0x358   :  { %v2568_v21 = vmax.f32 %v2553_v8, 0.0  ;;  %v9111_v61 = vld [vmem:[#allocation7 + $0xe48] ss:$24 sps:$4 sm:$0xff]   ;;  %v9119_v0 = vld [vmem:[#allocation7 + $0xe7c] ss:$24 sps:$4 sm:$0xff]  }
 0x359   :  { %v10133_v24 = vpack.c.bf16 %v2567_v17, %v2561_v12  ;;  %v9114_v1 = vld [vmem:[#allocation7 + $0xe70] ss:$24 sps:$4 sm:$0xff]   ;;  %v9125_v8 = vld [vmem:[#allocation7 + $0xeac] ss:$24 sps:$4 sm:$0xff]   ;;  %v9120_v9 = vld [vmem:[#allocation7 + $0xea0] ss:$24 sps:$4 sm:$0xff]  }
 0x35a   :  { %v10135_v25 = vpack.c.bf16 %v2568_v21, %v2562_v20  ;;  %4356 = vmatpush1.bf16.msra.mxu1 %v9054_v7  ;;  %4485 = vmatpush1.bf16.msra.mxu0 %v9057_v10  ;;  %v9117_v3 = vld [vmem:[#allocation7 + $0xe78] ss:$24 sps:$4 sm:$0xff]   ;;  %v9122_v7 = vld [vmem:[#allocation7 + $0xea4] ss:$24 sps:$4 sm:$0xff]   ;;  %v9123_v10 = vld [vmem:[#allocation7 + $0xea8] ss:$24 sps:$4 sm:$0xff]  }
 0x35b   :  { %4357 = vmatprep.subr.bf16.mxu1 %v9062_v5  ;;  %4486 = vmatprep.subr.bf16.mxu0 %v9065_v6  ;;  %v9128_v5 = vld [vmem:[#allocation7 + $0xed4] ss:$24 sps:$4 sm:$0xff]   ;;  %v9126_v17 = vld [vmem:[#allocation7 + $0xed0] ss:$24 sps:$4 sm:$0xff]   ;;  %v9134_v6 = vld [vmem:[#allocation7 + $0xf04] ss:$24 sps:$4 sm:$0xff]  }
 0x35c   :  { %v9131_v12 = vld [vmem:[#allocation7 + $0xedc] ss:$24 sps:$4 sm:$0xff]   ;;  %v9129_v19 = vld [vmem:[#allocation7 + $0xed8] ss:$24 sps:$4 sm:$0xff]   ;;  %v9137_v20 = vld [vmem:[#allocation7 + $0xf0c] ss:$24 sps:$4 sm:$0xff]  }
 0x35d   :  { %v9132_v21 = vld [vmem:[#allocation7 + $0xf00] ss:$24 sps:$4 sm:$0xff]  }
 0x35e   :  { %4358 = vmatpush1.bf16.msra.mxu1 %v9060_v26  ;;  %4487 = vmatpush1.bf16.msra.mxu0 %v9063_v27  ;;  %v9135_v26 = vld [vmem:[#allocation7 + $0xf08] ss:$24 sps:$4 sm:$0xff]   ;;  %v9140_v27 = vld [vmem:[#allocation7 + $0xf34] ss:$24 sps:$4 sm:$0xff]  }
 0x35f   :  { %4359 = vmatprep.subr.bf16.mxu1 %v9068_v28  ;;  %4488 = vmatprep.subr.bf16.mxu0 %v9071_v29  ;;  %v9143_v28 = vld [vmem:[#allocation7 + $0xf3c] ss:$24 sps:$4 sm:$0xff]   ;;  %v9138_v29 = vld [vmem:[#allocation7 + $0xf30] ss:$24 sps:$4 sm:$0xff]  }
 0x362   :  { %4360 = vmatpush1.bf16.msra.mxu1 %v9066_v30  ;;  %4489 = vmatpush1.bf16.msra.mxu0 %v9069_v31  ;;  %v9141_v30 = vld [vmem:[#allocation7 + $0xf38] ss:$24 sps:$4 sm:$0xff]   ;;  %v9146_v31 = vld [vmem:[#allocation7 + $0xf64] ss:$24 sps:$4 sm:$0xff]  }
 0x363   :  { %4361 = vmatprep.subr.bf16.mxu1 %v9074_v11  ;;  %4490 = vmatprep.subr.bf16.mxu0 %v9077_v13  ;;  %v9149_v11 = vld [vmem:[#allocation7 + $0xf6c] ss:$24 sps:$4 sm:$0xff]   ;;  %v9144_v13 = vld [vmem:[#allocation7 + $0xf60] ss:$24 sps:$4 sm:$0xff]  }
 0x366   :  { %4362 = vmatpush1.bf16.msra.mxu1 %v9072_v34  ;;  %4491 = vmatpush1.bf16.msra.mxu0 %v9075_v35  ;;  %v9147_v34 = vld [vmem:[#allocation7 + $0xf68] ss:$24 sps:$4 sm:$0xff]   ;;  %v9152_v35 = vld [vmem:[#allocation7 + $0xf94] ss:$24 sps:$4 sm:$0xff]  }
 0x367   :  { %4363 = vmatprep.subr.bf16.mxu1 %v9080_v37  ;;  %4492 = vmatprep.subr.bf16.mxu0 %v9083_v38  ;;  %v9155_v37 = vld [vmem:[#allocation7 + $0xf9c] ss:$24 sps:$4 sm:$0xff]   ;;  %v9150_v38 = vld [vmem:[#allocation7 + $0xf90] ss:$24 sps:$4 sm:$0xff]  }
 0x36a   :  { %4364 = vmatpush1.bf16.msra.mxu1 %v9078_v39  ;;  %4493 = vmatpush1.bf16.msra.mxu0 %v9081_v41  ;;  %v9153_v39 = vld [vmem:[#allocation7 + $0xf98] ss:$24 sps:$4 sm:$0xff]   ;;  %v9158_v41 = vld [vmem:[#allocation7 + $0xfc4] ss:$24 sps:$4 sm:$0xff]  }
 0x36b   :  { %4365 = vmatprep.subr.bf16.mxu1 %v9086_v53  ;;  %4494 = vmatprep.subr.bf16.mxu0 %v9089_v14  ;;  %v9161_v53 = vld [vmem:[#allocation7 + $0xfcc] ss:$24 sps:$4 sm:$0xff]   ;;  %v9156_v14 = vld [vmem:[#allocation7 + $0xfc0] ss:$24 sps:$4 sm:$0xff]  }
 0x36e   :  { %4366 = vmatpush1.bf16.msra.mxu1 %v9084_v42  ;;  %4495 = vmatpush1.bf16.msra.mxu0 %v9087_v43  ;;  %v9159_v42 = vld [vmem:[#allocation7 + $0xfc8] ss:$24 sps:$4 sm:$0xff]   ;;  %v9164_v43 = vld [vmem:[#allocation7 + $0xff4] ss:$24 sps:$4 sm:$0xff]  }
 0x36f   :  { %4367 = vmatprep.subr.bf16.mxu1 %v9092_v45  ;;  %4496 = vmatprep.subr.bf16.mxu0 %v9095_v15  ;;  %v9167_v45 = vld [vmem:[#allocation7 + $0xffc] ss:$24 sps:$4 sm:$0xff]   ;;  %v9162_v15 = vld [vmem:[#allocation7 + $0xff0] ss:$24 sps:$4 sm:$0xff]  }
 0x372   :  { %4368 = vmatpush1.bf16.msra.mxu1 %v9090_v46  ;;  %4497 = vmatpush1.bf16.msra.mxu0 %v9093_v44  ;;  %v9165_v46 = vld [vmem:[#allocation7 + $0xff8] ss:$24 sps:$4 sm:$0xff]   ;;  %v9170_v44 = vld [vmem:[#allocation7 + $0x1024] ss:$24 sps:$4 sm:$0xff]  }
 0x373   :  { %4369 = vmatprep.subr.bf16.mxu1 %v9098_v47  ;;  %4498 = vmatprep.subr.bf16.mxu0 %v9101_v48  ;;  %v9173_v47 = vld [vmem:[#allocation7 + $0x102c] ss:$24 sps:$4 sm:$0xff]   ;;  %v9168_v48 = vld [vmem:[#allocation7 + $0x1020] ss:$24 sps:$4 sm:$0xff]  }
 0x376   :  { %4370 = vmatpush1.bf16.msra.mxu1 %v9096_v49  ;;  %4499 = vmatpush1.bf16.msra.mxu0 %v9099_v54  ;;  %v9171_v49 = vld [vmem:[#allocation7 + $0x1028] ss:$24 sps:$4 sm:$0xff]   ;;  %v9176_v54 = vld [vmem:[#allocation7 + $0x1054] ss:$24 sps:$4 sm:$0xff]  }
 0x377   :  { %4371 = vmatprep.subr.bf16.mxu1 %v9104_v50  ;;  %4500 = vmatprep.subr.bf16.mxu0 %v9107_v51  ;;  %v9179_v50 = vld [vmem:[#allocation7 + $0x105c] ss:$24 sps:$4 sm:$0xff]   ;;  %v9174_v51 = vld [vmem:[#allocation7 + $0x1050] ss:$24 sps:$4 sm:$0xff]  }
 0x37a   :  { %4372 = vmatpush1.bf16.msra.mxu1 %v9102_v52  ;;  %4501 = vmatpush1.bf16.msra.mxu0 %v9105_v57  ;;  %v9177_v52 = vld [vmem:[#allocation7 + $0x1058] ss:$24 sps:$4 sm:$0xff]   ;;  %v9182_v57 = vld [vmem:[#allocation7 + $0x1084] ss:$24 sps:$4 sm:$0xff]  }
 0x37b   :  { %4373 = vmatprep.subr.bf16.mxu1 %v9110_v58  ;;  %4502 = vmatprep.subr.bf16.mxu0 %v9113_v59  ;;  %v9185_v58 = vld [vmem:[#allocation7 + $0x108c] ss:$24 sps:$4 sm:$0xff]   ;;  %v9180_v59 = vld [vmem:[#allocation7 + $0x1080] ss:$24 sps:$4 sm:$0xff]  }
 0x37e   :  { %4374 = vmatpush1.bf16.msra.mxu1 %v9108_v60  ;;  %4503 = vmatpush1.bf16.msra.mxu0 %v9111_v61  ;;  %v9183_v60 = vld [vmem:[#allocation7 + $0x1088] ss:$24 sps:$4 sm:$0xff]   ;;  %v9188_v61 = vld [vmem:[#allocation7 + $0x10b4] ss:$24 sps:$4 sm:$0xff]  }
 0x37f   :  { %4375 = vmatprep.subr.bf16.mxu1 %v9116_v63  ;;  %4504 = vmatprep.subr.bf16.mxu0 %v9119_v0  ;;  %v9191_v63 = vld [vmem:[#allocation7 + $0x10bc] ss:$24 sps:$4 sm:$0xff]   ;;  %v9186_v0 = vld [vmem:[#allocation7 + $0x10b0] ss:$24 sps:$4 sm:$0xff]  }
 0x382   :  { %4376 = vmatpush1.bf16.msra.mxu1 %v9114_v1  ;;  %4505 = vmatpush1.bf16.msra.mxu0 %v9117_v3  ;;  %v9189_v1 = vld [vmem:[#allocation7 + $0x10b8] ss:$24 sps:$4 sm:$0xff]   ;;  %v9194_v3 = vld [vmem:[#allocation7 + $0x10e4] ss:$24 sps:$4 sm:$0xff]  }
 0x383   :  { %4377 = vmatprep.subr.bf16.mxu1 %v9122_v7  ;;  %4506 = vmatprep.subr.bf16.mxu0 %v9125_v8  ;;  %v9197_v7 = vld [vmem:[#allocation7 + $0x10ec] ss:$24 sps:$4 sm:$0xff]   ;;  %v9192_v8 = vld [vmem:[#allocation7 + $0x10e0] ss:$24 sps:$4 sm:$0xff]  }
 0x386   :  { %4378 = vmatpush1.bf16.msra.mxu1 %v9120_v9  ;;  %4507 = vmatpush1.bf16.msra.mxu0 %v9123_v10  ;;  %v9195_v9 = vld [vmem:[#allocation7 + $0x10e8] ss:$24 sps:$4 sm:$0xff]   ;;  %v9200_v10 = vld [vmem:[#allocation7 + $0x1114] ss:$24 sps:$4 sm:$0xff]  }
 0x387   :  { %4379 = vmatprep.subr.bf16.mxu1 %v9128_v5  ;;  %4508 = vmatprep.subr.bf16.mxu0 %v9131_v12  ;;  %v9203_v5 = vld [vmem:[#allocation7 + $0x111c] ss:$24 sps:$4 sm:$0xff]   ;;  %v9198_v12 = vld [vmem:[#allocation7 + $0x1110] ss:$24 sps:$4 sm:$0xff]  }
 0x38a   :  { %4380 = vmatpush1.bf16.msra.mxu1 %v9126_v17  ;;  %4509 = vmatpush1.bf16.msra.mxu0 %v9129_v19  ;;  %v9201_v17 = vld [vmem:[#allocation7 + $0x1118] ss:$24 sps:$4 sm:$0xff]   ;;  %v9206_v19 = vld [vmem:[#allocation7 + $0x1144] ss:$24 sps:$4 sm:$0xff]  }
 0x38b   :  { %4392 = vmatprep.subr.bf16.mxu1 %v9134_v6  ;;  %4521 = vmatprep.subr.bf16.mxu0 %v9137_v20  ;;  %v9209_v6 = vld [vmem:[#allocation7 + $0x114c] ss:$24 sps:$4 sm:$0xff]   ;;  %v9204_v20 = vld [vmem:[#allocation7 + $0x1140] ss:$24 sps:$4 sm:$0xff]  }
 0x38d   :  { %4382 = vmatmul.mubr.bf16.vlgmr.msra.gmra.mrb[32].mxu1 %v10126_v55  ;;  %4511 = vmatmul.mubr.bf16.vlgmr.msra.gmra.mrb[8].mxu0 %v10126_v55 }
 0x38e   :  { %4393 = vmatpush1.bf16.msra.mxu1 %v9132_v21  ;;  %4424 = vmatprep.mubr.bf16.mxu1 %v10135_v25  ;;  %v9207_v21 = vld [vmem:[#allocation7 + $0x1148] ss:$24 sps:$4 sm:$0xff]  }
 0x38f   :  { %4522 = vmatpush1.bf16.msra.mxu0 %v9135_v26  ;;  %4553 = vmatprep.mubr.bf16.mxu0 %v10135_v25  ;;  %v9212_v26 = vld [vmem:[#allocation7 + $0x1174] ss:$24 sps:$4 sm:$0xff]  }
 0x390   :  { %4394 = vmatprep.subr.bf16.mxu1 %v9140_v27  ;;  %4523 = vmatprep.subr.bf16.mxu0 %v9143_v28  ;;  %v9215_v27 = vld [vmem:[#allocation7 + $0x117c] ss:$24 sps:$4 sm:$0xff]   ;;  %v9210_v28 = vld [vmem:[#allocation7 + $0x1170] ss:$24 sps:$4 sm:$0xff]  }
 0x392   :  { %4395 = vmatpush1.bf16.msra.mxu1 %v9138_v29  ;;  %v9213_v29 = vld [vmem:[#allocation7 + $0x1178] ss:$24 sps:$4 sm:$0xff]  }
 0x393   :  { %4524 = vmatpush1.bf16.msra.mxu0 %v9141_v30  ;;  %4396 = vmatprep.subr.bf16.mxu1 %v9146_v31  ;;  %v9218_v30 = vld [vmem:[#allocation7 + $0x11a4] ss:$24 sps:$4 sm:$0xff]  }
 0x394   :  { %4525 = vmatprep.subr.bf16.mxu0 %v9149_v11  ;;  %v9221_v31 = vld [vmem:[#allocation7 + $0x11ac] ss:$24 sps:$4 sm:$0xff]   ;;  %v9216_v11 = vld [vmem:[#allocation7 + $0x11a0] ss:$24 sps:$4 sm:$0xff]  }
 0x396   :  { %4397 = vmatpush1.bf16.msra.mxu1 %v9144_v13  ;;  %v9219_v13 = vld [vmem:[#allocation7 + $0x11a8] ss:$24 sps:$4 sm:$0xff]  }
 0x397   :  { %4526 = vmatpush1.bf16.msra.mxu0 %v9147_v34  ;;  %4398 = vmatprep.subr.bf16.mxu1 %v9152_v35  ;;  %v9224_v34 = vld [vmem:[#allocation7 + $0x11d4] ss:$24 sps:$4 sm:$0xff]  }
 0x398   :  { %4527 = vmatprep.subr.bf16.mxu0 %v9155_v37  ;;  %v9227_v35 = vld [vmem:[#allocation7 + $0x11dc] ss:$24 sps:$4 sm:$0xff]   ;;  %v9222_v37 = vld [vmem:[#allocation7 + $0x11d0] ss:$24 sps:$4 sm:$0xff]  }
 0x39a   :  { %4399 = vmatpush1.bf16.msra.mxu1 %v9150_v38  ;;  %v9225_v38 = vld [vmem:[#allocation7 + $0x11d8] ss:$24 sps:$4 sm:$0xff]  }
 0x39b   :  { %4528 = vmatpush1.bf16.msra.mxu0 %v9153_v39  ;;  %4400 = vmatprep.subr.bf16.mxu1 %v9158_v41  ;;  %v9230_v39 = vld [vmem:[#allocation7 + $0x914] ss:$24 sps:$4 sm:$0xff]   ;;  %v9228_v41 = vld [vmem:[#allocation7 + $0x910] ss:$24 sps:$4 sm:$0xff]  }
 0x39c   :  { %4529 = vmatprep.subr.bf16.mxu0 %v9161_v53  ;;  %v9233_v53 = vld [vmem:[#allocation7 + $0x944] ss:$24 sps:$4 sm:$0xff]  }
 0x39e   :  { %4401 = vmatpush1.bf16.msra.mxu1 %v9156_v14  ;;  %v9231_v14 = vld [vmem:[#allocation7 + $0x940] ss:$24 sps:$4 sm:$0xff]  }
 0x39f   :  { %4530 = vmatpush1.bf16.msra.mxu0 %v9159_v42  ;;  %4402 = vmatprep.subr.bf16.mxu1 %v9164_v43  ;;  %v9236_v42 = vld [vmem:[#allocation7 + $0x974] ss:$24 sps:$4 sm:$0xff]   ;;  %v9234_v43 = vld [vmem:[#allocation7 + $0x970] ss:$24 sps:$4 sm:$0xff]  }
 0x3a0   :  { %4531 = vmatprep.subr.bf16.mxu0 %v9167_v45  ;;  %v9239_v45 = vld [vmem:[#allocation7 + $0x9a4] ss:$24 sps:$4 sm:$0xff]  }
 0x3a2   :  { %4403 = vmatpush1.bf16.msra.mxu1 %v9162_v15  ;;  %v9237_v15 = vld [vmem:[#allocation7 + $0x9a0] ss:$24 sps:$4 sm:$0xff]  }
 0x3a3   :  { %4532 = vmatpush1.bf16.msra.mxu0 %v9165_v46  ;;  %4404 = vmatprep.subr.bf16.mxu1 %v9170_v44  ;;  %v9242_v46 = vld [vmem:[#allocation7 + $0x9d4] ss:$24 sps:$4 sm:$0xff]   ;;  %v9240_v44 = vld [vmem:[#allocation7 + $0x9d0] ss:$24 sps:$4 sm:$0xff]  }
 0x3a4   :  { %4533 = vmatprep.subr.bf16.mxu0 %v9173_v47  ;;  %v9245_v47 = vld [vmem:[#allocation7 + $0xa04] ss:$24 sps:$4 sm:$0xff]  }
 0x3a6   :  { %4405 = vmatpush1.bf16.msra.mxu1 %v9168_v48  ;;  %v9243_v48 = vld [vmem:[#allocation7 + $0xa00] ss:$24 sps:$4 sm:$0xff]  }
 0x3a7   :  { %4534 = vmatpush1.bf16.msra.mxu0 %v9171_v49  ;;  %4406 = vmatprep.subr.bf16.mxu1 %v9176_v54  ;;  %v9246_v49 = vld [vmem:[#allocation7 + $0xa30] ss:$24 sps:$4 sm:$0xff]   ;;  %v9251_v54 = vld [vmem:[#allocation7 + $0xa64] ss:$24 sps:$4 sm:$0xff]  }
 0x3a8   :  { %4535 = vmatprep.subr.bf16.mxu0 %v9179_v50  ;;  %v9249_v50 = vld [vmem:[#allocation7 + $0xa60] ss:$24 sps:$4 sm:$0xff]  }
 0x3aa   :  { %4407 = vmatpush1.bf16.msra.mxu1 %v9174_v51  ;;  %v9254_v51 = vld [vmem:[#allocation7 + $0xa94] ss:$24 sps:$4 sm:$0xff]  }
 0x3ab   :  { %4536 = vmatpush1.bf16.msra.mxu0 %v9177_v52  ;;  %4408 = vmatprep.subr.bf16.mxu1 %v9182_v57  ;;  %v9252_v52 = vld [vmem:[#allocation7 + $0xa90] ss:$24 sps:$4 sm:$0xff]   ;;  %v9257_v57 = vld [vmem:[#allocation7 + $0xac4] ss:$24 sps:$4 sm:$0xff]  }
 0x3ac   :  { %4537 = vmatprep.subr.bf16.mxu0 %v9185_v58  ;;  %v9255_v58 = vld [vmem:[#allocation7 + $0xac0] ss:$24 sps:$4 sm:$0xff]  }
 0x3ae   :  { %4409 = vmatpush1.bf16.msra.mxu1 %v9180_v59  ;;  %v9260_v59 = vld [vmem:[#allocation7 + $0xaf4] ss:$24 sps:$4 sm:$0xff]  }
 0x3af   :  { %4538 = vmatpush1.bf16.msra.mxu0 %v9183_v60  ;;  %4410 = vmatprep.subr.bf16.mxu1 %v9188_v61  ;;  %v9258_v60 = vld [vmem:[#allocation7 + $0xaf0] ss:$24 sps:$4 sm:$0xff]   ;;  %v9263_v61 = vld [vmem:[#allocation7 + $0xb24] ss:$24 sps:$4 sm:$0xff]  }
 0x3b0   :  { %4539 = vmatprep.subr.bf16.mxu0 %v9191_v63  ;;  %v9261_v63 = vld [vmem:[#allocation7 + $0xb20] ss:$24 sps:$4 sm:$0xff]  }
 0x3b2   :  { %4411 = vmatpush1.bf16.msra.mxu1 %v9186_v0  ;;  %v9266_v0 = vld [vmem:[#allocation7 + $0xb54] ss:$24 sps:$4 sm:$0xff]  }
 0x3b3   :  { %4540 = vmatpush1.bf16.msra.mxu0 %v9189_v1  ;;  %4412 = vmatprep.subr.bf16.mxu1 %v9194_v3  ;;  %v9264_v1 = vld [vmem:[#allocation7 + $0xb50] ss:$24 sps:$4 sm:$0xff]   ;;  %v9269_v3 = vld [vmem:[#allocation7 + $0xb84] ss:$24 sps:$4 sm:$0xff]  }
 0x3b4   :  { %4541 = vmatprep.subr.bf16.mxu0 %v9197_v7  ;;  %v9267_v7 = vld [vmem:[#allocation7 + $0xb80] ss:$24 sps:$4 sm:$0xff]  }
 0x3b6   :  { %4413 = vmatpush1.bf16.msra.mxu1 %v9192_v8  ;;  %v9272_v8 = vld [vmem:[#allocation7 + $0xbb4] ss:$24 sps:$4 sm:$0xff]  }
 0x3b7   :  { %4542 = vmatpush1.bf16.msra.mxu0 %v9195_v9  ;;  %4414 = vmatprep.subr.bf16.mxu1 %v9200_v10  ;;  %v9270_v9 = vld [vmem:[#allocation7 + $0xbb0] ss:$24 sps:$4 sm:$0xff]   ;;  %v9275_v10 = vld [vmem:[#allocation7 + $0xbe4] ss:$24 sps:$4 sm:$0xff]  }
 0x3b8   :  { %4543 = vmatprep.subr.bf16.mxu0 %v9203_v5  ;;  %v9273_v5 = vld [vmem:[#allocation7 + $0xbe0] ss:$24 sps:$4 sm:$0xff]  }
 0x3ba   :  { %4415 = vmatpush1.bf16.msra.mxu1 %v9198_v12  ;;  %v9278_v12 = vld [vmem:[#allocation7 + $0xc14] ss:$24 sps:$4 sm:$0xff]  }
 0x3bb   :  { %4544 = vmatpush1.bf16.msra.mxu0 %v9201_v17  ;;  %4416 = vmatprep.subr.bf16.mxu1 %v9206_v19  ;;  %v9276_v17 = vld [vmem:[#allocation7 + $0xc10] ss:$24 sps:$4 sm:$0xff]   ;;  %v9281_v19 = vld [vmem:[#allocation7 + $0xc44] ss:$24 sps:$4 sm:$0xff]  }
 0x3bc   :  { %4545 = vmatprep.subr.bf16.mxu0 %v9209_v6  ;;  %v9279_v6 = vld [vmem:[#allocation7 + $0xc40] ss:$24 sps:$4 sm:$0xff]  }
 0x3be   :  { %4417 = vmatpush1.bf16.msra.mxu1 %v9204_v20  ;;  %v9284_v20 = vld [vmem:[#allocation7 + $0xc74] ss:$24 sps:$4 sm:$0xff]  }
 0x3bf   :  { %4546 = vmatpush1.bf16.msra.mxu0 %v9207_v21  ;;  %4418 = vmatprep.subr.bf16.mxu1 %v9212_v26  ;;  %v9282_v21 = vld [vmem:[#allocation7 + $0xc70] ss:$24 sps:$4 sm:$0xff]   ;;  %v9287_v26 = vld [vmem:[#allocation7 + $0xca4] ss:$24 sps:$4 sm:$0xff]  }
 0x3c0   :  { %4547 = vmatprep.subr.bf16.mxu0 %v9215_v27  ;;  %v9285_v27 = vld [vmem:[#allocation7 + $0xca0] ss:$24 sps:$4 sm:$0xff]  }
 0x3c2   :  { %4419 = vmatpush1.bf16.msra.mxu1 %v9210_v28  ;;  %v9290_v28 = vld [vmem:[#allocation7 + $0xcd4] ss:$24 sps:$4 sm:$0xff]  }
 0x3c3   :  { %4548 = vmatpush1.bf16.msra.mxu0 %v9213_v29  ;;  %4420 = vmatprep.subr.bf16.mxu1 %v9218_v30  ;;  %v9288_v29 = vld [vmem:[#allocation7 + $0xcd0] ss:$24 sps:$4 sm:$0xff]   ;;  %v9293_v30 = vld [vmem:[#allocation7 + $0xd04] ss:$24 sps:$4 sm:$0xff]  }
 0x3c4   :  { %4549 = vmatprep.subr.bf16.mxu0 %v9221_v31  ;;  %v9296_v31 = vld [vmem:[#allocation7 + $0xd34] ss:$24 sps:$4 sm:$0xff]  }
 0x3c6   :  { %4421 = vmatpush1.bf16.msra.mxu1 %v9216_v11  ;;  %v9299_v11 = vld [vmem:[#allocation7 + $0xd64] ss:$24 sps:$4 sm:$0xff]  }
 0x3c7   :  { %4550 = vmatpush1.bf16.msra.mxu0 %v9219_v13  ;;  %4422 = vmatprep.subr.bf16.mxu1 %v9224_v34  ;;  %v9297_v13 = vld [vmem:[#allocation7 + $0xd60] ss:$24 sps:$4 sm:$0xff]   ;;  %v9302_v34 = vld [vmem:[#allocation7 + $0xd94] ss:$24 sps:$4 sm:$0xff]  }
 0x3c8   :  { %4551 = vmatprep.subr.bf16.mxu0 %v9227_v35  ;;  %v9300_v35 = vld [vmem:[#allocation7 + $0xd90] ss:$24 sps:$4 sm:$0xff]  }
 0x3ca   :  { %4423 = vmatpush1.bf16.msra.mxu1 %v9222_v37  ;;  %v9305_v37 = vld [vmem:[#allocation7 + $0xdc4] ss:$24 sps:$4 sm:$0xff]  }
 0x3cb   :  { %4552 = vmatpush1.bf16.msra.mxu0 %v9225_v38  ;;  %4564 = vmatprep.subr.bf16.mxu1 %v9230_v39  ;;  %v9303_v38 = vld [vmem:[#allocation7 + $0xdc0] ss:$24 sps:$4 sm:$0xff]   ;;  %v9308_v39 = vld [vmem:[#allocation7 + $0xdf4] ss:$24 sps:$4 sm:$0xff]  }
 0x3cd   :  { %4425 = vmatmul.mubr.bf16.vlgmr.msra.gmra.mrb[32].mxu1 %v10133_v24 }
 0x3ce   :  { %4554 = vmatmul.mubr.bf16.vlgmr.msra.gmra.mrb[8].mxu0 %v10133_v24  ;;  %4565 = vmatpush1.bf16.msra.mxu1 %v9228_v41  ;;  %v9306_v41 = vld [vmem:[#allocation7 + $0xdf0] ss:$24 sps:$4 sm:$0xff]  }
 0x3cf   :  { %4596 = vmatprep.mubr.bf16.mxu1 %v10114_v33  ;;  %4566 = vmatprep.subr.bf16.mxu1 %v9233_v53  ;;  %v9248_v33 = vld [vmem:[#allocation7 + $0xa34] ss:$24 sps:$4 sm:$0xff]   ;;  %v9311_v53 = vld [vmem:[#allocation7 + $0xe24] ss:$24 sps:$4 sm:$0xff]  }
 0x3d0   :  { %4827 = vmatprep.mubr.bf16.mxu0 %v9940_v18 }
 0x3d2   :  { %4567 = vmatpush1.bf16.msra.mxu1 %v9231_v14  ;;  %v9309_v14 = vld [vmem:[#allocation7 + $0xe20] ss:$24 sps:$4 sm:$0xff]  }
 0x3d3   :  { %4568 = vmatprep.subr.bf16.mxu1 %v9236_v42  ;;  %v9314_v42 = vld [vmem:[#allocation7 + $0xe54] ss:$24 sps:$4 sm:$0xff]  }
 0x3d6   :  { %4569 = vmatpush1.bf16.msra.mxu1 %v9234_v43  ;;  %v9312_v43 = vld [vmem:[#allocation7 + $0xe50] ss:$24 sps:$4 sm:$0xff]  }
 0x3d7   :  { %4570 = vmatprep.subr.bf16.mxu1 %v9239_v45  ;;  %v9317_v45 = vld [vmem:[#allocation7 + $0xe84] ss:$24 sps:$4 sm:$0xff]  }
 0x3da   :  { %4571 = vmatpush1.bf16.msra.mxu1 %v9237_v15  ;;  %v9315_v15 = vld [vmem:[#allocation7 + $0xe80] ss:$24 sps:$4 sm:$0xff]  }
 0x3db   :  { %4572 = vmatprep.subr.bf16.mxu1 %v9242_v46  ;;  %v9320_v46 = vld [vmem:[#allocation7 + $0xeb4] ss:$24 sps:$4 sm:$0xff]  }
 0x3de   :  { %4573 = vmatpush1.bf16.msra.mxu1 %v9240_v44  ;;  %v9318_v44 = vld [vmem:[#allocation7 + $0xeb0] ss:$24 sps:$4 sm:$0xff]  }
 0x3df   :  { %4574 = vmatprep.subr.bf16.mxu1 %v9245_v47  ;;  %v9323_v47 = vld [vmem:[#allocation7 + $0xee4] ss:$24 sps:$4 sm:$0xff]  }
 0x3e2   :  { %4575 = vmatpush1.bf16.msra.mxu1 %v9243_v48  ;;  %v9321_v48 = vld [vmem:[#allocation7 + $0xee0] ss:$24 sps:$4 sm:$0xff]  }
 0x3e3   :  { %4576 = vmatprep.subr.bf16.mxu1 %v9248_v33  ;;  %v9326_v33 = vld [vmem:[#allocation7 + $0xf14] ss:$24 sps:$4 sm:$0xff]  }
 0x3e6   :  { %4577 = vmatpush1.bf16.msra.mxu1 %v9246_v49  ;;  %v9324_v49 = vld [vmem:[#allocation7 + $0xf10] ss:$24 sps:$4 sm:$0xff]  }
 0x3e7   :  { %4578 = vmatprep.subr.bf16.mxu1 %v9251_v54  ;;  %v9329_v54 = vld [vmem:[#allocation7 + $0xf44] ss:$24 sps:$4 sm:$0xff]  }
 0x3ea   :  { %4579 = vmatpush1.bf16.msra.mxu1 %v9249_v50  ;;  %v9327_v50 = vld [vmem:[#allocation7 + $0xf40] ss:$24 sps:$4 sm:$0xff]  }
 0x3eb   :  { %4580 = vmatprep.subr.bf16.mxu1 %v9254_v51  ;;  %v9332_v51 = vld [vmem:[#allocation7 + $0xf74] ss:$24 sps:$4 sm:$0xff]  }
 0x3ee   :  { %4581 = vmatpush1.bf16.msra.mxu1 %v9252_v52  ;;  %v9330_v52 = vld [vmem:[#allocation7 + $0xf70] ss:$24 sps:$4 sm:$0xff]  }
 0x3ef   :  { %4582 = vmatprep.subr.bf16.mxu1 %v9257_v57  ;;  %v9335_v57 = vld [vmem:[#allocation7 + $0xfa4] ss:$24 sps:$4 sm:$0xff]  }
 0x3f2   :  { %4583 = vmatpush1.bf16.msra.mxu1 %v9255_v58  ;;  %v9333_v58 = vld [vmem:[#allocation7 + $0xfa0] ss:$24 sps:$4 sm:$0xff]  }
 0x3f3   :  { %4584 = vmatprep.subr.bf16.mxu1 %v9260_v59  ;;  %v9338_v59 = vld [vmem:[#allocation7 + $0xfd4] ss:$24 sps:$4 sm:$0xff]  }
 0x3f6   :  { %4585 = vmatpush1.bf16.msra.mxu1 %v9258_v60  ;;  %v9336_v60 = vld [vmem:[#allocation7 + $0xfd0] ss:$24 sps:$4 sm:$0xff]  }
 0x3f7   :  { %4586 = vmatprep.subr.bf16.mxu1 %v9263_v61  ;;  %v9341_v61 = vld [vmem:[#allocation7 + $0x1004] ss:$24 sps:$4 sm:$0xff]  }
 0x3fa   :  { %4587 = vmatpush1.bf16.msra.mxu1 %v9261_v63  ;;  %v9344_v63 = vld [vmem:[#allocation7 + $0x1034] ss:$24 sps:$4 sm:$0xff]  }
 0x3fb   :  { %4588 = vmatprep.subr.bf16.mxu1 %v9266_v0  ;;  %v9347_v0 = vld [vmem:[#allocation7 + $0x1064] ss:$24 sps:$4 sm:$0xff]  }
 0x3fe   :  { %4589 = vmatpush1.bf16.msra.mxu1 %v9264_v1  ;;  %v9345_v1 = vld [vmem:[#allocation7 + $0x1060] ss:$24 sps:$4 sm:$0xff]  }
 0x3ff   :  { %4590 = vmatprep.subr.bf16.mxu1 %v9269_v3  ;;  %v9350_v3 = vld [vmem:[#allocation7 + $0x1094] ss:$24 sps:$4 sm:$0xff]  }
 0x402   :  { %4591 = vmatpush1.bf16.msra.mxu1 %v9267_v7  ;;  %v9348_v7 = vld [vmem:[#allocation7 + $0x1090] ss:$24 sps:$4 sm:$0xff]  }
 0x403   :  { %4592 = vmatprep.subr.bf16.mxu1 %v9272_v8  ;;  %v9353_v8 = vld [vmem:[#allocation7 + $0x10c4] ss:$24 sps:$4 sm:$0xff]  }
 0x406   :  { %4593 = vmatpush1.bf16.msra.mxu1 %v9270_v9  ;;  %v9351_v9 = vld [vmem:[#allocation7 + $0x10c0] ss:$24 sps:$4 sm:$0xff]  }
 0x407   :  { %4594 = vmatprep.subr.bf16.mxu1 %v9275_v10  ;;  %v9356_v10 = vld [vmem:[#allocation7 + $0x10f4] ss:$24 sps:$4 sm:$0xff]  }
 0x40a   :  { %4595 = vmatpush1.bf16.msra.mxu1 %v9273_v5  ;;  %v9354_v5 = vld [vmem:[#allocation7 + $0x10f0] ss:$24 sps:$4 sm:$0xff]  }
 0x40b   :  { %4607 = vmatprep.subr.bf16.mxu1 %v9278_v12  ;;  %v9359_v12 = vld [vmem:[#allocation7 + $0x1124] ss:$24 sps:$4 sm:$0xff]  }
 0x40d   :  { %4597 = vmatmul.mubr.bf16.vlgmr.msra.gmra.mrb[36].mxu1 %v10112_v32  ;;  %v9291_v32 = vld [vmem:[#allocation7 + $0xd00] ss:$24 sps:$4 sm:$0xff]  }
 0x40e   :  { %4608 = vmatpush1.bf16.msra.mxu1 %v9276_v17  ;;  %4639 = vmatprep.mubr.bf16.mxu1 %v10128_v56  ;;  %v9294_v56 = vld [vmem:[#allocation7 + $0xd30] ss:$24 sps:$4 sm:$0xff]   ;;  %v9357_v17 = vld [vmem:[#allocation7 + $0x1120] ss:$24 sps:$4 sm:$0xff]  }
 0x40f   :  { %4609 = vmatprep.subr.bf16.mxu1 %v9281_v19  ;;  %v9362_v19 = vld [vmem:[#allocation7 + $0x1154] ss:$24 sps:$4 sm:$0xff]  }
 0x412   :  { %4610 = vmatpush1.bf16.msra.mxu1 %v9279_v6  ;;  %v9360_v6 = vld [vmem:[#allocation7 + $0x1150] ss:$24 sps:$4 sm:$0xff]  }
 0x413   :  { %4611 = vmatprep.subr.bf16.mxu1 %v9284_v20  ;;  %v9365_v20 = vld [vmem:[#allocation7 + $0x1184] ss:$24 sps:$4 sm:$0xff]  }
 0x416   :  { %4612 = vmatpush1.bf16.msra.mxu1 %v9282_v21  ;;  %v9363_v21 = vld [vmem:[#allocation7 + $0x1180] ss:$24 sps:$4 sm:$0xff]  }
 0x417   :  { %4613 = vmatprep.subr.bf16.mxu1 %v9287_v26  ;;  %v9368_v26 = vld [vmem:[#allocation7 + $0x11b4] ss:$24 sps:$4 sm:$0xff]  }
 0x41a   :  { %4614 = vmatpush1.bf16.msra.mxu1 %v9285_v27  ;;  %v9366_v27 = vld [vmem:[#allocation7 + $0x11b0] ss:$24 sps:$4 sm:$0xff]  }
 0x41b   :  { %4615 = vmatprep.subr.bf16.mxu1 %v9290_v28  ;;  %v9371_v28 = vld [vmem:[#allocation7 + $0x11e4] ss:$24 sps:$4 sm:$0xff]  }
 0x41e   :  { %4616 = vmatpush1.bf16.msra.mxu1 %v9288_v29  ;;  %v9369_v29 = vld [vmem:[#allocation7 + $0x11e0] ss:$24 sps:$4 sm:$0xff]  }
 0x41f   :  { %4617 = vmatprep.subr.bf16.mxu1 %v9293_v30 }
 0x422   :  { %4618 = vmatpush1.bf16.msra.mxu1 %v9291_v32 }
 0x423   :  { %4619 = vmatprep.subr.bf16.mxu1 %v9296_v31 }
 0x426   :  { %4620 = vmatpush1.bf16.msra.mxu1 %v9294_v56 }
 0x427   :  { %4621 = vmatprep.subr.bf16.mxu1 %v9299_v11 }
 0x42a   :  { %4622 = vmatpush1.bf16.msra.mxu1 %v9297_v13 }
 0x42b   :  { %4623 = vmatprep.subr.bf16.mxu1 %v9302_v34 }
 0x42e   :  { %4624 = vmatpush1.bf16.msra.mxu1 %v9300_v35 }
 0x42f   :  { %4625 = vmatprep.subr.bf16.mxu1 %v9305_v37 }
 0x432   :  { %4626 = vmatpush1.bf16.msra.mxu1 %v9303_v38 }
 0x433   :  { %4627 = vmatprep.subr.bf16.mxu1 %v9308_v39 }
 0x436   :  { %4628 = vmatpush1.bf16.msra.mxu1 %v9306_v41 }
 0x437   :  { %4629 = vmatprep.subr.bf16.mxu1 %v9311_v53 }
 0x43a   :  { %4630 = vmatpush1.bf16.msra.mxu1 %v9309_v14  ;;  %v9375_v14 = vld [vmem:[#allocation7 + $0x1208] ss:$24 sps:$4 sm:$0xff]  }
 0x43b   :  { %4631 = vmatprep.subr.bf16.mxu1 %v9314_v42  ;;  %v9377_v42 = vld [vmem:[#allocation7 + $0x120c] ss:$24 sps:$4 sm:$0xff]  }
 0x43e   :  { %4632 = vmatpush1.bf16.msra.mxu1 %v9312_v43  ;;  %v9383_v43 = vld [vmem:[#allocation7 + $0x123c] ss:$24 sps:$4 sm:$0xff]  }
 0x43f   :  { %4633 = vmatprep.subr.bf16.mxu1 %v9317_v45  ;;  %v9381_v45 = vld [vmem:[#allocation7 + $0x1238] ss:$24 sps:$4 sm:$0xff]  }
 0x442   :  { %4634 = vmatpush1.bf16.msra.mxu1 %v9315_v15  ;;  %v9389_v15 = vld [vmem:[#allocation7 + $0x126c] ss:$24 sps:$4 sm:$0xff]  }
 0x443   :  { %4635 = vmatprep.subr.bf16.mxu1 %v9320_v46  ;;  %v9387_v46 = vld [vmem:[#allocation7 + $0x1268] ss:$24 sps:$4 sm:$0xff]  }
 0x446   :  { %4636 = vmatpush1.bf16.msra.mxu1 %v9318_v44  ;;  %v9395_v44 = vld [vmem:[#allocation7 + $0x129c] ss:$24 sps:$4 sm:$0xff]  }
 0x447   :  { %4637 = vmatprep.subr.bf16.mxu1 %v9323_v47  ;;  %v9393_v47 = vld [vmem:[#allocation7 + $0x1298] ss:$24 sps:$4 sm:$0xff]  }
 0x44a   :  { %4638 = vmatpush1.bf16.msra.mxu1 %v9321_v48  ;;  %v9401_v48 = vld [vmem:[#allocation7 + $0x12cc] ss:$24 sps:$4 sm:$0xff]  }
 0x44b   :  { %4650 = vmatprep.subr.bf16.mxu1 %v9326_v33  ;;  %v9399_v33 = vld [vmem:[#allocation7 + $0x12c8] ss:$24 sps:$4 sm:$0xff]  }
 0x44d   :  { %4640 = vmatmul.mubr.bf16.vlgmr.msra.gmra.mrb[36].mxu1 %v10126_v55  ;;  %v9339_v55 = vld [vmem:[#allocation7 + $0x1000] ss:$24 sps:$4 sm:$0xff]  }
 0x44e   :  { %4651 = vmatpush1.bf16.msra.mxu1 %v9324_v49  ;;  %4682 = vmatprep.mubr.bf16.mxu1 %v10135_v25  ;;  %v9342_v25 = vld [vmem:[#allocation7 + $0x1030] ss:$24 sps:$4 sm:$0xff]   ;;  %v9407_v49 = vld [vmem:[#allocation7 + $0x12fc] ss:$24 sps:$4 sm:$0xff]  }
 0x44f   :  { %4652 = vmatprep.subr.bf16.mxu1 %v9329_v54  ;;  %v9405_v54 = vld [vmem:[#allocation7 + $0x12f8] ss:$24 sps:$4 sm:$0xff]  }
 0x452   :  { %4653 = vmatpush1.bf16.msra.mxu1 %v9327_v50  ;;  %v9413_v50 = vld [vmem:[#allocation7 + $0x132c] ss:$24 sps:$4 sm:$0xff]  }
 0x453   :  { %4654 = vmatprep.subr.bf16.mxu1 %v9332_v51  ;;  %v9411_v51 = vld [vmem:[#allocation7 + $0x1328] ss:$24 sps:$4 sm:$0xff]  }
 0x456   :  { %4655 = vmatpush1.bf16.msra.mxu1 %v9330_v52  ;;  %v9419_v52 = vld [vmem:[#allocation7 + $0x135c] ss:$24 sps:$4 sm:$0xff]  }
 0x457   :  { %4656 = vmatprep.subr.bf16.mxu1 %v9335_v57  ;;  %v9417_v57 = vld [vmem:[#allocation7 + $0x1358] ss:$24 sps:$4 sm:$0xff]  }
 0x45a   :  { %4657 = vmatpush1.bf16.msra.mxu1 %v9333_v58  ;;  %v9425_v58 = vld [vmem:[#allocation7 + $0x138c] ss:$24 sps:$4 sm:$0xff]  }
 0x45b   :  { %4658 = vmatprep.subr.bf16.mxu1 %v9338_v59  ;;  %v9423_v59 = vld [vmem:[#allocation7 + $0x1388] ss:$24 sps:$4 sm:$0xff]  }
 0x45e   :  { %4659 = vmatpush1.bf16.msra.mxu1 %v9336_v60  ;;  %v9431_v60 = vld [vmem:[#allocation7 + $0x13bc] ss:$24 sps:$4 sm:$0xff]  }
 0x45f   :  { %4660 = vmatprep.subr.bf16.mxu1 %v9341_v61  ;;  %v9429_v61 = vld [vmem:[#allocation7 + $0x13b8] ss:$24 sps:$4 sm:$0xff]  }
 0x462   :  { %4661 = vmatpush1.bf16.msra.mxu1 %v9339_v55  ;;  %v9437_v55 = vld [vmem:[#allocation7 + $0x13ec] ss:$24 sps:$4 sm:$0xff]  }
 0x463   :  { %4662 = vmatprep.subr.bf16.mxu1 %v9344_v63  ;;  %v9435_v63 = vld [vmem:[#allocation7 + $0x13e8] ss:$24 sps:$4 sm:$0xff]  }
 0x466   :  { %4663 = vmatpush1.bf16.msra.mxu1 %v9342_v25  ;;  %v9443_v25 = vld [vmem:[#allocation7 + $0x141c] ss:$24 sps:$4 sm:$0xff]  }
 0x467   :  { %4664 = vmatprep.subr.bf16.mxu1 %v9347_v0  ;;  %v9441_v0 = vld [vmem:[#allocation7 + $0x1418] ss:$24 sps:$4 sm:$0xff]  }
 0x46a   :  { %4665 = vmatpush1.bf16.msra.mxu1 %v9345_v1 }
 0x46b   :  { %4666 = vmatprep.subr.bf16.mxu1 %v9350_v3 }
 0x46e   :  { %4667 = vmatpush1.bf16.msra.mxu1 %v9348_v7 }
 0x46f   :  { %4668 = vmatprep.subr.bf16.mxu1 %v9353_v8 }
 0x472   :  { %4669 = vmatpush1.bf16.msra.mxu1 %v9351_v9 }
 0x473   :  { %4670 = vmatprep.subr.bf16.mxu1 %v9356_v10 }
 0x476   :  { %4671 = vmatpush1.bf16.msra.mxu1 %v9354_v5 }
 0x477   :  { %4672 = vmatprep.subr.bf16.mxu1 %v9359_v12 }
 0x47a   :  { %4673 = vmatpush1.bf16.msra.mxu1 %v9357_v17 }
 0x47b   :  { %4674 = vmatprep.subr.bf16.mxu1 %v9362_v19 }
 0x47e   :  { %4675 = vmatpush1.bf16.msra.mxu1 %v9360_v6 }
 0x47f   :  { %4676 = vmatprep.subr.bf16.mxu1 %v9365_v20 }
 0x482   :  { %4677 = vmatpush1.bf16.msra.mxu1 %v9363_v21 }
 0x483   :  { %4678 = vmatprep.subr.bf16.mxu1 %v9368_v26 }
 0x486   :  { %4679 = vmatpush1.bf16.msra.mxu1 %v9366_v27 }
 0x487   :  { %4680 = vmatprep.subr.bf16.mxu1 %v9371_v28  ;;  %v9374_v28 = vld [vmem:[#allocation7 + $0x1204] ss:$24 sps:$4 sm:$0xff]  }
 0x48a   :  { %4681 = vmatpush1.bf16.msra.mxu1 %v9369_v29 }
 0x48d   :  { %4683 = vmatmul.mubr.bf16.vlgmr.msra.gmra.mrb[36].mxu1 %v10133_v24 }
 0x48e   :  { %4786 = vmatprep.mubr.bf16.mxu1 %v9940_v18 }
 0x4a0   :  { %v4426_v30 = vpop.f32.mrb[32].mxu1 }
 0x4a1   :  { %v4693_v32 = vpack.c.bf16 %v4426_v30, %v4426_v30  ;;  %v4555_v31 = vpop.f32.mrb[8].mxu0  ;;  %v4428_v56 = vpop.f32.mrb[33].mxu1 }
 0x4a2   :  { %v4695_v11 = vpack.c.bf16 %v4555_v31, %v4555_v31  ;;  %v4694_v13 = vpack.c.bf16 %v4428_v56, %v4428_v56  ;;  %v4557_v34 = vpop.f32.mrb[9].mxu0  ;;  %v10151_v35 = vpop.f32.mrb[34].mxu1 }
 0x4a3   :  { %v4737_v37 = vsel %vm2271_vm1, %v4693_v32, 0  ;;  %v4696_v38 = vpack.c.bf16 %v4557_v34, %v4557_v34  ;;  %v10154_v39 = vpop.f32.mrb[10].mxu0  ;;  %v10156_v41 = vpop.f32.mrb[35].mxu1  ;;  %v4699_v12 = vpack.c.bf16 %v10151_v35, %v10151_v35 }
 0x4a4   :  { %v4743_v24 = vsel %vm2271_vm1, %v4695_v11, 0  ;;  %v10159_v53 = vpop.f32.mrb[11].mxu0  ;;  %8110 = vmatprep.subr.msk.bf16.mxu1 %vm2271_vm1, %v4694_v13  ;;  %v4700_v17 = vpack.c.bf16 %v10156_v41, %v10156_v41  ;;  %v4701_v20 = vpack.c.bf16 %v10154_v39, %v10154_v39  ;;  %v9372_v13 = vld [vmem:[#allocation7 + $0x1200] ss:$24 sps:$4 sm:$0xff]   ;;  %v9378_v39 = vld [vmem:[#allocation7 + $0x1230] ss:$24 sps:$4 sm:$0xff]  }
 0x4a5   :  { %8112 = vmatprep.subr.msk.bf16.mxu0 %vm2271_vm1, %v4696_v38  ;;  %4755 = vmatpush1.bf16.msra.mxu1 %v4737_v37  ;;  %v4878_v19 = vsel %vm2271_vm1, %v4699_v12, 0  ;;  %v4702_v6 = vpack.c.bf16 %v10159_v53, %v10159_v53  ;;  %v9380_v37 = vld [vmem:[#allocation7 + $0x1234] ss:$24 sps:$4 sm:$0xff]   ;;  %v9386_v41 = vld [vmem:[#allocation7 + $0x1264] ss:$24 sps:$4 sm:$0xff]  }
 0x4a6   :  { %4796 = vmatpush1.bf16.msra.mxu0 %v4743_v24  ;;  %6896 = vmatprep.subr.bf16.mxu1 %v9377_v42  ;;  %v4884_v21 = vsel %vm2271_vm1, %v4701_v20, 0  ;;  %v9384_v24 = vld [vmem:[#allocation7 + $0x1260] ss:$24 sps:$4 sm:$0xff]   ;;  %v9392_v53 = vld [vmem:[#allocation7 + $0x1294] ss:$24 sps:$4 sm:$0xff]  }
 0x4a7   :  { %v9398_v42 = vld [vmem:[#allocation7 + $0x12c4] ss:$24 sps:$4 sm:$0xff]   ;;  %v9462_v12 = vld [vmem:[#allocation7 + $0x14d0] ss:$24 sps:$4 sm:$0xff]  }
 0x4a8   :  { %8111 = vmatmul.mubr.msk.bf16.vlgmr.msra.gmra.mrb[40].mxu1 %vm76_vm0, %v10057_v22  ;;  %v2859_v20 = vld [vmem:[#allocation8 + $0x6] sm:$0x3f] }
 0x4a9   :  { %8113 = vmatmul.mubr.msk.bf16.vlgmr.msra.gmra.mrb[12].mxu0 %vm76_vm0, %v10057_v22  ;;  %6897 = vmatpush1.bf16.msra.mxu1 %v9375_v14  ;;  %v9390_v14 = vld [vmem:[#allocation7 + $0x1290] ss:$24 sps:$4 sm:$0xff]  }
 0x4aa   :  { %4868 = vmatprep.mubr.bf16.mxu0 %v9940_v18  ;;  %6898 = vmatprep.subr.bf16.mxu1 %v9383_v43  ;;  %v9396_v43 = vld [vmem:[#allocation7 + $0x12c0] ss:$24 sps:$4 sm:$0xff]  }
 0x4ad   :  { %6899 = vmatpush1.bf16.msra.mxu1 %v9381_v45  ;;  %v9404_v45 = vld [vmem:[#allocation7 + $0x12f4] ss:$24 sps:$4 sm:$0xff]  }
 0x4ae   :  { %6900 = vmatprep.subr.bf16.mxu1 %v9389_v15  ;;  %v9402_v15 = vld [vmem:[#allocation7 + $0x12f0] ss:$24 sps:$4 sm:$0xff]  }
 0x4b1   :  { %6901 = vmatpush1.bf16.msra.mxu1 %v9387_v46  ;;  %v9410_v46 = vld [vmem:[#allocation7 + $0x1324] ss:$24 sps:$4 sm:$0xff]  }
 0x4b2   :  { %6902 = vmatprep.subr.bf16.mxu1 %v9395_v44  ;;  %v9408_v44 = vld [vmem:[#allocation7 + $0x1320] ss:$24 sps:$4 sm:$0xff]  }
 0x4b5   :  { %6903 = vmatpush1.bf16.msra.mxu1 %v9393_v47  ;;  %v9416_v47 = vld [vmem:[#allocation7 + $0x1354] ss:$24 sps:$4 sm:$0xff]  }
 0x4b6   :  { %6904 = vmatprep.subr.bf16.mxu1 %v9401_v48  ;;  %v9414_v48 = vld [vmem:[#allocation7 + $0x1350] ss:$24 sps:$4 sm:$0xff]  }
 0x4b9   :  { %6905 = vmatpush1.bf16.msra.mxu1 %v9399_v33  ;;  %v9422_v33 = vld [vmem:[#allocation7 + $0x1384] ss:$24 sps:$4 sm:$0xff]  }
 0x4ba   :  { %6906 = vmatprep.subr.bf16.mxu1 %v9407_v49  ;;  %v9420_v49 = vld [vmem:[#allocation7 + $0x1380] ss:$24 sps:$4 sm:$0xff]  }
 0x4bd   :  { %6907 = vmatpush1.bf16.msra.mxu1 %v9405_v54  ;;  %v9428_v54 = vld [vmem:[#allocation7 + $0x13b4] ss:$24 sps:$4 sm:$0xff]  }
 0x4be   :  { %6908 = vmatprep.subr.bf16.mxu1 %v9413_v50  ;;  %v9426_v50 = vld [vmem:[#allocation7 + $0x13b0] ss:$24 sps:$4 sm:$0xff]  }
 0x4c1   :  { %6909 = vmatpush1.bf16.msra.mxu1 %v9411_v51  ;;  %v9434_v51 = vld [vmem:[#allocation7 + $0x13e4] ss:$24 sps:$4 sm:$0xff]  }
 0x4c2   :  { %6910 = vmatprep.subr.bf16.mxu1 %v9419_v52  ;;  %v9432_v52 = vld [vmem:[#allocation7 + $0x13e0] ss:$24 sps:$4 sm:$0xff]  }
 0x4c5   :  { %6911 = vmatpush1.bf16.msra.mxu1 %v9417_v57  ;;  %v9440_v57 = vld [vmem:[#allocation7 + $0x1414] ss:$24 sps:$4 sm:$0xff]  }
 0x4c6   :  { %6912 = vmatprep.subr.bf16.mxu1 %v9425_v58  ;;  %v9438_v58 = vld [vmem:[#allocation7 + $0x1410] ss:$24 sps:$4 sm:$0xff]  }
 0x4c9   :  { %6913 = vmatpush1.bf16.msra.mxu1 %v9423_v59  ;;  %v9446_v59 = vld [vmem:[#allocation7 + $0x1444] ss:$24 sps:$4 sm:$0xff]  }
 0x4ca   :  { %6914 = vmatprep.subr.bf16.mxu1 %v9431_v60  ;;  %v9449_v60 = vld [vmem:[#allocation7 + $0x144c] ss:$24 sps:$4 sm:$0xff]  }
 0x4cd   :  { %6915 = vmatpush1.bf16.msra.mxu1 %v9429_v61  ;;  %v9444_v61 = vld [vmem:[#allocation7 + $0x1440] ss:$24 sps:$4 sm:$0xff]  }
 0x4ce   :  { %6916 = vmatprep.subr.bf16.mxu1 %v9437_v55  ;;  %v9447_v55 = vld [vmem:[#allocation7 + $0x1448] ss:$24 sps:$4 sm:$0xff]  }
 0x4d1   :  { %6917 = vmatpush1.bf16.msra.mxu1 %v9435_v63  ;;  %v9452_v63 = vld [vmem:[#allocation7 + $0x1474] ss:$24 sps:$4 sm:$0xff]  }
 0x4d2   :  { %6918 = vmatprep.subr.bf16.mxu1 %v9443_v25  ;;  %v9455_v25 = vld [vmem:[#allocation7 + $0x147c] ss:$24 sps:$4 sm:$0xff]  }
 0x4d5   :  { %6919 = vmatpush1.bf16.msra.mxu1 %v9441_v0  ;;  %v9450_v0 = vld [vmem:[#allocation7 + $0x1470] ss:$24 sps:$4 sm:$0xff]  }
 0x4d6   :  { %6920 = vmatprep.subr.bf16.mxu1 %v9449_v60 }
 0x4d9   :  { %6921 = vmatpush1.bf16.msra.mxu1 %v9447_v55  ;;  %v9482_v55 = vld [vmem:[#allocation7 + $0x1564] ss:$24 sps:$4 sm:$0xff]  }
 0x4da   :  { %6922 = vmatprep.subr.bf16.mxu1 %v9455_v25 }
 0x560   :  { %v4684_v1 = vpop.f32.mrb[36].mxu1 }
 0x561   :  { %v4697_v3 = vpack.c.bf16 %v4684_v1, %v4684_v1  ;;  %v4686_v7 = vpop.f32.mrb[37].mxu1  ;;  %v9453_v1 = vld [vmem:[#allocation7 + $0x1478] ss:$24 sps:$4 sm:$0xff]  }
 0x562   :  { %v4698_v8 = vpack.c.bf16 %v4686_v7, %v4686_v7  ;;  %v4688_v9 = vpop.f32.mrb[38].mxu1  ;;  %6923 = vmatpush1.bf16.msra.mxu1 %v9453_v1  ;;  %v9461_v7 = vld [vmem:[#allocation7 + $0x14ac] ss:$24 sps:$4 sm:$0xff]  }
 0x563   :  { %v4749_v10 = vsel %vm2271_vm1, %v4697_v3, 0  ;;  %v4690_v5 = vpop.f32.mrb[39].mxu1  ;;  %v4703_v27 = vpack.c.bf16 %v4688_v9, %v4688_v9  ;;  %v9458_v3 = vld [vmem:[#allocation7 + $0x14a4] ss:$24 sps:$4 sm:$0xff]   ;;  %v9459_v9 = vld [vmem:[#allocation7 + $0x14a8] ss:$24 sps:$4 sm:$0xff]   ;;  %6924 = vmatprep.subr.bf16.mxu1 %v9461_v7 }
 0x564   :  { %8114 = vmatprep.subr.msk.bf16.mxu0 %vm2271_vm1, %v4698_v8  ;;  %v4704_v26 = vpack.c.bf16 %v4690_v5, %v4690_v5  ;;  %v9456_v8 = vld [vmem:[#allocation7 + $0x14a0] ss:$24 sps:$4 sm:$0xff]   ;;  %v9467_v5 = vld [vmem:[#allocation7 + $0x14dc] ss:$24 sps:$4 sm:$0xff]  }
 0x565   :  { %4837 = vmatpush1.bf16.msra.mxu0 %v4749_v10  ;;  %v4890_v29 = vsel %vm2271_vm1, %v4703_v27, 0  ;;  %v9464_v10 = vld [vmem:[#allocation7 + $0x14d4] ss:$24 sps:$4 sm:$0xff]  }
 0x566   :  { %8116 = vmatprep.subr.msk.bf16.mxu0 %vm2271_vm1, %v4700_v17  ;;  %6925 = vmatpush1.bf16.msra.mxu1 %v9459_v9  ;;  %v9465_v17 = vld [vmem:[#allocation7 + $0x14d8] ss:$24 sps:$4 sm:$0xff]   ;;  %v9483_v9 = vld [vmem:[#allocation7 + $0x1568] ss:$24 sps:$4 sm:$0xff]  }
 0x567   :  { %6926 = vmatprep.subr.bf16.mxu1 %v9467_v5  ;;  %v9488_v5 = vld [vmem:[#allocation7 + $0x1594] ss:$24 sps:$4 sm:$0xff]  }
 0x568   :  { %8115 = vmatmul.mubr.msk.bf16.vlgmr.msra.gmra.mrb[16].mxu0 %vm76_vm0, %v10057_v22 }
 0x569   :  { %4896 = vmatpush1.bf16.msra.mxu0 %v4878_v19  ;;  %4927 = vmatprep.mubr.bf16.mxu0 %v9940_v18  ;;  %v9470_v19 = vld [vmem:[#allocation7 + $0x1504] ss:$24 sps:$4 sm:$0xff]  }
 0x56a   :  { %8118 = vmatprep.subr.msk.bf16.mxu0 %vm2271_vm1, %v4702_v6  ;;  %6927 = vmatpush1.bf16.msra.mxu1 %v9465_v17  ;;  %v9473_v6 = vld [vmem:[#allocation7 + $0x150c] ss:$24 sps:$4 sm:$0xff]  }
 0x56b   :  { %6939 = vmatprep.subr.bf16.mxu1 %v9473_v6 }
 0x570   :  { %8117 = vmatmul.mubr.msk.bf16.vlgmr.msra.gmra.mrb[20].mxu0 %vm76_vm0, %v10079_v62 }
 0x571   :  { %4937 = vmatpush1.bf16.msra.mxu0 %v4884_v21  ;;  %4968 = vmatprep.mubr.bf16.mxu0 %v9940_v18 }
 0x572   :  { %8120 = vmatprep.subr.msk.bf16.mxu0 %vm2271_vm1, %v4704_v26 }
 0x578   :  { %8119 = vmatmul.mubr.msk.bf16.vlgmr.msra.gmra.mrb[24].mxu0 %vm76_vm0, %v10079_v62 }
 0x579   :  { %4978 = vmatpush1.bf16.msra.mxu0 %v4890_v29  ;;  %5009 = vmatprep.mubr.bf16.mxu0 %v9940_v18 }
 0x57a   :  { %6767 = vmatprep.subr.bf16.mxu0 %v9374_v28  ;;  %v4709_v28 = vrot.slane %v2859_v20, %v10096_v2 }
 0x57b   :  { %v10193_v30 = vpop.f32.mrb[40].mxu1 }
 0x57c   :  { %v10195_v32 = vpop.f32.mrb[12].mxu0  ;;  %v10197_v31 = vpop.f32.mrb[41].mxu1 }
 0x57d   :  { %v10199_v56 = vpop.f32.mrb[13].mxu0  ;;  %v4792_v11 = vpop.f32.mrb[42].mxu1 }
 0x57e   :  { %v4833_v34 = vpop.f32.mrb[14].mxu0  ;;  %v4793_v35 = vpop.f32.mrb[43].mxu1  ;;  %v4713_v11 = vrot.slane %v2859_v20, %v10098_v4 }
 0x57f   :  { %v4834_v38 = vpop.f32.mrb[15].mxu0 }
 0x580   :  { %8121 = vmatmul.mubr.msk.bf16.vlgmr.msra.gmra.mrb[28].mxu0 %vm76_vm0, %v10079_v62  ;;  %v4791_v34 = vadd.f32 %v10197_v31, %v4713_v11  ;;  %v9468_v31 = vld [vmem:[#allocation7 + $0x1500] ss:$24 sps:$4 sm:$0xff]  }
 0x581   :  { %6768 = vmatpush1.bf16.msra.mxu0 %v9372_v13  ;;  %v4789_v13 = vadd.f32 %v10193_v30, %v4709_v28 }
 0x582   :  { %6769 = vmatprep.subr.bf16.mxu0 %v9380_v37 }
 0x585   :  { %6770 = vmatpush1.bf16.msra.mxu0 %v9378_v39  ;;  %v4717_v39 = vrot.slane %v2859_v20, %v10105_v16 }
 0x586   :  { %6771 = vmatprep.subr.bf16.mxu0 %v9386_v41 }
 0x587   :  { %v4830_v30 = vadd.f32 %v10195_v32, %v4717_v39 }
 0x589   :  { %6772 = vmatpush1.bf16.msra.mxu0 %v9384_v24  ;;  %v5020_v32 = vmax.f32 %v4830_v30, 0.0  ;;  %v9509_v30 = vld [vmem:[#allocation7 + $0x162c] ss:$24 sps:$4 sm:$0xff]  }
 0x58a   :  { %6773 = vmatprep.subr.bf16.mxu0 %v9392_v53  ;;  %v5018_v53 = vmax.f32 %v4789_v13, 0.0  ;;  %v9494_v13 = vld [vmem:[#allocation7 + $0x15c4] ss:$24 sps:$4 sm:$0xff]  }
 0x58d   :  { %6774 = vmatpush1.bf16.msra.mxu0 %v9390_v14 }
 0x58e   :  { %6775 = vmatprep.subr.bf16.mxu0 %v9398_v42 }
 0x591   :  { %6776 = vmatpush1.bf16.msra.mxu0 %v9396_v43  ;;  %v5019_v43 = vmax.f32 %v4791_v34, 0.0 }
 0x592   :  { %6777 = vmatprep.subr.bf16.mxu0 %v9404_v45  ;;  %v4721_v45 = vrot.slane %v2859_v20, %v10108_v23 }
 0x595   :  { %6778 = vmatpush1.bf16.msra.mxu0 %v9402_v15 }
 0x596   :  { %6779 = vmatprep.subr.bf16.mxu0 %v9410_v46 }
 0x599   :  { %6780 = vmatpush1.bf16.msra.mxu0 %v9408_v44 }
 0x59a   :  { %6781 = vmatprep.subr.bf16.mxu0 %v9416_v47  ;;  %v9471_v47 = vld [vmem:[#allocation7 + $0x1508] ss:$24 sps:$4 sm:$0xff]  }
 0x59d   :  { %6782 = vmatpush1.bf16.msra.mxu0 %v9414_v48  ;;  %v9476_v48 = vld [vmem:[#allocation7 + $0x1534] ss:$24 sps:$4 sm:$0xff]  }
 0x59e   :  { %6783 = vmatprep.subr.bf16.mxu0 %v9422_v33  ;;  %v9479_v33 = vld [vmem:[#allocation7 + $0x153c] ss:$24 sps:$4 sm:$0xff]  }
 0x5a1   :  { %6784 = vmatpush1.bf16.msra.mxu0 %v9420_v49  ;;  %v4832_v49 = vadd.f32 %v10199_v56, %v4721_v45  ;;  %v4725_v56 = vrot.slane %v2859_v20, %v10116_v36 }
 0x5a2   :  { %6785 = vmatprep.subr.bf16.mxu0 %v9428_v54 }
 0x5a3   :  { %v5021_v25 = vmax.f32 %v4832_v49, 0.0  ;;  %v9510_v49 = vld [vmem:[#allocation7 + $0x1650] ss:$24 sps:$4 sm:$0xff]  }
 0x5a5   :  { %6786 = vmatpush1.bf16.msra.mxu0 %v9426_v50 }
 0x5a6   :  { %6787 = vmatprep.subr.bf16.mxu0 %v9434_v51 }
 0x5a9   :  { %6788 = vmatpush1.bf16.msra.mxu0 %v9432_v52 }
 0x5aa   :  { %6789 = vmatprep.subr.bf16.mxu0 %v9440_v57 }
 0x5ad   :  { %6790 = vmatpush1.bf16.msra.mxu0 %v9438_v58  ;;  %v9474_v58 = vld [vmem:[#allocation7 + $0x1530] ss:$24 sps:$4 sm:$0xff]  }
 0x5ae   :  { %6791 = vmatprep.subr.bf16.mxu0 %v9446_v59  ;;  %v9477_v59 = vld [vmem:[#allocation7 + $0x1538] ss:$24 sps:$4 sm:$0xff]  }
 0x5b1   :  { %6792 = vmatpush1.bf16.msra.mxu0 %v9444_v61 }
 0x5b2   :  { %6793 = vmatprep.subr.bf16.mxu0 %v9452_v63  ;;  %v9485_v63 = vld [vmem:[#allocation7 + $0x156c] ss:$24 sps:$4 sm:$0xff]  }
 0x5b5   :  { %6794 = vmatpush1.bf16.msra.mxu0 %v9450_v0  ;;  %v4729_v0 = vrot.slane %v2859_v20, %v10118_v40 }
 0x5b6   :  { %6795 = vmatprep.subr.bf16.mxu0 %v9458_v3 }
 0x5b9   :  { %6796 = vmatpush1.bf16.msra.mxu0 %v9456_v8  ;;  %v9480_v8 = vld [vmem:[#allocation7 + $0x1560] ss:$24 sps:$4 sm:$0xff]  }
 0x5ba   :  { %6797 = vmatprep.subr.bf16.mxu0 %v9464_v10 }
 0x5bd   :  { %6798 = vmatpush1.bf16.msra.mxu0 %v9462_v12  ;;  %v9491_v12 = vld [vmem:[#allocation7 + $0x159c] ss:$24 sps:$4 sm:$0xff]  }
 0x5be   :  { %6810 = vmatprep.subr.bf16.mxu0 %v9470_v19 }
 0x63b   :  { %v4870_v21 = vpop.f32.mrb[16].mxu0 }
 0x63c   :  { %v4872_v26 = vpop.f32.mrb[17].mxu0  ;;  %v4871_v10 = vadd.f32 %v4870_v21, %v4725_v56 }
 0x63d   :  { %v4874_v27 = vpop.f32.mrb[18].mxu0  ;;  %v4873_v17 = vadd.f32 %v4872_v26, %v4729_v0  ;;  %v9497_v26 = vld [vmem:[#allocation7 + $0x15cc] ss:$24 sps:$4 sm:$0xff]  }
 0x63e   :  { %v4875_v29 = vpop.f32.mrb[19].mxu0  ;;  %v9486_v27 = vld [vmem:[#allocation7 + $0x1590] ss:$24 sps:$4 sm:$0xff]   ;;  %v5022_v21 = vmax.f32 %v4871_v10, 0.0  ;;  %v9545_v10 = vld [vmem:[#allocation7 + $0x174c] ss:$24 sps:$4 sm:$0xff]  }
 0x643   :  { %v4929_v35 = vpop.f32.mrb[20].mxu0 }
 0x644   :  { %v4930_v37 = vadd.f32 %v4929_v35, %v4709_v28  ;;  %v4931_v38 = vpop.f32.mrb[21].mxu0 }
 0x645   :  { %v4932_v41 = vadd.f32 %v4931_v38, %v4713_v11  ;;  %v4933_v24 = vpop.f32.mrb[22].mxu0  ;;  %v9489_v11 = vld [vmem:[#allocation7 + $0x1598] ss:$24 sps:$4 sm:$0xff]  }
 0x646   :  { %v5024_v14 = vmax.f32 %v4930_v37, 0.0  ;;  %v4934_v42 = vpop.f32.mrb[23].mxu0  ;;  %v5023_v37 = vmax.f32 %v4873_v17, 0.0  ;;  %v9492_v24 = vld [vmem:[#allocation7 + $0x15c0] ss:$24 sps:$4 sm:$0xff]  }
 0x647   :  { %v5025_v15 = vmax.f32 %v4932_v41, 0.0  ;;  %v9503_v42 = vld [vmem:[#allocation7 + $0x15fc] ss:$24 sps:$4 sm:$0xff]  }
 0x648   :  { %v10209_v46 = vpack.c.bf16 %v5024_v14, %v5018_v53  ;;  %v9495_v53 = vld [vmem:[#allocation7 + $0x15c8] ss:$24 sps:$4 sm:$0xff]   ;;  %v9500_v14 = vld [vmem:[#allocation7 + $0x15f4] ss:$24 sps:$4 sm:$0xff]  }
 0x649   :  { %v10212_v44 = vpack.c.bf16 %v5025_v15, %v5019_v43  ;;  %v9498_v43 = vld [vmem:[#allocation7 + $0x15f0] ss:$24 sps:$4 sm:$0xff]   ;;  %v9506_v15 = vld [vmem:[#allocation7 + $0x1624] ss:$24 sps:$4 sm:$0xff]   ;;  %v9548_v17 = vld [vmem:[#allocation7 + $0x1774] ss:$24 sps:$4 sm:$0xff]  }
 0x64b   :  { %v4970_v54 = vpop.f32.mrb[24].mxu0  ;;  %6799 = vmatprep.mubr.bf16.mxu0 %v10212_v44  ;;  %6928 = vmatprep.mubr.bf16.mxu1 %v10212_v44 }
 0x64c   :  { %v4971_v50 = vadd.f32 %v4970_v54, %v4717_v39  ;;  %v4972_v51 = vpop.f32.mrb[25].mxu0  ;;  %6800 = vmatmul.mubr.bf16.vlgmr.msra.gmra.mrb[32].mxu0 %v10209_v46  ;;  %6929 = vmatmul.mubr.bf16.vlgmr.msra.gmra.mrb[44].mxu1 %v10209_v46  ;;  %v9513_v54 = vld [vmem:[#allocation7 + $0x1658] ss:$24 sps:$4 sm:$0xff]  }
 0x64d   :  { %v4973_v52 = vadd.f32 %v4972_v51, %v4721_v45  ;;  %6811 = vmatpush1.bf16.msra.mxu0 %v9468_v31  ;;  %6940 = vmatpush1.bf16.msra.mxu1 %v9471_v47  ;;  %v4974_v57 = vpop.f32.mrb[26].mxu0  ;;  %v9501_v45 = vld [vmem:[#allocation7 + $0x15f8] ss:$24 sps:$4 sm:$0xff]   ;;  %v9507_v47 = vld [vmem:[#allocation7 + $0x1628] ss:$24 sps:$4 sm:$0xff]  }
 0x64e   :  { %v5026_v60 = vmax.f32 %v4971_v50, 0.0  ;;  %v4975_v61 = vpop.f32.mrb[27].mxu0  ;;  %6812 = vmatprep.subr.bf16.mxu0 %v9476_v48  ;;  %6941 = vmatprep.subr.bf16.mxu1 %v9479_v33  ;;  %v9504_v31 = vld [vmem:[#allocation7 + $0x1620] ss:$24 sps:$4 sm:$0xff]   ;;  %v9512_v48 = vld [vmem:[#allocation7 + $0x1654] ss:$24 sps:$4 sm:$0xff]  }
 0x64f   :  { %v5027_v1 = vmax.f32 %v4973_v52, 0.0  ;;  %v9515_v33 = vld [vmem:[#allocation7 + $0x165c] ss:$24 sps:$4 sm:$0xff]   ;;  %v9521_v51 = vld [vmem:[#allocation7 + $0x168c] ss:$24 sps:$4 sm:$0xff]  }
 0x650   :  { %v10221_v3 = vpack.c.bf16 %v5026_v60, %v5020_v32  ;;  %v9518_v50 = vld [vmem:[#allocation7 + $0x1684] ss:$24 sps:$4 sm:$0xff]   ;;  %v9516_v32 = vld [vmem:[#allocation7 + $0x1680] ss:$24 sps:$4 sm:$0xff]   ;;  %v9524_v57 = vld [vmem:[#allocation7 + $0x16b4] ss:$24 sps:$4 sm:$0xff]  }
 0x651   :  { %v10223_v7 = vpack.c.bf16 %v5027_v1, %v5021_v25  ;;  %6813 = vmatpush1.bf16.msra.mxu0 %v9474_v58  ;;  %6942 = vmatpush1.bf16.msra.mxu1 %v9477_v59  ;;  %v9519_v52 = vld [vmem:[#allocation7 + $0x1688] ss:$24 sps:$4 sm:$0xff]   ;;  %v9527_v58 = vld [vmem:[#allocation7 + $0x16bc] ss:$24 sps:$4 sm:$0xff]   ;;  %v9533_v61 = vld [vmem:[#allocation7 + $0x16ec] ss:$24 sps:$4 sm:$0xff]  }
 0x652   :  { %6814 = vmatprep.subr.bf16.mxu0 %v9482_v55  ;;  %6943 = vmatprep.subr.bf16.mxu1 %v9485_v63  ;;  %v9522_v59 = vld [vmem:[#allocation7 + $0x16b0] ss:$24 sps:$4 sm:$0xff]   ;;  %v9530_v60 = vld [vmem:[#allocation7 + $0x16e4] ss:$24 sps:$4 sm:$0xff]   ;;  %v9528_v55 = vld [vmem:[#allocation7 + $0x16e0] ss:$24 sps:$4 sm:$0xff]  }
 0x653   :  { %v5011_v19 = vpop.f32.mrb[28].mxu0  ;;  %6842 = vmatprep.mubr.bf16.mxu0 %v10223_v7  ;;  %6971 = vmatprep.mubr.bf16.mxu1 %v10223_v7  ;;  %v9531_v63 = vld [vmem:[#allocation7 + $0x16e8] ss:$24 sps:$4 sm:$0xff]   ;;  %v9536_v25 = vld [vmem:[#allocation7 + $0x1714] ss:$24 sps:$4 sm:$0xff]  }
 0x654   :  { %v5012_v6 = vadd.f32 %v5011_v19, %v4725_v56  ;;  %v5013_v20 = vpop.f32.mrb[29].mxu0  ;;  %v9525_v56 = vld [vmem:[#allocation7 + $0x16b8] ss:$24 sps:$4 sm:$0xff]   ;;  %v9551_v19 = vld [vmem:[#allocation7 + $0x177c] ss:$24 sps:$4 sm:$0xff]  }
 0x655   :  { %v5014_v28 = vadd.f32 %v5013_v20, %v4729_v0  ;;  %6815 = vmatpush1.bf16.msra.mxu0 %v9480_v8  ;;  %6944 = vmatpush1.bf16.msra.mxu1 %v9483_v9  ;;  %v5015_v29 = vpop.f32.mrb[30].mxu0  ;;  %v9539_v0 = vld [vmem:[#allocation7 + $0x171c] ss:$24 sps:$4 sm:$0xff]   ;;  %v9534_v1 = vld [vmem:[#allocation7 + $0x1710] ss:$24 sps:$4 sm:$0xff]  }
 0x656   :  { %v5028_v34 = vmax.f32 %v5012_v6, 0.0  ;;  %v5016_v35 = vpop.f32.mrb[31].mxu0  ;;  %6816 = vmatprep.subr.bf16.mxu0 %v9488_v5  ;;  %6945 = vmatprep.subr.bf16.mxu1 %v9491_v12  ;;  %v9537_v8 = vld [vmem:[#allocation7 + $0x1718] ss:$24 sps:$4 sm:$0xff]   ;;  %v9542_v9 = vld [vmem:[#allocation7 + $0x1744] ss:$24 sps:$4 sm:$0xff]  }
 0x657   :  { %v5029_v38 = vmax.f32 %v5014_v28, 0.0  ;;  %v9540_v5 = vld [vmem:[#allocation7 + $0x1740] ss:$24 sps:$4 sm:$0xff]   ;;  %v9546_v6 = vld [vmem:[#allocation7 + $0x1770] ss:$24 sps:$4 sm:$0xff]  }
 0x658   :  { %v10227_v39 = vpack.c.bf16 %v5028_v34, %v5022_v21  ;;  %v9543_v12 = vld [vmem:[#allocation7 + $0x1748] ss:$24 sps:$4 sm:$0xff]   ;;  %v9549_v20 = vld [vmem:[#allocation7 + $0x1778] ss:$24 sps:$4 sm:$0xff]   ;;  %v9557_v28 = vld [vmem:[#allocation7 + $0x17ac] ss:$24 sps:$4 sm:$0xff]  }
 0x659   :  { %v10229_v41 = vpack.c.bf16 %v5029_v38, %v5023_v37  ;;  %6817 = vmatpush1.bf16.msra.mxu0 %v9486_v27  ;;  %6946 = vmatpush1.bf16.msra.mxu1 %v9489_v11  ;;  %v9554_v27 = vld [vmem:[#allocation7 + $0x17a4] ss:$24 sps:$4 sm:$0xff]   ;;  %v9552_v29 = vld [vmem:[#allocation7 + $0x17a0] ss:$24 sps:$4 sm:$0xff]   ;;  %v9558_v34 = vld [vmem:[#allocation7 + $0x17d0] ss:$24 sps:$4 sm:$0xff]  }
 0x65a   :  { %6818 = vmatprep.subr.bf16.mxu0 %v9494_v13  ;;  %6947 = vmatprep.subr.bf16.mxu1 %v9497_v26  ;;  %v9555_v11 = vld [vmem:[#allocation7 + $0x17a8] ss:$24 sps:$4 sm:$0xff]   ;;  %v9560_v13 = vld [vmem:[#allocation7 + $0x17d4] ss:$24 sps:$4 sm:$0xff]   ;;  %v9561_v35 = vld [vmem:[#allocation7 + $0x17d8] ss:$24 sps:$4 sm:$0xff]  }
 0x65b   :  { %v9563_v21 = vld [vmem:[#allocation7 + $0x17dc] ss:$24 sps:$4 sm:$0xff]   ;;  %v9569_v37 = vld [vmem:[#allocation7 + $0x180c] ss:$24 sps:$4 sm:$0xff]   ;;  %v9564_v38 = vld [vmem:[#allocation7 + $0x1800] ss:$24 sps:$4 sm:$0xff]  }
 0x65c   :  { %v9566_v26 = vld [vmem:[#allocation7 + $0x1804] ss:$24 sps:$4 sm:$0xff]  }
 0x65d   :  { %6819 = vmatpush1.bf16.msra.mxu0 %v9492_v24  ;;  %6948 = vmatpush1.bf16.msra.mxu1 %v9495_v53  ;;  %v9567_v24 = vld [vmem:[#allocation7 + $0x1808] ss:$24 sps:$4 sm:$0xff]   ;;  %v9572_v53 = vld [vmem:[#allocation7 + $0x1834] ss:$24 sps:$4 sm:$0xff]  }
 0x65e   :  { %6820 = vmatprep.subr.bf16.mxu0 %v9500_v14  ;;  %6949 = vmatprep.subr.bf16.mxu1 %v9503_v42  ;;  %v9575_v14 = vld [vmem:[#allocation7 + $0x183c] ss:$24 sps:$4 sm:$0xff]   ;;  %v9570_v42 = vld [vmem:[#allocation7 + $0x1830] ss:$24 sps:$4 sm:$0xff]  }
 0x661   :  { %6821 = vmatpush1.bf16.msra.mxu0 %v9498_v43  ;;  %6950 = vmatpush1.bf16.msra.mxu1 %v9501_v45  ;;  %v9573_v43 = vld [vmem:[#allocation7 + $0x1838] ss:$24 sps:$4 sm:$0xff]   ;;  %v9578_v45 = vld [vmem:[#allocation7 + $0x1864] ss:$24 sps:$4 sm:$0xff]  }
 0x662   :  { %6822 = vmatprep.subr.bf16.mxu0 %v9506_v15  ;;  %6951 = vmatprep.subr.bf16.mxu1 %v9509_v30  ;;  %v9581_v15 = vld [vmem:[#allocation7 + $0x186c] ss:$24 sps:$4 sm:$0xff]   ;;  %v9576_v30 = vld [vmem:[#allocation7 + $0x1860] ss:$24 sps:$4 sm:$0xff]  }
 0x665   :  { %6823 = vmatpush1.bf16.msra.mxu0 %v9504_v31  ;;  %6952 = vmatpush1.bf16.msra.mxu1 %v9507_v47  ;;  %v9579_v31 = vld [vmem:[#allocation7 + $0x1868] ss:$24 sps:$4 sm:$0xff]   ;;  %v9584_v47 = vld [vmem:[#allocation7 + $0x1894] ss:$24 sps:$4 sm:$0xff]  }
 0x666   :  { %6824 = vmatprep.subr.bf16.mxu0 %v9512_v48  ;;  %6953 = vmatprep.subr.bf16.mxu1 %v9515_v33  ;;  %v9587_v48 = vld [vmem:[#allocation7 + $0x189c] ss:$24 sps:$4 sm:$0xff]   ;;  %v9582_v33 = vld [vmem:[#allocation7 + $0x1890] ss:$24 sps:$4 sm:$0xff]  }
 0x669   :  { %6825 = vmatpush1.bf16.msra.mxu0 %v9510_v49  ;;  %6954 = vmatpush1.bf16.msra.mxu1 %v9513_v54  ;;  %v9585_v49 = vld [vmem:[#allocation7 + $0x1898] ss:$24 sps:$4 sm:$0xff]   ;;  %v9590_v54 = vld [vmem:[#allocation7 + $0x18c4] ss:$24 sps:$4 sm:$0xff]  }
 0x66a   :  { %6826 = vmatprep.subr.bf16.mxu0 %v9518_v50  ;;  %6955 = vmatprep.subr.bf16.mxu1 %v9521_v51  ;;  %v9593_v50 = vld [vmem:[#allocation7 + $0x18cc] ss:$24 sps:$4 sm:$0xff]   ;;  %v9588_v51 = vld [vmem:[#allocation7 + $0x18c0] ss:$24 sps:$4 sm:$0xff]  }
 0x66d   :  { %6827 = vmatpush1.bf16.msra.mxu0 %v9516_v32  ;;  %6956 = vmatpush1.bf16.msra.mxu1 %v9519_v52  ;;  %v9591_v32 = vld [vmem:[#allocation7 + $0x18c8] ss:$24 sps:$4 sm:$0xff]   ;;  %v9596_v52 = vld [vmem:[#allocation7 + $0x18f4] ss:$24 sps:$4 sm:$0xff]  }
 0x66e   :  { %6828 = vmatprep.subr.bf16.mxu0 %v9524_v57  ;;  %6957 = vmatprep.subr.bf16.mxu1 %v9527_v58  ;;  %v9599_v57 = vld [vmem:[#allocation7 + $0x18fc] ss:$24 sps:$4 sm:$0xff]   ;;  %v9594_v58 = vld [vmem:[#allocation7 + $0x18f0] ss:$24 sps:$4 sm:$0xff]  }
 0x671   :  { %6829 = vmatpush1.bf16.msra.mxu0 %v9522_v59  ;;  %6958 = vmatpush1.bf16.msra.mxu1 %v9525_v56  ;;  %v9597_v59 = vld [vmem:[#allocation7 + $0x18f8] ss:$24 sps:$4 sm:$0xff]   ;;  %v9602_v56 = vld [vmem:[#allocation7 + $0x1924] ss:$24 sps:$4 sm:$0xff]  }
 0x672   :  { %6830 = vmatprep.subr.bf16.mxu0 %v9530_v60  ;;  %6959 = vmatprep.subr.bf16.mxu1 %v9533_v61  ;;  %v9605_v60 = vld [vmem:[#allocation7 + $0x192c] ss:$24 sps:$4 sm:$0xff]   ;;  %v9600_v61 = vld [vmem:[#allocation7 + $0x1920] ss:$24 sps:$4 sm:$0xff]  }
 0x675   :  { %6831 = vmatpush1.bf16.msra.mxu0 %v9528_v55  ;;  %6960 = vmatpush1.bf16.msra.mxu1 %v9531_v63  ;;  %v9603_v55 = vld [vmem:[#allocation7 + $0x1928] ss:$24 sps:$4 sm:$0xff]   ;;  %v9608_v63 = vld [vmem:[#allocation7 + $0x1954] ss:$24 sps:$4 sm:$0xff]  }
 0x676   :  { %6832 = vmatprep.subr.bf16.mxu0 %v9536_v25  ;;  %6961 = vmatprep.subr.bf16.mxu1 %v9539_v0  ;;  %v9611_v25 = vld [vmem:[#allocation7 + $0x195c] ss:$24 sps:$4 sm:$0xff]   ;;  %v9606_v0 = vld [vmem:[#allocation7 + $0x1950] ss:$24 sps:$4 sm:$0xff]  }
 0x679   :  { %6833 = vmatpush1.bf16.msra.mxu0 %v9534_v1  ;;  %6962 = vmatpush1.bf16.msra.mxu1 %v9537_v8  ;;  %v9609_v1 = vld [vmem:[#allocation7 + $0x1958] ss:$24 sps:$4 sm:$0xff]   ;;  %v9614_v8 = vld [vmem:[#allocation7 + $0x1984] ss:$24 sps:$4 sm:$0xff]  }
 0x67a   :  { %6834 = vmatprep.subr.bf16.mxu0 %v9542_v9  ;;  %6963 = vmatprep.subr.bf16.mxu1 %v9545_v10  ;;  %v9617_v9 = vld [vmem:[#allocation7 + $0x198c] ss:$24 sps:$4 sm:$0xff]   ;;  %v9612_v10 = vld [vmem:[#allocation7 + $0x1980] ss:$24 sps:$4 sm:$0xff]  }
 0x67d   :  { %6835 = vmatpush1.bf16.msra.mxu0 %v9540_v5  ;;  %6964 = vmatpush1.bf16.msra.mxu1 %v9543_v12  ;;  %v9615_v5 = vld [vmem:[#allocation7 + $0x1988] ss:$24 sps:$4 sm:$0xff]   ;;  %v9620_v12 = vld [vmem:[#allocation7 + $0x19b4] ss:$24 sps:$4 sm:$0xff]  }
 0x67e   :  { %6836 = vmatprep.subr.bf16.mxu0 %v9548_v17  ;;  %6965 = vmatprep.subr.bf16.mxu1 %v9551_v19  ;;  %v9623_v17 = vld [vmem:[#allocation7 + $0x19bc] ss:$24 sps:$4 sm:$0xff]   ;;  %v9618_v19 = vld [vmem:[#allocation7 + $0x19b0] ss:$24 sps:$4 sm:$0xff]  }
 0x681   :  { %6837 = vmatpush1.bf16.msra.mxu0 %v9546_v6  ;;  %6966 = vmatpush1.bf16.msra.mxu1 %v9549_v20  ;;  %v9621_v6 = vld [vmem:[#allocation7 + $0x19b8] ss:$24 sps:$4 sm:$0xff]   ;;  %v9626_v20 = vld [vmem:[#allocation7 + $0x19e4] ss:$24 sps:$4 sm:$0xff]  }
 0x682   :  { %6838 = vmatprep.subr.bf16.mxu0 %v9554_v27  ;;  %6967 = vmatprep.subr.bf16.mxu1 %v9557_v28  ;;  %v9629_v27 = vld [vmem:[#allocation7 + $0x19ec] ss:$24 sps:$4 sm:$0xff]   ;;  %v9624_v28 = vld [vmem:[#allocation7 + $0x19e0] ss:$24 sps:$4 sm:$0xff]  }
 0x685   :  { %6839 = vmatpush1.bf16.msra.mxu0 %v9552_v29  ;;  %6968 = vmatpush1.bf16.msra.mxu1 %v9555_v11  ;;  %v9627_v29 = vld [vmem:[#allocation7 + $0x19e8] ss:$24 sps:$4 sm:$0xff]   ;;  %v9632_v11 = vld [vmem:[#allocation7 + $0x1a14] ss:$24 sps:$4 sm:$0xff]  }
 0x686   :  { %6840 = vmatprep.subr.bf16.mxu0 %v9560_v13  ;;  %6969 = vmatprep.subr.bf16.mxu1 %v9563_v21  ;;  %v9635_v13 = vld [vmem:[#allocation7 + $0x1a1c] ss:$24 sps:$4 sm:$0xff]   ;;  %v9630_v21 = vld [vmem:[#allocation7 + $0x1a10] ss:$24 sps:$4 sm:$0xff]  }
 0x689   :  { %6841 = vmatpush1.bf16.msra.mxu0 %v9558_v34  ;;  %6970 = vmatpush1.bf16.msra.mxu1 %v9561_v35  ;;  %v9633_v34 = vld [vmem:[#allocation7 + $0x1a18] ss:$24 sps:$4 sm:$0xff]   ;;  %v9638_v35 = vld [vmem:[#allocation7 + $0x1a44] ss:$24 sps:$4 sm:$0xff]  }
 0x68a   :  { %6853 = vmatprep.subr.bf16.mxu0 %v9566_v26  ;;  %6982 = vmatprep.subr.bf16.mxu1 %v9569_v37  ;;  %v9641_v26 = vld [vmem:[#allocation7 + $0x1a4c] ss:$24 sps:$4 sm:$0xff]   ;;  %v9636_v37 = vld [vmem:[#allocation7 + $0x1a40] ss:$24 sps:$4 sm:$0xff]  }
 0x68c   :  { %6843 = vmatmul.mubr.bf16.vlgmr.msra.gmra.mrb[32].mxu0 %v10221_v3  ;;  %6972 = vmatmul.mubr.bf16.vlgmr.msra.gmra.mrb[44].mxu1 %v10221_v3 }
 0x68d   :  { %6854 = vmatpush1.bf16.msra.mxu0 %v9564_v38  ;;  %6885 = vmatprep.mubr.bf16.mxu0 %v10229_v41  ;;  %v9639_v38 = vld [vmem:[#allocation7 + $0x1a48] ss:$24 sps:$4 sm:$0xff]  }
 0x68e   :  { %6983 = vmatpush1.bf16.msra.mxu1 %v9567_v24  ;;  %7014 = vmatprep.mubr.bf16.mxu1 %v10229_v41  ;;  %v9644_v24 = vld [vmem:[#allocation7 + $0x1a74] ss:$24 sps:$4 sm:$0xff]  }
 0x68f   :  { %6855 = vmatprep.subr.bf16.mxu0 %v9572_v53  ;;  %6984 = vmatprep.subr.bf16.mxu1 %v9575_v14  ;;  %v9647_v53 = vld [vmem:[#allocation7 + $0x1a7c] ss:$24 sps:$4 sm:$0xff]   ;;  %v9642_v14 = vld [vmem:[#allocation7 + $0x1a70] ss:$24 sps:$4 sm:$0xff]  }
 0x691   :  { %6856 = vmatpush1.bf16.msra.mxu0 %v9570_v42  ;;  %v9645_v42 = vld [vmem:[#allocation7 + $0x1a78] ss:$24 sps:$4 sm:$0xff]  }
 0x692   :  { %6985 = vmatpush1.bf16.msra.mxu1 %v9573_v43  ;;  %6857 = vmatprep.subr.bf16.mxu0 %v9578_v45  ;;  %v9650_v43 = vld [vmem:[#allocation7 + $0x1aa4] ss:$24 sps:$4 sm:$0xff]  }
 0x693   :  { %6986 = vmatprep.subr.bf16.mxu1 %v9581_v15  ;;  %v9653_v45 = vld [vmem:[#allocation7 + $0x1aac] ss:$24 sps:$4 sm:$0xff]   ;;  %v9648_v15 = vld [vmem:[#allocation7 + $0x1aa0] ss:$24 sps:$4 sm:$0xff]  }
 0x695   :  { %6858 = vmatpush1.bf16.msra.mxu0 %v9576_v30  ;;  %v9651_v30 = vld [vmem:[#allocation7 + $0x1aa8] ss:$24 sps:$4 sm:$0xff]  }
 0x696   :  { %6987 = vmatpush1.bf16.msra.mxu1 %v9579_v31  ;;  %6859 = vmatprep.subr.bf16.mxu0 %v9584_v47  ;;  %v9656_v31 = vld [vmem:[#allocation7 + $0x1ad4] ss:$24 sps:$4 sm:$0xff]  }
 0x697   :  { %6988 = vmatprep.subr.bf16.mxu1 %v9587_v48  ;;  %v9659_v47 = vld [vmem:[#allocation7 + $0x1adc] ss:$24 sps:$4 sm:$0xff]   ;;  %v9654_v48 = vld [vmem:[#allocation7 + $0x1ad0] ss:$24 sps:$4 sm:$0xff]  }
 0x699   :  { %6860 = vmatpush1.bf16.msra.mxu0 %v9582_v33  ;;  %v9657_v33 = vld [vmem:[#allocation7 + $0x1ad8] ss:$24 sps:$4 sm:$0xff]  }
 0x69a   :  { %6989 = vmatpush1.bf16.msra.mxu1 %v9585_v49  ;;  %6861 = vmatprep.subr.bf16.mxu0 %v9590_v54  ;;  %v9662_v49 = vld [vmem:[#allocation7 + $0x1214] ss:$24 sps:$4 sm:$0xff]   ;;  %v9660_v54 = vld [vmem:[#allocation7 + $0x1210] ss:$24 sps:$4 sm:$0xff]  }
 0x69b   :  { %6990 = vmatprep.subr.bf16.mxu1 %v9593_v50  ;;  %v9665_v50 = vld [vmem:[#allocation7 + $0x1244] ss:$24 sps:$4 sm:$0xff]  }
 0x69d   :  { %6862 = vmatpush1.bf16.msra.mxu0 %v9588_v51  ;;  %v9663_v51 = vld [vmem:[#allocation7 + $0x1240] ss:$24 sps:$4 sm:$0xff]  }
 0x69e   :  { %6991 = vmatpush1.bf16.msra.mxu1 %v9591_v32  ;;  %6863 = vmatprep.subr.bf16.mxu0 %v9596_v52  ;;  %v9668_v32 = vld [vmem:[#allocation7 + $0x1274] ss:$24 sps:$4 sm:$0xff]   ;;  %v9666_v52 = vld [vmem:[#allocation7 + $0x1270] ss:$24 sps:$4 sm:$0xff]  }
 0x69f   :  { %6992 = vmatprep.subr.bf16.mxu1 %v9599_v57  ;;  %v9671_v57 = vld [vmem:[#allocation7 + $0x12a4] ss:$24 sps:$4 sm:$0xff]  }
 0x6a1   :  { %6864 = vmatpush1.bf16.msra.mxu0 %v9594_v58  ;;  %v9669_v58 = vld [vmem:[#allocation7 + $0x12a0] ss:$24 sps:$4 sm:$0xff]  }
 0x6a2   :  { %6993 = vmatpush1.bf16.msra.mxu1 %v9597_v59  ;;  %6865 = vmatprep.subr.bf16.mxu0 %v9602_v56  ;;  %v9674_v59 = vld [vmem:[#allocation7 + $0x12d4] ss:$24 sps:$4 sm:$0xff]   ;;  %v9672_v56 = vld [vmem:[#allocation7 + $0x12d0] ss:$24 sps:$4 sm:$0xff]  }
 0x6a3   :  { %6994 = vmatprep.subr.bf16.mxu1 %v9605_v60  ;;  %v9677_v60 = vld [vmem:[#allocation7 + $0x1304] ss:$24 sps:$4 sm:$0xff]  }
 0x6a5   :  { %6866 = vmatpush1.bf16.msra.mxu0 %v9600_v61  ;;  %v9675_v61 = vld [vmem:[#allocation7 + $0x1300] ss:$24 sps:$4 sm:$0xff]  }
 0x6a6   :  { %6995 = vmatpush1.bf16.msra.mxu1 %v9603_v55  ;;  %6867 = vmatprep.subr.bf16.mxu0 %v9608_v63  ;;  %v9678_v55 = vld [vmem:[#allocation7 + $0x1330] ss:$24 sps:$4 sm:$0xff]   ;;  %v9683_v63 = vld [vmem:[#allocation7 + $0x1364] ss:$24 sps:$4 sm:$0xff]  }
 0x6a7   :  { %6996 = vmatprep.subr.bf16.mxu1 %v9611_v25  ;;  %v9681_v25 = vld [vmem:[#allocation7 + $0x1360] ss:$24 sps:$4 sm:$0xff]  }
 0x6a9   :  { %6868 = vmatpush1.bf16.msra.mxu0 %v9606_v0  ;;  %v9686_v0 = vld [vmem:[#allocation7 + $0x1394] ss:$24 sps:$4 sm:$0xff]  }
 0x6aa   :  { %6997 = vmatpush1.bf16.msra.mxu1 %v9609_v1  ;;  %6869 = vmatprep.subr.bf16.mxu0 %v9614_v8  ;;  %v9684_v1 = vld [vmem:[#allocation7 + $0x1390] ss:$24 sps:$4 sm:$0xff]   ;;  %v9689_v8 = vld [vmem:[#allocation7 + $0x13c4] ss:$24 sps:$4 sm:$0xff]  }
 0x6ab   :  { %6998 = vmatprep.subr.bf16.mxu1 %v9617_v9  ;;  %v9687_v9 = vld [vmem:[#allocation7 + $0x13c0] ss:$24 sps:$4 sm:$0xff]  }
 0x6ad   :  { %6870 = vmatpush1.bf16.msra.mxu0 %v9612_v10  ;;  %v9692_v10 = vld [vmem:[#allocation7 + $0x13f4] ss:$24 sps:$4 sm:$0xff]  }
 0x6ae   :  { %6999 = vmatpush1.bf16.msra.mxu1 %v9615_v5  ;;  %6871 = vmatprep.subr.bf16.mxu0 %v9620_v12  ;;  %v9690_v5 = vld [vmem:[#allocation7 + $0x13f0] ss:$24 sps:$4 sm:$0xff]   ;;  %v9695_v12 = vld [vmem:[#allocation7 + $0x1424] ss:$24 sps:$4 sm:$0xff]  }
 0x6af   :  { %7000 = vmatprep.subr.bf16.mxu1 %v9623_v17  ;;  %v9693_v17 = vld [vmem:[#allocation7 + $0x1420] ss:$24 sps:$4 sm:$0xff]  }
 0x6b1   :  { %6872 = vmatpush1.bf16.msra.mxu0 %v9618_v19  ;;  %v9698_v19 = vld [vmem:[#allocation7 + $0x1454] ss:$24 sps:$4 sm:$0xff]  }
 0x6b2   :  { %7001 = vmatpush1.bf16.msra.mxu1 %v9621_v6  ;;  %6873 = vmatprep.subr.bf16.mxu0 %v9626_v20  ;;  %v9696_v6 = vld [vmem:[#allocation7 + $0x1450] ss:$24 sps:$4 sm:$0xff]   ;;  %v9701_v20 = vld [vmem:[#allocation7 + $0x1484] ss:$24 sps:$4 sm:$0xff]  }
 0x6b3   :  { %7002 = vmatprep.subr.bf16.mxu1 %v9629_v27  ;;  %v9699_v27 = vld [vmem:[#allocation7 + $0x1480] ss:$24 sps:$4 sm:$0xff]  }
 0x6b5   :  { %6874 = vmatpush1.bf16.msra.mxu0 %v9624_v28  ;;  %v9704_v28 = vld [vmem:[#allocation7 + $0x14b4] ss:$24 sps:$4 sm:$0xff]  }
 0x6b6   :  { %7003 = vmatpush1.bf16.msra.mxu1 %v9627_v29  ;;  %6875 = vmatprep.subr.bf16.mxu0 %v9632_v11  ;;  %v9702_v29 = vld [vmem:[#allocation7 + $0x14b0] ss:$24 sps:$4 sm:$0xff]   ;;  %v9707_v11 = vld [vmem:[#allocation7 + $0x14e4] ss:$24 sps:$4 sm:$0xff]  }
 0x6b7   :  { %7004 = vmatprep.subr.bf16.mxu1 %v9635_v13  ;;  %v9705_v13 = vld [vmem:[#allocation7 + $0x14e0] ss:$24 sps:$4 sm:$0xff]  }
 0x6b9   :  { %6876 = vmatpush1.bf16.msra.mxu0 %v9630_v21  ;;  %v9710_v21 = vld [vmem:[#allocation7 + $0x1514] ss:$24 sps:$4 sm:$0xff]  }
 0x6ba   :  { %7005 = vmatpush1.bf16.msra.mxu1 %v9633_v34  ;;  %6877 = vmatprep.subr.bf16.mxu0 %v9638_v35  ;;  %v9708_v34 = vld [vmem:[#allocation7 + $0x1510] ss:$24 sps:$4 sm:$0xff]   ;;  %v9713_v35 = vld [vmem:[#allocation7 + $0x1544] ss:$24 sps:$4 sm:$0xff]  }
 0x6bb   :  { %7006 = vmatprep.subr.bf16.mxu1 %v9641_v26  ;;  %v9711_v26 = vld [vmem:[#allocation7 + $0x1540] ss:$24 sps:$4 sm:$0xff]  }
 0x6bd   :  { %6878 = vmatpush1.bf16.msra.mxu0 %v9636_v37  ;;  %v9716_v37 = vld [vmem:[#allocation7 + $0x1574] ss:$24 sps:$4 sm:$0xff]  }
 0x6be   :  { %7007 = vmatpush1.bf16.msra.mxu1 %v9639_v38  ;;  %6879 = vmatprep.subr.bf16.mxu0 %v9644_v24  ;;  %v9714_v38 = vld [vmem:[#allocation7 + $0x1570] ss:$24 sps:$4 sm:$0xff]   ;;  %v9719_v24 = vld [vmem:[#allocation7 + $0x15a4] ss:$24 sps:$4 sm:$0xff]  }
 0x6bf   :  { %7008 = vmatprep.subr.bf16.mxu1 %v9647_v53  ;;  %v9717_v53 = vld [vmem:[#allocation7 + $0x15a0] ss:$24 sps:$4 sm:$0xff]  }
 0x6c1   :  { %6880 = vmatpush1.bf16.msra.mxu0 %v9642_v14  ;;  %v9722_v14 = vld [vmem:[#allocation7 + $0x15d4] ss:$24 sps:$4 sm:$0xff]  }
 0x6c2   :  { %7009 = vmatpush1.bf16.msra.mxu1 %v9645_v42  ;;  %6881 = vmatprep.subr.bf16.mxu0 %v9650_v43  ;;  %v9720_v42 = vld [vmem:[#allocation7 + $0x15d0] ss:$24 sps:$4 sm:$0xff]   ;;  %v9725_v43 = vld [vmem:[#allocation7 + $0x1604] ss:$24 sps:$4 sm:$0xff]  }
 0x6c3   :  { %7010 = vmatprep.subr.bf16.mxu1 %v9653_v45  ;;  %v9728_v45 = vld [vmem:[#allocation7 + $0x1634] ss:$24 sps:$4 sm:$0xff]  }
 0x6c5   :  { %6882 = vmatpush1.bf16.msra.mxu0 %v9648_v15  ;;  %v9731_v15 = vld [vmem:[#allocation7 + $0x1664] ss:$24 sps:$4 sm:$0xff]  }
 0x6c6   :  { %7011 = vmatpush1.bf16.msra.mxu1 %v9651_v30  ;;  %6883 = vmatprep.subr.bf16.mxu0 %v9656_v31  ;;  %v9729_v30 = vld [vmem:[#allocation7 + $0x1660] ss:$24 sps:$4 sm:$0xff]   ;;  %v9734_v31 = vld [vmem:[#allocation7 + $0x1694] ss:$24 sps:$4 sm:$0xff]  }
 0x6c7   :  { %7012 = vmatprep.subr.bf16.mxu1 %v9659_v47  ;;  %v9732_v47 = vld [vmem:[#allocation7 + $0x1690] ss:$24 sps:$4 sm:$0xff]  }
 0x6c9   :  { %6884 = vmatpush1.bf16.msra.mxu0 %v9654_v48  ;;  %v9737_v48 = vld [vmem:[#allocation7 + $0x16c4] ss:$24 sps:$4 sm:$0xff]  }
 0x6ca   :  { %7013 = vmatpush1.bf16.msra.mxu1 %v9657_v33  ;;  %7025 = vmatprep.subr.bf16.mxu0 %v9662_v49  ;;  %v9735_v33 = vld [vmem:[#allocation7 + $0x16c0] ss:$24 sps:$4 sm:$0xff]   ;;  %v9740_v49 = vld [vmem:[#allocation7 + $0x16f4] ss:$24 sps:$4 sm:$0xff]  }
 0x6cc   :  { %6886 = vmatmul.mubr.bf16.vlgmr.msra.gmra.mrb[32].mxu0 %v10227_v39 }
 0x6cd   :  { %7015 = vmatmul.mubr.bf16.vlgmr.msra.gmra.mrb[44].mxu1 %v10227_v39  ;;  %7026 = vmatpush1.bf16.msra.mxu0 %v9660_v54  ;;  %v9738_v54 = vld [vmem:[#allocation7 + $0x16f0] ss:$24 sps:$4 sm:$0xff]  }
 0x6ce   :  { %7057 = vmatprep.mubr.bf16.mxu0 %v10212_v44  ;;  %7027 = vmatprep.subr.bf16.mxu0 %v9665_v50  ;;  %v9680_v44 = vld [vmem:[#allocation7 + $0x1334] ss:$24 sps:$4 sm:$0xff]   ;;  %v9743_v50 = vld [vmem:[#allocation7 + $0x1724] ss:$24 sps:$4 sm:$0xff]  }
 0x6cf   :  { %7247 = vmatprep.mubr.bf16.mxu1 %v9940_v18 }
 0x6d1   :  { %7028 = vmatpush1.bf16.msra.mxu0 %v9663_v51  ;;  %v9741_v51 = vld [vmem:[#allocation7 + $0x1720] ss:$24 sps:$4 sm:$0xff]  }
 0x6d2   :  { %7029 = vmatprep.subr.bf16.mxu0 %v9668_v32  ;;  %v9746_v32 = vld [vmem:[#allocation7 + $0x1754] ss:$24 sps:$4 sm:$0xff]  }
 0x6d5   :  { %7030 = vmatpush1.bf16.msra.mxu0 %v9666_v52  ;;  %v9744_v52 = vld [vmem:[#allocation7 + $0x1750] ss:$24 sps:$4 sm:$0xff]  }
 0x6d6   :  { %7031 = vmatprep.subr.bf16.mxu0 %v9671_v57  ;;  %v9749_v57 = vld [vmem:[#allocation7 + $0x1784] ss:$24 sps:$4 sm:$0xff]  }
 0x6d9   :  { %7032 = vmatpush1.bf16.msra.mxu0 %v9669_v58  ;;  %v9747_v58 = vld [vmem:[#allocation7 + $0x1780] ss:$24 sps:$4 sm:$0xff]  }
 0x6da   :  { %7033 = vmatprep.subr.bf16.mxu0 %v9674_v59  ;;  %v9752_v59 = vld [vmem:[#allocation7 + $0x17b4] ss:$24 sps:$4 sm:$0xff]  }
 0x6dd   :  { %7034 = vmatpush1.bf16.msra.mxu0 %v9672_v56  ;;  %v9750_v56 = vld [vmem:[#allocation7 + $0x17b0] ss:$24 sps:$4 sm:$0xff]  }
 0x6de   :  { %7035 = vmatprep.subr.bf16.mxu0 %v9677_v60  ;;  %v9755_v60 = vld [vmem:[#allocation7 + $0x17e4] ss:$24 sps:$4 sm:$0xff]  }
 0x6e1   :  { %7036 = vmatpush1.bf16.msra.mxu0 %v9675_v61  ;;  %v9753_v61 = vld [vmem:[#allocation7 + $0x17e0] ss:$24 sps:$4 sm:$0xff]  }
 0x6e2   :  { %7037 = vmatprep.subr.bf16.mxu0 %v9680_v44  ;;  %v9758_v44 = vld [vmem:[#allocation7 + $0x1814] ss:$24 sps:$4 sm:$0xff]  }
 0x6e5   :  { %7038 = vmatpush1.bf16.msra.mxu0 %v9678_v55  ;;  %v9756_v55 = vld [vmem:[#allocation7 + $0x1810] ss:$24 sps:$4 sm:$0xff]  }
 0x6e6   :  { %7039 = vmatprep.subr.bf16.mxu0 %v9683_v63  ;;  %v9761_v63 = vld [vmem:[#allocation7 + $0x1844] ss:$24 sps:$4 sm:$0xff]  }
 0x6e9   :  { %7040 = vmatpush1.bf16.msra.mxu0 %v9681_v25  ;;  %v9759_v25 = vld [vmem:[#allocation7 + $0x1840] ss:$24 sps:$4 sm:$0xff]  }
 0x6ea   :  { %7041 = vmatprep.subr.bf16.mxu0 %v9686_v0  ;;  %v9764_v0 = vld [vmem:[#allocation7 + $0x1874] ss:$24 sps:$4 sm:$0xff]  }
 0x6ed   :  { %7042 = vmatpush1.bf16.msra.mxu0 %v9684_v1  ;;  %v9762_v1 = vld [vmem:[#allocation7 + $0x1870] ss:$24 sps:$4 sm:$0xff]  }
 0x6ee   :  { %7043 = vmatprep.subr.bf16.mxu0 %v9689_v8  ;;  %v9767_v8 = vld [vmem:[#allocation7 + $0x18a4] ss:$24 sps:$4 sm:$0xff]  }
 0x6f1   :  { %7044 = vmatpush1.bf16.msra.mxu0 %v9687_v9  ;;  %v9765_v9 = vld [vmem:[#allocation7 + $0x18a0] ss:$24 sps:$4 sm:$0xff]  }
 0x6f2   :  { %7045 = vmatprep.subr.bf16.mxu0 %v9692_v10  ;;  %v9770_v10 = vld [vmem:[#allocation7 + $0x18d4] ss:$24 sps:$4 sm:$0xff]  }
 0x6f5   :  { %7046 = vmatpush1.bf16.msra.mxu0 %v9690_v5  ;;  %v9768_v5 = vld [vmem:[#allocation7 + $0x18d0] ss:$24 sps:$4 sm:$0xff]  }
 0x6f6   :  { %7047 = vmatprep.subr.bf16.mxu0 %v9695_v12  ;;  %v9773_v12 = vld [vmem:[#allocation7 + $0x1904] ss:$24 sps:$4 sm:$0xff]  }
 0x6f9   :  { %7048 = vmatpush1.bf16.msra.mxu0 %v9693_v17  ;;  %v9776_v17 = vld [vmem:[#allocation7 + $0x1934] ss:$24 sps:$4 sm:$0xff]  }
 0x6fa   :  { %7049 = vmatprep.subr.bf16.mxu0 %v9698_v19  ;;  %v9779_v19 = vld [vmem:[#allocation7 + $0x1964] ss:$24 sps:$4 sm:$0xff]  }
 0x6fd   :  { %7050 = vmatpush1.bf16.msra.mxu0 %v9696_v6  ;;  %v9777_v6 = vld [vmem:[#allocation7 + $0x1960] ss:$24 sps:$4 sm:$0xff]  }
 0x6fe   :  { %7051 = vmatprep.subr.bf16.mxu0 %v9701_v20  ;;  %v9782_v20 = vld [vmem:[#allocation7 + $0x1994] ss:$24 sps:$4 sm:$0xff]  }
 0x701   :  { %7052 = vmatpush1.bf16.msra.mxu0 %v9699_v27  ;;  %v9780_v27 = vld [vmem:[#allocation7 + $0x1990] ss:$24 sps:$4 sm:$0xff]  }
 0x702   :  { %7053 = vmatprep.subr.bf16.mxu0 %v9704_v28  ;;  %v9785_v28 = vld [vmem:[#allocation7 + $0x19c4] ss:$24 sps:$4 sm:$0xff]  }
 0x705   :  { %7054 = vmatpush1.bf16.msra.mxu0 %v9702_v29  ;;  %v9783_v29 = vld [vmem:[#allocation7 + $0x19c0] ss:$24 sps:$4 sm:$0xff]  }
 0x706   :  { %7055 = vmatprep.subr.bf16.mxu0 %v9707_v11  ;;  %v9788_v11 = vld [vmem:[#allocation7 + $0x19f4] ss:$24 sps:$4 sm:$0xff]  }
 0x709   :  { %7056 = vmatpush1.bf16.msra.mxu0 %v9705_v13  ;;  %v9786_v13 = vld [vmem:[#allocation7 + $0x19f0] ss:$24 sps:$4 sm:$0xff]  }
 0x70a   :  { %7068 = vmatprep.subr.bf16.mxu0 %v9710_v21  ;;  %v9791_v21 = vld [vmem:[#allocation7 + $0x1a24] ss:$24 sps:$4 sm:$0xff]  }
 0x70c   :  { %7058 = vmatmul.mubr.bf16.vlgmr.msra.gmra.mrb[36].mxu0 %v10209_v46  ;;  %v9723_v46 = vld [vmem:[#allocation7 + $0x1600] ss:$24 sps:$4 sm:$0xff]  }
 0x70d   :  { %7069 = vmatpush1.bf16.msra.mxu0 %v9708_v34  ;;  %7100 = vmatprep.mubr.bf16.mxu0 %v10223_v7  ;;  %v9726_v7 = vld [vmem:[#allocation7 + $0x1630] ss:$24 sps:$4 sm:$0xff]   ;;  %v9789_v34 = vld [vmem:[#allocation7 + $0x1a20] ss:$24 sps:$4 sm:$0xff]  }
 0x70e   :  { %7070 = vmatprep.subr.bf16.mxu0 %v9713_v35  ;;  %v9794_v35 = vld [vmem:[#allocation7 + $0x1a54] ss:$24 sps:$4 sm:$0xff]  }
 0x711   :  { %7071 = vmatpush1.bf16.msra.mxu0 %v9711_v26  ;;  %v9792_v26 = vld [vmem:[#allocation7 + $0x1a50] ss:$24 sps:$4 sm:$0xff]  }
 0x712   :  { %7072 = vmatprep.subr.bf16.mxu0 %v9716_v37  ;;  %v9797_v37 = vld [vmem:[#allocation7 + $0x1a84] ss:$24 sps:$4 sm:$0xff]  }
 0x715   :  { %7073 = vmatpush1.bf16.msra.mxu0 %v9714_v38  ;;  %v9795_v38 = vld [vmem:[#allocation7 + $0x1a80] ss:$24 sps:$4 sm:$0xff]  }
 0x716   :  { %7074 = vmatprep.subr.bf16.mxu0 %v9719_v24  ;;  %v9800_v24 = vld [vmem:[#allocation7 + $0x1ab4] ss:$24 sps:$4 sm:$0xff]  }
 0x719   :  { %7075 = vmatpush1.bf16.msra.mxu0 %v9717_v53  ;;  %v9798_v53 = vld [vmem:[#allocation7 + $0x1ab0] ss:$24 sps:$4 sm:$0xff]  }
 0x71a   :  { %7076 = vmatprep.subr.bf16.mxu0 %v9722_v14  ;;  %v9803_v14 = vld [vmem:[#allocation7 + $0x1ae4] ss:$24 sps:$4 sm:$0xff]  }
 0x71d   :  { %7077 = vmatpush1.bf16.msra.mxu0 %v9720_v42  ;;  %v9801_v42 = vld [vmem:[#allocation7 + $0x1ae0] ss:$24 sps:$4 sm:$0xff]  }
 0x71e   :  { %7078 = vmatprep.subr.bf16.mxu0 %v9725_v43 }
 0x721   :  { %7079 = vmatpush1.bf16.msra.mxu0 %v9723_v46 }
 0x722   :  { %7080 = vmatprep.subr.bf16.mxu0 %v9728_v45 }
 0x725   :  { %7081 = vmatpush1.bf16.msra.mxu0 %v9726_v7 }
 0x726   :  { %7082 = vmatprep.subr.bf16.mxu0 %v9731_v15 }
 0x729   :  { %7083 = vmatpush1.bf16.msra.mxu0 %v9729_v30 }
 0x72a   :  { %7084 = vmatprep.subr.bf16.mxu0 %v9734_v31 }
 0x72d   :  { %7085 = vmatpush1.bf16.msra.mxu0 %v9732_v47 }
 0x72e   :  { %7086 = vmatprep.subr.bf16.mxu0 %v9737_v48 }
 0x731   :  { %7087 = vmatpush1.bf16.msra.mxu0 %v9735_v33 }
 0x732   :  { %7088 = vmatprep.subr.bf16.mxu0 %v9740_v49 }
 0x735   :  { %7089 = vmatpush1.bf16.msra.mxu0 %v9738_v54 }
 0x736   :  { %7090 = vmatprep.subr.bf16.mxu0 %v9743_v50 }
 0x739   :  { %7091 = vmatpush1.bf16.msra.mxu0 %v9741_v51 }
 0x73a   :  { %7092 = vmatprep.subr.bf16.mxu0 %v9746_v32 }
 0x73d   :  { %7093 = vmatpush1.bf16.msra.mxu0 %v9744_v52 }
 0x73e   :  { %7094 = vmatprep.subr.bf16.mxu0 %v9749_v57 }
 0x741   :  { %7095 = vmatpush1.bf16.msra.mxu0 %v9747_v58 }
 0x742   :  { %7096 = vmatprep.subr.bf16.mxu0 %v9752_v59 }
 0x745   :  { %7097 = vmatpush1.bf16.msra.mxu0 %v9750_v56 }
 0x746   :  { %7098 = vmatprep.subr.bf16.mxu0 %v9755_v60 }
 0x749   :  { %7099 = vmatpush1.bf16.msra.mxu0 %v9753_v61 }
 0x74a   :  { %7111 = vmatprep.subr.bf16.mxu0 %v9758_v44 }
 0x74c   :  { %7101 = vmatmul.mubr.bf16.vlgmr.msra.gmra.mrb[36].mxu0 %v10221_v3  ;;  %v9771_v3 = vld [vmem:[#allocation7 + $0x1900] ss:$24 sps:$4 sm:$0xff]  }
 0x74d   :  { %7112 = vmatpush1.bf16.msra.mxu0 %v9756_v55  ;;  %7143 = vmatprep.mubr.bf16.mxu0 %v10229_v41  ;;  %v9774_v41 = vld [vmem:[#allocation7 + $0x1930] ss:$24 sps:$4 sm:$0xff]  }
 0x74e   :  { %7113 = vmatprep.subr.bf16.mxu0 %v9761_v63 }
 0x751   :  { %7114 = vmatpush1.bf16.msra.mxu0 %v9759_v25 }
 0x752   :  { %7115 = vmatprep.subr.bf16.mxu0 %v9764_v0 }
 0x755   :  { %7116 = vmatpush1.bf16.msra.mxu0 %v9762_v1 }
 0x756   :  { %7117 = vmatprep.subr.bf16.mxu0 %v9767_v8  ;;  %v5320_v8 = vld [vmem:[#allocation8 + $0xc] sm:$0x3f] }
 0x759   :  { %7118 = vmatpush1.bf16.msra.mxu0 %v9765_v9  ;;  %v7170_v9 = vrot.slane %v5320_v8, %v10096_v2  ;;  %v7182_v2 = vrot.slane %v5320_v8, %v10108_v23 }
 0x75a   :  { %7119 = vmatprep.subr.bf16.mxu0 %v9770_v10  ;;  %v7174_v10 = vrot.slane %v5320_v8, %v10098_v4 }
 0x75d   :  { %7120 = vmatpush1.bf16.msra.mxu0 %v9768_v5 }
 0x75e   :  { %7121 = vmatprep.subr.bf16.mxu0 %v9773_v12 }
 0x761   :  { %7122 = vmatpush1.bf16.msra.mxu0 %v9771_v3 }
 0x762   :  { %7123 = vmatprep.subr.bf16.mxu0 %v9776_v17 }
 0x765   :  { %7124 = vmatpush1.bf16.msra.mxu0 %v9774_v41 }
 0x766   :  { %7125 = vmatprep.subr.bf16.mxu0 %v9779_v19 }
 0x769   :  { %7126 = vmatpush1.bf16.msra.mxu0 %v9777_v6 }
 0x76a   :  { %7127 = vmatprep.subr.bf16.mxu0 %v9782_v20 }
 0x76d   :  { %7128 = vmatpush1.bf16.msra.mxu0 %v9780_v27  ;;  %v7178_v27 = vrot.slane %v5320_v8, %v10105_v16 }
 0x76e   :  { %7129 = vmatprep.subr.bf16.mxu0 %v9785_v28 }
 0x771   :  { %7130 = vmatpush1.bf16.msra.mxu0 %v9783_v29 }
 0x772   :  { %7131 = vmatprep.subr.bf16.mxu0 %v9788_v11 }
 0x775   :  { %7132 = vmatpush1.bf16.msra.mxu0 %v9786_v13 }
 0x776   :  { %7133 = vmatprep.subr.bf16.mxu0 %v9791_v21 }
 0x779   :  { %7134 = vmatpush1.bf16.msra.mxu0 %v9789_v34 }
 0x77a   :  { %7135 = vmatprep.subr.bf16.mxu0 %v9794_v35  ;;  %v7186_v35 = vrot.slane %v5320_v8, %v10116_v36 }
 0x77d   :  { %7136 = vmatpush1.bf16.msra.mxu0 %v9792_v26  ;;  %v7190_v26 = vrot.slane %v5320_v8, %v10118_v40 }
 0x77e   :  { %7137 = vmatprep.subr.bf16.mxu0 %v9797_v37 }
 0x781   :  { %7138 = vmatpush1.bf16.msra.mxu0 %v9795_v38 }
 0x782   :  { %7139 = vmatprep.subr.bf16.mxu0 %v9800_v24 }
 0x785   :  { %7140 = vmatpush1.bf16.msra.mxu0 %v9798_v53 }
 0x786   :  { %7141 = vmatprep.subr.bf16.mxu0 %v9803_v14 }
 0x789   :  { %7142 = vmatpush1.bf16.msra.mxu0 %v9801_v42 }
 0x78c   :  { %7144 = vmatmul.mubr.bf16.vlgmr.msra.gmra.mrb[36].mxu0 %v10227_v39 }
 0x79f   :  { %v6887_v43 = vpop.f32.mrb[32].mxu0 }
 0x7a0   :  { %v7154_v46 = vpack.c.bf16 %v6887_v43, %v6887_v43  ;;  %v7016_v45 = vpop.f32.mrb[44].mxu1  ;;  %v6889_v7 = vpop.f32.mrb[33].mxu0 }
 0x7a1   :  { %v7155_v15 = vpack.c.bf16 %v6889_v7, %v6889_v7  ;;  %v7018_v30 = vpop.f32.mrb[45].mxu1  ;;  %v6891_v31 = vpop.f32.mrb[34].mxu0  ;;  %v7156_v49 = vpack.c.bf16 %v7016_v45, %v7016_v45 }
 0x7a2   :  { %v7198_v47 = vsel %vm2271_vm1, %v7154_v46, 0  ;;  %v7020_v48 = vpop.f32.mrb[46].mxu1  ;;  %v6893_v33 = vpop.f32.mrb[35].mxu0  ;;  %v7157_v54 = vpack.c.bf16 %v7018_v30, %v7018_v30  ;;  %v7160_v60 = vpack.c.bf16 %v6891_v31, %v6891_v31 }
 0x7a3   :  { %v7022_v50 = vpop.f32.mrb[47].mxu1  ;;  %8410 = vmatprep.subr.msk.bf16.mxu1 %vm2271_vm1, %v7155_v15  ;;  %v7204_v39 = vsel %vm2271_vm1, %v7156_v49, 0  ;;  %v7161_v61 = vpack.c.bf16 %v6893_v33, %v6893_v33  ;;  %v7162_v63 = vpack.c.bf16 %v7020_v48, %v7020_v48 }
 0x7a4   :  { %7216 = vmatpush1.bf16.msra.mxu1 %v7198_v47  ;;  %v7339_v44 = vsel %vm2271_vm1, %v7160_v60, 0  ;;  %v7163_v55 = vpack.c.bf16 %v7022_v50, %v7022_v50 }
 0x7a5   :  { %8412 = vmatprep.subr.msk.bf16.mxu1 %vm2271_vm1, %v7157_v54  ;;  %v7345_v25 = vsel %vm2271_vm1, %v7162_v63, 0 }
 0x7a7   :  { %8411 = vmatmul.mubr.msk.bf16.vlgmr.msra.gmra.mrb[48].mxu1 %vm76_vm0, %v10057_v22 }
 0x7a8   :  { %7257 = vmatpush1.bf16.msra.mxu1 %v7204_v39  ;;  %7288 = vmatprep.mubr.bf16.mxu1 %v9940_v18 }
 0x7af   :  { %8413 = vmatmul.mubr.msk.bf16.vlgmr.msra.gmra.mrb[52].mxu1 %vm76_vm0, %v10057_v22 }
 0x7b0   :  { %7329 = vmatprep.mubr.bf16.mxu1 %v9940_v18 }
 0x85f   :  { %v7145_v51 = vpop.f32.mrb[36].mxu0 }
 0x860   :  { %v7158_v32 = vpack.c.bf16 %v7145_v51, %v7145_v51  ;;  %v7147_v52 = vpop.f32.mrb[37].mxu0 }
 0x861   :  { %v7159_v57 = vpack.c.bf16 %v7147_v52, %v7147_v52  ;;  %v7149_v58 = vpop.f32.mrb[38].mxu0 }
 0x862   :  { %v7210_v59 = vsel %vm2271_vm1, %v7158_v32, 0  ;;  %v7151_v56 = vpop.f32.mrb[39].mxu0  ;;  %v7164_v1 = vpack.c.bf16 %v7149_v58, %v7149_v58 }
 0x863   :  { %8414 = vmatprep.subr.msk.bf16.mxu1 %vm2271_vm1, %v7159_v57  ;;  %v7165_v0 = vpack.c.bf16 %v7151_v56, %v7151_v56 }
 0x864   :  { %7298 = vmatpush1.bf16.msra.mxu1 %v7210_v59 }
 0x865   :  { %8416 = vmatprep.subr.msk.bf16.mxu1 %vm2271_vm1, %v7161_v61 }
 0x867   :  { %8415 = vmatmul.mubr.msk.bf16.vlgmr.msra.gmra.mrb[56].mxu1 %vm76_vm0, %v10057_v22  ;;  %v7351_v22 = vsel %vm2271_vm1, %v7164_v1, 0 }
 0x868   :  { %7357 = vmatpush1.bf16.msra.mxu1 %v7339_v44  ;;  %7388 = vmatprep.mubr.bf16.mxu1 %v9940_v18 }
 0x869   :  { %8418 = vmatprep.subr.msk.bf16.mxu1 %vm2271_vm1, %v7163_v55 }
 0x86f   :  { %8417 = vmatmul.mubr.msk.bf16.vlgmr.msra.gmra.mrb[60].mxu1 %vm76_vm0, %v10079_v62 }
 0x870   :  { %7398 = vmatpush1.bf16.msra.mxu1 %v7345_v25  ;;  %7429 = vmatprep.mubr.bf16.mxu1 %v9940_v18 }
 0x871   :  { %8420 = vmatprep.subr.msk.bf16.mxu1 %vm2271_vm1, %v7165_v0 }
 0x877   :  { %8419 = vmatmul.mubr.msk.bf16.vlgmr.msra.gmra.mrb[64].mxu1 %vm76_vm0, %v10079_v62 }
 0x878   :  { %7439 = vmatpush1.bf16.msra.mxu1 %v7351_v22  ;;  %7470 = vmatprep.mubr.bf16.mxu1 %v9940_v18 }
 0x87a   :  { %v7249_v5 = vpop.f32.mrb[48].mxu1 }
 0x87b   :  { %v7250_v12 = vadd.f32 %v7249_v5, %v7170_v9  ;;  %v7251_v3 = vpop.f32.mrb[49].mxu1 }
 0x87c   :  { %v7252_v17 = vadd.f32 %v7251_v3, %v7174_v10  ;;  %v7253_v41 = vpop.f32.mrb[50].mxu1 }
 0x87d   :  { %v7479_v19 = vmax.f32 %v7250_v12, 0.0  ;;  %v7254_v6 = vpop.f32.mrb[51].mxu1 }
 0x87e   :  { %v7480_v20 = vmax.f32 %v7252_v17, 0.0 }
 0x87f   :  { %7491 = vst [vmem:[#allocation10] sm:$0xff] %v7479_v19  ;;  %8421 = vmatmul.mubr.msk.bf16.vlgmr.msra.gmra.mrb[68].mxu1 %vm76_vm0, %v10079_v62 }
 0x880   :  { %7492 = vst [vmem:[#allocation10 + $0x8] sm:$0xff] %v7480_v20 }
 0x882   :  { %v7290_v4 = vpop.f32.mrb[52].mxu1 }
 0x883   :  { %v7291_v28 = vadd.f32 %v7290_v4, %v7178_v27  ;;  %v7292_v18 = vpop.f32.mrb[53].mxu1 }
 0x884   :  { %v7293_v29 = vadd.f32 %v7292_v18, %v7182_v2  ;;  %v7294_v11 = vpop.f32.mrb[54].mxu1 }
 0x885   :  { %v7481_v13 = vmax.f32 %v7291_v28, 0.0  ;;  %v7295_v21 = vpop.f32.mrb[55].mxu1 }
 0x886   :  { %v7482_v34 = vmax.f32 %v7293_v29, 0.0 }
 0x887   :  { %7493 = vst [vmem:[#allocation10 + $0x10] sm:$0xff] %v7481_v13 }
 0x888   :  { %7494 = vst [vmem:[#allocation10 + $0x18] sm:$0xff] %v7482_v34 }
 0x93a   :  { %v7331_v62 = vpop.f32.mrb[56].mxu1 }
 0x93b   :  { %v7332_v37 = vadd.f32 %v7331_v62, %v7186_v35  ;;  %v7333_v16 = vpop.f32.mrb[57].mxu1 }
 0x93c   :  { %v7334_v38 = vadd.f32 %v7333_v16, %v7190_v26  ;;  %v7335_v24 = vpop.f32.mrb[58].mxu1 }
 0x93d   :  { %v7483_v23 = vmax.f32 %v7332_v37, 0.0  ;;  %v7336_v53 = vpop.f32.mrb[59].mxu1 }
 0x93e   :  { %v7484_v14 = vmax.f32 %v7334_v38, 0.0 }
 0x93f   :  { %7495 = vst [vmem:[#allocation10 + $0x20] sm:$0xff] %v7483_v23 }
 0x940   :  { %7496 = vst [vmem:[#allocation10 + $0x28] sm:$0xff] %v7484_v14 }
 0x942   :  { %v7390_v42 = vpop.f32.mrb[60].mxu1 }
 0x943   :  { %v7391_v43 = vadd.f32 %v7390_v42, %v7170_v9  ;;  %v7392_v46 = vpop.f32.mrb[61].mxu1 }
 0x944   :  { %v7393_v45 = vadd.f32 %v7392_v46, %v7174_v10  ;;  %v7394_v7 = vpop.f32.mrb[62].mxu1 }
 0x945   :  { %v7485_v15 = vmax.f32 %v7391_v43, 0.0  ;;  %v7395_v30 = vpop.f32.mrb[63].mxu1 }
 0x946   :  { %v7486_v36 = vmax.f32 %v7393_v45, 0.0 }
 0x947   :  { %7497 = vst [vmem:[#allocation10 + $0x30] sm:$0xff] %v7485_v15 }
 0x948   :  { %7498 = vst [vmem:[#allocation10 + $0x38] sm:$0xff] %v7486_v36 }
 0x94a   :  { %v7431_v40 = vpop.f32.mrb[64].mxu1 }
 0x94b   :  { %v7432_v31 = vadd.f32 %v7431_v40, %v7178_v27  ;;  %v7433_v47 = vpop.f32.mrb[65].mxu1 }
 0x94c   :  { %v7434_v48 = vadd.f32 %v7433_v47, %v7182_v2  ;;  %v7435_v33 = vpop.f32.mrb[66].mxu1 }
 0x94d   :  { %v7487_v49 = vmax.f32 %v7432_v31, 0.0  ;;  %v7436_v54 = vpop.f32.mrb[67].mxu1 }
 0x94e   :  { %v7488_v50 = vmax.f32 %v7434_v48, 0.0 }
 0x94f   :  { %7499 = vst [vmem:[#allocation10 + $0x40] sm:$0xff] %v7487_v49 }
 0x950   :  { %7500 = vst [vmem:[#allocation10 + $0x48] sm:$0xff] %v7488_v50 }
 0x952   :  { %v7472_v39 = vpop.f32.mrb[68].mxu1 }
 0x953   :  { %v7473_v51 = vadd.f32 %v7472_v39, %v7186_v35  ;;  %v7474_v32 = vpop.f32.mrb[69].mxu1 }
 0x954   :  { %v7475_v52 = vadd.f32 %v7474_v32, %v7190_v26  ;;  %v7476_v57 = vpop.f32.mrb[70].mxu1 }
 0x955   :  { %v7489_v58 = vmax.f32 %v7473_v51, 0.0  ;;  %v7477_v59 = vpop.f32.mrb[71].mxu1 }
 0x956   :  { %v7490_v56 = vmax.f32 %v7475_v52, 0.0 }
 0x957   :  { %7501 = vst [vmem:[#allocation10 + $0x50] sm:$0xff] %v7489_v58 }
 0x958   :  { %7502 = vst [vmem:[#allocation10 + $0x58] sm:$0xff] %v7490_v56 }
 0x959   :  { %9909 = shalt.err (!%p9906_p8)
}
 0x95a   :  { %s9910_s21 = scalar_lea.hbm %s10298_s4, 1536 }
 0x95b   :  { %p9911_p9 = scmp.ne.s32.totalorder %s10298_s4, %s9910_s21  ;;  %p9914_p10 = scmp.lt.u32.totalorder %s9910_s21, %s10298_s4 }
 0x95d   :  { %p9916_p11 = pnand %p9914_p10, %p9911_p9 }
 0x95f   :  { %9919 = shalt.err (!%p9916_p11)
}
 0x960   :  { %7514 = dma.vmem_to_hbm [thread:$0]  %s7509_s17, 1536, %s10298_s4, [#allocation4], %s9932_s1, %s9932_s1, %s9933_s13  }
 0x961   :  { %9926 = dma.done.wait [#allocation4], 1536  }
 0x962   :  { %9927 = vsyncadd [#allocation4], 4294965760 }
 0x963   :  { %7518 = vsyncpa [#allocation3], 1 }
 0x964   :  { %7519 = vsyncpa [#allocation6], 1 }
 0x965   :  { %7520 = vsyncpa [#allocation9], 1 }
 0x966   :  { %7521 = vsyncpa [#allocation4], 1 }

// kernel: tpu_custom_call.1
= control target key start
LH: loop header
LB: loop body
LE: loop exit
PB: predicated region body
PF: predicated region fallthrough
CT: control target
= control target key end

     0   :  { %9 = vsyncpa [#allocation3], 0  ;;  %s10294_s0 = inlined_call_operand.hbm [shape: f32[2,8,768], index: 0, kind: input, shape index: {}]   ;;  %s10295_s1 = inlined_call_operand.hbm [shape: f32[2,8,8], index: 1, kind: input, shape index: {}]   ;;  %s10296_s2 = inlined_call_operand.hbm [shape: bf16[3,768,768], index: 2, kind: input, shape index: {}]   ;;  %s10297_s3 = inlined_call_operand.hbm [shape: f32[3,1,768], index: 3, kind: input, shape index: {}]   ;;  %s10298_s4 = inlined_call_operand.hbm [shape: f32[2,8,768], index: 4, kind: output, shape index: {}]  }
   0x1   :  { %10 = vsyncpa [#allocation6], 0 }
   0x2   :  { %11 = vsyncpa [#allocation9], 0 }
   0x3   :  { %12 = vsyncpa [#allocation4], 0  ;;  %s9928_s15 = smov [#allocation5]   ;;  %s9810_s19 = scalar_lea.hbm %s10295_s1, 256 }
   0x4   :  { %s30_s16 = sshll.u32 %s9928_s15, 4  ;;  %p9811_p0 = scmp.ne.s32.totalorder %s10295_s1, %s9810_s19  ;;  %s31_s16 = int_to_ptr.vmem [resolvable:$true] %s30_s16 }
   0x5   :  { %p9814_p1 = scmp.lt.u32.totalorder %s9810_s19, %s10295_s1 }
   0x7   :  { %p9816_p2 = pnand %p9814_p1, %p9811_p0 }
   0x9   :  { %9819 = shalt.err (!%p9816_p2)
}
   0xa   :  { %s9820_s24 = scalar_lea.vmem %s31_s16, 256  ;;  %p9825_p4 = scmp.lt.s32.totalorder %s31_s16, %s31_s16 }
   0xb   :  { %p9821_p3 = scmp.ne.s32.totalorder %s31_s16, %s9820_s24  ;;  %p9826_p5 = scmp.lt.s32.totalorder %s9820_s24, %s9820_s24 }
   0xd   :  { %p9827_p6 = por %p9826_p5, %p9825_p4 }
   0xf   :  { %p9828_p7 = pnand %p9827_p6, %p9821_p3 }
  0x11   :  { %9831 = shalt.err (!%p9828_p7)
}
  0x12   :  { %s9929_s25 = smov 128   ;;  %s9930_s26 = smov 8  }
  0x13   :  { %36 = dma.hbm_to_vmem [thread:$0]  %s10295_s1, 256, %s31_s16, [#allocation6], %s9929_s25, %s9929_s25, %s9930_s26  }
  0x14   :  { %s9931_s29 = smov [#allocation2]   ;;  %s9832_s7 = scalar_lea.hbm %s10294_s0, 1536 }
  0x15   :  { %s18_s30 = sshll.u32 %s9931_s29, 4  ;;  %p9833_p8 = scmp.ne.s32.totalorder %s10294_s0, %s9832_s7  ;;  %s19_s30 = int_to_ptr.vmem [resolvable:$true] %s18_s30 }
  0x16   :  { %p9836_p9 = scmp.lt.u32.totalorder %s9832_s7, %s10294_s0 }
  0x18   :  { %p9838_p10 = pnand %p9836_p9, %p9833_p8 }
  0x1a   :  { %9841 = shalt.err (!%p9838_p10)
}
  0x1b   :  { %s9842_s12 = scalar_lea.vmem %s19_s30, 1536  ;;  %p9847_p12 = scmp.lt.s32.totalorder %s19_s30, %s19_s30 }
  0x1c   :  { %p9843_p11 = scmp.ne.s32.totalorder %s19_s30, %s9842_s12  ;;  %p9848_p13 = scmp.lt.s32.totalorder %s9842_s12, %s9842_s12 }
  0x1e   :  { %p9849_p0 = por %p9848_p13, %p9847_p12 }
  0x20   :  { %p9850_p1 = pnand %p9849_p0, %p9843_p11 }
  0x22   :  { %9853 = shalt.err (!%p9850_p1)
}
  0x23   :  { %s9932_s1 = smov 768   ;;  %s9933_s13 = smov 48  }
  0x24   :  { %24 = dma.hbm_to_vmem [thread:$0]  %s10294_s0, 1536, %s19_s30, [#allocation3], %s9932_s1, %s9932_s1, %s9933_s13  }
  0x25   :  { %s9934_s16 = smov [#allocation7]   ;;  %s9854_s20 = scalar_lea.hbm %s10296_s2, 110592 }
  0x26   :  { %s42_s17 = sshll.u32 %s9934_s16, 4  ;;  %p9855_p2 = scmp.ne.s32.totalorder %s10296_s2, %s9854_s20  ;;  %s43_s17 = int_to_ptr.vmem [resolvable:$true] %s42_s17 }
  0x27   :  { %p9858_p3 = scmp.lt.u32.totalorder %s9854_s20, %s10296_s2 }
  0x29   :  { %p9860_p4 = pnand %p9858_p3, %p9855_p2 }
  0x2b   :  { %9863 = shalt.err (!%p9860_p4)
}
  0x2c   :  { %s9864_s25 = scalar_lea.vmem %s43_s17, 110592  ;;  %p9869_p6 = scmp.lt.s32.totalorder %s43_s17, %s43_s17 }
  0x2d   :  { %p9865_p5 = scmp.ne.s32.totalorder %s43_s17, %s9864_s25  ;;  %p9870_p7 = scmp.lt.s32.totalorder %s9864_s25, %s9864_s25 }
  0x2f   :  { %p9871_p8 = por %p9870_p7, %p9869_p6 }
  0x31   :  { %p9872_p9 = pnand %p9871_p8, %p9865_p5 }
  0x33   :  { %9875 = shalt.err (!%p9872_p9)
}
  0x34   :  { %s9935_s0 = smov 384   ;;  %s9936_s26 = smov 24  }
  0x35   :  { %48 = dma.hbm_to_vmem [thread:$0]  %s10296_s2, 110592, %s43_s17, [#allocation6], %s9935_s0, %s9935_s0, %s9936_s26  }
  0x36   :  { %s9937_s29 = smov [#allocation8]   ;;  %s9876_s7 = scalar_lea.hbm %s10297_s3, 288 }
  0x37   :  { %s54_s30 = sshll.u32 %s9937_s29, 4  ;;  %p9877_p10 = scmp.ne.s32.totalorder %s10297_s3, %s9876_s7  ;;  %s55_s30 = int_to_ptr.vmem [resolvable:$true] %s54_s30 }
  0x38   :  { %p9880_p11 = scmp.lt.u32.totalorder %s9876_s7, %s10297_s3 }
  0x3a   :  { %p9882_p12 = pnand %p9880_p11, %p9877_p10 }
  0x3c   :  { %9885 = shalt.err (!%p9882_p12)
}
  0x3d   :  { %s9886_s12 = scalar_lea.vmem %s55_s30, 288  ;;  %p9891_p0 = scmp.lt.s32.totalorder %s55_s30, %s55_s30 }
  0x3e   :  { %p9887_p13 = scmp.ne.s32.totalorder %s55_s30, %s9886_s12  ;;  %p9892_p1 = scmp.lt.s32.totalorder %s9886_s12, %s9886_s12 }
  0x40   :  { %p9893_p2 = por %p9892_p1, %p9891_p0 }
  0x42   :  { %p9894_p3 = pnand %p9893_p2, %p9887_p13 }
  0x44   :  { %9897 = shalt.err (!%p9894_p3)
}
  0x45   :  { %s9938_s2 = smov 96   ;;  %s9939_s14 = smov 6  }
  0x46   :  { %60 = dma.hbm_to_vmem [thread:$0]  %s10297_s3, 288, %s55_s30, [#allocation9], %s9938_s2, %s9938_s2, %s9939_s14  }
  0x47   :  { %9920 = dma.done.wait [#allocation3], 1536  }
  0x48   :  { %9921 = vsyncadd [#allocation3], 4294965760 }
  0x49   :  { %9922 = dma.done.wait [#allocation6], 110848  }
  0x4a   :  { %9923 = vsyncadd [#allocation6], 4294856448 }
  0x4b   :  { %9924 = dma.done.wait [#allocation9], 288  }
  0x4c   :  { %9925 = vsyncadd [#allocation9], 4294967008  ;;  %v8508_v0 = vld [vmem:[#allocation7 + $0x4] ss:$24 sps:$4 sm:$0xff]   ;;  %v8512_v2 = vld [vmem:[#allocation7] ss:$24 sps:$4 sm:$0xff]  }
  0x4d   :  { %v8510_v1 = vld [vmem:[#allocation7 + $0x304] ss:$24 sps:$4 sm:$0xff]   ;;  %1838 = vmatprep.subr.bf16.mxu1 %v8508_v0  ;;  %v8513_v3 = vld [vmem:[#allocation7 + $0x300] ss:$24 sps:$4 sm:$0xff]   ;;  %v8514_v4 = vld [vmem:[#allocation7 + $0x34] ss:$24 sps:$4 sm:$0xff]  }
  0x4e   :  { %1881 = vmatprep.subr.bf16.mxu0 %v8510_v1  ;;  %1839 = vmatpush1.bf16.msra.mxu1 %v8512_v2  ;;  %v8516_v5 = vld [vmem:[#allocation7 + $0x334] ss:$24 sps:$4 sm:$0xff]   ;;  %v8518_v6 = vld [vmem:[#allocation7 + $0x30] ss:$24 sps:$4 sm:$0xff]   ;;  %v8520_v8 = vld [vmem:[#allocation7 + $0x64] ss:$24 sps:$4 sm:$0xff]  }
  0x4f   :  { %1882 = vmatpush1.bf16.msra.mxu0 %v8513_v3  ;;  %1840 = vmatprep.subr.bf16.mxu1 %v8514_v4  ;;  %v8519_v7 = vld [vmem:[#allocation7 + $0x330] ss:$24 sps:$4 sm:$0xff]   ;;  %v8522_v9 = vld [vmem:[#allocation7 + $0x364] ss:$24 sps:$4 sm:$0xff]   ;;  %v8524_v10 = vld [vmem:[#allocation7 + $0x60] ss:$24 sps:$4 sm:$0xff]  }
  0x50   :  { %1883 = vmatprep.subr.bf16.mxu0 %v8516_v5  ;;  %v8525_v11 = vld [vmem:[#allocation7 + $0x360] ss:$24 sps:$4 sm:$0xff]   ;;  %v8526_v12 = vld [vmem:[#allocation7 + $0x94] ss:$24 sps:$4 sm:$0xff]   ;;  %v8530_v14 = vld [vmem:[#allocation7 + $0x90] ss:$24 sps:$4 sm:$0xff]  }
  0x51   :  { %v8528_v13 = vld [vmem:[#allocation7 + $0x394] ss:$24 sps:$4 sm:$0xff]   ;;  %v8531_v15 = vld [vmem:[#allocation7 + $0x390] ss:$24 sps:$4 sm:$0xff]   ;;  %v8532_v16 = vld [vmem:[#allocation7 + $0xc4] ss:$24 sps:$4 sm:$0xff]  }
  0x52   :  { %1841 = vmatpush1.bf16.msra.mxu1 %v8518_v6  ;;  %v8534_v17 = vld [vmem:[#allocation7 + $0x3c4] ss:$24 sps:$4 sm:$0xff]   ;;  %v8536_v18 = vld [vmem:[#allocation7 + $0xc0] ss:$24 sps:$4 sm:$0xff]   ;;  %v8538_v20 = vld [vmem:[#allocation7 + $0xf4] ss:$24 sps:$4 sm:$0xff]  }
  0x53   :  { %1884 = vmatpush1.bf16.msra.mxu0 %v8519_v7  ;;  %1842 = vmatprep.subr.bf16.mxu1 %v8520_v8  ;;  %v8537_v19 = vld [vmem:[#allocation7 + $0x3c0] ss:$24 sps:$4 sm:$0xff]   ;;  %v8540_v21 = vld [vmem:[#allocation7 + $0x3f4] ss:$24 sps:$4 sm:$0xff]   ;;  %v8542_v22 = vld [vmem:[#allocation7 + $0xf0] ss:$24 sps:$4 sm:$0xff]  }
  0x54   :  { %1885 = vmatprep.subr.bf16.mxu0 %v8522_v9  ;;  %v8543_v23 = vld [vmem:[#allocation7 + $0x3f0] ss:$24 sps:$4 sm:$0xff]   ;;  %v8544_v24 = vld [vmem:[#allocation7 + $0x124] ss:$24 sps:$4 sm:$0xff]   ;;  %v8548_v26 = vld [vmem:[#allocation7 + $0x120] ss:$24 sps:$4 sm:$0xff]  }
  0x55   :  { %v8546_v25 = vld [vmem:[#allocation7 + $0x424] ss:$24 sps:$4 sm:$0xff]   ;;  %v8549_v27 = vld [vmem:[#allocation7 + $0x420] ss:$24 sps:$4 sm:$0xff]   ;;  %v8550_v28 = vld [vmem:[#allocation7 + $0x154] ss:$24 sps:$4 sm:$0xff]  }
  0x56   :  { %1843 = vmatpush1.bf16.msra.mxu1 %v8524_v10  ;;  %v8552_v29 = vld [vmem:[#allocation7 + $0x454] ss:$24 sps:$4 sm:$0xff]   ;;  %v8554_v30 = vld [vmem:[#allocation7 + $0x150] ss:$24 sps:$4 sm:$0xff]   ;;  %v8556_v32 = vld [vmem:[#allocation7 + $0x184] ss:$24 sps:$4 sm:$0xff]  }
  0x57   :  { %1886 = vmatpush1.bf16.msra.mxu0 %v8525_v11  ;;  %1844 = vmatprep.subr.bf16.mxu1 %v8526_v12  ;;  %v8555_v31 = vld [vmem:[#allocation7 + $0x450] ss:$24 sps:$4 sm:$0xff]   ;;  %v8558_v33 = vld [vmem:[#allocation7 + $0x484] ss:$24 sps:$4 sm:$0xff]   ;;  %v8560_v34 = vld [vmem:[#allocation7 + $0x180] ss:$24 sps:$4 sm:$0xff]  }
  0x58   :  { %1887 = vmatprep.subr.bf16.mxu0 %v8528_v13  ;;  %v8561_v35 = vld [vmem:[#allocation7 + $0x480] ss:$24 sps:$4 sm:$0xff]   ;;  %v8562_v36 = vld [vmem:[#allocation7 + $0x1b4] ss:$24 sps:$4 sm:$0xff]   ;;  %v8566_v38 = vld [vmem:[#allocation7 + $0x1b0] ss:$24 sps:$4 sm:$0xff]  }
  0x59   :  { %v8564_v37 = vld [vmem:[#allocation7 + $0x4b4] ss:$24 sps:$4 sm:$0xff]   ;;  %v8567_v39 = vld [vmem:[#allocation7 + $0x4b0] ss:$24 sps:$4 sm:$0xff]   ;;  %v8568_v40 = vld [vmem:[#allocation7 + $0x1e4] ss:$24 sps:$4 sm:$0xff]  }
  0x5a   :  { %1845 = vmatpush1.bf16.msra.mxu1 %v8530_v14  ;;  %v8570_v41 = vld [vmem:[#allocation7 + $0x4e4] ss:$24 sps:$4 sm:$0xff]   ;;  %v8572_v42 = vld [vmem:[#allocation7 + $0x1e0] ss:$24 sps:$4 sm:$0xff]   ;;  %v8574_v44 = vld [vmem:[#allocation7 + $0x214] ss:$24 sps:$4 sm:$0xff]  }
  0x5b   :  { %1888 = vmatpush1.bf16.msra.mxu0 %v8531_v15  ;;  %1846 = vmatprep.subr.bf16.mxu1 %v8532_v16  ;;  %v8573_v43 = vld [vmem:[#allocation7 + $0x4e0] ss:$24 sps:$4 sm:$0xff]   ;;  %v8576_v45 = vld [vmem:[#allocation7 + $0x514] ss:$24 sps:$4 sm:$0xff]   ;;  %v8578_v46 = vld [vmem:[#allocation7 + $0x210] ss:$24 sps:$4 sm:$0xff]  }
  0x5c   :  { %1889 = vmatprep.subr.bf16.mxu0 %v8534_v17  ;;  %v8579_v47 = vld [vmem:[#allocation7 + $0x510] ss:$24 sps:$4 sm:$0xff]   ;;  %v92_v48 = vld [vmem:[#allocation2 + $0x8] sm:$0xff]  ;;  %v8586_v58 = vld [vmem:[#allocation7 + $0x274] ss:$24 sps:$4 sm:$0xff]   ;;  %vm76_vm0 = vcmask 64512  }
  0x5d   :  { %v98_v49 = vld [vmem:[#allocation2 + $0x38] sm:$0xff]  ;;  %v100_v51 = vld [vmem:[#allocation2 + $0x48] sm:$0xff]  ;;  %v91_v6 = vld [vmem:[#allocation2] sm:$0xff]  ;;  %vm2271_vm1 = vcmask 1043456   ;;  %s9941_s3 = smov [#allocation10]  }
  0x5e   :  { %1847 = vmatpush1.bf16.msra.mxu1 %v8536_v18  ;;  %v94_v50 = vld [vmem:[#allocation2 + $0x18] sm:$0xff]  ;;  %v8580_v52 = vld [vmem:[#allocation7 + $0x244] ss:$24 sps:$4 sm:$0xff]   ;;  %v10018_v53 = vpack.c.bf16 %v98_v49, %v92_v48  ;;  %v8584_v56 = vld [vmem:[#allocation7 + $0x240] ss:$24 sps:$4 sm:$0xff]   ;;  %s7508_s17 = sshll.u32 %s9941_s3, 4  ;;  %s7509_s17 = int_to_ptr.vmem [resolvable:$true] %s7508_s17 }
  0x5f   :  { %1890 = vmatpush1.bf16.msra.mxu0 %v8537_v19  ;;  %1848 = vmatprep.subr.bf16.mxu1 %v8538_v20  ;;  %v10020_v54 = vpack.c.bf16 %v100_v51, %v94_v50  ;;  %v8582_v55 = vld [vmem:[#allocation7 + $0x544] ss:$24 sps:$4 sm:$0xff]   ;;  %v8585_v57 = vld [vmem:[#allocation7 + $0x540] ss:$24 sps:$4 sm:$0xff]   ;;  %v8588_v59 = vld [vmem:[#allocation7 + $0x574] ss:$24 sps:$4 sm:$0xff]   ;;  %p9903_p5 = scmp.lt.s32.totalorder %s7509_s17, %s7509_s17 }
  0x60   :  { %1891 = vmatprep.subr.bf16.mxu0 %v8540_v21  ;;  %1870 = vmatprep.mubr.bf16.mxu1 %v10018_v53  ;;  %v8590_v60 = vld [vmem:[#allocation7 + $0x270] ss:$24 sps:$4 sm:$0xff]   ;;  %v8592_v62 = vld [vmem:[#allocation7 + $0x2a4] ss:$24 sps:$4 sm:$0xff]   ;;  %v8596_v0 = vld [vmem:[#allocation7 + $0x2a0] ss:$24 sps:$4 sm:$0xff]  }
  0x61   :  { %1913 = vmatprep.mubr.bf16.mxu0 %v10020_v54  ;;  %v8591_v61 = vld [vmem:[#allocation7 + $0x570] ss:$24 sps:$4 sm:$0xff]   ;;  %v8594_v63 = vld [vmem:[#allocation7 + $0x5a4] ss:$24 sps:$4 sm:$0xff]   ;;  %v8597_v1 = vld [vmem:[#allocation7 + $0x5a0] ss:$24 sps:$4 sm:$0xff]  }
  0x62   :  { %1849 = vmatpush1.bf16.msra.mxu1 %v8542_v22  ;;  %v8598_v2 = vld [vmem:[#allocation7 + $0x2d4] ss:$24 sps:$4 sm:$0xff]   ;;  %v8602_v4 = vld [vmem:[#allocation7 + $0x2d0] ss:$24 sps:$4 sm:$0xff]   ;;  %v8606_v7 = vld [vmem:[#allocation7 + $0x604] ss:$24 sps:$4 sm:$0xff]  }
  0x63   :  { %1892 = vmatpush1.bf16.msra.mxu0 %v8543_v23  ;;  %1850 = vmatprep.subr.bf16.mxu1 %v8544_v24  ;;  %v8600_v3 = vld [vmem:[#allocation7 + $0x5d4] ss:$24 sps:$4 sm:$0xff]   ;;  %v8603_v5 = vld [vmem:[#allocation7 + $0x5d0] ss:$24 sps:$4 sm:$0xff]   ;;  %v97_v8 = vld [vmem:[#allocation2 + $0x30] sm:$0xff]  ;;  %s9898_s18 = scalar_lea.vmem %s7509_s17, 1536 }
  0x64   :  { %1893 = vmatprep.subr.bf16.mxu0 %v8546_v25  ;;  %v93_v9 = vld [vmem:[#allocation2 + $0x10] sm:$0xff]  ;;  %v99_v10 = vld [vmem:[#allocation2 + $0x40] sm:$0xff]  ;;  %v10024_v14 = vpack.c.bf16 %v97_v8, %v91_v6  ;;  %p9899_p4 = scmp.ne.s32.totalorder %s7509_s17, %s9898_s18  ;;  %p9904_p6 = scmp.lt.s32.totalorder %s9898_s18, %s9898_s18 }
  0x65   :  { %v8609_v11 = vld [vmem:[#allocation7 + $0xc] ss:$24 sps:$4 sm:$0xff]   ;;  %v8604_v12 = vld [vmem:[#allocation7 + $0x600] ss:$24 sps:$4 sm:$0xff]   ;;  %v10026_v15 = vpack.c.bf16 %v99_v10, %v93_v9  ;;  %v8615_v17 = vld [vmem:[#allocation7 + $0x3c] ss:$24 sps:$4 sm:$0xff]  }
  0x66   :  { %1851 = vmatpush1.bf16.msra.mxu1 %v8548_v26  ;;  %v8607_v13 = vld [vmem:[#allocation7 + $0x8] ss:$24 sps:$4 sm:$0xff]   ;;  %v8612_v16 = vld [vmem:[#allocation7 + $0x634] ss:$24 sps:$4 sm:$0xff]   ;;  %v8613_v19 = vld [vmem:[#allocation7 + $0x38] ss:$24 sps:$4 sm:$0xff]   ;;  %p9905_p7 = por %p9904_p6, %p9903_p5 }
  0x67   :  { %1894 = vmatpush1.bf16.msra.mxu0 %v8549_v27  ;;  %1852 = vmatprep.subr.bf16.mxu1 %v8550_v28  ;;  %v8610_v18 = vld [vmem:[#allocation7 + $0x630] ss:$24 sps:$4 sm:$0xff]   ;;  %v8618_v20 = vld [vmem:[#allocation7 + $0x664] ss:$24 sps:$4 sm:$0xff]   ;;  %v8616_v22 = vld [vmem:[#allocation7 + $0x660] ss:$24 sps:$4 sm:$0xff]  }
  0x68   :  { %1895 = vmatprep.subr.bf16.mxu0 %v8552_v29  ;;  %v8621_v21 = vld [vmem:[#allocation7 + $0x6c] ss:$24 sps:$4 sm:$0xff]   ;;  %v8619_v23 = vld [vmem:[#allocation7 + $0x68] ss:$24 sps:$4 sm:$0xff]   ;;  %v8627_v25 = vld [vmem:[#allocation7 + $0x9c] ss:$24 sps:$4 sm:$0xff]   ;;  %p9906_p8 = pnand %p9905_p7, %p9899_p4 }
  0x69   :  { %v8624_v24 = vld [vmem:[#allocation7 + $0x694] ss:$24 sps:$4 sm:$0xff]   ;;  %v8622_v26 = vld [vmem:[#allocation7 + $0x690] ss:$24 sps:$4 sm:$0xff]   ;;  %v8630_v28 = vld [vmem:[#allocation7 + $0x6c4] ss:$24 sps:$4 sm:$0xff]  }
  0x6a   :  { %1853 = vmatpush1.bf16.msra.mxu1 %v8554_v30  ;;  %v8625_v27 = vld [vmem:[#allocation7 + $0x98] ss:$24 sps:$4 sm:$0xff]   ;;  %v8633_v29 = vld [vmem:[#allocation7 + $0xcc] ss:$24 sps:$4 sm:$0xff]   ;;  %v8655_v50 = vld [vmem:[#allocation7 + $0x188] ss:$24 sps:$4 sm:$0xff]  }
  0x6b   :  { %1896 = vmatpush1.bf16.msra.mxu0 %v8555_v31  ;;  %1854 = vmatprep.subr.bf16.mxu1 %v8556_v32  ;;  %v8628_v30 = vld [vmem:[#allocation7 + $0x6c0] ss:$24 sps:$4 sm:$0xff]   ;;  %v8636_v32 = vld [vmem:[#allocation7 + $0x6f4] ss:$24 sps:$4 sm:$0xff]   ;;  %v8690_v9 = vld [vmem:[#allocation7 + $0x8a4] ss:$24 sps:$4 sm:$0xff]  }
  0x6c   :  { %1897 = vmatprep.subr.bf16.mxu0 %v8558_v33  ;;  %v8631_v31 = vld [vmem:[#allocation7 + $0xc8] ss:$24 sps:$4 sm:$0xff]   ;;  %v8639_v33 = vld [vmem:[#allocation7 + $0xfc] ss:$24 sps:$4 sm:$0xff]   ;;  %v8657_v48 = vld [vmem:[#allocation7 + $0x18c] ss:$24 sps:$4 sm:$0xff]  }
  0x6d   :  { %v8652_v49 = vld [vmem:[#allocation7 + $0x780] ss:$24 sps:$4 sm:$0xff]   ;;  %v8660_v51 = vld [vmem:[#allocation7 + $0x7b4] ss:$24 sps:$4 sm:$0xff]  }
  0x6e   :  { %1855 = vmatpush1.bf16.msra.mxu1 %v8560_v34  ;;  %v8634_v34 = vld [vmem:[#allocation7 + $0x6f0] ss:$24 sps:$4 sm:$0xff]   ;;  %v8687_v6 = vld [vmem:[#allocation7 + $0x27c] ss:$24 sps:$4 sm:$0xff]   ;;  %v8693_v10 = vld [vmem:[#allocation7 + $0x2ac] ss:$24 sps:$4 sm:$0xff]  }
  0x6f   :  { %1898 = vmatpush1.bf16.msra.mxu0 %v8561_v35  ;;  %1856 = vmatprep.subr.bf16.mxu1 %v8562_v36  ;;  %v8637_v35 = vld [vmem:[#allocation7 + $0xf8] ss:$24 sps:$4 sm:$0xff]   ;;  %v8642_v36 = vld [vmem:[#allocation7 + $0x724] ss:$24 sps:$4 sm:$0xff]  }
  0x70   :  { %1899 = vmatprep.subr.bf16.mxu0 %v8564_v37  ;;  %v8645_v37 = vld [vmem:[#allocation7 + $0x12c] ss:$24 sps:$4 sm:$0xff]   ;;  %v8685_v8 = vld [vmem:[#allocation7 + $0x278] ss:$24 sps:$4 sm:$0xff]  }
  0x72   :  { %1857 = vmatpush1.bf16.msra.mxu1 %v8566_v38  ;;  %v8640_v38 = vld [vmem:[#allocation7 + $0x720] ss:$24 sps:$4 sm:$0xff]  }
  0x73   :  { %1900 = vmatpush1.bf16.msra.mxu0 %v8567_v39  ;;  %1858 = vmatprep.subr.bf16.mxu1 %v8568_v40  ;;  %v8643_v39 = vld [vmem:[#allocation7 + $0x128] ss:$24 sps:$4 sm:$0xff]   ;;  %v8648_v40 = vld [vmem:[#allocation7 + $0x754] ss:$24 sps:$4 sm:$0xff]  }
  0x74   :  { %1901 = vmatprep.subr.bf16.mxu0 %v8570_v41  ;;  %v96_v41 = vld [vmem:[#allocation2 + $0x28] sm:$0xff] }
  0x76   :  { %1859 = vmatpush1.bf16.msra.mxu1 %v8572_v42  ;;  %v102_v42 = vld [vmem:[#allocation2 + $0x58] sm:$0xff] }
  0x77   :  { %1902 = vmatpush1.bf16.msra.mxu0 %v8573_v43  ;;  %1860 = vmatprep.subr.bf16.mxu1 %v8574_v44  ;;  %v8651_v43 = vld [vmem:[#allocation7 + $0x15c] ss:$24 sps:$4 sm:$0xff]   ;;  %v10031_v44 = vpack.c.bf16 %v102_v42, %v96_v41  ;;  %v8727_v41 = vld [vmem:[#allocation7 + $0xd0] ss:$24 sps:$4 sm:$0xff]  }
  0x78   :  { %1903 = vmatprep.subr.bf16.mxu0 %v8576_v45  ;;  %v8646_v45 = vld [vmem:[#allocation7 + $0x750] ss:$24 sps:$4 sm:$0xff]   ;;  %v8735_v42 = vld [vmem:[#allocation7 + $0x104] ss:$24 sps:$4 sm:$0xff]  }
  0x7a   :  { %1861 = vmatpush1.bf16.msra.mxu1 %v8578_v46  ;;  %v8649_v46 = vld [vmem:[#allocation7 + $0x158] ss:$24 sps:$4 sm:$0xff]  }
  0x7b   :  { %1904 = vmatpush1.bf16.msra.mxu0 %v8579_v47  ;;  %1862 = vmatprep.subr.bf16.mxu1 %v8580_v52  ;;  %v8654_v47 = vld [vmem:[#allocation7 + $0x784] ss:$24 sps:$4 sm:$0xff]  }
  0x7c   :  { %1905 = vmatprep.subr.bf16.mxu0 %v8582_v55  ;;  %v8663_v52 = vld [vmem:[#allocation7 + $0x1bc] ss:$24 sps:$4 sm:$0xff]   ;;  %v8658_v55 = vld [vmem:[#allocation7 + $0x7b0] ss:$24 sps:$4 sm:$0xff]  }
  0x7e   :  { %1863 = vmatpush1.bf16.msra.mxu1 %v8584_v56  ;;  %v8661_v56 = vld [vmem:[#allocation7 + $0x1b8] ss:$24 sps:$4 sm:$0xff]  }
  0x7f   :  { %1906 = vmatpush1.bf16.msra.mxu0 %v8585_v57  ;;  %1864 = vmatprep.subr.bf16.mxu1 %v8586_v58  ;;  %v8666_v57 = vld [vmem:[#allocation7 + $0x7e4] ss:$24 sps:$4 sm:$0xff]  }
  0x80   :  { %1907 = vmatprep.subr.bf16.mxu0 %v8588_v59  ;;  %v8669_v58 = vld [vmem:[#allocation7 + $0x1ec] ss:$24 sps:$4 sm:$0xff]   ;;  %v8664_v59 = vld [vmem:[#allocation7 + $0x7e0] ss:$24 sps:$4 sm:$0xff]  }
  0x82   :  { %1865 = vmatpush1.bf16.msra.mxu1 %v8590_v60  ;;  %v8667_v60 = vld [vmem:[#allocation7 + $0x1e8] ss:$24 sps:$4 sm:$0xff]  }
  0x83   :  { %1908 = vmatpush1.bf16.msra.mxu0 %v8591_v61  ;;  %1866 = vmatprep.subr.bf16.mxu1 %v8592_v62  ;;  %v8672_v61 = vld [vmem:[#allocation7 + $0x814] ss:$24 sps:$4 sm:$0xff]  }
  0x84   :  { %1909 = vmatprep.subr.bf16.mxu0 %v8594_v63  ;;  %v8675_v62 = vld [vmem:[#allocation7 + $0x21c] ss:$24 sps:$4 sm:$0xff]   ;;  %v8670_v63 = vld [vmem:[#allocation7 + $0x810] ss:$24 sps:$4 sm:$0xff]  }
  0x86   :  { %1867 = vmatpush1.bf16.msra.mxu1 %v8596_v0  ;;  %v8673_v0 = vld [vmem:[#allocation7 + $0x218] ss:$24 sps:$4 sm:$0xff]  }
  0x87   :  { %1910 = vmatpush1.bf16.msra.mxu0 %v8597_v1  ;;  %1868 = vmatprep.subr.bf16.mxu1 %v8598_v2  ;;  %v8678_v1 = vld [vmem:[#allocation7 + $0x844] ss:$24 sps:$4 sm:$0xff]  }
  0x88   :  { %1911 = vmatprep.subr.bf16.mxu0 %v8600_v3  ;;  %v8681_v2 = vld [vmem:[#allocation7 + $0x24c] ss:$24 sps:$4 sm:$0xff]   ;;  %v8676_v3 = vld [vmem:[#allocation7 + $0x840] ss:$24 sps:$4 sm:$0xff]  }
  0x8a   :  { %1869 = vmatpush1.bf16.msra.mxu1 %v8602_v4  ;;  %v8679_v4 = vld [vmem:[#allocation7 + $0x248] ss:$24 sps:$4 sm:$0xff]  }
  0x8b   :  { %1912 = vmatpush1.bf16.msra.mxu0 %v8603_v5  ;;  %1967 = vmatprep.subr.bf16.mxu1 %v8609_v11  ;;  %v8684_v5 = vld [vmem:[#allocation7 + $0x874] ss:$24 sps:$4 sm:$0xff]   ;;  %v8688_v11 = vld [vmem:[#allocation7 + $0x8a0] ss:$24 sps:$4 sm:$0xff]  }
  0x8c   :  { %1924 = vmatprep.subr.bf16.mxu0 %v8606_v7  ;;  %v8682_v7 = vld [vmem:[#allocation7 + $0x870] ss:$24 sps:$4 sm:$0xff]  }
  0x8d   :  { %1871 = vmatmul.mubr.bf16.vlgmr.msra.gmra.mrb[0].mxu1 %v10024_v14 }
  0x8e   :  { %1914 = vmatmul.mubr.bf16.vlgmr.msra.gmra.mrb[0].mxu0 %v10026_v15  ;;  %1968 = vmatpush1.bf16.msra.mxu1 %v8607_v13  ;;  %v8696_v13 = vld [vmem:[#allocation7 + $0x8d4] ss:$24 sps:$4 sm:$0xff]  }
  0x8f   :  { %1925 = vmatpush1.bf16.msra.mxu0 %v8604_v12  ;;  %1969 = vmatprep.subr.bf16.mxu1 %v8615_v17  ;;  %v8691_v12 = vld [vmem:[#allocation7 + $0x2a8] ss:$24 sps:$4 sm:$0xff]  }
  0x90   :  { %1926 = vmatprep.subr.bf16.mxu0 %v8612_v16  ;;  %1999 = vmatprep.mubr.bf16.mxu1 %v10018_v53  ;;  %v8699_v16 = vld [vmem:[#allocation7 + $0x2dc] ss:$24 sps:$4 sm:$0xff]   ;;  %v8694_v17 = vld [vmem:[#allocation7 + $0x8d0] ss:$24 sps:$4 sm:$0xff]  }
  0x91   :  { %1956 = vmatprep.mubr.bf16.mxu0 %v10031_v44 }
  0x92   :  { %1970 = vmatpush1.bf16.msra.mxu1 %v8613_v19  ;;  %v95_v19 = vld [vmem:[#allocation2 + $0x20] sm:$0xff] }
  0x93   :  { %1927 = vmatpush1.bf16.msra.mxu0 %v8610_v18  ;;  %1971 = vmatprep.subr.bf16.mxu1 %v8621_v21  ;;  %v8697_v18 = vld [vmem:[#allocation7 + $0x2d8] ss:$24 sps:$4 sm:$0xff]   ;;  %v8702_v21 = vld [vmem:[#allocation7 + $0x30c] ss:$24 sps:$4 sm:$0xff]  }
  0x94   :  { %1928 = vmatprep.subr.bf16.mxu0 %v8618_v20  ;;  %v101_v20 = vld [vmem:[#allocation2 + $0x50] sm:$0xff] }
  0x96   :  { %1972 = vmatpush1.bf16.msra.mxu1 %v8619_v23  ;;  %v10034_v23 = vpack.c.bf16 %v101_v20, %v95_v19  ;;  %v8789_v19 = vld [vmem:[#allocation7 + $0x2b4] ss:$24 sps:$4 sm:$0xff]   ;;  %v8784_v20 = vld [vmem:[#allocation7 + $0x5a8] ss:$24 sps:$4 sm:$0xff]  }
  0x97   :  { %1929 = vmatpush1.bf16.msra.mxu0 %v8616_v22  ;;  %1973 = vmatprep.subr.bf16.mxu1 %v8627_v25  ;;  %v8705_v22 = vld [vmem:[#allocation7 + $0x14] ss:$24 sps:$4 sm:$0xff]   ;;  %v8703_v25 = vld [vmem:[#allocation7 + $0x10] ss:$24 sps:$4 sm:$0xff]  }
  0x98   :  { %1930 = vmatprep.subr.bf16.mxu0 %v8624_v24  ;;  %v8700_v24 = vld [vmem:[#allocation7 + $0x308] ss:$24 sps:$4 sm:$0xff]  }
  0x9a   :  { %1974 = vmatpush1.bf16.msra.mxu1 %v8625_v27  ;;  %v8711_v27 = vld [vmem:[#allocation7 + $0x44] ss:$24 sps:$4 sm:$0xff]  }
  0x9b   :  { %1931 = vmatpush1.bf16.msra.mxu0 %v8622_v26  ;;  %1975 = vmatprep.subr.bf16.mxu1 %v8633_v29  ;;  %v8708_v26 = vld [vmem:[#allocation7 + $0x33c] ss:$24 sps:$4 sm:$0xff]   ;;  %v8709_v29 = vld [vmem:[#allocation7 + $0x40] ss:$24 sps:$4 sm:$0xff]  }
  0x9c   :  { %1932 = vmatprep.subr.bf16.mxu0 %v8630_v28  ;;  %v8706_v28 = vld [vmem:[#allocation7 + $0x338] ss:$24 sps:$4 sm:$0xff]  }
  0x9e   :  { %1976 = vmatpush1.bf16.msra.mxu1 %v8631_v31  ;;  %v8717_v31 = vld [vmem:[#allocation7 + $0x74] ss:$24 sps:$4 sm:$0xff]  }
  0x9f   :  { %1933 = vmatpush1.bf16.msra.mxu0 %v8628_v30  ;;  %1977 = vmatprep.subr.bf16.mxu1 %v8639_v33  ;;  %v8714_v30 = vld [vmem:[#allocation7 + $0x36c] ss:$24 sps:$4 sm:$0xff]   ;;  %v8715_v33 = vld [vmem:[#allocation7 + $0x70] ss:$24 sps:$4 sm:$0xff]  }
  0xa0   :  { %1934 = vmatprep.subr.bf16.mxu0 %v8636_v32  ;;  %v8712_v32 = vld [vmem:[#allocation7 + $0x368] ss:$24 sps:$4 sm:$0xff]  }
  0xa2   :  { %1978 = vmatpush1.bf16.msra.mxu1 %v8637_v35  ;;  %v8723_v35 = vld [vmem:[#allocation7 + $0xa4] ss:$24 sps:$4 sm:$0xff]  }
  0xa3   :  { %1935 = vmatpush1.bf16.msra.mxu0 %v8634_v34  ;;  %1979 = vmatprep.subr.bf16.mxu1 %v8645_v37  ;;  %v8720_v34 = vld [vmem:[#allocation7 + $0x39c] ss:$24 sps:$4 sm:$0xff]   ;;  %v8721_v37 = vld [vmem:[#allocation7 + $0xa0] ss:$24 sps:$4 sm:$0xff]  }
  0xa4   :  { %1936 = vmatprep.subr.bf16.mxu0 %v8642_v36  ;;  %v8718_v36 = vld [vmem:[#allocation7 + $0x398] ss:$24 sps:$4 sm:$0xff]  }
  0xa6   :  { %1980 = vmatpush1.bf16.msra.mxu1 %v8643_v39  ;;  %v8729_v39 = vld [vmem:[#allocation7 + $0xd4] ss:$24 sps:$4 sm:$0xff]  }
  0xa7   :  { %1937 = vmatpush1.bf16.msra.mxu0 %v8640_v38  ;;  %1981 = vmatprep.subr.bf16.mxu1 %v8651_v43  ;;  %v8726_v38 = vld [vmem:[#allocation7 + $0x3cc] ss:$24 sps:$4 sm:$0xff]   ;;  %v8730_v43 = vld [vmem:[#allocation7 + $0x3f8] ss:$24 sps:$4 sm:$0xff]  }
  0xa8   :  { %1938 = vmatprep.subr.bf16.mxu0 %v8648_v40  ;;  %v8724_v40 = vld [vmem:[#allocation7 + $0x3c8] ss:$24 sps:$4 sm:$0xff]  }
  0xaa   :  { %1982 = vmatpush1.bf16.msra.mxu1 %v8649_v46  ;;  %v8738_v46 = vld [vmem:[#allocation7 + $0x42c] ss:$24 sps:$4 sm:$0xff]  }
  0xab   :  { %1939 = vmatpush1.bf16.msra.mxu0 %v8646_v45  ;;  %1983 = vmatprep.subr.bf16.mxu1 %v8657_v48  ;;  %v8733_v45 = vld [vmem:[#allocation7 + $0x100] ss:$24 sps:$4 sm:$0xff]  }
  0xac   :  { %1940 = vmatprep.subr.bf16.mxu0 %v8654_v47  ;;  %v8741_v47 = vld [vmem:[#allocation7 + $0x134] ss:$24 sps:$4 sm:$0xff]   ;;  %v8736_v48 = vld [vmem:[#allocation7 + $0x428] ss:$24 sps:$4 sm:$0xff]  }
  0xae   :  { %1984 = vmatpush1.bf16.msra.mxu1 %v8655_v50  ;;  %v8744_v50 = vld [vmem:[#allocation7 + $0x45c] ss:$24 sps:$4 sm:$0xff]  }
  0xaf   :  { %1941 = vmatpush1.bf16.msra.mxu0 %v8652_v49  ;;  %1985 = vmatprep.subr.bf16.mxu1 %v8663_v52  ;;  %v8739_v49 = vld [vmem:[#allocation7 + $0x130] ss:$24 sps:$4 sm:$0xff]  }
  0xb0   :  { %1942 = vmatprep.subr.bf16.mxu0 %v8660_v51  ;;  %v8747_v51 = vld [vmem:[#allocation7 + $0x164] ss:$24 sps:$4 sm:$0xff]   ;;  %v8742_v52 = vld [vmem:[#allocation7 + $0x458] ss:$24 sps:$4 sm:$0xff]  }
  0xb2   :  { %1986 = vmatpush1.bf16.msra.mxu1 %v8661_v56  ;;  %v8750_v56 = vld [vmem:[#allocation7 + $0x48c] ss:$24 sps:$4 sm:$0xff]  }
  0xb3   :  { %1943 = vmatpush1.bf16.msra.mxu0 %v8658_v55  ;;  %1987 = vmatprep.subr.bf16.mxu1 %v8669_v58  ;;  %v8745_v55 = vld [vmem:[#allocation7 + $0x160] ss:$24 sps:$4 sm:$0xff]  }
  0xb4   :  { %1944 = vmatprep.subr.bf16.mxu0 %v8666_v57  ;;  %v8753_v57 = vld [vmem:[#allocation7 + $0x194] ss:$24 sps:$4 sm:$0xff]   ;;  %v8748_v58 = vld [vmem:[#allocation7 + $0x488] ss:$24 sps:$4 sm:$0xff]  }
  0xb6   :  { %1988 = vmatpush1.bf16.msra.mxu1 %v8667_v60  ;;  %v8756_v60 = vld [vmem:[#allocation7 + $0x4bc] ss:$24 sps:$4 sm:$0xff]  }
  0xb7   :  { %1945 = vmatpush1.bf16.msra.mxu0 %v8664_v59  ;;  %1989 = vmatprep.subr.bf16.mxu1 %v8675_v62  ;;  %v8751_v59 = vld [vmem:[#allocation7 + $0x190] ss:$24 sps:$4 sm:$0xff]  }
  0xb8   :  { %1946 = vmatprep.subr.bf16.mxu0 %v8672_v61  ;;  %v8759_v61 = vld [vmem:[#allocation7 + $0x1c4] ss:$24 sps:$4 sm:$0xff]   ;;  %v8754_v62 = vld [vmem:[#allocation7 + $0x4b8] ss:$24 sps:$4 sm:$0xff]  }
  0xba   :  { %1990 = vmatpush1.bf16.msra.mxu1 %v8673_v0  ;;  %v8762_v0 = vld [vmem:[#allocation7 + $0x4ec] ss:$24 sps:$4 sm:$0xff]  }
  0xbb   :  { %1947 = vmatpush1.bf16.msra.mxu0 %v8670_v63  ;;  %1991 = vmatprep.subr.bf16.mxu1 %v8681_v2  ;;  %v8757_v63 = vld [vmem:[#allocation7 + $0x1c0] ss:$24 sps:$4 sm:$0xff]  }
  0xbc   :  { %1948 = vmatprep.subr.bf16.mxu0 %v8678_v1  ;;  %v8765_v1 = vld [vmem:[#allocation7 + $0x1f4] ss:$24 sps:$4 sm:$0xff]   ;;  %v8760_v2 = vld [vmem:[#allocation7 + $0x4e8] ss:$24 sps:$4 sm:$0xff]  }
  0xbe   :  { %1992 = vmatpush1.bf16.msra.mxu1 %v8679_v4  ;;  %v8768_v4 = vld [vmem:[#allocation7 + $0x51c] ss:$24 sps:$4 sm:$0xff]  }
  0xbf   :  { %1949 = vmatpush1.bf16.msra.mxu0 %v8676_v3  ;;  %1993 = vmatprep.subr.bf16.mxu1 %v8687_v6  ;;  %v8763_v3 = vld [vmem:[#allocation7 + $0x1f0] ss:$24 sps:$4 sm:$0xff]  }
  0xc0   :  { %1950 = vmatprep.subr.bf16.mxu0 %v8684_v5  ;;  %v8771_v5 = vld [vmem:[#allocation7 + $0x224] ss:$24 sps:$4 sm:$0xff]   ;;  %v8766_v6 = vld [vmem:[#allocation7 + $0x518] ss:$24 sps:$4 sm:$0xff]  }
  0xc2   :  { %1994 = vmatpush1.bf16.msra.mxu1 %v8685_v8  ;;  %v8774_v8 = vld [vmem:[#allocation7 + $0x54c] ss:$24 sps:$4 sm:$0xff]  }
  0xc3   :  { %1951 = vmatpush1.bf16.msra.mxu0 %v8682_v7  ;;  %1995 = vmatprep.subr.bf16.mxu1 %v8693_v10  ;;  %v8769_v7 = vld [vmem:[#allocation7 + $0x220] ss:$24 sps:$4 sm:$0xff]  }
  0xc4   :  { %1952 = vmatprep.subr.bf16.mxu0 %v8690_v9  ;;  %v8777_v9 = vld [vmem:[#allocation7 + $0x254] ss:$24 sps:$4 sm:$0xff]   ;;  %v8772_v10 = vld [vmem:[#allocation7 + $0x548] ss:$24 sps:$4 sm:$0xff]  }
  0xc6   :  { %1996 = vmatpush1.bf16.msra.mxu1 %v8691_v12  ;;  %v8780_v12 = vld [vmem:[#allocation7 + $0x57c] ss:$24 sps:$4 sm:$0xff]  }
  0xc7   :  { %1953 = vmatpush1.bf16.msra.mxu0 %v8688_v11  ;;  %1997 = vmatprep.subr.bf16.mxu1 %v8699_v16  ;;  %v8775_v11 = vld [vmem:[#allocation7 + $0x250] ss:$24 sps:$4 sm:$0xff]  }
  0xc8   :  { %1954 = vmatprep.subr.bf16.mxu0 %v8696_v13  ;;  %v8783_v13 = vld [vmem:[#allocation7 + $0x284] ss:$24 sps:$4 sm:$0xff]   ;;  %v8778_v16 = vld [vmem:[#allocation7 + $0x578] ss:$24 sps:$4 sm:$0xff]  }
  0xca   :  { %1998 = vmatpush1.bf16.msra.mxu1 %v8697_v18  ;;  %v8786_v18 = vld [vmem:[#allocation7 + $0x5ac] ss:$24 sps:$4 sm:$0xff]  }
  0xcb   :  { %1955 = vmatpush1.bf16.msra.mxu0 %v8694_v17  ;;  %2010 = vmatprep.subr.bf16.mxu1 %v8702_v21  ;;  %v8781_v17 = vld [vmem:[#allocation7 + $0x280] ss:$24 sps:$4 sm:$0xff]   ;;  %v8787_v21 = vld [vmem:[#allocation7 + $0x2b0] ss:$24 sps:$4 sm:$0xff]  }
  0xcc   :  { %2096 = vmatprep.subr.bf16.mxu0 %v8705_v22  ;;  %v8792_v22 = vld [vmem:[#allocation7 + $0x5dc] ss:$24 sps:$4 sm:$0xff]  }
  0xcd   :  { %2000 = vmatmul.mubr.bf16.vlgmr.msra.gmra.mrb[4].mxu1 %v10024_v14 }
  0xce   :  { %1957 = vmatmul.mubr.bf16.vlgmr.msra.gmra.mrb[0].mxu0 %v10034_v23  ;;  %2011 = vmatpush1.bf16.msra.mxu1 %v8700_v24  ;;  %v8795_v24 = vld [vmem:[#allocation7 + $0x2e4] ss:$24 sps:$4 sm:$0xff]  }
  0xcf   :  { %2097 = vmatpush1.bf16.msra.mxu0 %v8703_v25  ;;  %2012 = vmatprep.subr.bf16.mxu1 %v8708_v26  ;;  %v8790_v25 = vld [vmem:[#allocation7 + $0x5d8] ss:$24 sps:$4 sm:$0xff]  }
  0xd0   :  { %2098 = vmatprep.subr.bf16.mxu0 %v8711_v27  ;;  %2042 = vmatprep.mubr.bf16.mxu1 %v10020_v54  ;;  %v8793_v26 = vld [vmem:[#allocation7 + $0x2e0] ss:$24 sps:$4 sm:$0xff]   ;;  %v8798_v27 = vld [vmem:[#allocation7 + $0x60c] ss:$24 sps:$4 sm:$0xff]  }
  0xd1   :  { %2128 = vmatprep.mubr.bf16.mxu0 %v10018_v53  ;;  %v8732_v53 = vld [vmem:[#allocation7 + $0x3fc] ss:$24 sps:$4 sm:$0xff]  }
  0xd2   :  { %2013 = vmatpush1.bf16.msra.mxu1 %v8706_v28  ;;  %v8801_v28 = vld [vmem:[#allocation7 + $0x314] ss:$24 sps:$4 sm:$0xff]  }
  0xd3   :  { %2099 = vmatpush1.bf16.msra.mxu0 %v8709_v29  ;;  %2014 = vmatprep.subr.bf16.mxu1 %v8714_v30  ;;  %v8796_v29 = vld [vmem:[#allocation7 + $0x608] ss:$24 sps:$4 sm:$0xff]  }
  0xd4   :  { %2100 = vmatprep.subr.bf16.mxu0 %v8717_v31  ;;  %v8799_v30 = vld [vmem:[#allocation7 + $0x310] ss:$24 sps:$4 sm:$0xff]   ;;  %v8804_v31 = vld [vmem:[#allocation7 + $0x63c] ss:$24 sps:$4 sm:$0xff]  }
  0xd6   :  { %2015 = vmatpush1.bf16.msra.mxu1 %v8712_v32  ;;  %v8807_v32 = vld [vmem:[#allocation7 + $0x344] ss:$24 sps:$4 sm:$0xff]  }
  0xd7   :  { %2101 = vmatpush1.bf16.msra.mxu0 %v8715_v33  ;;  %2016 = vmatprep.subr.bf16.mxu1 %v8720_v34  ;;  %v8802_v33 = vld [vmem:[#allocation7 + $0x638] ss:$24 sps:$4 sm:$0xff]  }
  0xd8   :  { %2102 = vmatprep.subr.bf16.mxu0 %v8723_v35  ;;  %v8805_v34 = vld [vmem:[#allocation7 + $0x340] ss:$24 sps:$4 sm:$0xff]   ;;  %v74_v35 = vld [vmem:[#allocation5] sm:$0xff] }
  0xda   :  { %2017 = vmatpush1.bf16.msra.mxu1 %v8718_v36  ;;  %v8810_v36 = vld [vmem:[#allocation7 + $0x66c] ss:$24 sps:$4 sm:$0xff]  }
  0xdb   :  { %2103 = vmatpush1.bf16.msra.mxu0 %v8721_v37  ;;  %2018 = vmatprep.subr.bf16.mxu1 %v8726_v38  ;;  %v8813_v37 = vld [vmem:[#allocation7 + $0x374] ss:$24 sps:$4 sm:$0xff]   ;;  %v77_v38 = vsel %vm76_vm0, %v74_v35, 0.0  ;;  %v8892_v35 = vld [vmem:[#allocation7 + $0x610] ss:$24 sps:$4 sm:$0xff]  }
  0xdc   :  { %2104 = vmatprep.subr.bf16.mxu0 %v8729_v39  ;;  %v8808_v39 = vld [vmem:[#allocation7 + $0x668] ss:$24 sps:$4 sm:$0xff]   ;;  %78 = vadd.xlane.f32.xlu0 %v77_v38  ;;  %v8900_v38 = vld [vmem:[#allocation7 + $0x674] ss:$24 sps:$4 sm:$0xff]  }
  0xde   :  { %2019 = vmatpush1.bf16.msra.mxu1 %v8724_v40  ;;  %v8811_v40 = vld [vmem:[#allocation7 + $0x370] ss:$24 sps:$4 sm:$0xff]  }
  0xdf   :  { %2105 = vmatpush1.bf16.msra.mxu0 %v8727_v41  ;;  %2020 = vmatprep.subr.bf16.mxu1 %v8732_v53  ;;  %v8816_v41 = vld [vmem:[#allocation7 + $0x69c] ss:$24 sps:$4 sm:$0xff]  }
  0xe0   :  { %2106 = vmatprep.subr.bf16.mxu0 %v8735_v42  ;;  %v8819_v53 = vld [vmem:[#allocation7 + $0x3a4] ss:$24 sps:$4 sm:$0xff]   ;;  %v8817_v42 = vld [vmem:[#allocation7 + $0x3a0] ss:$24 sps:$4 sm:$0xff]  }
  0xe2   :  { %2021 = vmatpush1.bf16.msra.mxu1 %v8730_v43  ;;  %v8822_v43 = vld [vmem:[#allocation7 + $0x6cc] ss:$24 sps:$4 sm:$0xff]  }
  0xe3   :  { %2107 = vmatpush1.bf16.msra.mxu0 %v8733_v45  ;;  %2022 = vmatprep.subr.bf16.mxu1 %v8738_v46  ;;  %v8825_v45 = vld [vmem:[#allocation7 + $0x3d4] ss:$24 sps:$4 sm:$0xff]   ;;  %v8820_v46 = vld [vmem:[#allocation7 + $0x6c8] ss:$24 sps:$4 sm:$0xff]  }
  0xe4   :  { %2108 = vmatprep.subr.bf16.mxu0 %v8741_v47  ;;  %v8823_v47 = vld [vmem:[#allocation7 + $0x3d0] ss:$24 sps:$4 sm:$0xff]  }
  0xe6   :  { %2023 = vmatpush1.bf16.msra.mxu1 %v8736_v48  ;;  %v8828_v48 = vld [vmem:[#allocation7 + $0x6fc] ss:$24 sps:$4 sm:$0xff]  }
  0xe7   :  { %2109 = vmatpush1.bf16.msra.mxu0 %v8739_v49  ;;  %2024 = vmatprep.subr.bf16.mxu1 %v8744_v50  ;;  %v8831_v49 = vld [vmem:[#allocation7 + $0x404] ss:$24 sps:$4 sm:$0xff]   ;;  %v8829_v50 = vld [vmem:[#allocation7 + $0x400] ss:$24 sps:$4 sm:$0xff]  }
  0xe8   :  { %2110 = vmatprep.subr.bf16.mxu0 %v8747_v51  ;;  %v8834_v51 = vld [vmem:[#allocation7 + $0x72c] ss:$24 sps:$4 sm:$0xff]  }
  0xea   :  { %2025 = vmatpush1.bf16.msra.mxu1 %v8742_v52  ;;  %v8837_v52 = vld [vmem:[#allocation7 + $0x434] ss:$24 sps:$4 sm:$0xff]  }
  0xeb   :  { %2111 = vmatpush1.bf16.msra.mxu0 %v8745_v55  ;;  %2026 = vmatprep.subr.bf16.mxu1 %v8750_v56  ;;  %v8832_v55 = vld [vmem:[#allocation7 + $0x728] ss:$24 sps:$4 sm:$0xff]  }
  0xec   :  { %2112 = vmatprep.subr.bf16.mxu0 %v8753_v57  ;;  %v8835_v56 = vld [vmem:[#allocation7 + $0x430] ss:$24 sps:$4 sm:$0xff]   ;;  %v8840_v57 = vld [vmem:[#allocation7 + $0x75c] ss:$24 sps:$4 sm:$0xff]  }
  0xee   :  { %2027 = vmatpush1.bf16.msra.mxu1 %v8748_v58  ;;  %v8843_v58 = vld [vmem:[#allocation7 + $0x464] ss:$24 sps:$4 sm:$0xff]  }
  0xef   :  { %2113 = vmatpush1.bf16.msra.mxu0 %v8751_v59  ;;  %2028 = vmatprep.subr.bf16.mxu1 %v8756_v60  ;;  %v8838_v59 = vld [vmem:[#allocation7 + $0x758] ss:$24 sps:$4 sm:$0xff]  }
  0xf0   :  { %2114 = vmatprep.subr.bf16.mxu0 %v8759_v61  ;;  %v8841_v60 = vld [vmem:[#allocation7 + $0x460] ss:$24 sps:$4 sm:$0xff]   ;;  %v8846_v61 = vld [vmem:[#allocation7 + $0x78c] ss:$24 sps:$4 sm:$0xff]  }
  0xf2   :  { %2029 = vmatpush1.bf16.msra.mxu1 %v8754_v62  ;;  %v8849_v62 = vld [vmem:[#allocation7 + $0x494] ss:$24 sps:$4 sm:$0xff]  }
  0xf3   :  { %2115 = vmatpush1.bf16.msra.mxu0 %v8757_v63  ;;  %2030 = vmatprep.subr.bf16.mxu1 %v8762_v0  ;;  %v75_v63 = vld [vmem:[#allocation5 + $0x8] sm:$0xff]  ;;  %v8844_v0 = vld [vmem:[#allocation7 + $0x788] ss:$24 sps:$4 sm:$0xff]  }
  0xf4   :  { %2116 = vmatprep.subr.bf16.mxu0 %v8765_v1  ;;  %v8847_v1 = vld [vmem:[#allocation7 + $0x490] ss:$24 sps:$4 sm:$0xff]  }
  0xf6   :  { %2031 = vmatpush1.bf16.msra.mxu1 %v8760_v2  ;;  %v80_v2 = vsel %vm76_vm0, %v75_v63, 0.0  ;;  %v8931_v63 = vld [vmem:[#allocation7 + $0x880] ss:$24 sps:$4 sm:$0xff]  }
  0xf7   :  { %2117 = vmatpush1.bf16.msra.mxu0 %v8763_v3  ;;  %2032 = vmatprep.subr.bf16.mxu1 %v8768_v4  ;;  %v8852_v3 = vld [vmem:[#allocation7 + $0x7bc] ss:$24 sps:$4 sm:$0xff]  }
  0xf8   :  { %2118 = vmatprep.subr.bf16.mxu0 %v8771_v5  ;;  %v8855_v4 = vld [vmem:[#allocation7 + $0x4c4] ss:$24 sps:$4 sm:$0xff]   ;;  %81 = vadd.xlane.f32.xlu0 %v80_v2  ;;  %v8850_v5 = vld [vmem:[#allocation7 + $0x7b8] ss:$24 sps:$4 sm:$0xff]  }
  0xf9   :  { %v8939_v2 = vld [vmem:[#allocation7 + $0x8e4] ss:$24 sps:$4 sm:$0xff]  }
  0xfa   :  { %2033 = vmatpush1.bf16.msra.mxu1 %v8766_v6  ;;  %v8853_v6 = vld [vmem:[#allocation7 + $0x4c0] ss:$24 sps:$4 sm:$0xff]  }
  0xfb   :  { %2119 = vmatpush1.bf16.msra.mxu0 %v8769_v7  ;;  %2034 = vmatprep.subr.bf16.mxu1 %v8774_v8  ;;  %v8858_v7 = vld [vmem:[#allocation7 + $0x7ec] ss:$24 sps:$4 sm:$0xff]  }
  0xfc   :  { %2120 = vmatprep.subr.bf16.mxu0 %v8777_v9  ;;  %v8861_v8 = vld [vmem:[#allocation7 + $0x4f4] ss:$24 sps:$4 sm:$0xff]   ;;  %v8856_v9 = vld [vmem:[#allocation7 + $0x7e8] ss:$24 sps:$4 sm:$0xff]  }
  0xfe   :  { %2035 = vmatpush1.bf16.msra.mxu1 %v8772_v10  ;;  %v8859_v10 = vld [vmem:[#allocation7 + $0x4f0] ss:$24 sps:$4 sm:$0xff]  }
  0xff   :  { %2121 = vmatpush1.bf16.msra.mxu0 %v8775_v11  ;;  %2036 = vmatprep.subr.bf16.mxu1 %v8780_v12  ;;  %v8864_v11 = vld [vmem:[#allocation7 + $0x81c] ss:$24 sps:$4 sm:$0xff]  }
 0x100   :  { %2122 = vmatprep.subr.bf16.mxu0 %v8783_v13  ;;  %v8867_v12 = vld [vmem:[#allocation7 + $0x524] ss:$24 sps:$4 sm:$0xff]   ;;  %v8862_v13 = vld [vmem:[#allocation7 + $0x818] ss:$24 sps:$4 sm:$0xff]  }
 0x102   :  { %2037 = vmatpush1.bf16.msra.mxu1 %v8778_v16  ;;  %v8865_v16 = vld [vmem:[#allocation7 + $0x520] ss:$24 sps:$4 sm:$0xff]  }
 0x103   :  { %2123 = vmatpush1.bf16.msra.mxu0 %v8781_v17  ;;  %2038 = vmatprep.subr.bf16.mxu1 %v8786_v18  ;;  %v8870_v17 = vld [vmem:[#allocation7 + $0x84c] ss:$24 sps:$4 sm:$0xff]  }
 0x104   :  { %2124 = vmatprep.subr.bf16.mxu0 %v8789_v19  ;;  %v8873_v18 = vld [vmem:[#allocation7 + $0x554] ss:$24 sps:$4 sm:$0xff]   ;;  %v8868_v19 = vld [vmem:[#allocation7 + $0x848] ss:$24 sps:$4 sm:$0xff]  }
 0x106   :  { %2039 = vmatpush1.bf16.msra.mxu1 %v8784_v20  ;;  %v8871_v20 = vld [vmem:[#allocation7 + $0x550] ss:$24 sps:$4 sm:$0xff]  }
 0x107   :  { %2125 = vmatpush1.bf16.msra.mxu0 %v8787_v21  ;;  %2040 = vmatprep.subr.bf16.mxu1 %v8792_v22  ;;  %v8876_v21 = vld [vmem:[#allocation7 + $0x87c] ss:$24 sps:$4 sm:$0xff]  }
 0x108   :  { %2126 = vmatprep.subr.bf16.mxu0 %v8795_v24  ;;  %v8879_v22 = vld [vmem:[#allocation7 + $0x584] ss:$24 sps:$4 sm:$0xff]   ;;  %v8874_v24 = vld [vmem:[#allocation7 + $0x878] ss:$24 sps:$4 sm:$0xff]  }
 0x10a   :  { %2041 = vmatpush1.bf16.msra.mxu1 %v8790_v25  ;;  %v8877_v25 = vld [vmem:[#allocation7 + $0x580] ss:$24 sps:$4 sm:$0xff]  }
 0x10b   :  { %2127 = vmatpush1.bf16.msra.mxu0 %v8793_v26  ;;  %2053 = vmatprep.subr.bf16.mxu1 %v8798_v27  ;;  %v8882_v26 = vld [vmem:[#allocation7 + $0x8ac] ss:$24 sps:$4 sm:$0xff]  }
 0x10c   :  { %2139 = vmatprep.subr.bf16.mxu0 %v8801_v28  ;;  %v8885_v27 = vld [vmem:[#allocation7 + $0x5b4] ss:$24 sps:$4 sm:$0xff]   ;;  %v8880_v28 = vld [vmem:[#allocation7 + $0x8a8] ss:$24 sps:$4 sm:$0xff]  }
 0x10d   :  { %2043 = vmatmul.mubr.bf16.vlgmr.msra.gmra.mrb[4].mxu1 %v10026_v15 }
 0x10e   :  { %2129 = vmatmul.mubr.bf16.vlgmr.msra.gmra.mrb[4].mxu0 %v10024_v14  ;;  %2054 = vmatpush1.bf16.msra.mxu1 %v8796_v29  ;;  %v8814_v14 = vld [vmem:[#allocation7 + $0x698] ss:$24 sps:$4 sm:$0xff]  }
 0x10f   :  { %2140 = vmatpush1.bf16.msra.mxu0 %v8799_v30  ;;  %2055 = vmatprep.subr.bf16.mxu1 %v8804_v31  ;;  %v8883_v29 = vld [vmem:[#allocation7 + $0x5b0] ss:$24 sps:$4 sm:$0xff]   ;;  %v8888_v30 = vld [vmem:[#allocation7 + $0x8dc] ss:$24 sps:$4 sm:$0xff]  }
 0x110   :  { %2141 = vmatprep.subr.bf16.mxu0 %v8807_v32  ;;  %2085 = vmatprep.mubr.bf16.mxu1 %v10031_v44  ;;  %v8891_v31 = vld [vmem:[#allocation7 + $0x5e4] ss:$24 sps:$4 sm:$0xff]   ;;  %v8886_v32 = vld [vmem:[#allocation7 + $0x8d8] ss:$24 sps:$4 sm:$0xff]  }
 0x111   :  { %2171 = vmatprep.mubr.bf16.mxu0 %v10020_v54  ;;  %v8826_v54 = vld [vmem:[#allocation7 + $0x6f8] ss:$24 sps:$4 sm:$0xff]  }
 0x112   :  { %2056 = vmatpush1.bf16.msra.mxu1 %v8802_v33  ;;  %v8889_v33 = vld [vmem:[#allocation7 + $0x5e0] ss:$24 sps:$4 sm:$0xff]  }
 0x113   :  { %2142 = vmatpush1.bf16.msra.mxu0 %v8805_v34  ;;  %2057 = vmatprep.subr.bf16.mxu1 %v8810_v36  ;;  %v8894_v34 = vld [vmem:[#allocation7 + $0x614] ss:$24 sps:$4 sm:$0xff]   ;;  %v8897_v36 = vld [vmem:[#allocation7 + $0x644] ss:$24 sps:$4 sm:$0xff]  }
 0x114   :  { %2143 = vmatprep.subr.bf16.mxu0 %v8813_v37  ;;  %v8895_v37 = vld [vmem:[#allocation7 + $0x640] ss:$24 sps:$4 sm:$0xff]  }
 0x116   :  { %2058 = vmatpush1.bf16.msra.mxu1 %v8808_v39  ;;  %v8898_v39 = vld [vmem:[#allocation7 + $0x670] ss:$24 sps:$4 sm:$0xff]  }
 0x117   :  { %2144 = vmatpush1.bf16.msra.mxu0 %v8811_v40  ;;  %2059 = vmatprep.subr.bf16.mxu1 %v8816_v41  ;;  %v8903_v40 = vld [vmem:[#allocation7 + $0x6a4] ss:$24 sps:$4 sm:$0xff]   ;;  %v8901_v41 = vld [vmem:[#allocation7 + $0x6a0] ss:$24 sps:$4 sm:$0xff]  }
 0x118   :  { %2145 = vmatprep.subr.bf16.mxu0 %v8819_v53  ;;  %v8906_v53 = vld [vmem:[#allocation7 + $0x6d4] ss:$24 sps:$4 sm:$0xff]  }
 0x11a   :  { %2060 = vmatpush1.bf16.msra.mxu1 %v8814_v14  ;;  %v8904_v14 = vld [vmem:[#allocation7 + $0x6d0] ss:$24 sps:$4 sm:$0xff]  }
 0x11b   :  { %2146 = vmatpush1.bf16.msra.mxu0 %v8817_v42  ;;  %2061 = vmatprep.subr.bf16.mxu1 %v8822_v43  ;;  %v8909_v42 = vld [vmem:[#allocation7 + $0x704] ss:$24 sps:$4 sm:$0xff]   ;;  %v8907_v43 = vld [vmem:[#allocation7 + $0x700] ss:$24 sps:$4 sm:$0xff]  }
 0x11c   :  { %2147 = vmatprep.subr.bf16.mxu0 %v8825_v45  ;;  %v8912_v45 = vld [vmem:[#allocation7 + $0x734] ss:$24 sps:$4 sm:$0xff]  }
 0x11e   :  { %2062 = vmatpush1.bf16.msra.mxu1 %v8820_v46 }
 0x11f   :  { %2148 = vmatpush1.bf16.msra.mxu0 %v8823_v47  ;;  %2063 = vmatprep.subr.bf16.mxu1 %v8828_v48 }
 0x120   :  { %2149 = vmatprep.subr.bf16.mxu0 %v8831_v49 }
 0x122   :  { %2064 = vmatpush1.bf16.msra.mxu1 %v8826_v54  ;;  %v8913_v54 = vld [vmem:[#allocation7 + $0x760] ss:$24 sps:$4 sm:$0xff]  }
 0x123   :  { %2150 = vmatpush1.bf16.msra.mxu0 %v8829_v50  ;;  %2065 = vmatprep.subr.bf16.mxu1 %v8834_v51  ;;  %v8918_v50 = vld [vmem:[#allocation7 + $0x794] ss:$24 sps:$4 sm:$0xff]   ;;  %v8916_v51 = vld [vmem:[#allocation7 + $0x790] ss:$24 sps:$4 sm:$0xff]  }
 0x124   :  { %2151 = vmatprep.subr.bf16.mxu0 %v8837_v52  ;;  %v8921_v52 = vld [vmem:[#allocation7 + $0x7c4] ss:$24 sps:$4 sm:$0xff]  }
 0x126   :  { %2066 = vmatpush1.bf16.msra.mxu1 %v8832_v55  ;;  %v8919_v55 = vld [vmem:[#allocation7 + $0x7c0] ss:$24 sps:$4 sm:$0xff]  }
 0x127   :  { %2152 = vmatpush1.bf16.msra.mxu0 %v8835_v56  ;;  %2067 = vmatprep.subr.bf16.mxu1 %v8840_v57  ;;  %v8924_v56 = vld [vmem:[#allocation7 + $0x7f4] ss:$24 sps:$4 sm:$0xff]   ;;  %v8922_v57 = vld [vmem:[#allocation7 + $0x7f0] ss:$24 sps:$4 sm:$0xff]  }
 0x128   :  { %2153 = vmatprep.subr.bf16.mxu0 %v8843_v58  ;;  %v8927_v58 = vld [vmem:[#allocation7 + $0x824] ss:$24 sps:$4 sm:$0xff]  }
 0x12a   :  { %2068 = vmatpush1.bf16.msra.mxu1 %v8838_v59  ;;  %v8925_v59 = vld [vmem:[#allocation7 + $0x820] ss:$24 sps:$4 sm:$0xff]  }
 0x12b   :  { %2154 = vmatpush1.bf16.msra.mxu0 %v8841_v60  ;;  %2069 = vmatprep.subr.bf16.mxu1 %v8846_v61  ;;  %v8930_v60 = vld [vmem:[#allocation7 + $0x854] ss:$24 sps:$4 sm:$0xff]   ;;  %v8928_v61 = vld [vmem:[#allocation7 + $0x850] ss:$24 sps:$4 sm:$0xff]  }
 0x12c   :  { %2155 = vmatprep.subr.bf16.mxu0 %v8849_v62  ;;  %v8933_v62 = vld [vmem:[#allocation7 + $0x884] ss:$24 sps:$4 sm:$0xff]  }
 0x12e   :  { %2070 = vmatpush1.bf16.msra.mxu1 %v8844_v0  ;;  %v8936_v0 = vld [vmem:[#allocation7 + $0x8b4] ss:$24 sps:$4 sm:$0xff]  }
 0x12f   :  { %2156 = vmatpush1.bf16.msra.mxu0 %v8847_v1  ;;  %2071 = vmatprep.subr.bf16.mxu1 %v8852_v3  ;;  %v8934_v1 = vld [vmem:[#allocation7 + $0x8b0] ss:$24 sps:$4 sm:$0xff]   ;;  %v8937_v3 = vld [vmem:[#allocation7 + $0x8e0] ss:$24 sps:$4 sm:$0xff]  }
 0x130   :  { %2157 = vmatprep.subr.bf16.mxu0 %v8855_v4 }
 0x132   :  { %2072 = vmatpush1.bf16.msra.mxu1 %v8850_v5 }
 0x133   :  { %2158 = vmatpush1.bf16.msra.mxu0 %v8853_v6  ;;  %2073 = vmatprep.subr.bf16.mxu1 %v8858_v7 }
 0x134   :  { %2159 = vmatprep.subr.bf16.mxu0 %v8861_v8 }
 0x136   :  { %2074 = vmatpush1.bf16.msra.mxu1 %v8856_v9 }
 0x137   :  { %2160 = vmatpush1.bf16.msra.mxu0 %v8859_v10  ;;  %2075 = vmatprep.subr.bf16.mxu1 %v8864_v11 }
 0x138   :  { %2161 = vmatprep.subr.bf16.mxu0 %v8867_v12 }
 0x13a   :  { %2076 = vmatpush1.bf16.msra.mxu1 %v8862_v13 }
 0x13b   :  { %2162 = vmatpush1.bf16.msra.mxu0 %v8865_v16  ;;  %2077 = vmatprep.subr.bf16.mxu1 %v8870_v17 }
 0x13c   :  { %2163 = vmatprep.subr.bf16.mxu0 %v8873_v18  ;;  %v9940_v18 = vmov 0  }
 0x13e   :  { %2078 = vmatpush1.bf16.msra.mxu1 %v8868_v19 }
 0x13f   :  { %2164 = vmatpush1.bf16.msra.mxu0 %v8871_v20  ;;  %2079 = vmatprep.subr.bf16.mxu1 %v8876_v21  ;;  %v9808_v20 = vld [vmem:[#allocation5] sm:$0xff] }
 0x140   :  { %2165 = vmatprep.subr.bf16.mxu0 %v8879_v22 }
 0x142   :  { %2080 = vmatpush1.bf16.msra.mxu1 %v8874_v24  ;;  %v8943_v24 = vld [vmem:[#allocation7 + $0x908] ss:$24 sps:$4 sm:$0xff]  }
 0x143   :  { %2166 = vmatpush1.bf16.msra.mxu0 %v8877_v25  ;;  %2081 = vmatprep.subr.bf16.mxu1 %v8882_v26  ;;  %v8945_v25 = vld [vmem:[#allocation7 + $0x90c] ss:$24 sps:$4 sm:$0xff]   ;;  %v8951_v26 = vld [vmem:[#allocation7 + $0x93c] ss:$24 sps:$4 sm:$0xff]  }
 0x144   :  { %2167 = vmatprep.subr.bf16.mxu0 %v8885_v27  ;;  %v8949_v27 = vld [vmem:[#allocation7 + $0x938] ss:$24 sps:$4 sm:$0xff]  }
 0x146   :  { %2082 = vmatpush1.bf16.msra.mxu1 %v8880_v28  ;;  %v8957_v28 = vld [vmem:[#allocation7 + $0x96c] ss:$24 sps:$4 sm:$0xff]  }
 0x147   :  { %2168 = vmatpush1.bf16.msra.mxu0 %v8883_v29  ;;  %2083 = vmatprep.subr.bf16.mxu1 %v8888_v30  ;;  %v8955_v29 = vld [vmem:[#allocation7 + $0x968] ss:$24 sps:$4 sm:$0xff]   ;;  %v8963_v30 = vld [vmem:[#allocation7 + $0x99c] ss:$24 sps:$4 sm:$0xff]  }
 0x148   :  { %2169 = vmatprep.subr.bf16.mxu0 %v8891_v31  ;;  %v8961_v31 = vld [vmem:[#allocation7 + $0x998] ss:$24 sps:$4 sm:$0xff]  }
 0x14a   :  { %2084 = vmatpush1.bf16.msra.mxu1 %v8886_v32  ;;  %v8969_v32 = vld [vmem:[#allocation7 + $0x9cc] ss:$24 sps:$4 sm:$0xff]  }
 0x14b   :  { %2170 = vmatpush1.bf16.msra.mxu0 %v8889_v33  ;;  %v8967_v33 = vld [vmem:[#allocation7 + $0x9c8] ss:$24 sps:$4 sm:$0xff]  }
 0x14c   :  { %2182 = vmatprep.subr.bf16.mxu0 %v8894_v34  ;;  %v8975_v34 = vld [vmem:[#allocation7 + $0x9fc] ss:$24 sps:$4 sm:$0xff]  }
 0x14d   :  { %2086 = vmatmul.mubr.bf16.vlgmr.msra.gmra.mrb[4].mxu1 %v10034_v23 }
 0x14e   :  { %2172 = vmatmul.mubr.bf16.vlgmr.msra.gmra.mrb[4].mxu0 %v10026_v15  ;;  %v8910_v15 = vld [vmem:[#allocation7 + $0x730] ss:$24 sps:$4 sm:$0xff]   ;;  %2322 = vmatprep.mubr.bf16.mxu1 %v9940_v18 }
 0x14f   :  { %2183 = vmatpush1.bf16.msra.mxu0 %v8892_v35  ;;  %2214 = vmatprep.mubr.bf16.mxu0 %v10031_v44  ;;  %v8915_v44 = vld [vmem:[#allocation7 + $0x764] ss:$24 sps:$4 sm:$0xff]   ;;  %v8973_v35 = vld [vmem:[#allocation7 + $0x9f8] ss:$24 sps:$4 sm:$0xff]  }
 0x150   :  { %2184 = vmatprep.subr.bf16.mxu0 %v8897_v36  ;;  %v8981_v36 = vld [vmem:[#allocation7 + $0xa2c] ss:$24 sps:$4 sm:$0xff]  }
 0x153   :  { %2185 = vmatpush1.bf16.msra.mxu0 %v8895_v37  ;;  %v8979_v37 = vld [vmem:[#allocation7 + $0xa28] ss:$24 sps:$4 sm:$0xff]  }
 0x154   :  { %2186 = vmatprep.subr.bf16.mxu0 %v8900_v38  ;;  %v8987_v38 = vld [vmem:[#allocation7 + $0xa5c] ss:$24 sps:$4 sm:$0xff]  }
 0x157   :  { %2187 = vmatpush1.bf16.msra.mxu0 %v8898_v39  ;;  %v8985_v39 = vld [vmem:[#allocation7 + $0xa58] ss:$24 sps:$4 sm:$0xff]  }
 0x158   :  { %2188 = vmatprep.subr.bf16.mxu0 %v8903_v40 }
 0x15b   :  { %2189 = vmatpush1.bf16.msra.mxu0 %v8901_v41 }
 0x15c   :  { %2190 = vmatprep.subr.bf16.mxu0 %v8906_v53 }
 0x15f   :  { %2191 = vmatpush1.bf16.msra.mxu0 %v8904_v14 }
 0x160   :  { %2192 = vmatprep.subr.bf16.mxu0 %v8909_v42  ;;  %v1872_v46 = vpop.f32.mrb[0].mxu1 }
 0x161   :  { %v1874_v47 = vpop.f32.mrb[1].mxu1 }
 0x162   :  { %v1876_v48 = vpop.f32.mrb[2].mxu1 }
 0x163   :  { %2193 = vmatpush1.bf16.msra.mxu0 %v8907_v43  ;;  %v1878_v49 = vpop.f32.mrb[3].mxu1 }
 0x164   :  { %2194 = vmatprep.subr.bf16.mxu0 %v8912_v45 }
 0x167   :  { %2195 = vmatpush1.bf16.msra.mxu0 %v8910_v15 }
 0x168   :  { %2196 = vmatprep.subr.bf16.mxu0 %v8915_v44 }
 0x169   :  { %v79_v4 = vpop.xlane.xlu0 %78 }
 0x16a   :  { %v83_v5 = vadd.f32 1.0, %v79_v4  ;;  %v8940_v4 = vld [vmem:[#allocation7 + $0x900] ss:$24 sps:$4 sm:$0xff]  }
 0x16b   :  { %2197 = vmatpush1.bf16.msra.mxu0 %v8913_v54 }
 0x16c   :  { %2198 = vmatprep.subr.bf16.mxu0 %v8918_v50  ;;  %9804 = vrcp.f32 %v83_v5  ;;  %v8948_v5 = vld [vmem:[#allocation7 + $0x934] ss:$24 sps:$4 sm:$0xff]  }
 0x16f   :  { %2199 = vmatpush1.bf16.msra.mxu0 %v8916_v51 }
 0x170   :  { %2200 = vmatprep.subr.bf16.mxu0 %v8921_v52 }
 0x173   :  { %2201 = vmatpush1.bf16.msra.mxu0 %v8919_v55 }
 0x174   :  { %2202 = vmatprep.subr.bf16.mxu0 %v8924_v56 }
 0x176   :  { %v9805_v19 = vpop.eup %9804 }
 0x177   :  { %2203 = vmatpush1.bf16.msra.mxu0 %v8922_v57  ;;  %v86_v21 = vmul.f32 %v9808_v20, %v9805_v19  ;;  %v8960_v19 = vld [vmem:[#allocation7 + $0x994] ss:$24 sps:$4 sm:$0xff]  }
 0x178   :  { %2204 = vmatprep.subr.bf16.mxu0 %v8927_v58 }
 0x179   :  { %v10057_v22 = vpack.c.bf16 %v86_v21, %v86_v21  ;;  %v9003_v21 = vld [vmem:[#allocation7 + $0xae8] ss:$24 sps:$4 sm:$0xff]  }
 0x17b   :  { %2205 = vmatpush1.bf16.msra.mxu0 %v8925_v59  ;;  %v9809_v59 = vld [vmem:[#allocation5 + $0x8] sm:$0xff] }
 0x17c   :  { %2206 = vmatprep.subr.bf16.mxu0 %v8930_v60 }
 0x17f   :  { %2207 = vmatpush1.bf16.msra.mxu0 %v8928_v61 }
 0x180   :  { %2208 = vmatprep.subr.bf16.mxu0 %v8933_v62 }
 0x183   :  { %2209 = vmatpush1.bf16.msra.mxu0 %v8931_v63 }
 0x184   :  { %2210 = vmatprep.subr.bf16.mxu0 %v8936_v0 }
 0x185   :  { %v82_v15 = vpop.xlane.xlu0 %81 }
 0x187   :  { %2211 = vmatpush1.bf16.msra.mxu0 %v8934_v1 }
 0x188   :  { %2212 = vmatprep.subr.bf16.mxu0 %v8939_v2  ;;  %v8942_v2 = vld [vmem:[#allocation7 + $0x904] ss:$24 sps:$4 sm:$0xff]  }
 0x18b   :  { %2213 = vmatpush1.bf16.msra.mxu0 %v8937_v3 }
 0x18c   :  { %4435 = vmatprep.subr.bf16.mxu0 %v8945_v25  ;;  %v8958_v25 = vld [vmem:[#allocation7 + $0x990] ss:$24 sps:$4 sm:$0xff]  }
 0x18e   :  { %2215 = vmatmul.mubr.bf16.vlgmr.msra.gmra.mrb[4].mxu0 %v10034_v23 }
 0x18f   :  { %4436 = vmatpush1.bf16.msra.mxu0 %v8943_v24  ;;  %v9011_v24 = vld [vmem:[#allocation7 + $0xb1c] ss:$24 sps:$4 sm:$0xff]  }
 0x190   :  { %4437 = vmatprep.subr.bf16.mxu0 %v8951_v26  ;;  %v8966_v26 = vld [vmem:[#allocation7 + $0x9c4] ss:$24 sps:$4 sm:$0xff]  }
 0x193   :  { %4438 = vmatpush1.bf16.msra.mxu0 %v8949_v27  ;;  %v9009_v27 = vld [vmem:[#allocation7 + $0xb18] ss:$24 sps:$4 sm:$0xff]  }
 0x194   :  { %4439 = vmatprep.subr.bf16.mxu0 %v8957_v28  ;;  %v8964_v28 = vld [vmem:[#allocation7 + $0x9c0] ss:$24 sps:$4 sm:$0xff]  }
 0x197   :  { %4440 = vmatpush1.bf16.msra.mxu0 %v8955_v29  ;;  %v8972_v29 = vld [vmem:[#allocation7 + $0x9f4] ss:$24 sps:$4 sm:$0xff]  }
 0x198   :  { %4441 = vmatprep.subr.bf16.mxu0 %v8963_v30  ;;  %v8970_v30 = vld [vmem:[#allocation7 + $0x9f0] ss:$24 sps:$4 sm:$0xff]  }
 0x19b   :  { %4442 = vmatpush1.bf16.msra.mxu0 %v8961_v31  ;;  %v8978_v31 = vld [vmem:[#allocation7 + $0xa24] ss:$24 sps:$4 sm:$0xff]  }
 0x19c   :  { %4443 = vmatprep.subr.bf16.mxu0 %v8969_v32  ;;  %v8976_v32 = vld [vmem:[#allocation7 + $0xa20] ss:$24 sps:$4 sm:$0xff]  }
 0x19f   :  { %4444 = vmatpush1.bf16.msra.mxu0 %v8967_v33  ;;  %v8984_v33 = vld [vmem:[#allocation7 + $0xa54] ss:$24 sps:$4 sm:$0xff]  }
 0x1a0   :  { %4445 = vmatprep.subr.bf16.mxu0 %v8975_v34  ;;  %v8982_v34 = vld [vmem:[#allocation7 + $0xa50] ss:$24 sps:$4 sm:$0xff]  }
 0x1a1   :  { %v1958_v6 = vpop.f32.mrb[0].mxu0 }
 0x1a2   :  { %v8422_v7 = vadd.f32 %v1958_v6, %v1872_v46  ;;  %v1960_v8 = vpop.f32.mrb[1].mxu0  ;;  %v84_v46 = vadd.f32 1.0, %v82_v15  ;;  %v8991_v6 = vld [vmem:[#allocation7 + $0xa88] ss:$24 sps:$4 sm:$0xff]   ;;  %v9020_v15 = vld [vmem:[#allocation7 + $0xb74] ss:$24 sps:$4 sm:$0xff]  }
 0x1a3   :  { %v8423_v9 = vadd.f32 %v1960_v8, %v1874_v47  ;;  %v1962_v10 = vpop.f32.mrb[2].mxu0  ;;  %4446 = vmatpush1.bf16.msra.mxu0 %v8973_v35  ;;  %v8946_v8 = vld [vmem:[#allocation7 + $0x930] ss:$24 sps:$4 sm:$0xff]   ;;  %v8990_v35 = vld [vmem:[#allocation7 + $0xa84] ss:$24 sps:$4 sm:$0xff]  }
 0x1a4   :  { %v2225_v11 = vpack.c.bf16 %v8422_v7, %v8422_v7  ;;  %v10050_v12 = vadd.f32 %v1962_v10, %v1876_v48  ;;  %v1964_v13 = vpop.f32.mrb[3].mxu0  ;;  %4447 = vmatprep.subr.bf16.mxu0 %v8981_v36  ;;  %9806 = vrcp.f32 %v84_v46  ;;  %v8993_v7 = vld [vmem:[#allocation7 + $0xa8c] ss:$24 sps:$4 sm:$0xff]   ;;  %v8988_v36 = vld [vmem:[#allocation7 + $0xa80] ss:$24 sps:$4 sm:$0xff]  }
 0x1a5   :  { %v2226_v16 = vpack.c.bf16 %v8423_v9, %v8423_v9  ;;  %v10052_v17 = vadd.f32 %v1964_v13, %v1878_v49  ;;  %v8999_v9 = vld [vmem:[#allocation7 + $0xabc] ss:$24 sps:$4 sm:$0xff]  }
 0x1a6   :  { %v2273_v23 = vsel %vm2271_vm1, %v2225_v11, 0  ;;  %v2231_v52 = vpack.c.bf16 %v10050_v12, %v10050_v12  ;;  %v8954_v10 = vld [vmem:[#allocation7 + $0x964] ss:$24 sps:$4 sm:$0xff]   ;;  %v8997_v12 = vld [vmem:[#allocation7 + $0xab8] ss:$24 sps:$4 sm:$0xff]  }
 0x1a7   :  { %7810 = vmatprep.subr.msk.bf16.mxu1 %vm2271_vm1, %v2226_v16  ;;  %4448 = vmatpush1.bf16.msra.mxu0 %v8979_v37  ;;  %v2232_v55 = vpack.c.bf16 %v10052_v17, %v10052_v17  ;;  %v9005_v16 = vld [vmem:[#allocation7 + $0xaec] ss:$24 sps:$4 sm:$0xff]   ;;  %v8952_v17 = vld [vmem:[#allocation7 + $0x960] ss:$24 sps:$4 sm:$0xff]   ;;  %v9023_v46 = vld [vmem:[#allocation7 + $0xb7c] ss:$24 sps:$4 sm:$0xff]  }
 0x1a8   :  { %2291 = vmatpush1.bf16.msra.mxu1 %v2273_v23  ;;  %4449 = vmatprep.subr.bf16.mxu0 %v8987_v38  ;;  %v2417_v57 = vsel %vm2271_vm1, %v2231_v52, 0  ;;  %v8996_v37 = vld [vmem:[#allocation7 + $0xab4] ss:$24 sps:$4 sm:$0xff]   ;;  %v8994_v38 = vld [vmem:[#allocation7 + $0xab0] ss:$24 sps:$4 sm:$0xff]  }
 0x1a9   :  { %v9035_v52 = vld [vmem:[#allocation7 + $0xbdc] ss:$24 sps:$4 sm:$0xff]  }
 0x1ab   :  { %7811 = vmatmul.mubr.msk.bf16.vlgmr.msra.gmra.mrb[8].mxu1 %vm76_vm0, %v10057_v22  ;;  %4450 = vmatpush1.bf16.msra.mxu0 %v8985_v39  ;;  %v9002_v39 = vld [vmem:[#allocation7 + $0xae4] ss:$24 sps:$4 sm:$0xff]  }
 0x1ac   :  { %2363 = vmatprep.mubr.bf16.mxu1 %v9940_v18  ;;  %4451 = vmatprep.subr.bf16.mxu0 %v8993_v7 }
 0x1ae   :  { %v9807_v56 = vpop.eup %9806 }
 0x1af   :  { %v88_v60 = vmul.f32 %v9809_v59, %v9807_v56  ;;  %4452 = vmatpush1.bf16.msra.mxu0 %v8991_v6  ;;  %v9033_v56 = vld [vmem:[#allocation7 + $0xbd8] ss:$24 sps:$4 sm:$0xff]  }
 0x1b0   :  { %4453 = vmatprep.subr.bf16.mxu0 %v8999_v9 }
 0x1b1   :  { %v10079_v62 = vpack.c.bf16 %v88_v60, %v88_v60 }
 0x1b3   :  { %4454 = vmatpush1.bf16.msra.mxu0 %v8997_v12 }
 0x1b4   :  { %4455 = vmatprep.subr.bf16.mxu0 %v9005_v16 }
 0x1b7   :  { %4456 = vmatpush1.bf16.msra.mxu0 %v9003_v21 }
 0x1b8   :  { %4457 = vmatprep.subr.bf16.mxu0 %v9011_v24 }
 0x1bb   :  { %4458 = vmatpush1.bf16.msra.mxu0 %v9009_v27 }
 0x220   :  { %v2087_v40 = vpop.f32.mrb[4].mxu1 }
 0x221   :  { %v2227_v41 = vpack.c.bf16 %v2087_v40, %v2087_v40  ;;  %v2089_v53 = vpop.f32.mrb[5].mxu1  ;;  %v9000_v40 = vld [vmem:[#allocation7 + $0xae0] ss:$24 sps:$4 sm:$0xff]  }
 0x222   :  { %v2228_v14 = vpack.c.bf16 %v2089_v53, %v2089_v53  ;;  %v2091_v42 = vpop.f32.mrb[6].mxu1  ;;  %v9006_v53 = vld [vmem:[#allocation7 + $0xb10] ss:$24 sps:$4 sm:$0xff]  }
 0x223   :  { %v2279_v43 = vsel %vm2271_vm1, %v2227_v41, 0  ;;  %v2093_v45 = vpop.f32.mrb[7].mxu1  ;;  %v2233_v61 = vpack.c.bf16 %v2091_v42, %v2091_v42  ;;  %v9008_v41 = vld [vmem:[#allocation7 + $0xb14] ss:$24 sps:$4 sm:$0xff]  }
 0x224   :  { %7812 = vmatprep.subr.msk.bf16.mxu1 %vm2271_vm1, %v2228_v14  ;;  %v2234_v58 = vpack.c.bf16 %v2093_v45, %v2093_v45  ;;  %v9014_v14 = vld [vmem:[#allocation7 + $0xb44] ss:$24 sps:$4 sm:$0xff]   ;;  %v9015_v45 = vld [vmem:[#allocation7 + $0xb48] ss:$24 sps:$4 sm:$0xff]  }
 0x225   :  { %2332 = vmatpush1.bf16.msra.mxu1 %v2279_v43  ;;  %v2423_v63 = vsel %vm2271_vm1, %v2233_v61, 0  ;;  %v9017_v42 = vld [vmem:[#allocation7 + $0xb4c] ss:$24 sps:$4 sm:$0xff]   ;;  %v9012_v43 = vld [vmem:[#allocation7 + $0xb40] ss:$24 sps:$4 sm:$0xff]  }
 0x226   :  { %4459 = vmatprep.subr.bf16.mxu0 %v9017_v42  ;;  %v9042_v42 = vld [vmem:[#allocation7 + $0xc30] ss:$24 sps:$4 sm:$0xff]  }
 0x227   :  { %4460 = vmatpush1.bf16.msra.mxu0 %v9015_v45 }
 0x228   :  { %7813 = vmatmul.mubr.msk.bf16.vlgmr.msra.gmra.mrb[12].mxu1 %vm76_vm0, %v10057_v22  ;;  %4461 = vmatprep.subr.bf16.mxu0 %v9023_v46  ;;  %v9050_v46 = vld [vmem:[#allocation7 + $0xc64] ss:$24 sps:$4 sm:$0xff]  }
 0x229   :  { %2404 = vmatprep.mubr.bf16.mxu1 %v9940_v18 }
 0x261   :  { %v2216_v44 = vpop.f32.mrb[4].mxu0 }
 0x262   :  { %v2229_v47 = vpack.c.bf16 %v2216_v44, %v2216_v44  ;;  %v2218_v48 = vpop.f32.mrb[5].mxu0  ;;  %v9018_v44 = vld [vmem:[#allocation7 + $0xb70] ss:$24 sps:$4 sm:$0xff]  }
 0x263   :  { %v2230_v49 = vpack.c.bf16 %v2218_v48, %v2218_v48  ;;  %v2220_v54 = vpop.f32.mrb[6].mxu0  ;;  %v9026_v48 = vld [vmem:[#allocation7 + $0xba4] ss:$24 sps:$4 sm:$0xff]  }
 0x264   :  { %v2285_v50 = vsel %vm2271_vm1, %v2229_v47, 0  ;;  %v2222_v51 = vpop.f32.mrb[7].mxu0  ;;  %v2235_v1 = vpack.c.bf16 %v2220_v54, %v2220_v54  ;;  %v9021_v47 = vld [vmem:[#allocation7 + $0xb78] ss:$24 sps:$4 sm:$0xff]  }
 0x265   :  { %7814 = vmatprep.subr.msk.bf16.mxu1 %vm2271_vm1, %v2230_v49  ;;  %v2236_v0 = vpack.c.bf16 %v2222_v51, %v2222_v51  ;;  %4462 = vmatpush1.bf16.msra.mxu0 %v9021_v47  ;;  %v9029_v49 = vld [vmem:[#allocation7 + $0xbac] ss:$24 sps:$4 sm:$0xff]   ;;  %v9024_v54 = vld [vmem:[#allocation7 + $0xba0] ss:$24 sps:$4 sm:$0xff]  }
 0x266   :  { %2373 = vmatpush1.bf16.msra.mxu1 %v2285_v50  ;;  %v2429_v3 = vsel %vm2271_vm1, %v2235_v1, 0  ;;  %v9027_v50 = vld [vmem:[#allocation7 + $0xba8] ss:$24 sps:$4 sm:$0xff]   ;;  %4463 = vmatprep.subr.bf16.mxu0 %v9029_v49  ;;  %v9032_v51 = vld [vmem:[#allocation7 + $0xbd4] ss:$24 sps:$4 sm:$0xff]  }
 0x267   :  { %7816 = vmatprep.subr.msk.bf16.mxu1 %vm2271_vm1, %v2232_v55  ;;  %v9030_v55 = vld [vmem:[#allocation7 + $0xbd0] ss:$24 sps:$4 sm:$0xff]  }
 0x269   :  { %7815 = vmatmul.mubr.msk.bf16.vlgmr.msra.gmra.mrb[16].mxu1 %vm76_vm0, %v10057_v22  ;;  %4464 = vmatpush1.bf16.msra.mxu0 %v9027_v50 }
 0x26a   :  { %2435 = vmatpush1.bf16.msra.mxu1 %v2417_v57  ;;  %2466 = vmatprep.mubr.bf16.mxu1 %v9940_v18  ;;  %v9038_v57 = vld [vmem:[#allocation7 + $0xc04] ss:$24 sps:$4 sm:$0xff]  }
 0x26b   :  { %7818 = vmatprep.subr.msk.bf16.mxu1 %vm2271_vm1, %v2234_v58  ;;  %4465 = vmatprep.subr.bf16.mxu0 %v9035_v52  ;;  %v9041_v58 = vld [vmem:[#allocation7 + $0xc0c] ss:$24 sps:$4 sm:$0xff]  }
 0x26d   :  { %4466 = vmatpush1.bf16.msra.mxu0 %v9033_v56 }
 0x26e   :  { %4478 = vmatprep.subr.bf16.mxu0 %v9041_v58  ;;  %v9051_v58 = vld [vmem:[#allocation7 + $0xc68] ss:$24 sps:$4 sm:$0xff]  }
 0x271   :  { %7817 = vmatmul.mubr.msk.bf16.vlgmr.msra.gmra.mrb[20].mxu1 %vm76_vm0, %v10079_v62 }
 0x272   :  { %2476 = vmatpush1.bf16.msra.mxu1 %v2423_v63  ;;  %2507 = vmatprep.mubr.bf16.mxu1 %v9940_v18 }
 0x273   :  { %7820 = vmatprep.subr.msk.bf16.mxu1 %vm2271_vm1, %v2236_v0  ;;  %v2238_v0 = vlaneseq }
 0x275   :  { %v2239_v1 = vshrl.u32 %v2238_v0, 7 }
 0x277   :  { %v10105_v16 = vsub.s32 2, %v2239_v1 }
 0x279   :  { %7819 = vmatmul.mubr.msk.bf16.vlgmr.msra.gmra.mrb[24].mxu1 %vm76_vm0, %v10079_v62 }
 0x27a   :  { %2517 = vmatpush1.bf16.msra.mxu1 %v2429_v3  ;;  %2548 = vmatprep.mubr.bf16.mxu1 %v9940_v18  ;;  %v391_v3 = vld [vmem:[#allocation8] sm:$0x3f] }
 0x27b   :  { %4306 = vmatprep.subr.bf16.mxu1 %v8942_v2  ;;  %v10096_v2 = vsub.s32 0, %v2239_v1  ;;  %v2249_v27 = vrot.slane %v391_v3, %v10105_v16 }
 0x27e   :  { %v10092_v11 = vpop.f32.mrb[8].mxu1 }
 0x27f   :  { %v10094_v13 = vpop.f32.mrb[9].mxu1 }
 0x280   :  { %v2328_v23 = vpop.f32.mrb[10].mxu1 }
 0x281   :  { %7821 = vmatmul.mubr.msk.bf16.vlgmr.msra.gmra.mrb[28].mxu1 %vm76_vm0, %v10079_v62  ;;  %v2329_v20 = vpop.f32.mrb[11].mxu1  ;;  %v10108_v23 = vsub.s32 3, %v2239_v1 }
 0x282   :  { %4307 = vmatpush1.bf16.msra.mxu1 %v8940_v4  ;;  %v10098_v4 = vsub.s32 1, %v2239_v1 }
 0x283   :  { %4308 = vmatprep.subr.bf16.mxu1 %v8948_v5 }
 0x286   :  { %4309 = vmatpush1.bf16.msra.mxu1 %v8946_v8  ;;  %v2241_v8 = vrot.slane %v391_v3, %v10096_v2 }
 0x287   :  { %4310 = vmatprep.subr.bf16.mxu1 %v8954_v10  ;;  %v2245_v10 = vrot.slane %v391_v3, %v10098_v4 }
 0x288   :  { %v2325_v12 = vadd.f32 %v10092_v11, %v2241_v8 }
 0x28a   :  { %4311 = vmatpush1.bf16.msra.mxu1 %v8952_v17  ;;  %v2327_v17 = vadd.f32 %v10094_v13, %v2245_v10  ;;  %v9036_v13 = vld [vmem:[#allocation7 + $0xc00] ss:$24 sps:$4 sm:$0xff]  }
 0x28b   :  { %4312 = vmatprep.subr.bf16.mxu1 %v8960_v19 }
 0x28e   :  { %4313 = vmatpush1.bf16.msra.mxu1 %v8958_v25 }
 0x28f   :  { %4314 = vmatprep.subr.bf16.mxu1 %v8966_v26  ;;  %v2557_v26 = vmax.f32 %v2325_v12, 0.0 }
 0x292   :  { %4315 = vmatpush1.bf16.msra.mxu1 %v8964_v28 }
 0x293   :  { %4316 = vmatprep.subr.bf16.mxu1 %v8972_v29 }
 0x296   :  { %4317 = vmatpush1.bf16.msra.mxu1 %v8970_v30  ;;  %v2558_v30 = vmax.f32 %v2327_v17, 0.0 }
 0x297   :  { %4318 = vmatprep.subr.bf16.mxu1 %v8978_v31  ;;  %v2253_v31 = vrot.slane %v391_v3, %v10108_v23 }
 0x29a   :  { %4319 = vmatpush1.bf16.msra.mxu1 %v8976_v32 }
 0x29b   :  { %4320 = vmatprep.subr.bf16.mxu1 %v8984_v33 }
 0x29e   :  { %4321 = vmatpush1.bf16.msra.mxu1 %v8982_v34  ;;  %v9039_v34 = vld [vmem:[#allocation7 + $0xc08] ss:$24 sps:$4 sm:$0xff]  }
 0x29f   :  { %4322 = vmatprep.subr.bf16.mxu1 %v8990_v35 }
 0x2a2   :  { %4323 = vmatpush1.bf16.msra.mxu1 %v8988_v36  ;;  %v10116_v36 = vsub.s32 4, %v2239_v1 }
 0x2a3   :  { %4324 = vmatprep.subr.bf16.mxu1 %v8996_v37  ;;  %v9044_v37 = vld [vmem:[#allocation7 + $0xc34] ss:$24 sps:$4 sm:$0xff]  }
 0x2a4   :  { %v2257_v47 = vrot.slane %v391_v3, %v10116_v36 }
 0x2a6   :  { %4325 = vmatpush1.bf16.msra.mxu1 %v8994_v38  ;;  %v9047_v38 = vld [vmem:[#allocation7 + $0xc3c] ss:$24 sps:$4 sm:$0xff]  }
 0x2a7   :  { %4326 = vmatprep.subr.bf16.mxu1 %v9002_v39 }
 0x2aa   :  { %4327 = vmatpush1.bf16.msra.mxu1 %v9000_v40  ;;  %v10118_v40 = vsub.s32 5, %v2239_v1 }
 0x2ab   :  { %4328 = vmatprep.subr.bf16.mxu1 %v9008_v41 }
 0x2ae   :  { %4329 = vmatpush1.bf16.msra.mxu1 %v9006_v53 }
 0x2af   :  { %4330 = vmatprep.subr.bf16.mxu1 %v9014_v14 }
 0x2b2   :  { %4331 = vmatpush1.bf16.msra.mxu1 %v9012_v43 }
 0x2b3   :  { %4332 = vmatprep.subr.bf16.mxu1 %v9020_v15  ;;  %v9045_v15 = vld [vmem:[#allocation7 + $0xc38] ss:$24 sps:$4 sm:$0xff]  }
 0x2b6   :  { %4333 = vmatpush1.bf16.msra.mxu1 %v9018_v44 }
 0x2b7   :  { %4334 = vmatprep.subr.bf16.mxu1 %v9026_v48 }
 0x2ba   :  { %4335 = vmatpush1.bf16.msra.mxu1 %v9024_v54  ;;  %v9053_v54 = vld [vmem:[#allocation7 + $0xc6c] ss:$24 sps:$4 sm:$0xff]  }
 0x2bb   :  { %4336 = vmatprep.subr.bf16.mxu1 %v9032_v51  ;;  %v2261_v51 = vrot.slane %v391_v3, %v10118_v40 }
 0x2be   :  { %4337 = vmatpush1.bf16.msra.mxu1 %v9030_v55 }
 0x2bf   :  { %4349 = vmatprep.subr.bf16.mxu1 %v9038_v57  ;;  %v9048_v57 = vld [vmem:[#allocation7 + $0xc60] ss:$24 sps:$4 sm:$0xff]  }
 0x2fb   :  { %v2365_v59 = vpop.f32.mrb[12].mxu1 }
 0x2fc   :  { %v2367_v60 = vpop.f32.mrb[13].mxu1  ;;  %v2366_v35 = vadd.f32 %v2365_v59, %v2249_v27 }
 0x2fd   :  { %v2369_v61 = vpop.f32.mrb[14].mxu1  ;;  %v2368_v39 = vadd.f32 %v2367_v60, %v2253_v31  ;;  %v9056_v60 = vld [vmem:[#allocation7 + $0xc94] ss:$24 sps:$4 sm:$0xff]  }
 0x2fe   :  { %v2370_v63 = vpop.f32.mrb[15].mxu1  ;;  %v2559_v44 = vmax.f32 %v2366_v35, 0.0  ;;  %v9059_v61 = vld [vmem:[#allocation7 + $0xc9c] ss:$24 sps:$4 sm:$0xff]   ;;  %v9075_v35 = vld [vmem:[#allocation7 + $0xd28] ss:$24 sps:$4 sm:$0xff]  }
 0x2ff   :  { %v2560_v50 = vmax.f32 %v2368_v39, 0.0  ;;  %v9078_v39 = vld [vmem:[#allocation7 + $0xd50] ss:$24 sps:$4 sm:$0xff]  }
 0x33c   :  { %v2406_v5 = vpop.f32.mrb[16].mxu1 }
 0x33d   :  { %v10100_v6 = vpop.f32.mrb[17].mxu1  ;;  %v2407_v59 = vadd.f32 %v2406_v5, %v2257_v47  ;;  %v9062_v5 = vld [vmem:[#allocation7 + $0xcc4] ss:$24 sps:$4 sm:$0xff]  }
 0x33e   :  { %v2410_v7 = vpop.f32.mrb[18].mxu1  ;;  %v2409_v63 = vadd.f32 %v10100_v6, %v2261_v51  ;;  %v9065_v6 = vld [vmem:[#allocation7 + $0xccc] ss:$24 sps:$4 sm:$0xff]  }
 0x33f   :  { %v2411_v9 = vpop.f32.mrb[19].mxu1  ;;  %v9054_v7 = vld [vmem:[#allocation7 + $0xc90] ss:$24 sps:$4 sm:$0xff]   ;;  %v2561_v12 = vmax.f32 %v2407_v59, 0.0  ;;  %v9113_v59 = vld [vmem:[#allocation7 + $0xe4c] ss:$24 sps:$4 sm:$0xff]  }
 0x344   :  { %v2468_v19 = vpop.f32.mrb[20].mxu1 }
 0x345   :  { %v2469_v20 = vadd.f32 %v2468_v19, %v2241_v8  ;;  %v2470_v21 = vpop.f32.mrb[21].mxu1 }
 0x346   :  { %v2471_v24 = vadd.f32 %v2470_v21, %v2245_v10  ;;  %v2472_v25 = vpop.f32.mrb[22].mxu1  ;;  %v9057_v10 = vld [vmem:[#allocation7 + $0xc98] ss:$24 sps:$4 sm:$0xff]  }
 0x347   :  { %v2563_v28 = vmax.f32 %v2469_v20, 0.0  ;;  %v2473_v29 = vpop.f32.mrb[23].mxu1  ;;  %v2562_v20 = vmax.f32 %v2409_v63, 0.0  ;;  %v9116_v63 = vld [vmem:[#allocation7 + $0xe74] ss:$24 sps:$4 sm:$0xff]  }
 0x348   :  { %v2564_v11 = vmax.f32 %v2471_v24, 0.0  ;;  %v9071_v29 = vld [vmem:[#allocation7 + $0xcfc] ss:$24 sps:$4 sm:$0xff]  }
 0x349   :  { %v10112_v32 = vpack.c.bf16 %v2563_v28, %v2557_v26  ;;  %v9060_v26 = vld [vmem:[#allocation7 + $0xcc0] ss:$24 sps:$4 sm:$0xff]   ;;  %v9068_v28 = vld [vmem:[#allocation7 + $0xcf4] ss:$24 sps:$4 sm:$0xff]  }
 0x34a   :  { %v10114_v33 = vpack.c.bf16 %v2564_v11, %v2558_v30  ;;  %v9066_v30 = vld [vmem:[#allocation7 + $0xcf0] ss:$24 sps:$4 sm:$0xff]   ;;  %v9074_v11 = vld [vmem:[#allocation7 + $0xd24] ss:$24 sps:$4 sm:$0xff]  }
 0x34c   :  { %v2509_v41 = vpop.f32.mrb[24].mxu1  ;;  %4338 = vmatprep.mubr.bf16.mxu1 %v10114_v33  ;;  %4467 = vmatprep.mubr.bf16.mxu0 %v10114_v33 }
 0x34d   :  { %v2510_v53 = vadd.f32 %v2509_v41, %v2249_v27  ;;  %v2511_v14 = vpop.f32.mrb[25].mxu1  ;;  %4339 = vmatmul.mubr.bf16.vlgmr.msra.gmra.mrb[32].mxu1 %v10112_v32  ;;  %4468 = vmatmul.mubr.bf16.vlgmr.msra.gmra.mrb[8].mxu0 %v10112_v32  ;;  %v9063_v27 = vld [vmem:[#allocation7 + $0xcc8] ss:$24 sps:$4 sm:$0xff]   ;;  %v9081_v41 = vld [vmem:[#allocation7 + $0xd58] ss:$24 sps:$4 sm:$0xff]  }
 0x34e   :  { %v2512_v43 = vadd.f32 %v2511_v14, %v2253_v31  ;;  %4350 = vmatpush1.bf16.msra.mxu1 %v9036_v13  ;;  %4479 = vmatpush1.bf16.msra.mxu0 %v9039_v34  ;;  %v2513_v45 = vpop.f32.mrb[26].mxu1  ;;  %v9069_v31 = vld [vmem:[#allocation7 + $0xcf8] ss:$24 sps:$4 sm:$0xff]   ;;  %v9077_v13 = vld [vmem:[#allocation7 + $0xd2c] ss:$24 sps:$4 sm:$0xff]  }
 0x34f   :  { %v2565_v48 = vmax.f32 %v2510_v53, 0.0  ;;  %v2514_v49 = vpop.f32.mrb[27].mxu1  ;;  %4351 = vmatprep.subr.bf16.mxu1 %v9044_v37  ;;  %4480 = vmatprep.subr.bf16.mxu0 %v9047_v38  ;;  %v9072_v34 = vld [vmem:[#allocation7 + $0xd20] ss:$24 sps:$4 sm:$0xff]   ;;  %v9080_v37 = vld [vmem:[#allocation7 + $0xd54] ss:$24 sps:$4 sm:$0xff]  }
 0x350   :  { %v2566_v52 = vmax.f32 %v2512_v43, 0.0  ;;  %v9083_v38 = vld [vmem:[#allocation7 + $0xd5c] ss:$24 sps:$4 sm:$0xff]   ;;  %v9089_v14 = vld [vmem:[#allocation7 + $0xd8c] ss:$24 sps:$4 sm:$0xff]  }
 0x351   :  { %v10126_v55 = vpack.c.bf16 %v2565_v48, %v2559_v44  ;;  %v9086_v53 = vld [vmem:[#allocation7 + $0xd84] ss:$24 sps:$4 sm:$0xff]   ;;  %v9087_v43 = vld [vmem:[#allocation7 + $0xd88] ss:$24 sps:$4 sm:$0xff]   ;;  %v9092_v45 = vld [vmem:[#allocation7 + $0xdb4] ss:$24 sps:$4 sm:$0xff]  }
 0x352   :  { %v10128_v56 = vpack.c.bf16 %v2566_v52, %v2560_v50  ;;  %4352 = vmatpush1.bf16.msra.mxu1 %v9042_v42  ;;  %4481 = vmatpush1.bf16.msra.mxu0 %v9045_v15  ;;  %v9084_v42 = vld [vmem:[#allocation7 + $0xd80] ss:$24 sps:$4 sm:$0xff]   ;;  %v9095_v15 = vld [vmem:[#allocation7 + $0xdbc] ss:$24 sps:$4 sm:$0xff]   ;;  %v9101_v48 = vld [vmem:[#allocation7 + $0xdec] ss:$24 sps:$4 sm:$0xff]  }
 0x353   :  { %4353 = vmatprep.subr.bf16.mxu1 %v9050_v46  ;;  %4482 = vmatprep.subr.bf16.mxu0 %v9053_v54  ;;  %v9090_v46 = vld [vmem:[#allocation7 + $0xdb0] ss:$24 sps:$4 sm:$0xff]   ;;  %v9096_v49 = vld [vmem:[#allocation7 + $0xde0] ss:$24 sps:$4 sm:$0xff]   ;;  %v9104_v50 = vld [vmem:[#allocation7 + $0xe14] ss:$24 sps:$4 sm:$0xff]  }
 0x354   :  { %v2550_v0 = vpop.f32.mrb[28].mxu1  ;;  %4381 = vmatprep.mubr.bf16.mxu1 %v10128_v56  ;;  %4510 = vmatprep.mubr.bf16.mxu0 %v10128_v56  ;;  %v9093_v44 = vld [vmem:[#allocation7 + $0xdb8] ss:$24 sps:$4 sm:$0xff]   ;;  %v9099_v54 = vld [vmem:[#allocation7 + $0xde8] ss:$24 sps:$4 sm:$0xff]  }
 0x355   :  { %v2551_v1 = vadd.f32 %v2550_v0, %v2257_v47  ;;  %v2552_v3 = vpop.f32.mrb[29].mxu1  ;;  %v9098_v47 = vld [vmem:[#allocation7 + $0xde4] ss:$24 sps:$4 sm:$0xff]   ;;  %v9102_v52 = vld [vmem:[#allocation7 + $0xe10] ss:$24 sps:$4 sm:$0xff]  }
 0x356   :  { %v2553_v8 = vadd.f32 %v2552_v3, %v2261_v51  ;;  %4354 = vmatpush1.bf16.msra.mxu1 %v9048_v57  ;;  %4483 = vmatpush1.bf16.msra.mxu0 %v9051_v58  ;;  %v2554_v9 = vpop.f32.mrb[30].mxu1  ;;  %v9107_v51 = vld [vmem:[#allocation7 + $0xe1c] ss:$24 sps:$4 sm:$0xff]   ;;  %v9105_v57 = vld [vmem:[#allocation7 + $0xe18] ss:$24 sps:$4 sm:$0xff]  }
 0x357   :  { %v2567_v17 = vmax.f32 %v2551_v1, 0.0  ;;  %v2555_v19 = vpop.f32.mrb[31].mxu1  ;;  %4355 = vmatprep.subr.bf16.mxu1 %v9056_v60  ;;  %4484 = vmatprep.subr.bf16.mxu0 %v9059_v61  ;;  %v9110_v58 = vld [vmem:[#allocation7 + $0xe44] ss:$24 sps:$4 sm:$0xff]   ;;  %v9108_v60 = vld [vmem:[#allocation7 + $0xe40] ss:$24 sps:$4 sm:$0xff]  }
 0x358   :  { %v2568_v21 = vmax.f32 %v2553_v8, 0.0  ;;  %v9111_v61 = vld [vmem:[#allocation7 + $0xe48] ss:$24 sps:$4 sm:$0xff]   ;;  %v9119_v0 = vld [vmem:[#allocation7 + $0xe7c] ss:$24 sps:$4 sm:$0xff]  }
 0x359   :  { %v10133_v24 = vpack.c.bf16 %v2567_v17, %v2561_v12  ;;  %v9114_v1 = vld [vmem:[#allocation7 + $0xe70] ss:$24 sps:$4 sm:$0xff]   ;;  %v9125_v8 = vld [vmem:[#allocation7 + $0xeac] ss:$24 sps:$4 sm:$0xff]   ;;  %v9120_v9 = vld [vmem:[#allocation7 + $0xea0] ss:$24 sps:$4 sm:$0xff]  }
 0x35a   :  { %v10135_v25 = vpack.c.bf16 %v2568_v21, %v2562_v20  ;;  %4356 = vmatpush1.bf16.msra.mxu1 %v9054_v7  ;;  %4485 = vmatpush1.bf16.msra.mxu0 %v9057_v10  ;;  %v9117_v3 = vld [vmem:[#allocation7 + $0xe78] ss:$24 sps:$4 sm:$0xff]   ;;  %v9122_v7 = vld [vmem:[#allocation7 + $0xea4] ss:$24 sps:$4 sm:$0xff]   ;;  %v9123_v10 = vld [vmem:[#allocation7 + $0xea8] ss:$24 sps:$4 sm:$0xff]  }
 0x35b   :  { %4357 = vmatprep.subr.bf16.mxu1 %v9062_v5  ;;  %4486 = vmatprep.subr.bf16.mxu0 %v9065_v6  ;;  %v9128_v5 = vld [vmem:[#allocation7 + $0xed4] ss:$24 sps:$4 sm:$0xff]   ;;  %v9126_v17 = vld [vmem:[#allocation7 + $0xed0] ss:$24 sps:$4 sm:$0xff]   ;;  %v9134_v6 = vld [vmem:[#allocation7 + $0xf04] ss:$24 sps:$4 sm:$0xff]  }
 0x35c   :  { %v9131_v12 = vld [vmem:[#allocation7 + $0xedc] ss:$24 sps:$4 sm:$0xff]   ;;  %v9129_v19 = vld [vmem:[#allocation7 + $0xed8] ss:$24 sps:$4 sm:$0xff]   ;;  %v9137_v20 = vld [vmem:[#allocation7 + $0xf0c] ss:$24 sps:$4 sm:$0xff]  }
 0x35d   :  { %v9132_v21 = vld [vmem:[#allocation7 + $0xf00] ss:$24 sps:$4 sm:$0xff]  }
 0x35e   :  { %4358 = vmatpush1.bf16.msra.mxu1 %v9060_v26  ;;  %4487 = vmatpush1.bf16.msra.mxu0 %v9063_v27  ;;  %v9135_v26 = vld [vmem:[#allocation7 + $0xf08] ss:$24 sps:$4 sm:$0xff]   ;;  %v9140_v27 = vld [vmem:[#allocation7 + $0xf34] ss:$24 sps:$4 sm:$0xff]  }
 0x35f   :  { %4359 = vmatprep.subr.bf16.mxu1 %v9068_v28  ;;  %4488 = vmatprep.subr.bf16.mxu0 %v9071_v29  ;;  %v9143_v28 = vld [vmem:[#allocation7 + $0xf3c] ss:$24 sps:$4 sm:$0xff]   ;;  %v9138_v29 = vld [vmem:[#allocation7 + $0xf30] ss:$24 sps:$4 sm:$0xff]  }
 0x362   :  { %4360 = vmatpush1.bf16.msra.mxu1 %v9066_v30  ;;  %4489 = vmatpush1.bf16.msra.mxu0 %v9069_v31  ;;  %v9141_v30 = vld [vmem:[#allocation7 + $0xf38] ss:$24 sps:$4 sm:$0xff]   ;;  %v9146_v31 = vld [vmem:[#allocation7 + $0xf64] ss:$24 sps:$4 sm:$0xff]  }
 0x363   :  { %4361 = vmatprep.subr.bf16.mxu1 %v9074_v11  ;;  %4490 = vmatprep.subr.bf16.mxu0 %v9077_v13  ;;  %v9149_v11 = vld [vmem:[#allocation7 + $0xf6c] ss:$24 sps:$4 sm:$0xff]   ;;  %v9144_v13 = vld [vmem:[#allocation7 + $0xf60] ss:$24 sps:$4 sm:$0xff]  }
 0x366   :  { %4362 = vmatpush1.bf16.msra.mxu1 %v9072_v34  ;;  %4491 = vmatpush1.bf16.msra.mxu0 %v9075_v35  ;;  %v9147_v34 = vld [vmem:[#allocation7 + $0xf68] ss:$24 sps:$4 sm:$0xff]   ;;  %v9152_v35 = vld [vmem:[#allocation7 + $0xf94] ss:$24 sps:$4 sm:$0xff]  }
 0x367   :  { %4363 = vmatprep.subr.bf16.mxu1 %v9080_v37  ;;  %4492 = vmatprep.subr.bf16.mxu0 %v9083_v38  ;;  %v9155_v37 = vld [vmem:[#allocation7 + $0xf9c] ss:$24 sps:$4 sm:$0xff]   ;;  %v9150_v38 = vld [vmem:[#allocation7 + $0xf90] ss:$24 sps:$4 sm:$0xff]  }
 0x36a   :  { %4364 = vmatpush1.bf16.msra.mxu1 %v9078_v39  ;;  %4493 = vmatpush1.bf16.msra.mxu0 %v9081_v41  ;;  %v9153_v39 = vld [vmem:[#allocation7 + $0xf98] ss:$24 sps:$4 sm:$0xff]   ;;  %v9158_v41 = vld [vmem:[#allocation7 + $0xfc4] ss:$24 sps:$4 sm:$0xff]  }
 0x36b   :  { %4365 = vmatprep.subr.bf16.mxu1 %v9086_v53  ;;  %4494 = vmatprep.subr.bf16.mxu0 %v9089_v14  ;;  %v9161_v53 = vld [vmem:[#allocation7 + $0xfcc] ss:$24 sps:$4 sm:$0xff]   ;;  %v9156_v14 = vld [vmem:[#allocation7 + $0xfc0] ss:$24 sps:$4 sm:$0xff]  }
 0x36e   :  { %4366 = vmatpush1.bf16.msra.mxu1 %v9084_v42  ;;  %4495 = vmatpush1.bf16.msra.mxu0 %v9087_v43  ;;  %v9159_v42 = vld [vmem:[#allocation7 + $0xfc8] ss:$24 sps:$4 sm:$0xff]   ;;  %v9164_v43 = vld [vmem:[#allocation7 + $0xff4] ss:$24 sps:$4 sm:$0xff]  }
 0x36f   :  { %4367 = vmatprep.subr.bf16.mxu1 %v9092_v45  ;;  %4496 = vmatprep.subr.bf16.mxu0 %v9095_v15  ;;  %v9167_v45 = vld [vmem:[#allocation7 + $0xffc] ss:$24 sps:$4 sm:$0xff]   ;;  %v9162_v15 = vld [vmem:[#allocation7 + $0xff0] ss:$24 sps:$4 sm:$0xff]  }
 0x372   :  { %4368 = vmatpush1.bf16.msra.mxu1 %v9090_v46  ;;  %4497 = vmatpush1.bf16.msra.mxu0 %v9093_v44  ;;  %v9165_v46 = vld [vmem:[#allocation7 + $0xff8] ss:$24 sps:$4 sm:$0xff]   ;;  %v9170_v44 = vld [vmem:[#allocation7 + $0x1024] ss:$24 sps:$4 sm:$0xff]  }
 0x373   :  { %4369 = vmatprep.subr.bf16.mxu1 %v9098_v47  ;;  %4498 = vmatprep.subr.bf16.mxu0 %v9101_v48  ;;  %v9173_v47 = vld [vmem:[#allocation7 + $0x102c] ss:$24 sps:$4 sm:$0xff]   ;;  %v9168_v48 = vld [vmem:[#allocation7 + $0x1020] ss:$24 sps:$4 sm:$0xff]  }
 0x376   :  { %4370 = vmatpush1.bf16.msra.mxu1 %v9096_v49  ;;  %4499 = vmatpush1.bf16.msra.mxu0 %v9099_v54  ;;  %v9171_v49 = vld [vmem:[#allocation7 + $0x1028] ss:$24 sps:$4 sm:$0xff]   ;;  %v9176_v54 = vld [vmem:[#allocation7 + $0x1054] ss:$24 sps:$4 sm:$0xff]  }
 0x377   :  { %4371 = vmatprep.subr.bf16.mxu1 %v9104_v50  ;;  %4500 = vmatprep.subr.bf16.mxu0 %v9107_v51  ;;  %v9179_v50 = vld [vmem:[#allocation7 + $0x105c] ss:$24 sps:$4 sm:$0xff]   ;;  %v9174_v51 = vld [vmem:[#allocation7 + $0x1050] ss:$24 sps:$4 sm:$0xff]  }
 0x37a   :  { %4372 = vmatpush1.bf16.msra.mxu1 %v9102_v52  ;;  %4501 = vmatpush1.bf16.msra.mxu0 %v9105_v57  ;;  %v9177_v52 = vld [vmem:[#allocation7 + $0x1058] ss:$24 sps:$4 sm:$0xff]   ;;  %v9182_v57 = vld [vmem:[#allocation7 + $0x1084] ss:$24 sps:$4 sm:$0xff]  }
 0x37b   :  { %4373 = vmatprep.subr.bf16.mxu1 %v9110_v58  ;;  %4502 = vmatprep.subr.bf16.mxu0 %v9113_v59  ;;  %v9185_v58 = vld [vmem:[#allocation7 + $0x108c] ss:$24 sps:$4 sm:$0xff]   ;;  %v9180_v59 = vld [vmem:[#allocation7 + $0x1080] ss:$24 sps:$4 sm:$0xff]  }
 0x37e   :  { %4374 = vmatpush1.bf16.msra.mxu1 %v9108_v60  ;;  %4503 = vmatpush1.bf16.msra.mxu0 %v9111_v61  ;;  %v9183_v60 = vld [vmem:[#allocation7 + $0x1088] ss:$24 sps:$4 sm:$0xff]   ;;  %v9188_v61 = vld [vmem:[#allocation7 + $0x10b4] ss:$24 sps:$4 sm:$0xff]  }
 0x37f   :  { %4375 = vmatprep.subr.bf16.mxu1 %v9116_v63  ;;  %4504 = vmatprep.subr.bf16.mxu0 %v9119_v0  ;;  %v9191_v63 = vld [vmem:[#allocation7 + $0x10bc] ss:$24 sps:$4 sm:$0xff]   ;;  %v9186_v0 = vld [vmem:[#allocation7 + $0x10b0] ss:$24 sps:$4 sm:$0xff]  }
 0x382   :  { %4376 = vmatpush1.bf16.msra.mxu1 %v9114_v1  ;;  %4505 = vmatpush1.bf16.msra.mxu0 %v9117_v3  ;;  %v9189_v1 = vld [vmem:[#allocation7 + $0x10b8] ss:$24 sps:$4 sm:$0xff]   ;;  %v9194_v3 = vld [vmem:[#allocation7 + $0x10e4] ss:$24 sps:$4 sm:$0xff]  }
 0x383   :  { %4377 = vmatprep.subr.bf16.mxu1 %v9122_v7  ;;  %4506 = vmatprep.subr.bf16.mxu0 %v9125_v8  ;;  %v9197_v7 = vld [vmem:[#allocation7 + $0x10ec] ss:$24 sps:$4 sm:$0xff]   ;;  %v9192_v8 = vld [vmem:[#allocation7 + $0x10e0] ss:$24 sps:$4 sm:$0xff]  }
 0x386   :  { %4378 = vmatpush1.bf16.msra.mxu1 %v9120_v9  ;;  %4507 = vmatpush1.bf16.msra.mxu0 %v9123_v10  ;;  %v9195_v9 = vld [vmem:[#allocation7 + $0x10e8] ss:$24 sps:$4 sm:$0xff]   ;;  %v9200_v10 = vld [vmem:[#allocation7 + $0x1114] ss:$24 sps:$4 sm:$0xff]  }
 0x387   :  { %4379 = vmatprep.subr.bf16.mxu1 %v9128_v5  ;;  %4508 = vmatprep.subr.bf16.mxu0 %v9131_v12  ;;  %v9203_v5 = vld [vmem:[#allocation7 + $0x111c] ss:$24 sps:$4 sm:$0xff]   ;;  %v9198_v12 = vld [vmem:[#allocation7 + $0x1110] ss:$24 sps:$4 sm:$0xff]  }
 0x38a   :  { %4380 = vmatpush1.bf16.msra.mxu1 %v9126_v17  ;;  %4509 = vmatpush1.bf16.msra.mxu0 %v9129_v19  ;;  %v9201_v17 = vld [vmem:[#allocation7 + $0x1118] ss:$24 sps:$4 sm:$0xff]   ;;  %v9206_v19 = vld [vmem:[#allocation7 + $0x1144] ss:$24 sps:$4 sm:$0xff]  }
 0x38b   :  { %4392 = vmatprep.subr.bf16.mxu1 %v9134_v6  ;;  %4521 = vmatprep.subr.bf16.mxu0 %v9137_v20  ;;  %v9209_v6 = vld [vmem:[#allocation7 + $0x114c] ss:$24 sps:$4 sm:$0xff]   ;;  %v9204_v20 = vld [vmem:[#allocation7 + $0x1140] ss:$24 sps:$4 sm:$0xff]  }
 0x38d   :  { %4382 = vmatmul.mubr.bf16.vlgmr.msra.gmra.mrb[32].mxu1 %v10126_v55  ;;  %4511 = vmatmul.mubr.bf16.vlgmr.msra.gmra.mrb[8].mxu0 %v10126_v55 }
 0x38e   :  { %4393 = vmatpush1.bf16.msra.mxu1 %v9132_v21  ;;  %4424 = vmatprep.mubr.bf16.mxu1 %v10135_v25  ;;  %v9207_v21 = vld [vmem:[#allocation7 + $0x1148] ss:$24 sps:$4 sm:$0xff]  }
 0x38f   :  { %4522 = vmatpush1.bf16.msra.mxu0 %v9135_v26  ;;  %4553 = vmatprep.mubr.bf16.mxu0 %v10135_v25  ;;  %v9212_v26 = vld [vmem:[#allocation7 + $0x1174] ss:$24 sps:$4 sm:$0xff]  }
 0x390   :  { %4394 = vmatprep.subr.bf16.mxu1 %v9140_v27  ;;  %4523 = vmatprep.subr.bf16.mxu0 %v9143_v28  ;;  %v9215_v27 = vld [vmem:[#allocation7 + $0x117c] ss:$24 sps:$4 sm:$0xff]   ;;  %v9210_v28 = vld [vmem:[#allocation7 + $0x1170] ss:$24 sps:$4 sm:$0xff]  }
 0x392   :  { %4395 = vmatpush1.bf16.msra.mxu1 %v9138_v29  ;;  %v9213_v29 = vld [vmem:[#allocation7 + $0x1178] ss:$24 sps:$4 sm:$0xff]  }
 0x393   :  { %4524 = vmatpush1.bf16.msra.mxu0 %v9141_v30  ;;  %4396 = vmatprep.subr.bf16.mxu1 %v9146_v31  ;;  %v9218_v30 = vld [vmem:[#allocation7 + $0x11a4] ss:$24 sps:$4 sm:$0xff]  }
 0x394   :  { %4525 = vmatprep.subr.bf16.mxu0 %v9149_v11  ;;  %v9221_v31 = vld [vmem:[#allocation7 + $0x11ac] ss:$24 sps:$4 sm:$0xff]   ;;  %v9216_v11 = vld [vmem:[#allocation7 + $0x11a0] ss:$24 sps:$4 sm:$0xff]  }
 0x396   :  { %4397 = vmatpush1.bf16.msra.mxu1 %v9144_v13  ;;  %v9219_v13 = vld [vmem:[#allocation7 + $0x11a8] ss:$24 sps:$4 sm:$0xff]  }
 0x397   :  { %4526 = vmatpush1.bf16.msra.mxu0 %v9147_v34  ;;  %4398 = vmatprep.subr.bf16.mxu1 %v9152_v35  ;;  %v9224_v34 = vld [vmem:[#allocation7 + $0x11d4] ss:$24 sps:$4 sm:$0xff]  }
 0x398   :  { %4527 = vmatprep.subr.bf16.mxu0 %v9155_v37  ;;  %v9227_v35 = vld [vmem:[#allocation7 + $0x11dc] ss:$24 sps:$4 sm:$0xff]   ;;  %v9222_v37 = vld [vmem:[#allocation7 + $0x11d0] ss:$24 sps:$4 sm:$0xff]  }
 0x39a   :  { %4399 = vmatpush1.bf16.msra.mxu1 %v9150_v38  ;;  %v9225_v38 = vld [vmem:[#allocation7 + $0x11d8] ss:$24 sps:$4 sm:$0xff]  }
 0x39b   :  { %4528 = vmatpush1.bf16.msra.mxu0 %v9153_v39  ;;  %4400 = vmatprep.subr.bf16.mxu1 %v9158_v41  ;;  %v9230_v39 = vld [vmem:[#allocation7 + $0x914] ss:$24 sps:$4 sm:$0xff]   ;;  %v9228_v41 = vld [vmem:[#allocation7 + $0x910] ss:$24 sps:$4 sm:$0xff]  }
 0x39c   :  { %4529 = vmatprep.subr.bf16.mxu0 %v9161_v53  ;;  %v9233_v53 = vld [vmem:[#allocation7 + $0x944] ss:$24 sps:$4 sm:$0xff]  }
 0x39e   :  { %4401 = vmatpush1.bf16.msra.mxu1 %v9156_v14  ;;  %v9231_v14 = vld [vmem:[#allocation7 + $0x940] ss:$24 sps:$4 sm:$0xff]  }
 0x39f   :  { %4530 = vmatpush1.bf16.msra.mxu0 %v9159_v42  ;;  %4402 = vmatprep.subr.bf16.mxu1 %v9164_v43  ;;  %v9236_v42 = vld [vmem:[#allocation7 + $0x974] ss:$24 sps:$4 sm:$0xff]   ;;  %v9234_v43 = vld [vmem:[#allocation7 + $0x970] ss:$24 sps:$4 sm:$0xff]  }
 0x3a0   :  { %4531 = vmatprep.subr.bf16.mxu0 %v9167_v45  ;;  %v9239_v45 = vld [vmem:[#allocation7 + $0x9a4] ss:$24 sps:$4 sm:$0xff]  }
 0x3a2   :  { %4403 = vmatpush1.bf16.msra.mxu1 %v9162_v15  ;;  %v9237_v15 = vld [vmem:[#allocation7 + $0x9a0] ss:$24 sps:$4 sm:$0xff]  }
 0x3a3   :  { %4532 = vmatpush1.bf16.msra.mxu0 %v9165_v46  ;;  %4404 = vmatprep.subr.bf16.mxu1 %v9170_v44  ;;  %v9242_v46 = vld [vmem:[#allocation7 + $0x9d4] ss:$24 sps:$4 sm:$0xff]   ;;  %v9240_v44 = vld [vmem:[#allocation7 + $0x9d0] ss:$24 sps:$4 sm:$0xff]  }
 0x3a4   :  { %4533 = vmatprep.subr.bf16.mxu0 %v9173_v47  ;;  %v9245_v47 = vld [vmem:[#allocation7 + $0xa04] ss:$24 sps:$4 sm:$0xff]  }
 0x3a6   :  { %4405 = vmatpush1.bf16.msra.mxu1 %v9168_v48  ;;  %v9243_v48 = vld [vmem:[#allocation7 + $0xa00] ss:$24 sps:$4 sm:$0xff]  }
 0x3a7   :  { %4534 = vmatpush1.bf16.msra.mxu0 %v9171_v49  ;;  %4406 = vmatprep.subr.bf16.mxu1 %v9176_v54  ;;  %v9246_v49 = vld [vmem:[#allocation7 + $0xa30] ss:$24 sps:$4 sm:$0xff]   ;;  %v9251_v54 = vld [vmem:[#allocation7 + $0xa64] ss:$24 sps:$4 sm:$0xff]  }
 0x3a8   :  { %4535 = vmatprep.subr.bf16.mxu0 %v9179_v50  ;;  %v9249_v50 = vld [vmem:[#allocation7 + $0xa60] ss:$24 sps:$4 sm:$0xff]  }
 0x3aa   :  { %4407 = vmatpush1.bf16.msra.mxu1 %v9174_v51  ;;  %v9254_v51 = vld [vmem:[#allocation7 + $0xa94] ss:$24 sps:$4 sm:$0xff]  }
 0x3ab   :  { %4536 = vmatpush1.bf16.msra.mxu0 %v9177_v52  ;;  %4408 = vmatprep.subr.bf16.mxu1 %v9182_v57  ;;  %v9252_v52 = vld [vmem:[#allocation7 + $0xa90] ss:$24 sps:$4 sm:$0xff]   ;;  %v9257_v57 = vld [vmem:[#allocation7 + $0xac4] ss:$24 sps:$4 sm:$0xff]  }
 0x3ac   :  { %4537 = vmatprep.subr.bf16.mxu0 %v9185_v58  ;;  %v9255_v58 = vld [vmem:[#allocation7 + $0xac0] ss:$24 sps:$4 sm:$0xff]  }
 0x3ae   :  { %4409 = vmatpush1.bf16.msra.mxu1 %v9180_v59  ;;  %v9260_v59 = vld [vmem:[#allocation7 + $0xaf4] ss:$24 sps:$4 sm:$0xff]  }
 0x3af   :  { %4538 = vmatpush1.bf16.msra.mxu0 %v9183_v60  ;;  %4410 = vmatprep.subr.bf16.mxu1 %v9188_v61  ;;  %v9258_v60 = vld [vmem:[#allocation7 + $0xaf0] ss:$24 sps:$4 sm:$0xff]   ;;  %v9263_v61 = vld [vmem:[#allocation7 + $0xb24] ss:$24 sps:$4 sm:$0xff]  }
 0x3b0   :  { %4539 = vmatprep.subr.bf16.mxu0 %v9191_v63  ;;  %v9261_v63 = vld [vmem:[#allocation7 + $0xb20] ss:$24 sps:$4 sm:$0xff]  }
 0x3b2   :  { %4411 = vmatpush1.bf16.msra.mxu1 %v9186_v0  ;;  %v9266_v0 = vld [vmem:[#allocation7 + $0xb54] ss:$24 sps:$4 sm:$0xff]  }
 0x3b3   :  { %4540 = vmatpush1.bf16.msra.mxu0 %v9189_v1  ;;  %4412 = vmatprep.subr.bf16.mxu1 %v9194_v3  ;;  %v9264_v1 = vld [vmem:[#allocation7 + $0xb50] ss:$24 sps:$4 sm:$0xff]   ;;  %v9269_v3 = vld [vmem:[#allocation7 + $0xb84] ss:$24 sps:$4 sm:$0xff]  }
 0x3b4   :  { %4541 = vmatprep.subr.bf16.mxu0 %v9197_v7  ;;  %v9267_v7 = vld [vmem:[#allocation7 + $0xb80] ss:$24 sps:$4 sm:$0xff]  }
 0x3b6   :  { %4413 = vmatpush1.bf16.msra.mxu1 %v9192_v8  ;;  %v9272_v8 = vld [vmem:[#allocation7 + $0xbb4] ss:$24 sps:$4 sm:$0xff]  }
 0x3b7   :  { %4542 = vmatpush1.bf16.msra.mxu0 %v9195_v9  ;;  %4414 = vmatprep.subr.bf16.mxu1 %v9200_v10  ;;  %v9270_v9 = vld [vmem:[#allocation7 + $0xbb0] ss:$24 sps:$4 sm:$0xff]   ;;  %v9275_v10 = vld [vmem:[#allocation7 + $0xbe4] ss:$24 sps:$4 sm:$0xff]  }
 0x3b8   :  { %4543 = vmatprep.subr.bf16.mxu0 %v9203_v5  ;;  %v9273_v5 = vld [vmem:[#allocation7 + $0xbe0] ss:$24 sps:$4 sm:$0xff]  }
 0x3ba   :  { %4415 = vmatpush1.bf16.msra.mxu1 %v9198_v12  ;;  %v9278_v12 = vld [vmem:[#allocation7 + $0xc14] ss:$24 sps:$4 sm:$0xff]  }
 0x3bb   :  { %4544 = vmatpush1.bf16.msra.mxu0 %v9201_v17  ;;  %4416 = vmatprep.subr.bf16.mxu1 %v9206_v19  ;;  %v9276_v17 = vld [vmem:[#allocation7 + $0xc10] ss:$24 sps:$4 sm:$0xff]   ;;  %v9281_v19 = vld [vmem:[#allocation7 + $0xc44] ss:$24 sps:$4 sm:$0xff]  }
 0x3bc   :  { %4545 = vmatprep.subr.bf16.mxu0 %v9209_v6  ;;  %v9279_v6 = vld [vmem:[#allocation7 + $0xc40] ss:$24 sps:$4 sm:$0xff]  }
 0x3be   :  { %4417 = vmatpush1.bf16.msra.mxu1 %v9204_v20  ;;  %v9284_v20 = vld [vmem:[#allocation7 + $0xc74] ss:$24 sps:$4 sm:$0xff]  }
 0x3bf   :  { %4546 = vmatpush1.bf16.msra.mxu0 %v9207_v21  ;;  %4418 = vmatprep.subr.bf16.mxu1 %v9212_v26  ;;  %v9282_v21 = vld [vmem:[#allocation7 + $0xc70] ss:$24 sps:$4 sm:$0xff]   ;;  %v9287_v26 = vld [vmem:[#allocation7 + $0xca4] ss:$24 sps:$4 sm:$0xff]  }
 0x3c0   :  { %4547 = vmatprep.subr.bf16.mxu0 %v9215_v27  ;;  %v9285_v27 = vld [vmem:[#allocation7 + $0xca0] ss:$24 sps:$4 sm:$0xff]  }
 0x3c2   :  { %4419 = vmatpush1.bf16.msra.mxu1 %v9210_v28  ;;  %v9290_v28 = vld [vmem:[#allocation7 + $0xcd4] ss:$24 sps:$4 sm:$0xff]  }
 0x3c3   :  { %4548 = vmatpush1.bf16.msra.mxu0 %v9213_v29  ;;  %4420 = vmatprep.subr.bf16.mxu1 %v9218_v30  ;;  %v9288_v29 = vld [vmem:[#allocation7 + $0xcd0] ss:$24 sps:$4 sm:$0xff]   ;;  %v9293_v30 = vld [vmem:[#allocation7 + $0xd04] ss:$24 sps:$4 sm:$0xff]  }
 0x3c4   :  { %4549 = vmatprep.subr.bf16.mxu0 %v9221_v31  ;;  %v9296_v31 = vld [vmem:[#allocation7 + $0xd34] ss:$24 sps:$4 sm:$0xff]  }
 0x3c6   :  { %4421 = vmatpush1.bf16.msra.mxu1 %v9216_v11  ;;  %v9299_v11 = vld [vmem:[#allocation7 + $0xd64] ss:$24 sps:$4 sm:$0xff]  }
 0x3c7   :  { %4550 = vmatpush1.bf16.msra.mxu0 %v9219_v13  ;;  %4422 = vmatprep.subr.bf16.mxu1 %v9224_v34  ;;  %v9297_v13 = vld [vmem:[#allocation7 + $0xd60] ss:$24 sps:$4 sm:$0xff]   ;;  %v9302_v34 = vld [vmem:[#allocation7 + $0xd94] ss:$24 sps:$4 sm:$0xff]  }
 0x3c8   :  { %4551 = vmatprep.subr.bf16.mxu0 %v9227_v35  ;;  %v9300_v35 = vld [vmem:[#allocation7 + $0xd90] ss:$24 sps:$4 sm:$0xff]  }
 0x3ca   :  { %4423 = vmatpush1.bf16.msra.mxu1 %v9222_v37  ;;  %v9305_v37 = vld [vmem:[#allocation7 + $0xdc4] ss:$24 sps:$4 sm:$0xff]  }
 0x3cb   :  { %4552 = vmatpush1.bf16.msra.mxu0 %v9225_v38  ;;  %4564 = vmatprep.subr.bf16.mxu1 %v9230_v39  ;;  %v9303_v38 = vld [vmem:[#allocation7 + $0xdc0] ss:$24 sps:$4 sm:$0xff]   ;;  %v9308_v39 = vld [vmem:[#allocation7 + $0xdf4] ss:$24 sps:$4 sm:$0xff]  }
 0x3cd   :  { %4425 = vmatmul.mubr.bf16.vlgmr.msra.gmra.mrb[32].mxu1 %v10133_v24 }
 0x3ce   :  { %4554 = vmatmul.mubr.bf16.vlgmr.msra.gmra.mrb[8].mxu0 %v10133_v24  ;;  %4565 = vmatpush1.bf16.msra.mxu1 %v9228_v41  ;;  %v9306_v41 = vld [vmem:[#allocation7 + $0xdf0] ss:$24 sps:$4 sm:$0xff]  }
 0x3cf   :  { %4596 = vmatprep.mubr.bf16.mxu1 %v10114_v33  ;;  %4566 = vmatprep.subr.bf16.mxu1 %v9233_v53  ;;  %v9248_v33 = vld [vmem:[#allocation7 + $0xa34] ss:$24 sps:$4 sm:$0xff]   ;;  %v9311_v53 = vld [vmem:[#allocation7 + $0xe24] ss:$24 sps:$4 sm:$0xff]  }
 0x3d0   :  { %4827 = vmatprep.mubr.bf16.mxu0 %v9940_v18 }
 0x3d2   :  { %4567 = vmatpush1.bf16.msra.mxu1 %v9231_v14  ;;  %v9309_v14 = vld [vmem:[#allocation7 + $0xe20] ss:$24 sps:$4 sm:$0xff]  }
 0x3d3   :  { %4568 = vmatprep.subr.bf16.mxu1 %v9236_v42  ;;  %v9314_v42 = vld [vmem:[#allocation7 + $0xe54] ss:$24 sps:$4 sm:$0xff]  }
 0x3d6   :  { %4569 = vmatpush1.bf16.msra.mxu1 %v9234_v43  ;;  %v9312_v43 = vld [vmem:[#allocation7 + $0xe50] ss:$24 sps:$4 sm:$0xff]  }
 0x3d7   :  { %4570 = vmatprep.subr.bf16.mxu1 %v9239_v45  ;;  %v9317_v45 = vld [vmem:[#allocation7 + $0xe84] ss:$24 sps:$4 sm:$0xff]  }
 0x3da   :  { %4571 = vmatpush1.bf16.msra.mxu1 %v9237_v15  ;;  %v9315_v15 = vld [vmem:[#allocation7 + $0xe80] ss:$24 sps:$4 sm:$0xff]  }
 0x3db   :  { %4572 = vmatprep.subr.bf16.mxu1 %v9242_v46  ;;  %v9320_v46 = vld [vmem:[#allocation7 + $0xeb4] ss:$24 sps:$4 sm:$0xff]  }
 0x3de   :  { %4573 = vmatpush1.bf16.msra.mxu1 %v9240_v44  ;;  %v9318_v44 = vld [vmem:[#allocation7 + $0xeb0] ss:$24 sps:$4 sm:$0xff]  }
 0x3df   :  { %4574 = vmatprep.subr.bf16.mxu1 %v9245_v47  ;;  %v9323_v47 = vld [vmem:[#allocation7 + $0xee4] ss:$24 sps:$4 sm:$0xff]  }
 0x3e2   :  { %4575 = vmatpush1.bf16.msra.mxu1 %v9243_v48  ;;  %v9321_v48 = vld [vmem:[#allocation7 + $0xee0] ss:$24 sps:$4 sm:$0xff]  }
 0x3e3   :  { %4576 = vmatprep.subr.bf16.mxu1 %v9248_v33  ;;  %v9326_v33 = vld [vmem:[#allocation7 + $0xf14] ss:$24 sps:$4 sm:$0xff]  }
 0x3e6   :  { %4577 = vmatpush1.bf16.msra.mxu1 %v9246_v49  ;;  %v9324_v49 = vld [vmem:[#allocation7 + $0xf10] ss:$24 sps:$4 sm:$0xff]  }
 0x3e7   :  { %4578 = vmatprep.subr.bf16.mxu1 %v9251_v54  ;;  %v9329_v54 = vld [vmem:[#allocation7 + $0xf44] ss:$24 sps:$4 sm:$0xff]  }
 0x3ea   :  { %4579 = vmatpush1.bf16.msra.mxu1 %v9249_v50  ;;  %v9327_v50 = vld [vmem:[#allocation7 + $0xf40] ss:$24 sps:$4 sm:$0xff]  }
 0x3eb   :  { %4580 = vmatprep.subr.bf16.mxu1 %v9254_v51  ;;  %v9332_v51 = vld [vmem:[#allocation7 + $0xf74] ss:$24 sps:$4 sm:$0xff]  }
 0x3ee   :  { %4581 = vmatpush1.bf16.msra.mxu1 %v9252_v52  ;;  %v9330_v52 = vld [vmem:[#allocation7 + $0xf70] ss:$24 sps:$4 sm:$0xff]  }
 0x3ef   :  { %4582 = vmatprep.subr.bf16.mxu1 %v9257_v57  ;;  %v9335_v57 = vld [vmem:[#allocation7 + $0xfa4] ss:$24 sps:$4 sm:$0xff]  }
 0x3f2   :  { %4583 = vmatpush1.bf16.msra.mxu1 %v9255_v58  ;;  %v9333_v58 = vld [vmem:[#allocation7 + $0xfa0] ss:$24 sps:$4 sm:$0xff]  }
 0x3f3   :  { %4584 = vmatprep.subr.bf16.mxu1 %v9260_v59  ;;  %v9338_v59 = vld [vmem:[#allocation7 + $0xfd4] ss:$24 sps:$4 sm:$0xff]  }
 0x3f6   :  { %4585 = vmatpush1.bf16.msra.mxu1 %v9258_v60  ;;  %v9336_v60 = vld [vmem:[#allocation7 + $0xfd0] ss:$24 sps:$4 sm:$0xff]  }
 0x3f7   :  { %4586 = vmatprep.subr.bf16.mxu1 %v9263_v61  ;;  %v9341_v61 = vld [vmem:[#allocation7 + $0x1004] ss:$24 sps:$4 sm:$0xff]  }
 0x3fa   :  { %4587 = vmatpush1.bf16.msra.mxu1 %v9261_v63  ;;  %v9344_v63 = vld [vmem:[#allocation7 + $0x1034] ss:$24 sps:$4 sm:$0xff]  }
 0x3fb   :  { %4588 = vmatprep.subr.bf16.mxu1 %v9266_v0  ;;  %v9347_v0 = vld [vmem:[#allocation7 + $0x1064] ss:$24 sps:$4 sm:$0xff]  }
 0x3fe   :  { %4589 = vmatpush1.bf16.msra.mxu1 %v9264_v1  ;;  %v9345_v1 = vld [vmem:[#allocation7 + $0x1060] ss:$24 sps:$4 sm:$0xff]  }
 0x3ff   :  { %4590 = vmatprep.subr.bf16.mxu1 %v9269_v3  ;;  %v9350_v3 = vld [vmem:[#allocation7 + $0x1094] ss:$24 sps:$4 sm:$0xff]  }
 0x402   :  { %4591 = vmatpush1.bf16.msra.mxu1 %v9267_v7  ;;  %v9348_v7 = vld [vmem:[#allocation7 + $0x1090] ss:$24 sps:$4 sm:$0xff]  }
 0x403   :  { %4592 = vmatprep.subr.bf16.mxu1 %v9272_v8  ;;  %v9353_v8 = vld [vmem:[#allocation7 + $0x10c4] ss:$24 sps:$4 sm:$0xff]  }
 0x406   :  { %4593 = vmatpush1.bf16.msra.mxu1 %v9270_v9  ;;  %v9351_v9 = vld [vmem:[#allocation7 + $0x10c0] ss:$24 sps:$4 sm:$0xff]  }
 0x407   :  { %4594 = vmatprep.subr.bf16.mxu1 %v9275_v10  ;;  %v9356_v10 = vld [vmem:[#allocation7 + $0x10f4] ss:$24 sps:$4 sm:$0xff]  }
 0x40a   :  { %4595 = vmatpush1.bf16.msra.mxu1 %v9273_v5  ;;  %v9354_v5 = vld [vmem:[#allocation7 + $0x10f0] ss:$24 sps:$4 sm:$0xff]  }
 0x40b   :  { %4607 = vmatprep.subr.bf16.mxu1 %v9278_v12  ;;  %v9359_v12 = vld [vmem:[#allocation7 + $0x1124] ss:$24 sps:$4 sm:$0xff]  }
 0x40d   :  { %4597 = vmatmul.mubr.bf16.vlgmr.msra.gmra.mrb[36].mxu1 %v10112_v32  ;;  %v9291_v32 = vld [vmem:[#allocation7 + $0xd00] ss:$24 sps:$4 sm:$0xff]  }
 0x40e   :  { %4608 = vmatpush1.bf16.msra.mxu1 %v9276_v17  ;;  %4639 = vmatprep.mubr.bf16.mxu1 %v10128_v56  ;;  %v9294_v56 = vld [vmem:[#allocation7 + $0xd30] ss:$24 sps:$4 sm:$0xff]   ;;  %v9357_v17 = vld [vmem:[#allocation7 + $0x1120] ss:$24 sps:$4 sm:$0xff]  }
 0x40f   :  { %4609 = vmatprep.subr.bf16.mxu1 %v9281_v19  ;;  %v9362_v19 = vld [vmem:[#allocation7 + $0x1154] ss:$24 sps:$4 sm:$0xff]  }
 0x412   :  { %4610 = vmatpush1.bf16.msra.mxu1 %v9279_v6  ;;  %v9360_v6 = vld [vmem:[#allocation7 + $0x1150] ss:$24 sps:$4 sm:$0xff]  }
 0x413   :  { %4611 = vmatprep.subr.bf16.mxu1 %v9284_v20  ;;  %v9365_v20 = vld [vmem:[#allocation7 + $0x1184] ss:$24 sps:$4 sm:$0xff]  }
 0x416   :  { %4612 = vmatpush1.bf16.msra.mxu1 %v9282_v21  ;;  %v9363_v21 = vld [vmem:[#allocation7 + $0x1180] ss:$24 sps:$4 sm:$0xff]  }
 0x417   :  { %4613 = vmatprep.subr.bf16.mxu1 %v9287_v26  ;;  %v9368_v26 = vld [vmem:[#allocation7 + $0x11b4] ss:$24 sps:$4 sm:$0xff]  }
 0x41a   :  { %4614 = vmatpush1.bf16.msra.mxu1 %v9285_v27  ;;  %v9366_v27 = vld [vmem:[#allocation7 + $0x11b0] ss:$24 sps:$4 sm:$0xff]  }
 0x41b   :  { %4615 = vmatprep.subr.bf16.mxu1 %v9290_v28  ;;  %v9371_v28 = vld [vmem:[#allocation7 + $0x11e4] ss:$24 sps:$4 sm:$0xff]  }
 0x41e   :  { %4616 = vmatpush1.bf16.msra.mxu1 %v9288_v29  ;;  %v9369_v29 = vld [vmem:[#allocation7 + $0x11e0] ss:$24 sps:$4 sm:$0xff]  }
 0x41f   :  { %4617 = vmatprep.subr.bf16.mxu1 %v9293_v30 }
 0x422   :  { %4618 = vmatpush1.bf16.msra.mxu1 %v9291_v32 }
 0x423   :  { %4619 = vmatprep.subr.bf16.mxu1 %v9296_v31 }
 0x426   :  { %4620 = vmatpush1.bf16.msra.mxu1 %v9294_v56 }
 0x427   :  { %4621 = vmatprep.subr.bf16.mxu1 %v9299_v11 }
 0x42a   :  { %4622 = vmatpush1.bf16.msra.mxu1 %v9297_v13 }
 0x42b   :  { %4623 = vmatprep.subr.bf16.mxu1 %v9302_v34 }
 0x42e   :  { %4624 = vmatpush1.bf16.msra.mxu1 %v9300_v35 }
 0x42f   :  { %4625 = vmatprep.subr.bf16.mxu1 %v9305_v37 }
 0x432   :  { %4626 = vmatpush1.bf16.msra.mxu1 %v9303_v38 }
 0x433   :  { %4627 = vmatprep.subr.bf16.mxu1 %v9308_v39 }
 0x436   :  { %4628 = vmatpush1.bf16.msra.mxu1 %v9306_v41 }
 0x437   :  { %4629 = vmatprep.subr.bf16.mxu1 %v9311_v53 }
 0x43a   :  { %4630 = vmatpush1.bf16.msra.mxu1 %v9309_v14  ;;  %v9375_v14 = vld [vmem:[#allocation7 + $0x1208] ss:$24 sps:$4 sm:$0xff]  }
 0x43b   :  { %4631 = vmatprep.subr.bf16.mxu1 %v9314_v42  ;;  %v9377_v42 = vld [vmem:[#allocation7 + $0x120c] ss:$24 sps:$4 sm:$0xff]  }
 0x43e   :  { %4632 = vmatpush1.bf16.msra.mxu1 %v9312_v43  ;;  %v9383_v43 = vld [vmem:[#allocation7 + $0x123c] ss:$24 sps:$4 sm:$0xff]  }
 0x43f   :  { %4633 = vmatprep.subr.bf16.mxu1 %v9317_v45  ;;  %v9381_v45 = vld [vmem:[#allocation7 + $0x1238] ss:$24 sps:$4 sm:$0xff]  }
 0x442   :  { %4634 = vmatpush1.bf16.msra.mxu1 %v9315_v15  ;;  %v9389_v15 = vld [vmem:[#allocation7 + $0x126c] ss:$24 sps:$4 sm:$0xff]  }
 0x443   :  { %4635 = vmatprep.subr.bf16.mxu1 %v9320_v46  ;;  %v9387_v46 = vld [vmem:[#allocation7 + $0x1268] ss:$24 sps:$4 sm:$0xff]  }
 0x446   :  { %4636 = vmatpush1.bf16.msra.mxu1 %v9318_v44  ;;  %v9395_v44 = vld [vmem:[#allocation7 + $0x129c] ss:$24 sps:$4 sm:$0xff]  }
 0x447   :  { %4637 = vmatprep.subr.bf16.mxu1 %v9323_v47  ;;  %v9393_v47 = vld [vmem:[#allocation7 + $0x1298] ss:$24 sps:$4 sm:$0xff]  }
 0x44a   :  { %4638 = vmatpush1.bf16.msra.mxu1 %v9321_v48  ;;  %v9401_v48 = vld [vmem:[#allocation7 + $0x12cc] ss:$24 sps:$4 sm:$0xff]  }
 0x44b   :  { %4650 = vmatprep.subr.bf16.mxu1 %v9326_v33  ;;  %v9399_v33 = vld [vmem:[#allocation7 + $0x12c8] ss:$24 sps:$4 sm:$0xff]  }
 0x44d   :  { %4640 = vmatmul.mubr.bf16.vlgmr.msra.gmra.mrb[36].mxu1 %v10126_v55  ;;  %v9339_v55 = vld [vmem:[#allocation7 + $0x1000] ss:$24 sps:$4 sm:$0xff]  }
 0x44e   :  { %4651 = vmatpush1.bf16.msra.mxu1 %v9324_v49  ;;  %4682 = vmatprep.mubr.bf16.mxu1 %v10135_v25  ;;  %v9342_v25 = vld [vmem:[#allocation7 + $0x1030] ss:$24 sps:$4 sm:$0xff]   ;;  %v9407_v49 = vld [vmem:[#allocation7 + $0x12fc] ss:$24 sps:$4 sm:$0xff]  }
 0x44f   :  { %4652 = vmatprep.subr.bf16.mxu1 %v9329_v54  ;;  %v9405_v54 = vld [vmem:[#allocation7 + $0x12f8] ss:$24 sps:$4 sm:$0xff]  }
 0x452   :  { %4653 = vmatpush1.bf16.msra.mxu1 %v9327_v50  ;;  %v9413_v50 = vld [vmem:[#allocation7 + $0x132c] ss:$24 sps:$4 sm:$0xff]  }
 0x453   :  { %4654 = vmatprep.subr.bf16.mxu1 %v9332_v51  ;;  %v9411_v51 = vld [vmem:[#allocation7 + $0x1328] ss:$24 sps:$4 sm:$0xff]  }
 0x456   :  { %4655 = vmatpush1.bf16.msra.mxu1 %v9330_v52  ;;  %v9419_v52 = vld [vmem:[#allocation7 + $0x135c] ss:$24 sps:$4 sm:$0xff]  }
 0x457   :  { %4656 = vmatprep.subr.bf16.mxu1 %v9335_v57  ;;  %v9417_v57 = vld [vmem:[#allocation7 + $0x1358] ss:$24 sps:$4 sm:$0xff]  }
 0x45a   :  { %4657 = vmatpush1.bf16.msra.mxu1 %v9333_v58  ;;  %v9425_v58 = vld [vmem:[#allocation7 + $0x138c] ss:$24 sps:$4 sm:$0xff]  }
 0x45b   :  { %4658 = vmatprep.subr.bf16.mxu1 %v9338_v59  ;;  %v9423_v59 = vld [vmem:[#allocation7 + $0x1388] ss:$24 sps:$4 sm:$0xff]  }
 0x45e   :  { %4659 = vmatpush1.bf16.msra.mxu1 %v9336_v60  ;;  %v9431_v60 = vld [vmem:[#allocation7 + $0x13bc] ss:$24 sps:$4 sm:$0xff]  }
 0x45f   :  { %4660 = vmatprep.subr.bf16.mxu1 %v9341_v61  ;;  %v9429_v61 = vld [vmem:[#allocation7 + $0x13b8] ss:$24 sps:$4 sm:$0xff]  }
 0x462   :  { %4661 = vmatpush1.bf16.msra.mxu1 %v9339_v55  ;;  %v9437_v55 = vld [vmem:[#allocation7 + $0x13ec] ss:$24 sps:$4 sm:$0xff]  }
 0x463   :  { %4662 = vmatprep.subr.bf16.mxu1 %v9344_v63  ;;  %v9435_v63 = vld [vmem:[#allocation7 + $0x13e8] ss:$24 sps:$4 sm:$0xff]  }
 0x466   :  { %4663 = vmatpush1.bf16.msra.mxu1 %v9342_v25  ;;  %v9443_v25 = vld [vmem:[#allocation7 + $0x141c] ss:$24 sps:$4 sm:$0xff]  }
 0x467   :  { %4664 = vmatprep.subr.bf16.mxu1 %v9347_v0  ;;  %v9441_v0 = vld [vmem:[#allocation7 + $0x1418] ss:$24 sps:$4 sm:$0xff]  }
 0x46a   :  { %4665 = vmatpush1.bf16.msra.mxu1 %v9345_v1 }
 0x46b   :  { %4666 = vmatprep.subr.bf16.mxu1 %v9350_v3 }
 0x46e   :  { %4667 = vmatpush1.bf16.msra.mxu1 %v9348_v7 }
 0x46f   :  { %4668 = vmatprep.subr.bf16.mxu1 %v9353_v8 }
 0x472   :  { %4669 = vmatpush1.bf16.msra.mxu1 %v9351_v9 }
 0x473   :  { %4670 = vmatprep.subr.bf16.mxu1 %v9356_v10 }
 0x476   :  { %4671 = vmatpush1.bf16.msra.mxu1 %v9354_v5 }
 0x477   :  { %4672 = vmatprep.subr.bf16.mxu1 %v9359_v12 }
 0x47a   :  { %4673 = vmatpush1.bf16.msra.mxu1 %v9357_v17 }
 0x47b   :  { %4674 = vmatprep.subr.bf16.mxu1 %v9362_v19 }
 0x47e   :  { %4675 = vmatpush1.bf16.msra.mxu1 %v9360_v6 }
 0x47f   :  { %4676 = vmatprep.subr.bf16.mxu1 %v9365_v20 }
 0x482   :  { %4677 = vmatpush1.bf16.msra.mxu1 %v9363_v21 }
 0x483   :  { %4678 = vmatprep.subr.bf16.mxu1 %v9368_v26 }
 0x486   :  { %4679 = vmatpush1.bf16.msra.mxu1 %v9366_v27 }
 0x487   :  { %4680 = vmatprep.subr.bf16.mxu1 %v9371_v28  ;;  %v9374_v28 = vld [vmem:[#allocation7 + $0x1204] ss:$24 sps:$4 sm:$0xff]  }
 0x48a   :  { %4681 = vmatpush1.bf16.msra.mxu1 %v9369_v29 }
 0x48d   :  { %4683 = vmatmul.mubr.bf16.vlgmr.msra.gmra.mrb[36].mxu1 %v10133_v24 }
 0x48e   :  { %4786 = vmatprep.mubr.bf16.mxu1 %v9940_v18 }
 0x4a0   :  { %v4426_v30 = vpop.f32.mrb[32].mxu1 }
 0x4a1   :  { %v4693_v32 = vpack.c.bf16 %v4426_v30, %v4426_v30  ;;  %v4555_v31 = vpop.f32.mrb[8].mxu0  ;;  %v4428_v56 = vpop.f32.mrb[33].mxu1 }
 0x4a2   :  { %v4695_v11 = vpack.c.bf16 %v4555_v31, %v4555_v31  ;;  %v4694_v13 = vpack.c.bf16 %v4428_v56, %v4428_v56  ;;  %v4557_v34 = vpop.f32.mrb[9].mxu0  ;;  %v10151_v35 = vpop.f32.mrb[34].mxu1 }
 0x4a3   :  { %v4737_v37 = vsel %vm2271_vm1, %v4693_v32, 0  ;;  %v4696_v38 = vpack.c.bf16 %v4557_v34, %v4557_v34  ;;  %v10154_v39 = vpop.f32.mrb[10].mxu0  ;;  %v10156_v41 = vpop.f32.mrb[35].mxu1  ;;  %v4699_v12 = vpack.c.bf16 %v10151_v35, %v10151_v35 }
 0x4a4   :  { %v4743_v24 = vsel %vm2271_vm1, %v4695_v11, 0  ;;  %v10159_v53 = vpop.f32.mrb[11].mxu0  ;;  %8110 = vmatprep.subr.msk.bf16.mxu1 %vm2271_vm1, %v4694_v13  ;;  %v4700_v17 = vpack.c.bf16 %v10156_v41, %v10156_v41  ;;  %v4701_v20 = vpack.c.bf16 %v10154_v39, %v10154_v39  ;;  %v9372_v13 = vld [vmem:[#allocation7 + $0x1200] ss:$24 sps:$4 sm:$0xff]   ;;  %v9378_v39 = vld [vmem:[#allocation7 + $0x1230] ss:$24 sps:$4 sm:$0xff]  }
 0x4a5   :  { %8112 = vmatprep.subr.msk.bf16.mxu0 %vm2271_vm1, %v4696_v38  ;;  %4755 = vmatpush1.bf16.msra.mxu1 %v4737_v37  ;;  %v4878_v19 = vsel %vm2271_vm1, %v4699_v12, 0  ;;  %v4702_v6 = vpack.c.bf16 %v10159_v53, %v10159_v53  ;;  %v9380_v37 = vld [vmem:[#allocation7 + $0x1234] ss:$24 sps:$4 sm:$0xff]   ;;  %v9386_v41 = vld [vmem:[#allocation7 + $0x1264] ss:$24 sps:$4 sm:$0xff]  }
 0x4a6   :  { %4796 = vmatpush1.bf16.msra.mxu0 %v4743_v24  ;;  %6896 = vmatprep.subr.bf16.mxu1 %v9377_v42  ;;  %v4884_v21 = vsel %vm2271_vm1, %v4701_v20, 0  ;;  %v9384_v24 = vld [vmem:[#allocation7 + $0x1260] ss:$24 sps:$4 sm:$0xff]   ;;  %v9392_v53 = vld [vmem:[#allocation7 + $0x1294] ss:$24 sps:$4 sm:$0xff]  }
 0x4a7   :  { %v9398_v42 = vld [vmem:[#allocation7 + $0x12c4] ss:$24 sps:$4 sm:$0xff]   ;;  %v9462_v12 = vld [vmem:[#allocation7 + $0x14d0] ss:$24 sps:$4 sm:$0xff]  }
 0x4a8   :  { %8111 = vmatmul.mubr.msk.bf16.vlgmr.msra.gmra.mrb[40].mxu1 %vm76_vm0, %v10057_v22  ;;  %v2859_v20 = vld [vmem:[#allocation8 + $0x6] sm:$0x3f] }
 0x4a9   :  { %8113 = vmatmul.mubr.msk.bf16.vlgmr.msra.gmra.mrb[12].mxu0 %vm76_vm0, %v10057_v22  ;;  %6897 = vmatpush1.bf16.msra.mxu1 %v9375_v14  ;;  %v9390_v14 = vld [vmem:[#allocation7 + $0x1290] ss:$24 sps:$4 sm:$0xff]  }
 0x4aa   :  { %4868 = vmatprep.mubr.bf16.mxu0 %v9940_v18  ;;  %6898 = vmatprep.subr.bf16.mxu1 %v9383_v43  ;;  %v9396_v43 = vld [vmem:[#allocation7 + $0x12c0] ss:$24 sps:$4 sm:$0xff]  }
 0x4ad   :  { %6899 = vmatpush1.bf16.msra.mxu1 %v9381_v45  ;;  %v9404_v45 = vld [vmem:[#allocation7 + $0x12f4] ss:$24 sps:$4 sm:$0xff]  }
 0x4ae   :  { %6900 = vmatprep.subr.bf16.mxu1 %v9389_v15  ;;  %v9402_v15 = vld [vmem:[#allocation7 + $0x12f0] ss:$24 sps:$4 sm:$0xff]  }
 0x4b1   :  { %6901 = vmatpush1.bf16.msra.mxu1 %v9387_v46  ;;  %v9410_v46 = vld [vmem:[#allocation7 + $0x1324] ss:$24 sps:$4 sm:$0xff]  }
 0x4b2   :  { %6902 = vmatprep.subr.bf16.mxu1 %v9395_v44  ;;  %v9408_v44 = vld [vmem:[#allocation7 + $0x1320] ss:$24 sps:$4 sm:$0xff]  }
 0x4b5   :  { %6903 = vmatpush1.bf16.msra.mxu1 %v9393_v47  ;;  %v9416_v47 = vld [vmem:[#allocation7 + $0x1354] ss:$24 sps:$4 sm:$0xff]  }
 0x4b6   :  { %6904 = vmatprep.subr.bf16.mxu1 %v9401_v48  ;;  %v9414_v48 = vld [vmem:[#allocation7 + $0x1350] ss:$24 sps:$4 sm:$0xff]  }
 0x4b9   :  { %6905 = vmatpush1.bf16.msra.mxu1 %v9399_v33  ;;  %v9422_v33 = vld [vmem:[#allocation7 + $0x1384] ss:$24 sps:$4 sm:$0xff]  }
 0x4ba   :  { %6906 = vmatprep.subr.bf16.mxu1 %v9407_v49  ;;  %v9420_v49 = vld [vmem:[#allocation7 + $0x1380] ss:$24 sps:$4 sm:$0xff]  }
 0x4bd   :  { %6907 = vmatpush1.bf16.msra.mxu1 %v9405_v54  ;;  %v9428_v54 = vld [vmem:[#allocation7 + $0x13b4] ss:$24 sps:$4 sm:$0xff]  }
 0x4be   :  { %6908 = vmatprep.subr.bf16.mxu1 %v9413_v50  ;;  %v9426_v50 = vld [vmem:[#allocation7 + $0x13b0] ss:$24 sps:$4 sm:$0xff]  }
 0x4c1   :  { %6909 = vmatpush1.bf16.msra.mxu1 %v9411_v51  ;;  %v9434_v51 = vld [vmem:[#allocation7 + $0x13e4] ss:$24 sps:$4 sm:$0xff]  }
 0x4c2   :  { %6910 = vmatprep.subr.bf16.mxu1 %v9419_v52  ;;  %v9432_v52 = vld [vmem:[#allocation7 + $0x13e0] ss:$24 sps:$4 sm:$0xff]  }
 0x4c5   :  { %6911 = vmatpush1.bf16.msra.mxu1 %v9417_v57  ;;  %v9440_v57 = vld [vmem:[#allocation7 + $0x1414] ss:$24 sps:$4 sm:$0xff]  }
 0x4c6   :  { %6912 = vmatprep.subr.bf16.mxu1 %v9425_v58  ;;  %v9438_v58 = vld [vmem:[#allocation7 + $0x1410] ss:$24 sps:$4 sm:$0xff]  }
 0x4c9   :  { %6913 = vmatpush1.bf16.msra.mxu1 %v9423_v59  ;;  %v9446_v59 = vld [vmem:[#allocation7 + $0x1444] ss:$24 sps:$4 sm:$0xff]  }
 0x4ca   :  { %6914 = vmatprep.subr.bf16.mxu1 %v9431_v60  ;;  %v9449_v60 = vld [vmem:[#allocation7 + $0x144c] ss:$24 sps:$4 sm:$0xff]  }
 0x4cd   :  { %6915 = vmatpush1.bf16.msra.mxu1 %v9429_v61  ;;  %v9444_v61 = vld [vmem:[#allocation7 + $0x1440] ss:$24 sps:$4 sm:$0xff]  }
 0x4ce   :  { %6916 = vmatprep.subr.bf16.mxu1 %v9437_v55  ;;  %v9447_v55 = vld [vmem:[#allocation7 + $0x1448] ss:$24 sps:$4 sm:$0xff]  }
 0x4d1   :  { %6917 = vmatpush1.bf16.msra.mxu1 %v9435_v63  ;;  %v9452_v63 = vld [vmem:[#allocation7 + $0x1474] ss:$24 sps:$4 sm:$0xff]  }
 0x4d2   :  { %6918 = vmatprep.subr.bf16.mxu1 %v9443_v25  ;;  %v9455_v25 = vld [vmem:[#allocation7 + $0x147c] ss:$24 sps:$4 sm:$0xff]  }
 0x4d5   :  { %6919 = vmatpush1.bf16.msra.mxu1 %v9441_v0  ;;  %v9450_v0 = vld [vmem:[#allocation7 + $0x1470] ss:$24 sps:$4 sm:$0xff]  }
 0x4d6   :  { %6920 = vmatprep.subr.bf16.mxu1 %v9449_v60 }
 0x4d9   :  { %6921 = vmatpush1.bf16.msra.mxu1 %v9447_v55  ;;  %v9482_v55 = vld [vmem:[#allocation7 + $0x1564] ss:$24 sps:$4 sm:$0xff]  }
 0x4da   :  { %6922 = vmatprep.subr.bf16.mxu1 %v9455_v25 }
 0x560   :  { %v4684_v1 = vpop.f32.mrb[36].mxu1 }
 0x561   :  { %v4697_v3 = vpack.c.bf16 %v4684_v1, %v4684_v1  ;;  %v4686_v7 = vpop.f32.mrb[37].mxu1  ;;  %v9453_v1 = vld [vmem:[#allocation7 + $0x1478] ss:$24 sps:$4 sm:$0xff]  }
 0x562   :  { %v4698_v8 = vpack.c.bf16 %v4686_v7, %v4686_v7  ;;  %v4688_v9 = vpop.f32.mrb[38].mxu1  ;;  %6923 = vmatpush1.bf16.msra.mxu1 %v9453_v1  ;;  %v9461_v7 = vld [vmem:[#allocation7 + $0x14ac] ss:$24 sps:$4 sm:$0xff]  }
 0x563   :  { %v4749_v10 = vsel %vm2271_vm1, %v4697_v3, 0  ;;  %v4690_v5 = vpop.f32.mrb[39].mxu1  ;;  %v4703_v27 = vpack.c.bf16 %v4688_v9, %v4688_v9  ;;  %v9458_v3 = vld [vmem:[#allocation7 + $0x14a4] ss:$24 sps:$4 sm:$0xff]   ;;  %v9459_v9 = vld [vmem:[#allocation7 + $0x14a8] ss:$24 sps:$4 sm:$0xff]   ;;  %6924 = vmatprep.subr.bf16.mxu1 %v9461_v7 }
 0x564   :  { %8114 = vmatprep.subr.msk.bf16.mxu0 %vm2271_vm1, %v4698_v8  ;;  %v4704_v26 = vpack.c.bf16 %v4690_v5, %v4690_v5  ;;  %v9456_v8 = vld [vmem:[#allocation7 + $0x14a0] ss:$24 sps:$4 sm:$0xff]   ;;  %v9467_v5 = vld [vmem:[#allocation7 + $0x14dc] ss:$24 sps:$4 sm:$0xff]  }
 0x565   :  { %4837 = vmatpush1.bf16.msra.mxu0 %v4749_v10  ;;  %v4890_v29 = vsel %vm2271_vm1, %v4703_v27, 0  ;;  %v9464_v10 = vld [vmem:[#allocation7 + $0x14d4] ss:$24 sps:$4 sm:$0xff]  }
 0x566   :  { %8116 = vmatprep.subr.msk.bf16.mxu0 %vm2271_vm1, %v4700_v17  ;;  %6925 = vmatpush1.bf16.msra.mxu1 %v9459_v9  ;;  %v9465_v17 = vld [vmem:[#allocation7 + $0x14d8] ss:$24 sps:$4 sm:$0xff]   ;;  %v9483_v9 = vld [vmem:[#allocation7 + $0x1568] ss:$24 sps:$4 sm:$0xff]  }
 0x567   :  { %6926 = vmatprep.subr.bf16.mxu1 %v9467_v5  ;;  %v9488_v5 = vld [vmem:[#allocation7 + $0x1594] ss:$24 sps:$4 sm:$0xff]  }
 0x568   :  { %8115 = vmatmul.mubr.msk.bf16.vlgmr.msra.gmra.mrb[16].mxu0 %vm76_vm0, %v10057_v22 }
 0x569   :  { %4896 = vmatpush1.bf16.msra.mxu0 %v4878_v19  ;;  %4927 = vmatprep.mubr.bf16.mxu0 %v9940_v18  ;;  %v9470_v19 = vld [vmem:[#allocation7 + $0x1504] ss:$24 sps:$4 sm:$0xff]  }
 0x56a   :  { %8118 = vmatprep.subr.msk.bf16.mxu0 %vm2271_vm1, %v4702_v6  ;;  %6927 = vmatpush1.bf16.msra.mxu1 %v9465_v17  ;;  %v9473_v6 = vld [vmem:[#allocation7 + $0x150c] ss:$24 sps:$4 sm:$0xff]  }
 0x56b   :  { %6939 = vmatprep.subr.bf16.mxu1 %v9473_v6 }
 0x570   :  { %8117 = vmatmul.mubr.msk.bf16.vlgmr.msra.gmra.mrb[20].mxu0 %vm76_vm0, %v10079_v62 }
 0x571   :  { %4937 = vmatpush1.bf16.msra.mxu0 %v4884_v21  ;;  %4968 = vmatprep.mubr.bf16.mxu0 %v9940_v18 }
 0x572   :  { %8120 = vmatprep.subr.msk.bf16.mxu0 %vm2271_vm1, %v4704_v26 }
 0x578   :  { %8119 = vmatmul.mubr.msk.bf16.vlgmr.msra.gmra.mrb[24].mxu0 %vm76_vm0, %v10079_v62 }
 0x579   :  { %4978 = vmatpush1.bf16.msra.mxu0 %v4890_v29  ;;  %5009 = vmatprep.mubr.bf16.mxu0 %v9940_v18 }
 0x57a   :  { %6767 = vmatprep.subr.bf16.mxu0 %v9374_v28  ;;  %v4709_v28 = vrot.slane %v2859_v20, %v10096_v2 }
 0x57b   :  { %v10193_v30 = vpop.f32.mrb[40].mxu1 }
 0x57c   :  { %v10195_v32 = vpop.f32.mrb[12].mxu0  ;;  %v10197_v31 = vpop.f32.mrb[41].mxu1 }
 0x57d   :  { %v10199_v56 = vpop.f32.mrb[13].mxu0  ;;  %v4792_v11 = vpop.f32.mrb[42].mxu1 }
 0x57e   :  { %v4833_v34 = vpop.f32.mrb[14].mxu0  ;;  %v4793_v35 = vpop.f32.mrb[43].mxu1  ;;  %v4713_v11 = vrot.slane %v2859_v20, %v10098_v4 }
 0x57f   :  { %v4834_v38 = vpop.f32.mrb[15].mxu0 }
 0x580   :  { %8121 = vmatmul.mubr.msk.bf16.vlgmr.msra.gmra.mrb[28].mxu0 %vm76_vm0, %v10079_v62  ;;  %v4791_v34 = vadd.f32 %v10197_v31, %v4713_v11  ;;  %v9468_v31 = vld [vmem:[#allocation7 + $0x1500] ss:$24 sps:$4 sm:$0xff]  }
 0x581   :  { %6768 = vmatpush1.bf16.msra.mxu0 %v9372_v13  ;;  %v4789_v13 = vadd.f32 %v10193_v30, %v4709_v28 }
 0x582   :  { %6769 = vmatprep.subr.bf16.mxu0 %v9380_v37 }
 0x585   :  { %6770 = vmatpush1.bf16.msra.mxu0 %v9378_v39  ;;  %v4717_v39 = vrot.slane %v2859_v20, %v10105_v16 }
 0x586   :  { %6771 = vmatprep.subr.bf16.mxu0 %v9386_v41 }
 0x587   :  { %v4830_v30 = vadd.f32 %v10195_v32, %v4717_v39 }
 0x589   :  { %6772 = vmatpush1.bf16.msra.mxu0 %v9384_v24  ;;  %v5020_v32 = vmax.f32 %v4830_v30, 0.0  ;;  %v9509_v30 = vld [vmem:[#allocation7 + $0x162c] ss:$24 sps:$4 sm:$0xff]  }
 0x58a   :  { %6773 = vmatprep.subr.bf16.mxu0 %v9392_v53  ;;  %v5018_v53 = vmax.f32 %v4789_v13, 0.0  ;;  %v9494_v13 = vld [vmem:[#allocation7 + $0x15c4] ss:$24 sps:$4 sm:$0xff]  }
 0x58d   :  { %6774 = vmatpush1.bf16.msra.mxu0 %v9390_v14 }
 0x58e   :  { %6775 = vmatprep.subr.bf16.mxu0 %v9398_v42 }
 0x591   :  { %6776 = vmatpush1.bf16.msra.mxu0 %v9396_v43  ;;  %v5019_v43 = vmax.f32 %v4791_v34, 0.0 }
 0x592   :  { %6777 = vmatprep.subr.bf16.mxu0 %v9404_v45  ;;  %v4721_v45 = vrot.slane %v2859_v20, %v10108_v23 }
 0x595   :  { %6778 = vmatpush1.bf16.msra.mxu0 %v9402_v15 }
 0x596   :  { %6779 = vmatprep.subr.bf16.mxu0 %v9410_v46 }
 0x599   :  { %6780 = vmatpush1.bf16.msra.mxu0 %v9408_v44 }
 0x59a   :  { %6781 = vmatprep.subr.bf16.mxu0 %v9416_v47  ;;  %v9471_v47 = vld [vmem:[#allocation7 + $0x1508] ss:$24 sps:$4 sm:$0xff]  }
 0x59d   :  { %6782 = vmatpush1.bf16.msra.mxu0 %v9414_v48  ;;  %v9476_v48 = vld [vmem:[#allocation7 + $0x1534] ss:$24 sps:$4 sm:$0xff]  }
 0x59e   :  { %6783 = vmatprep.subr.bf16.mxu0 %v9422_v33  ;;  %v9479_v33 = vld [vmem:[#allocation7 + $0x153c] ss:$24 sps:$4 sm:$0xff]  }
 0x5a1   :  { %6784 = vmatpush1.bf16.msra.mxu0 %v9420_v49  ;;  %v4832_v49 = vadd.f32 %v10199_v56, %v4721_v45  ;;  %v4725_v56 = vrot.slane %v2859_v20, %v10116_v36 }
 0x5a2   :  { %6785 = vmatprep.subr.bf16.mxu0 %v9428_v54 }
 0x5a3   :  { %v5021_v25 = vmax.f32 %v4832_v49, 0.0  ;;  %v9510_v49 = vld [vmem:[#allocation7 + $0x1650] ss:$24 sps:$4 sm:$0xff]  }
 0x5a5   :  { %6786 = vmatpush1.bf16.msra.mxu0 %v9426_v50 }
 0x5a6   :  { %6787 = vmatprep.subr.bf16.mxu0 %v9434_v51 }
 0x5a9   :  { %6788 = vmatpush1.bf16.msra.mxu0 %v9432_v52 }
 0x5aa   :  { %6789 = vmatprep.subr.bf16.mxu0 %v9440_v57 }
 0x5ad   :  { %6790 = vmatpush1.bf16.msra.mxu0 %v9438_v58  ;;  %v9474_v58 = vld [vmem:[#allocation7 + $0x1530] ss:$24 sps:$4 sm:$0xff]  }
 0x5ae   :  { %6791 = vmatprep.subr.bf16.mxu0 %v9446_v59  ;;  %v9477_v59 = vld [vmem:[#allocation7 + $0x1538] ss:$24 sps:$4 sm:$0xff]  }
 0x5b1   :  { %6792 = vmatpush1.bf16.msra.mxu0 %v9444_v61 }
 0x5b2   :  { %6793 = vmatprep.subr.bf16.mxu0 %v9452_v63  ;;  %v9485_v63 = vld [vmem:[#allocation7 + $0x156c] ss:$24 sps:$4 sm:$0xff]  }
 0x5b5   :  { %6794 = vmatpush1.bf16.msra.mxu0 %v9450_v0  ;;  %v4729_v0 = vrot.slane %v2859_v20, %v10118_v40 }
 0x5b6   :  { %6795 = vmatprep.subr.bf16.mxu0 %v9458_v3 }
 0x5b9   :  { %6796 = vmatpush1.bf16.msra.mxu0 %v9456_v8  ;;  %v9480_v8 = vld [vmem:[#allocation7 + $0x1560] ss:$24 sps:$4 sm:$0xff]  }
 0x5ba   :  { %6797 = vmatprep.subr.bf16.mxu0 %v9464_v10 }
 0x5bd   :  { %6798 = vmatpush1.bf16.msra.mxu0 %v9462_v12  ;;  %v9491_v12 = vld [vmem:[#allocation7 + $0x159c] ss:$24 sps:$4 sm:$0xff]  }
 0x5be   :  { %6810 = vmatprep.subr.bf16.mxu0 %v9470_v19 }
 0x63b   :  { %v4870_v21 = vpop.f32.mrb[16].mxu0 }
 0x63c   :  { %v4872_v26 = vpop.f32.mrb[17].mxu0  ;;  %v4871_v10 = vadd.f32 %v4870_v21, %v4725_v56 }
 0x63d   :  { %v4874_v27 = vpop.f32.mrb[18].mxu0  ;;  %v4873_v17 = vadd.f32 %v4872_v26, %v4729_v0  ;;  %v9497_v26 = vld [vmem:[#allocation7 + $0x15cc] ss:$24 sps:$4 sm:$0xff]  }
 0x63e   :  { %v4875_v29 = vpop.f32.mrb[19].mxu0  ;;  %v9486_v27 = vld [vmem:[#allocation7 + $0x1590] ss:$24 sps:$4 sm:$0xff]   ;;  %v5022_v21 = vmax.f32 %v4871_v10, 0.0  ;;  %v9545_v10 = vld [vmem:[#allocation7 + $0x174c] ss:$24 sps:$4 sm:$0xff]  }
 0x643   :  { %v4929_v35 = vpop.f32.mrb[20].mxu0 }
 0x644   :  { %v4930_v37 = vadd.f32 %v4929_v35, %v4709_v28  ;;  %v4931_v38 = vpop.f32.mrb[21].mxu0 }
 0x645   :  { %v4932_v41 = vadd.f32 %v4931_v38, %v4713_v11  ;;  %v4933_v24 = vpop.f32.mrb[22].mxu0  ;;  %v9489_v11 = vld [vmem:[#allocation7 + $0x1598] ss:$24 sps:$4 sm:$0xff]  }
 0x646   :  { %v5024_v14 = vmax.f32 %v4930_v37, 0.0  ;;  %v4934_v42 = vpop.f32.mrb[23].mxu0  ;;  %v5023_v37 = vmax.f32 %v4873_v17, 0.0  ;;  %v9492_v24 = vld [vmem:[#allocation7 + $0x15c0] ss:$24 sps:$4 sm:$0xff]  }
 0x647   :  { %v5025_v15 = vmax.f32 %v4932_v41, 0.0  ;;  %v9503_v42 = vld [vmem:[#allocation7 + $0x15fc] ss:$24 sps:$4 sm:$0xff]  }
 0x648   :  { %v10209_v46 = vpack.c.bf16 %v5024_v14, %v5018_v53  ;;  %v9495_v53 = vld [vmem:[#allocation7 + $0x15c8] ss:$24 sps:$4 sm:$0xff]   ;;  %v9500_v14 = vld [vmem:[#allocation7 + $0x15f4] ss:$24 sps:$4 sm:$0xff]  }
 0x649   :  { %v10212_v44 = vpack.c.bf16 %v5025_v15, %v5019_v43  ;;  %v9498_v43 = vld [vmem:[#allocation7 + $0x15f0] ss:$24 sps:$4 sm:$0xff]   ;;  %v9506_v15 = vld [vmem:[#allocation7 + $0x1624] ss:$24 sps:$4 sm:$0xff]   ;;  %v9548_v17 = vld [vmem:[#allocation7 + $0x1774] ss:$24 sps:$4 sm:$0xff]  }
 0x64b   :  { %v4970_v54 = vpop.f32.mrb[24].mxu0  ;;  %6799 = vmatprep.mubr.bf16.mxu0 %v10212_v44  ;;  %6928 = vmatprep.mubr.bf16.mxu1 %v10212_v44 }
 0x64c   :  { %v4971_v50 = vadd.f32 %v4970_v54, %v4717_v39  ;;  %v4972_v51 = vpop.f32.mrb[25].mxu0  ;;  %6800 = vmatmul.mubr.bf16.vlgmr.msra.gmra.mrb[32].mxu0 %v10209_v46  ;;  %6929 = vmatmul.mubr.bf16.vlgmr.msra.gmra.mrb[44].mxu1 %v10209_v46  ;;  %v9513_v54 = vld [vmem:[#allocation7 + $0x1658] ss:$24 sps:$4 sm:$0xff]  }
 0x64d   :  { %v4973_v52 = vadd.f32 %v4972_v51, %v4721_v45  ;;  %6811 = vmatpush1.bf16.msra.mxu0 %v9468_v31  ;;  %6940 = vmatpush1.bf16.msra.mxu1 %v9471_v47  ;;  %v4974_v57 = vpop.f32.mrb[26].mxu0  ;;  %v9501_v45 = vld [vmem:[#allocation7 + $0x15f8] ss:$24 sps:$4 sm:$0xff]   ;;  %v9507_v47 = vld [vmem:[#allocation7 + $0x1628] ss:$24 sps:$4 sm:$0xff]  }
 0x64e   :  { %v5026_v60 = vmax.f32 %v4971_v50, 0.0  ;;  %v4975_v61 = vpop.f32.mrb[27].mxu0  ;;  %6812 = vmatprep.subr.bf16.mxu0 %v9476_v48  ;;  %6941 = vmatprep.subr.bf16.mxu1 %v9479_v33  ;;  %v9504_v31 = vld [vmem:[#allocation7 + $0x1620] ss:$24 sps:$4 sm:$0xff]   ;;  %v9512_v48 = vld [vmem:[#allocation7 + $0x1654] ss:$24 sps:$4 sm:$0xff]  }
 0x64f   :  { %v5027_v1 = vmax.f32 %v4973_v52, 0.0  ;;  %v9515_v33 = vld [vmem:[#allocation7 + $0x165c] ss:$24 sps:$4 sm:$0xff]   ;;  %v9521_v51 = vld [vmem:[#allocation7 + $0x168c] ss:$24 sps:$4 sm:$0xff]  }
 0x650   :  { %v10221_v3 = vpack.c.bf16 %v5026_v60, %v5020_v32  ;;  %v9518_v50 = vld [vmem:[#allocation7 + $0x1684] ss:$24 sps:$4 sm:$0xff]   ;;  %v9516_v32 = vld [vmem:[#allocation7 + $0x1680] ss:$24 sps:$4 sm:$0xff]   ;;  %v9524_v57 = vld [vmem:[#allocation7 + $0x16b4] ss:$24 sps:$4 sm:$0xff]  }
 0x651   :  { %v10223_v7 = vpack.c.bf16 %v5027_v1, %v5021_v25  ;;  %6813 = vmatpush1.bf16.msra.mxu0 %v9474_v58  ;;  %6942 = vmatpush1.bf16.msra.mxu1 %v9477_v59  ;;  %v9519_v52 = vld [vmem:[#allocation7 + $0x1688] ss:$24 sps:$4 sm:$0xff]   ;;  %v9527_v58 = vld [vmem:[#allocation7 + $0x16bc] ss:$24 sps:$4 sm:$0xff]   ;;  %v9533_v61 = vld [vmem:[#allocation7 + $0x16ec] ss:$24 sps:$4 sm:$0xff]  }
 0x652   :  { %6814 = vmatprep.subr.bf16.mxu0 %v9482_v55  ;;  %6943 = vmatprep.subr.bf16.mxu1 %v9485_v63  ;;  %v9522_v59 = vld [vmem:[#allocation7 + $0x16b0] ss:$24 sps:$4 sm:$0xff]   ;;  %v9530_v60 = vld [vmem:[#allocation7 + $0x16e4] ss:$24 sps:$4 sm:$0xff]   ;;  %v9528_v55 = vld [vmem:[#allocation7 + $0x16e0] ss:$24 sps:$4 sm:$0xff]  }
 0x653   :  { %v5011_v19 = vpop.f32.mrb[28].mxu0  ;;  %6842 = vmatprep.mubr.bf16.mxu0 %v10223_v7  ;;  %6971 = vmatprep.mubr.bf16.mxu1 %v10223_v7  ;;  %v9531_v63 = vld [vmem:[#allocation7 + $0x16e8] ss:$24 sps:$4 sm:$0xff]   ;;  %v9536_v25 = vld [vmem:[#allocation7 + $0x1714] ss:$24 sps:$4 sm:$0xff]  }
 0x654   :  { %v5012_v6 = vadd.f32 %v5011_v19, %v4725_v56  ;;  %v5013_v20 = vpop.f32.mrb[29].mxu0  ;;  %v9525_v56 = vld [vmem:[#allocation7 + $0x16b8] ss:$24 sps:$4 sm:$0xff]   ;;  %v9551_v19 = vld [vmem:[#allocation7 + $0x177c] ss:$24 sps:$4 sm:$0xff]  }
 0x655   :  { %v5014_v28 = vadd.f32 %v5013_v20, %v4729_v0  ;;  %6815 = vmatpush1.bf16.msra.mxu0 %v9480_v8  ;;  %6944 = vmatpush1.bf16.msra.mxu1 %v9483_v9  ;;  %v5015_v29 = vpop.f32.mrb[30].mxu0  ;;  %v9539_v0 = vld [vmem:[#allocation7 + $0x171c] ss:$24 sps:$4 sm:$0xff]   ;;  %v9534_v1 = vld [vmem:[#allocation7 + $0x1710] ss:$24 sps:$4 sm:$0xff]  }
 0x656   :  { %v5028_v34 = vmax.f32 %v5012_v6, 0.0  ;;  %v5016_v35 = vpop.f32.mrb[31].mxu0  ;;  %6816 = vmatprep.subr.bf16.mxu0 %v9488_v5  ;;  %6945 = vmatprep.subr.bf16.mxu1 %v9491_v12  ;;  %v9537_v8 = vld [vmem:[#allocation7 + $0x1718] ss:$24 sps:$4 sm:$0xff]   ;;  %v9542_v9 = vld [vmem:[#allocation7 + $0x1744] ss:$24 sps:$4 sm:$0xff]  }
 0x657   :  { %v5029_v38 = vmax.f32 %v5014_v28, 0.0  ;;  %v9540_v5 = vld [vmem:[#allocation7 + $0x1740] ss:$24 sps:$4 sm:$0xff]   ;;  %v9546_v6 = vld [vmem:[#allocation7 + $0x1770] ss:$24 sps:$4 sm:$0xff]  }
 0x658   :  { %v10227_v39 = vpack.c.bf16 %v5028_v34, %v5022_v21  ;;  %v9543_v12 = vld [vmem:[#allocation7 + $0x1748] ss:$24 sps:$4 sm:$0xff]   ;;  %v9549_v20 = vld [vmem:[#allocation7 + $0x1778] ss:$24 sps:$4 sm:$0xff]   ;;  %v9557_v28 = vld [vmem:[#allocation7 + $0x17ac] ss:$24 sps:$4 sm:$0xff]  }
 0x659   :  { %v10229_v41 = vpack.c.bf16 %v5029_v38, %v5023_v37  ;;  %6817 = vmatpush1.bf16.msra.mxu0 %v9486_v27  ;;  %6946 = vmatpush1.bf16.msra.mxu1 %v9489_v11  ;;  %v9554_v27 = vld [vmem:[#allocation7 + $0x17a4] ss:$24 sps:$4 sm:$0xff]   ;;  %v9552_v29 = vld [vmem:[#allocation7 + $0x17a0] ss:$24 sps:$4 sm:$0xff]   ;;  %v9558_v34 = vld [vmem:[#allocation7 + $0x17d0] ss:$24 sps:$4 sm:$0xff]  }
 0x65a   :  { %6818 = vmatprep.subr.bf16.mxu0 %v9494_v13  ;;  %6947 = vmatprep.subr.bf16.mxu1 %v9497_v26  ;;  %v9555_v11 = vld [vmem:[#allocation7 + $0x17a8] ss:$24 sps:$4 sm:$0xff]   ;;  %v9560_v13 = vld [vmem:[#allocation7 + $0x17d4] ss:$24 sps:$4 sm:$0xff]   ;;  %v9561_v35 = vld [vmem:[#allocation7 + $0x17d8] ss:$24 sps:$4 sm:$0xff]  }
 0x65b   :  { %v9563_v21 = vld [vmem:[#allocation7 + $0x17dc] ss:$24 sps:$4 sm:$0xff]   ;;  %v9569_v37 = vld [vmem:[#allocation7 + $0x180c] ss:$24 sps:$4 sm:$0xff]   ;;  %v9564_v38 = vld [vmem:[#allocation7 + $0x1800] ss:$24 sps:$4 sm:$0xff]  }
 0x65c   :  { %v9566_v26 = vld [vmem:[#allocation7 + $0x1804] ss:$24 sps:$4 sm:$0xff]  }
 0x65d   :  { %6819 = vmatpush1.bf16.msra.mxu0 %v9492_v24  ;;  %6948 = vmatpush1.bf16.msra.mxu1 %v9495_v53  ;;  %v9567_v24 = vld [vmem:[#allocation7 + $0x1808] ss:$24 sps:$4 sm:$0xff]   ;;  %v9572_v53 = vld [vmem:[#allocation7 + $0x1834] ss:$24 sps:$4 sm:$0xff]  }
 0x65e   :  { %6820 = vmatprep.subr.bf16.mxu0 %v9500_v14  ;;  %6949 = vmatprep.subr.bf16.mxu1 %v9503_v42  ;;  %v9575_v14 = vld [vmem:[#allocation7 + $0x183c] ss:$24 sps:$4 sm:$0xff]   ;;  %v9570_v42 = vld [vmem:[#allocation7 + $0x1830] ss:$24 sps:$4 sm:$0xff]  }
 0x661   :  { %6821 = vmatpush1.bf16.msra.mxu0 %v9498_v43  ;;  %6950 = vmatpush1.bf16.msra.mxu1 %v9501_v45  ;;  %v9573_v43 = vld [vmem:[#allocation7 + $0x1838] ss:$24 sps:$4 sm:$0xff]   ;;  %v9578_v45 = vld [vmem:[#allocation7 + $0x1864] ss:$24 sps:$4 sm:$0xff]  }
 0x662   :  { %6822 = vmatprep.subr.bf16.mxu0 %v9506_v15  ;;  %6951 = vmatprep.subr.bf16.mxu1 %v9509_v30  ;;  %v9581_v15 = vld [vmem:[#allocation7 + $0x186c] ss:$24 sps:$4 sm:$0xff]   ;;  %v9576_v30 = vld [vmem:[#allocation7 + $0x1860] ss:$24 sps:$4 sm:$0xff]  }
 0x665   :  { %6823 = vmatpush1.bf16.msra.mxu0 %v9504_v31  ;;  %6952 = vmatpush1.bf16.msra.mxu1 %v9507_v47  ;;  %v9579_v31 = vld [vmem:[#allocation7 + $0x1868] ss:$24 sps:$4 sm:$0xff]   ;;  %v9584_v47 = vld [vmem:[#allocation7 + $0x1894] ss:$24 sps:$4 sm:$0xff]  }
 0x666   :  { %6824 = vmatprep.subr.bf16.mxu0 %v9512_v48  ;;  %6953 = vmatprep.subr.bf16.mxu1 %v9515_v33  ;;  %v9587_v48 = vld [vmem:[#allocation7 + $0x189c] ss:$24 sps:$4 sm:$0xff]   ;;  %v9582_v33 = vld [vmem:[#allocation7 + $0x1890] ss:$24 sps:$4 sm:$0xff]  }
 0x669   :  { %6825 = vmatpush1.bf16.msra.mxu0 %v9510_v49  ;;  %6954 = vmatpush1.bf16.msra.mxu1 %v9513_v54  ;;  %v9585_v49 = vld [vmem:[#allocation7 + $0x1898] ss:$24 sps:$4 sm:$0xff]   ;;  %v9590_v54 = vld [vmem:[#allocation7 + $0x18c4] ss:$24 sps:$4 sm:$0xff]  }
 0x66a   :  { %6826 = vmatprep.subr.bf16.mxu0 %v9518_v50  ;;  %6955 = vmatprep.subr.bf16.mxu1 %v9521_v51  ;;  %v9593_v50 = vld [vmem:[#allocation7 + $0x18cc] ss:$24 sps:$4 sm:$0xff]   ;;  %v9588_v51 = vld [vmem:[#allocation7 + $0x18c0] ss:$24 sps:$4 sm:$0xff]  }
 0x66d   :  { %6827 = vmatpush1.bf16.msra.mxu0 %v9516_v32  ;;  %6956 = vmatpush1.bf16.msra.mxu1 %v9519_v52  ;;  %v9591_v32 = vld [vmem:[#allocation7 + $0x18c8] ss:$24 sps:$4 sm:$0xff]   ;;  %v9596_v52 = vld [vmem:[#allocation7 + $0x18f4] ss:$24 sps:$4 sm:$0xff]  }
 0x66e   :  { %6828 = vmatprep.subr.bf16.mxu0 %v9524_v57  ;;  %6957 = vmatprep.subr.bf16.mxu1 %v9527_v58  ;;  %v9599_v57 = vld [vmem:[#allocation7 + $0x18fc] ss:$24 sps:$4 sm:$0xff]   ;;  %v9594_v58 = vld [vmem:[#allocation7 + $0x18f0] ss:$24 sps:$4 sm:$0xff]  }
 0x671   :  { %6829 = vmatpush1.bf16.msra.mxu0 %v9522_v59  ;;  %6958 = vmatpush1.bf16.msra.mxu1 %v9525_v56  ;;  %v9597_v59 = vld [vmem:[#allocation7 + $0x18f8] ss:$24 sps:$4 sm:$0xff]   ;;  %v9602_v56 = vld [vmem:[#allocation7 + $0x1924] ss:$24 sps:$4 sm:$0xff]  }
 0x672   :  { %6830 = vmatprep.subr.bf16.mxu0 %v9530_v60  ;;  %6959 = vmatprep.subr.bf16.mxu1 %v9533_v61  ;;  %v9605_v60 = vld [vmem:[#allocation7 + $0x192c] ss:$24 sps:$4 sm:$0xff]   ;;  %v9600_v61 = vld [vmem:[#allocation7 + $0x1920] ss:$24 sps:$4 sm:$0xff]  }
 0x675   :  { %6831 = vmatpush1.bf16.msra.mxu0 %v9528_v55  ;;  %6960 = vmatpush1.bf16.msra.mxu1 %v9531_v63  ;;  %v9603_v55 = vld [vmem:[#allocation7 + $0x1928] ss:$24 sps:$4 sm:$0xff]   ;;  %v9608_v63 = vld [vmem:[#allocation7 + $0x1954] ss:$24 sps:$4 sm:$0xff]  }
 0x676   :  { %6832 = vmatprep.subr.bf16.mxu0 %v9536_v25  ;;  %6961 = vmatprep.subr.bf16.mxu1 %v9539_v0  ;;  %v9611_v25 = vld [vmem:[#allocation7 + $0x195c] ss:$24 sps:$4 sm:$0xff]   ;;  %v9606_v0 = vld [vmem:[#allocation7 + $0x1950] ss:$24 sps:$4 sm:$0xff]  }
 0x679   :  { %6833 = vmatpush1.bf16.msra.mxu0 %v9534_v1  ;;  %6962 = vmatpush1.bf16.msra.mxu1 %v9537_v8  ;;  %v9609_v1 = vld [vmem:[#allocation7 + $0x1958] ss:$24 sps:$4 sm:$0xff]   ;;  %v9614_v8 = vld [vmem:[#allocation7 + $0x1984] ss:$24 sps:$4 sm:$0xff]  }
 0x67a   :  { %6834 = vmatprep.subr.bf16.mxu0 %v9542_v9  ;;  %6963 = vmatprep.subr.bf16.mxu1 %v9545_v10  ;;  %v9617_v9 = vld [vmem:[#allocation7 + $0x198c] ss:$24 sps:$4 sm:$0xff]   ;;  %v9612_v10 = vld [vmem:[#allocation7 + $0x1980] ss:$24 sps:$4 sm:$0xff]  }
 0x67d   :  { %6835 = vmatpush1.bf16.msra.mxu0 %v9540_v5  ;;  %6964 = vmatpush1.bf16.msra.mxu1 %v9543_v12  ;;  %v9615_v5 = vld [vmem:[#allocation7 + $0x1988] ss:$24 sps:$4 sm:$0xff]   ;;  %v9620_v12 = vld [vmem:[#allocation7 + $0x19b4] ss:$24 sps:$4 sm:$0xff]  }
 0x67e   :  { %6836 = vmatprep.subr.bf16.mxu0 %v9548_v17  ;;  %6965 = vmatprep.subr.bf16.mxu1 %v9551_v19  ;;  %v9623_v17 = vld [vmem:[#allocation7 + $0x19bc] ss:$24 sps:$4 sm:$0xff]   ;;  %v9618_v19 = vld [vmem:[#allocation7 + $0x19b0] ss:$24 sps:$4 sm:$0xff]  }
 0x681   :  { %6837 = vmatpush1.bf16.msra.mxu0 %v9546_v6  ;;  %6966 = vmatpush1.bf16.msra.mxu1 %v9549_v20  ;;  %v9621_v6 = vld [vmem:[#allocation7 + $0x19b8] ss:$24 sps:$4 sm:$0xff]   ;;  %v9626_v20 = vld [vmem:[#allocation7 + $0x19e4] ss:$24 sps:$4 sm:$0xff]  }
 0x682   :  { %6838 = vmatprep.subr.bf16.mxu0 %v9554_v27  ;;  %6967 = vmatprep.subr.bf16.mxu1 %v9557_v28  ;;  %v9629_v27 = vld [vmem:[#allocation7 + $0x19ec] ss:$24 sps:$4 sm:$0xff]   ;;  %v9624_v28 = vld [vmem:[#allocation7 + $0x19e0] ss:$24 sps:$4 sm:$0xff]  }
 0x685   :  { %6839 = vmatpush1.bf16.msra.mxu0 %v9552_v29  ;;  %6968 = vmatpush1.bf16.msra.mxu1 %v9555_v11  ;;  %v9627_v29 = vld [vmem:[#allocation7 + $0x19e8] ss:$24 sps:$4 sm:$0xff]   ;;  %v9632_v11 = vld [vmem:[#allocation7 + $0x1a14] ss:$24 sps:$4 sm:$0xff]  }
 0x686   :  { %6840 = vmatprep.subr.bf16.mxu0 %v9560_v13  ;;  %6969 = vmatprep.subr.bf16.mxu1 %v9563_v21  ;;  %v9635_v13 = vld [vmem:[#allocation7 + $0x1a1c] ss:$24 sps:$4 sm:$0xff]   ;;  %v9630_v21 = vld [vmem:[#allocation7 + $0x1a10] ss:$24 sps:$4 sm:$0xff]  }
 0x689   :  { %6841 = vmatpush1.bf16.msra.mxu0 %v9558_v34  ;;  %6970 = vmatpush1.bf16.msra.mxu1 %v9561_v35  ;;  %v9633_v34 = vld [vmem:[#allocation7 + $0x1a18] ss:$24 sps:$4 sm:$0xff]   ;;  %v9638_v35 = vld [vmem:[#allocation7 + $0x1a44] ss:$24 sps:$4 sm:$0xff]  }
 0x68a   :  { %6853 = vmatprep.subr.bf16.mxu0 %v9566_v26  ;;  %6982 = vmatprep.subr.bf16.mxu1 %v9569_v37  ;;  %v9641_v26 = vld [vmem:[#allocation7 + $0x1a4c] ss:$24 sps:$4 sm:$0xff]   ;;  %v9636_v37 = vld [vmem:[#allocation7 + $0x1a40] ss:$24 sps:$4 sm:$0xff]  }
 0x68c   :  { %6843 = vmatmul.mubr.bf16.vlgmr.msra.gmra.mrb[32].mxu0 %v10221_v3  ;;  %6972 = vmatmul.mubr.bf16.vlgmr.msra.gmra.mrb[44].mxu1 %v10221_v3 }
 0x68d   :  { %6854 = vmatpush1.bf16.msra.mxu0 %v9564_v38  ;;  %6885 = vmatprep.mubr.bf16.mxu0 %v10229_v41  ;;  %v9639_v38 = vld [vmem:[#allocation7 + $0x1a48] ss:$24 sps:$4 sm:$0xff]  }
 0x68e   :  { %6983 = vmatpush1.bf16.msra.mxu1 %v9567_v24  ;;  %7014 = vmatprep.mubr.bf16.mxu1 %v10229_v41  ;;  %v9644_v24 = vld [vmem:[#allocation7 + $0x1a74] ss:$24 sps:$4 sm:$0xff]  }
 0x68f   :  { %6855 = vmatprep.subr.bf16.mxu0 %v9572_v53  ;;  %6984 = vmatprep.subr.bf16.mxu1 %v9575_v14  ;;  %v9647_v53 = vld [vmem:[#allocation7 + $0x1a7c] ss:$24 sps:$4 sm:$0xff]   ;;  %v9642_v14 = vld [vmem:[#allocation7 + $0x1a70] ss:$24 sps:$4 sm:$0xff]  }
 0x691   :  { %6856 = vmatpush1.bf16.msra.mxu0 %v9570_v42  ;;  %v9645_v42 = vld [vmem:[#allocation7 + $0x1a78] ss:$24 sps:$4 sm:$0xff]  }
 0x692   :  { %6985 = vmatpush1.bf16.msra.mxu1 %v9573_v43  ;;  %6857 = vmatprep.subr.bf16.mxu0 %v9578_v45  ;;  %v9650_v43 = vld [vmem:[#allocation7 + $0x1aa4] ss:$24 sps:$4 sm:$0xff]  }
 0x693   :  { %6986 = vmatprep.subr.bf16.mxu1 %v9581_v15  ;;  %v9653_v45 = vld [vmem:[#allocation7 + $0x1aac] ss:$24 sps:$4 sm:$0xff]   ;;  %v9648_v15 = vld [vmem:[#allocation7 + $0x1aa0] ss:$24 sps:$4 sm:$0xff]  }
 0x695   :  { %6858 = vmatpush1.bf16.msra.mxu0 %v9576_v30  ;;  %v9651_v30 = vld [vmem:[#allocation7 + $0x1aa8] ss:$24 sps:$4 sm:$0xff]  }
 0x696   :  { %6987 = vmatpush1.bf16.msra.mxu1 %v9579_v31  ;;  %6859 = vmatprep.subr.bf16.mxu0 %v9584_v47  ;;  %v9656_v31 = vld [vmem:[#allocation7 + $0x1ad4] ss:$24 sps:$4 sm:$0xff]  }
 0x697   :  { %6988 = vmatprep.subr.bf16.mxu1 %v9587_v48  ;;  %v9659_v47 = vld [vmem:[#allocation7 + $0x1adc] ss:$24 sps:$4 sm:$0xff]   ;;  %v9654_v48 = vld [vmem:[#allocation7 + $0x1ad0] ss:$24 sps:$4 sm:$0xff]  }
 0x699   :  { %6860 = vmatpush1.bf16.msra.mxu0 %v9582_v33  ;;  %v9657_v33 = vld [vmem:[#allocation7 + $0x1ad8] ss:$24 sps:$4 sm:$0xff]  }
 0x69a   :  { %6989 = vmatpush1.bf16.msra.mxu1 %v9585_v49  ;;  %6861 = vmatprep.subr.bf16.mxu0 %v9590_v54  ;;  %v9662_v49 = vld [vmem:[#allocation7 + $0x1214] ss:$24 sps:$4 sm:$0xff]   ;;  %v9660_v54 = vld [vmem:[#allocation7 + $0x1210] ss:$24 sps:$4 sm:$0xff]  }
 0x69b   :  { %6990 = vmatprep.subr.bf16.mxu1 %v9593_v50  ;;  %v9665_v50 = vld [vmem:[#allocation7 + $0x1244] ss:$24 sps:$4 sm:$0xff]  }
 0x69d   :  { %6862 = vmatpush1.bf16.msra.mxu0 %v9588_v51  ;;  %v9663_v51 = vld [vmem:[#allocation7 + $0x1240] ss:$24 sps:$4 sm:$0xff]  }
 0x69e   :  { %6991 = vmatpush1.bf16.msra.mxu1 %v9591_v32  ;;  %6863 = vmatprep.subr.bf16.mxu0 %v9596_v52  ;;  %v9668_v32 = vld [vmem:[#allocation7 + $0x1274] ss:$24 sps:$4 sm:$0xff]   ;;  %v9666_v52 = vld [vmem:[#allocation7 + $0x1270] ss:$24 sps:$4 sm:$0xff]  }
 0x69f   :  { %6992 = vmatprep.subr.bf16.mxu1 %v9599_v57  ;;  %v9671_v57 = vld [vmem:[#allocation7 + $0x12a4] ss:$24 sps:$4 sm:$0xff]  }
 0x6a1   :  { %6864 = vmatpush1.bf16.msra.mxu0 %v9594_v58  ;;  %v9669_v58 = vld [vmem:[#allocation7 + $0x12a0] ss:$24 sps:$4 sm:$0xff]  }
 0x6a2   :  { %6993 = vmatpush1.bf16.msra.mxu1 %v9597_v59  ;;  %6865 = vmatprep.subr.bf16.mxu0 %v9602_v56  ;;  %v9674_v59 = vld [vmem:[#allocation7 + $0x12d4] ss:$24 sps:$4 sm:$0xff]   ;;  %v9672_v56 = vld [vmem:[#allocation7 + $0x12d0] ss:$24 sps:$4 sm:$0xff]  }
 0x6a3   :  { %6994 = vmatprep.subr.bf16.mxu1 %v9605_v60  ;;  %v9677_v60 = vld [vmem:[#allocation7 + $0x1304] ss:$24 sps:$4 sm:$0xff]  }
 0x6a5   :  { %6866 = vmatpush1.bf16.msra.mxu0 %v9600_v61  ;;  %v9675_v61 = vld [vmem:[#allocation7 + $0x1300] ss:$24 sps:$4 sm:$0xff]  }
 0x6a6   :  { %6995 = vmatpush1.bf16.msra.mxu1 %v9603_v55  ;;  %6867 = vmatprep.subr.bf16.mxu0 %v9608_v63  ;;  %v9678_v55 = vld [vmem:[#allocation7 + $0x1330] ss:$24 sps:$4 sm:$0xff]   ;;  %v9683_v63 = vld [vmem:[#allocation7 + $0x1364] ss:$24 sps:$4 sm:$0xff]  }
 0x6a7   :  { %6996 = vmatprep.subr.bf16.mxu1 %v9611_v25  ;;  %v9681_v25 = vld [vmem:[#allocation7 + $0x1360] ss:$24 sps:$4 sm:$0xff]  }
 0x6a9   :  { %6868 = vmatpush1.bf16.msra.mxu0 %v9606_v0  ;;  %v9686_v0 = vld [vmem:[#allocation7 + $0x1394] ss:$24 sps:$4 sm:$0xff]  }
 0x6aa   :  { %6997 = vmatpush1.bf16.msra.mxu1 %v9609_v1  ;;  %6869 = vmatprep.subr.bf16.mxu0 %v9614_v8  ;;  %v9684_v1 = vld [vmem:[#allocation7 + $0x1390] ss:$24 sps:$4 sm:$0xff]   ;;  %v9689_v8 = vld [vmem:[#allocation7 + $0x13c4] ss:$24 sps:$4 sm:$0xff]  }
 0x6ab   :  { %6998 = vmatprep.subr.bf16.mxu1 %v9617_v9  ;;  %v9687_v9 = vld [vmem:[#allocation7 + $0x13c0] ss:$24 sps:$4 sm:$0xff]  }
 0x6ad   :  { %6870 = vmatpush1.bf16.msra.mxu0 %v9612_v10  ;;  %v9692_v10 = vld [vmem:[#allocation7 + $0x13f4] ss:$24 sps:$4 sm:$0xff]  }
 0x6ae   :  { %6999 = vmatpush1.bf16.msra.mxu1 %v9615_v5  ;;  %6871 = vmatprep.subr.bf16.mxu0 %v9620_v12  ;;  %v9690_v5 = vld [vmem:[#allocation7 + $0x13f0] ss:$24 sps:$4 sm:$0xff]   ;;  %v9695_v12 = vld [vmem:[#allocation7 + $0x1424] ss:$24 sps:$4 sm:$0xff]  }
 0x6af   :  { %7000 = vmatprep.subr.bf16.mxu1 %v9623_v17  ;;  %v9693_v17 = vld [vmem:[#allocation7 + $0x1420] ss:$24 sps:$4 sm:$0xff]  }
 0x6b1   :  { %6872 = vmatpush1.bf16.msra.mxu0 %v9618_v19  ;;  %v9698_v19 = vld [vmem:[#allocation7 + $0x1454] ss:$24 sps:$4 sm:$0xff]  }
 0x6b2   :  { %7001 = vmatpush1.bf16.msra.mxu1 %v9621_v6  ;;  %6873 = vmatprep.subr.bf16.mxu0 %v9626_v20  ;;  %v9696_v6 = vld [vmem:[#allocation7 + $0x1450] ss:$24 sps:$4 sm:$0xff]   ;;  %v9701_v20 = vld [vmem:[#allocation7 + $0x1484] ss:$24 sps:$4 sm:$0xff]  }
 0x6b3   :  { %7002 = vmatprep.subr.bf16.mxu1 %v9629_v27  ;;  %v9699_v27 = vld [vmem:[#allocation7 + $0x1480] ss:$24 sps:$4 sm:$0xff]  }
 0x6b5   :  { %6874 = vmatpush1.bf16.msra.mxu0 %v9624_v28  ;;  %v9704_v28 = vld [vmem:[#allocation7 + $0x14b4] ss:$24 sps:$4 sm:$0xff]  }
 0x6b6   :  { %7003 = vmatpush1.bf16.msra.mxu1 %v9627_v29  ;;  %6875 = vmatprep.subr.bf16.mxu0 %v9632_v11  ;;  %v9702_v29 = vld [vmem:[#allocation7 + $0x14b0] ss:$24 sps:$4 sm:$0xff]   ;;  %v9707_v11 = vld [vmem:[#allocation7 + $0x14e4] ss:$24 sps:$4 sm:$0xff]  }
 0x6b7   :  { %7004 = vmatprep.subr.bf16.mxu1 %v9635_v13  ;;  %v9705_v13 = vld [vmem:[#allocation7 + $0x14e0] ss:$24 sps:$4 sm:$0xff]  }
 0x6b9   :  { %6876 = vmatpush1.bf16.msra.mxu0 %v9630_v21  ;;  %v9710_v21 = vld [vmem:[#allocation7 + $0x1514] ss:$24 sps:$4 sm:$0xff]  }
 0x6ba   :  { %7005 = vmatpush1.bf16.msra.mxu1 %v9633_v34  ;;  %6877 = vmatprep.subr.bf16.mxu0 %v9638_v35  ;;  %v9708_v34 = vld [vmem:[#allocation7 + $0x1510] ss:$24 sps:$4 sm:$0xff]   ;;  %v9713_v35 = vld [vmem:[#allocation7 + $0x1544] ss:$24 sps:$4 sm:$0xff]  }
 0x6bb   :  { %7006 = vmatprep.subr.bf16.mxu1 %v9641_v26  ;;  %v9711_v26 = vld [vmem:[#allocation7 + $0x1540] ss:$24 sps:$4 sm:$0xff]  }
 0x6bd   :  { %6878 = vmatpush1.bf16.msra.mxu0 %v9636_v37  ;;  %v9716_v37 = vld [vmem:[#allocation7 + $0x1574] ss:$24 sps:$4 sm:$0xff]  }
 0x6be   :  { %7007 = vmatpush1.bf16.msra.mxu1 %v9639_v38  ;;  %6879 = vmatprep.subr.bf16.mxu0 %v9644_v24  ;;  %v9714_v38 = vld [vmem:[#allocation7 + $0x1570] ss:$24 sps:$4 sm:$0xff]   ;;  %v9719_v24 = vld [vmem:[#allocation7 + $0x15a4] ss:$24 sps:$4 sm:$0xff]  }
 0x6bf   :  { %7008 = vmatprep.subr.bf16.mxu1 %v9647_v53  ;;  %v9717_v53 = vld [vmem:[#allocation7 + $0x15a0] ss:$24 sps:$4 sm:$0xff]  }
 0x6c1   :  { %6880 = vmatpush1.bf16.msra.mxu0 %v9642_v14  ;;  %v9722_v14 = vld [vmem:[#allocation7 + $0x15d4] ss:$24 sps:$4 sm:$0xff]  }
 0x6c2   :  { %7009 = vmatpush1.bf16.msra.mxu1 %v9645_v42  ;;  %6881 = vmatprep.subr.bf16.mxu0 %v9650_v43  ;;  %v9720_v42 = vld [vmem:[#allocation7 + $0x15d0] ss:$24 sps:$4 sm:$0xff]   ;;  %v9725_v43 = vld [vmem:[#allocation7 + $0x1604] ss:$24 sps:$4 sm:$0xff]  }
 0x6c3   :  { %7010 = vmatprep.subr.bf16.mxu1 %v9653_v45  ;;  %v9728_v45 = vld [vmem:[#allocation7 + $0x1634] ss:$24 sps:$4 sm:$0xff]  }
 0x6c5   :  { %6882 = vmatpush1.bf16.msra.mxu0 %v9648_v15  ;;  %v9731_v15 = vld [vmem:[#allocation7 + $0x1664] ss:$24 sps:$4 sm:$0xff]  }
 0x6c6   :  { %7011 = vmatpush1.bf16.msra.mxu1 %v9651_v30  ;;  %6883 = vmatprep.subr.bf16.mxu0 %v9656_v31  ;;  %v9729_v30 = vld [vmem:[#allocation7 + $0x1660] ss:$24 sps:$4 sm:$0xff]   ;;  %v9734_v31 = vld [vmem:[#allocation7 + $0x1694] ss:$24 sps:$4 sm:$0xff]  }
 0x6c7   :  { %7012 = vmatprep.subr.bf16.mxu1 %v9659_v47  ;;  %v9732_v47 = vld [vmem:[#allocation7 + $0x1690] ss:$24 sps:$4 sm:$0xff]  }
 0x6c9   :  { %6884 = vmatpush1.bf16.msra.mxu0 %v9654_v48  ;;  %v9737_v48 = vld [vmem:[#allocation7 + $0x16c4] ss:$24 sps:$4 sm:$0xff]  }
 0x6ca   :  { %7013 = vmatpush1.bf16.msra.mxu1 %v9657_v33  ;;  %7025 = vmatprep.subr.bf16.mxu0 %v9662_v49  ;;  %v9735_v33 = vld [vmem:[#allocation7 + $0x16c0] ss:$24 sps:$4 sm:$0xff]   ;;  %v9740_v49 = vld [vmem:[#allocation7 + $0x16f4] ss:$24 sps:$4 sm:$0xff]  }
 0x6cc   :  { %6886 = vmatmul.mubr.bf16.vlgmr.msra.gmra.mrb[32].mxu0 %v10227_v39 }
 0x6cd   :  { %7015 = vmatmul.mubr.bf16.vlgmr.msra.gmra.mrb[44].mxu1 %v10227_v39  ;;  %7026 = vmatpush1.bf16.msra.mxu0 %v9660_v54  ;;  %v9738_v54 = vld [vmem:[#allocation7 + $0x16f0] ss:$24 sps:$4 sm:$0xff]  }
 0x6ce   :  { %7057 = vmatprep.mubr.bf16.mxu0 %v10212_v44  ;;  %7027 = vmatprep.subr.bf16.mxu0 %v9665_v50  ;;  %v9680_v44 = vld [vmem:[#allocation7 + $0x1334] ss:$24 sps:$4 sm:$0xff]   ;;  %v9743_v50 = vld [vmem:[#allocation7 + $0x1724] ss:$24 sps:$4 sm:$0xff]  }
 0x6cf   :  { %7247 = vmatprep.mubr.bf16.mxu1 %v9940_v18 }
 0x6d1   :  { %7028 = vmatpush1.bf16.msra.mxu0 %v9663_v51  ;;  %v9741_v51 = vld [vmem:[#allocation7 + $0x1720] ss:$24 sps:$4 sm:$0xff]  }
 0x6d2   :  { %7029 = vmatprep.subr.bf16.mxu0 %v9668_v32  ;;  %v9746_v32 = vld [vmem:[#allocation7 + $0x1754] ss:$24 sps:$4 sm:$0xff]  }
 0x6d5   :  { %7030 = vmatpush1.bf16.msra.mxu0 %v9666_v52  ;;  %v9744_v52 = vld [vmem:[#allocation7 + $0x1750] ss:$24 sps:$4 sm:$0xff]  }
 0x6d6   :  { %7031 = vmatprep.subr.bf16.mxu0 %v9671_v57  ;;  %v9749_v57 = vld [vmem:[#allocation7 + $0x1784] ss:$24 sps:$4 sm:$0xff]  }
 0x6d9   :  { %7032 = vmatpush1.bf16.msra.mxu0 %v9669_v58  ;;  %v9747_v58 = vld [vmem:[#allocation7 + $0x1780] ss:$24 sps:$4 sm:$0xff]  }
 0x6da   :  { %7033 = vmatprep.subr.bf16.mxu0 %v9674_v59  ;;  %v9752_v59 = vld [vmem:[#allocation7 + $0x17b4] ss:$24 sps:$4 sm:$0xff]  }
 0x6dd   :  { %7034 = vmatpush1.bf16.msra.mxu0 %v9672_v56  ;;  %v9750_v56 = vld [vmem:[#allocation7 + $0x17b0] ss:$24 sps:$4 sm:$0xff]  }
 0x6de   :  { %7035 = vmatprep.subr.bf16.mxu0 %v9677_v60  ;;  %v9755_v60 = vld [vmem:[#allocation7 + $0x17e4] ss:$24 sps:$4 sm:$0xff]  }
 0x6e1   :  { %7036 = vmatpush1.bf16.msra.mxu0 %v9675_v61  ;;  %v9753_v61 = vld [vmem:[#allocation7 + $0x17e0] ss:$24 sps:$4 sm:$0xff]  }
 0x6e2   :  { %7037 = vmatprep.subr.bf16.mxu0 %v9680_v44  ;;  %v9758_v44 = vld [vmem:[#allocation7 + $0x1814] ss:$24 sps:$4 sm:$0xff]  }
 0x6e5   :  { %7038 = vmatpush1.bf16.msra.mxu0 %v9678_v55  ;;  %v9756_v55 = vld [vmem:[#allocation7 + $0x1810] ss:$24 sps:$4 sm:$0xff]  }
 0x6e6   :  { %7039 = vmatprep.subr.bf16.mxu0 %v9683_v63  ;;  %v9761_v63 = vld [vmem:[#allocation7 + $0x1844] ss:$24 sps:$4 sm:$0xff]  }
 0x6e9   :  { %7040 = vmatpush1.bf16.msra.mxu0 %v9681_v25  ;;  %v9759_v25 = vld [vmem:[#allocation7 + $0x1840] ss:$24 sps:$4 sm:$0xff]  }
 0x6ea   :  { %7041 = vmatprep.subr.bf16.mxu0 %v9686_v0  ;;  %v9764_v0 = vld [vmem:[#allocation7 + $0x1874] ss:$24 sps:$4 sm:$0xff]  }
 0x6ed   :  { %7042 = vmatpush1.bf16.msra.mxu0 %v9684_v1  ;;  %v9762_v1 = vld [vmem:[#allocation7 + $0x1870] ss:$24 sps:$4 sm:$0xff]  }
 0x6ee   :  { %7043 = vmatprep.subr.bf16.mxu0 %v9689_v8  ;;  %v9767_v8 = vld [vmem:[#allocation7 + $0x18a4] ss:$24 sps:$4 sm:$0xff]  }
 0x6f1   :  { %7044 = vmatpush1.bf16.msra.mxu0 %v9687_v9  ;;  %v9765_v9 = vld [vmem:[#allocation7 + $0x18a0] ss:$24 sps:$4 sm:$0xff]  }
 0x6f2   :  { %7045 = vmatprep.subr.bf16.mxu0 %v9692_v10  ;;  %v9770_v10 = vld [vmem:[#allocation7 + $0x18d4] ss:$24 sps:$4 sm:$0xff]  }
 0x6f5   :  { %7046 = vmatpush1.bf16.msra.mxu0 %v9690_v5  ;;  %v9768_v5 = vld [vmem:[#allocation7 + $0x18d0] ss:$24 sps:$4 sm:$0xff]  }
 0x6f6   :  { %7047 = vmatprep.subr.bf16.mxu0 %v9695_v12  ;;  %v9773_v12 = vld [vmem:[#allocation7 + $0x1904] ss:$24 sps:$4 sm:$0xff]  }
 0x6f9   :  { %7048 = vmatpush1.bf16.msra.mxu0 %v9693_v17  ;;  %v9776_v17 = vld [vmem:[#allocation7 + $0x1934] ss:$24 sps:$4 sm:$0xff]  }
 0x6fa   :  { %7049 = vmatprep.subr.bf16.mxu0 %v9698_v19  ;;  %v9779_v19 = vld [vmem:[#allocation7 + $0x1964] ss:$24 sps:$4 sm:$0xff]  }
 0x6fd   :  { %7050 = vmatpush1.bf16.msra.mxu0 %v9696_v6  ;;  %v9777_v6 = vld [vmem:[#allocation7 + $0x1960] ss:$24 sps:$4 sm:$0xff]  }
 0x6fe   :  { %7051 = vmatprep.subr.bf16.mxu0 %v9701_v20  ;;  %v9782_v20 = vld [vmem:[#allocation7 + $0x1994] ss:$24 sps:$4 sm:$0xff]  }
 0x701   :  { %7052 = vmatpush1.bf16.msra.mxu0 %v9699_v27  ;;  %v9780_v27 = vld [vmem:[#allocation7 + $0x1990] ss:$24 sps:$4 sm:$0xff]  }
 0x702   :  { %7053 = vmatprep.subr.bf16.mxu0 %v9704_v28  ;;  %v9785_v28 = vld [vmem:[#allocation7 + $0x19c4] ss:$24 sps:$4 sm:$0xff]  }
 0x705   :  { %7054 = vmatpush1.bf16.msra.mxu0 %v9702_v29  ;;  %v9783_v29 = vld [vmem:[#allocation7 + $0x19c0] ss:$24 sps:$4 sm:$0xff]  }
 0x706   :  { %7055 = vmatprep.subr.bf16.mxu0 %v9707_v11  ;;  %v9788_v11 = vld [vmem:[#allocation7 + $0x19f4] ss:$24 sps:$4 sm:$0xff]  }
 0x709   :  { %7056 = vmatpush1.bf16.msra.mxu0 %v9705_v13  ;;  %v9786_v13 = vld [vmem:[#allocation7 + $0x19f0] ss:$24 sps:$4 sm:$0xff]  }
 0x70a   :  { %7068 = vmatprep.subr.bf16.mxu0 %v9710_v21  ;;  %v9791_v21 = vld [vmem:[#allocation7 + $0x1a24] ss:$24 sps:$4 sm:$0xff]  }
 0x70c   :  { %7058 = vmatmul.mubr.bf16.vlgmr.msra.gmra.mrb[36].mxu0 %v10209_v46  ;;  %v9723_v46 = vld [vmem:[#allocation7 + $0x1600] ss:$24 sps:$4 sm:$0xff]  }
 0x70d   :  { %7069 = vmatpush1.bf16.msra.mxu0 %v9708_v34  ;;  %7100 = vmatprep.mubr.bf16.mxu0 %v10223_v7  ;;  %v9726_v7 = vld [vmem:[#allocation7 + $0x1630] ss:$24 sps:$4 sm:$0xff]   ;;  %v9789_v34 = vld [vmem:[#allocation7 + $0x1a20] ss:$24 sps:$4 sm:$0xff]  }
 0x70e   :  { %7070 = vmatprep.subr.bf16.mxu0 %v9713_v35  ;;  %v9794_v35 = vld [vmem:[#allocation7 + $0x1a54] ss:$24 sps:$4 sm:$0xff]  }
 0x711   :  { %7071 = vmatpush1.bf16.msra.mxu0 %v9711_v26  ;;  %v9792_v26 = vld [vmem:[#allocation7 + $0x1a50] ss:$24 sps:$4 sm:$0xff]  }
 0x712   :  { %7072 = vmatprep.subr.bf16.mxu0 %v9716_v37  ;;  %v9797_v37 = vld [vmem:[#allocation7 + $0x1a84] ss:$24 sps:$4 sm:$0xff]  }
 0x715   :  { %7073 = vmatpush1.bf16.msra.mxu0 %v9714_v38  ;;  %v9795_v38 = vld [vmem:[#allocation7 + $0x1a80] ss:$24 sps:$4 sm:$0xff]  }
 0x716   :  { %7074 = vmatprep.subr.bf16.mxu0 %v9719_v24  ;;  %v9800_v24 = vld [vmem:[#allocation7 + $0x1ab4] ss:$24 sps:$4 sm:$0xff]  }
 0x719   :  { %7075 = vmatpush1.bf16.msra.mxu0 %v9717_v53  ;;  %v9798_v53 = vld [vmem:[#allocation7 + $0x1ab0] ss:$24 sps:$4 sm:$0xff]  }
 0x71a   :  { %7076 = vmatprep.subr.bf16.mxu0 %v9722_v14  ;;  %v9803_v14 = vld [vmem:[#allocation7 + $0x1ae4] ss:$24 sps:$4 sm:$0xff]  }
 0x71d   :  { %7077 = vmatpush1.bf16.msra.mxu0 %v9720_v42  ;;  %v9801_v42 = vld [vmem:[#allocation7 + $0x1ae0] ss:$24 sps:$4 sm:$0xff]  }
 0x71e   :  { %7078 = vmatprep.subr.bf16.mxu0 %v9725_v43 }
 0x721   :  { %7079 = vmatpush1.bf16.msra.mxu0 %v9723_v46 }
 0x722   :  { %7080 = vmatprep.subr.bf16.mxu0 %v9728_v45 }
 0x725   :  { %7081 = vmatpush1.bf16.msra.mxu0 %v9726_v7 }
 0x726   :  { %7082 = vmatprep.subr.bf16.mxu0 %v9731_v15 }
 0x729   :  { %7083 = vmatpush1.bf16.msra.mxu0 %v9729_v30 }
 0x72a   :  { %7084 = vmatprep.subr.bf16.mxu0 %v9734_v31 }
 0x72d   :  { %7085 = vmatpush1.bf16.msra.mxu0 %v9732_v47 }
 0x72e   :  { %7086 = vmatprep.subr.bf16.mxu0 %v9737_v48 }
 0x731   :  { %7087 = vmatpush1.bf16.msra.mxu0 %v9735_v33 }
 0x732   :  { %7088 = vmatprep.subr.bf16.mxu0 %v9740_v49 }
 0x735   :  { %7089 = vmatpush1.bf16.msra.mxu0 %v9738_v54 }
 0x736   :  { %7090 = vmatprep.subr.bf16.mxu0 %v9743_v50 }
 0x739   :  { %7091 = vmatpush1.bf16.msra.mxu0 %v9741_v51 }
 0x73a   :  { %7092 = vmatprep.subr.bf16.mxu0 %v9746_v32 }
 0x73d   :  { %7093 = vmatpush1.bf16.msra.mxu0 %v9744_v52 }
 0x73e   :  { %7094 = vmatprep.subr.bf16.mxu0 %v9749_v57 }
 0x741   :  { %7095 = vmatpush1.bf16.msra.mxu0 %v9747_v58 }
 0x742   :  { %7096 = vmatprep.subr.bf16.mxu0 %v9752_v59 }
 0x745   :  { %7097 = vmatpush1.bf16.msra.mxu0 %v9750_v56 }
 0x746   :  { %7098 = vmatprep.subr.bf16.mxu0 %v9755_v60 }
 0x749   :  { %7099 = vmatpush1.bf16.msra.mxu0 %v9753_v61 }
 0x74a   :  { %7111 = vmatprep.subr.bf16.mxu0 %v9758_v44 }
 0x74c   :  { %7101 = vmatmul.mubr.bf16.vlgmr.msra.gmra.mrb[36].mxu0 %v10221_v3  ;;  %v9771_v3 = vld [vmem:[#allocation7 + $0x1900] ss:$24 sps:$4 sm:$0xff]  }
 0x74d   :  { %7112 = vmatpush1.bf16.msra.mxu0 %v9756_v55  ;;  %7143 = vmatprep.mubr.bf16.mxu0 %v10229_v41  ;;  %v9774_v41 = vld [vmem:[#allocation7 + $0x1930] ss:$24 sps:$4 sm:$0xff]  }
 0x74e   :  { %7113 = vmatprep.subr.bf16.mxu0 %v9761_v63 }
 0x751   :  { %7114 = vmatpush1.bf16.msra.mxu0 %v9759_v25 }
 0x752   :  { %7115 = vmatprep.subr.bf16.mxu0 %v9764_v0 }
 0x755   :  { %7116 = vmatpush1.bf16.msra.mxu0 %v9762_v1 }
 0x756   :  { %7117 = vmatprep.subr.bf16.mxu0 %v9767_v8  ;;  %v5320_v8 = vld [vmem:[#allocation8 + $0xc] sm:$0x3f] }
 0x759   :  { %7118 = vmatpush1.bf16.msra.mxu0 %v9765_v9  ;;  %v7170_v9 = vrot.slane %v5320_v8, %v10096_v2  ;;  %v7182_v2 = vrot.slane %v5320_v8, %v10108_v23 }
 0x75a   :  { %7119 = vmatprep.subr.bf16.mxu0 %v9770_v10  ;;  %v7174_v10 = vrot.slane %v5320_v8, %v10098_v4 }
 0x75d   :  { %7120 = vmatpush1.bf16.msra.mxu0 %v9768_v5 }
 0x75e   :  { %7121 = vmatprep.subr.bf16.mxu0 %v9773_v12 }
 0x761   :  { %7122 = vmatpush1.bf16.msra.mxu0 %v9771_v3 }
 0x762   :  { %7123 = vmatprep.subr.bf16.mxu0 %v9776_v17 }
 0x765   :  { %7124 = vmatpush1.bf16.msra.mxu0 %v9774_v41 }
 0x766   :  { %7125 = vmatprep.subr.bf16.mxu0 %v9779_v19 }
 0x769   :  { %7126 = vmatpush1.bf16.msra.mxu0 %v9777_v6 }
 0x76a   :  { %7127 = vmatprep.subr.bf16.mxu0 %v9782_v20 }
 0x76d   :  { %7128 = vmatpush1.bf16.msra.mxu0 %v9780_v27  ;;  %v7178_v27 = vrot.slane %v5320_v8, %v10105_v16 }
 0x76e   :  { %7129 = vmatprep.subr.bf16.mxu0 %v9785_v28 }
 0x771   :  { %7130 = vmatpush1.bf16.msra.mxu0 %v9783_v29 }
 0x772   :  { %7131 = vmatprep.subr.bf16.mxu0 %v9788_v11 }
 0x775   :  { %7132 = vmatpush1.bf16.msra.mxu0 %v9786_v13 }
 0x776   :  { %7133 = vmatprep.subr.bf16.mxu0 %v9791_v21 }
 0x779   :  { %7134 = vmatpush1.bf16.msra.mxu0 %v9789_v34 }
 0x77a   :  { %7135 = vmatprep.subr.bf16.mxu0 %v9794_v35  ;;  %v7186_v35 = vrot.slane %v5320_v8, %v10116_v36 }
 0x77d   :  { %7136 = vmatpush1.bf16.msra.mxu0 %v9792_v26  ;;  %v7190_v26 = vrot.slane %v5320_v8, %v10118_v40 }
 0x77e   :  { %7137 = vmatprep.subr.bf16.mxu0 %v9797_v37 }
 0x781   :  { %7138 = vmatpush1.bf16.msra.mxu0 %v9795_v38 }
 0x782   :  { %7139 = vmatprep.subr.bf16.mxu0 %v9800_v24 }
 0x785   :  { %7140 = vmatpush1.bf16.msra.mxu0 %v9798_v53 }
 0x786   :  { %7141 = vmatprep.subr.bf16.mxu0 %v9803_v14 }
 0x789   :  { %7142 = vmatpush1.bf16.msra.mxu0 %v9801_v42 }
 0x78c   :  { %7144 = vmatmul.mubr.bf16.vlgmr.msra.gmra.mrb[36].mxu0 %v10227_v39 }
 0x79f   :  { %v6887_v43 = vpop.f32.mrb[32].mxu0 }
 0x7a0   :  { %v7154_v46 = vpack.c.bf16 %v6887_v43, %v6887_v43  ;;  %v7016_v45 = vpop.f32.mrb[44].mxu1  ;;  %v6889_v7 = vpop.f32.mrb[33].mxu0 }
 0x7a1   :  { %v7155_v15 = vpack.c.bf16 %v6889_v7, %v6889_v7  ;;  %v7018_v30 = vpop.f32.mrb[45].mxu1  ;;  %v6891_v31 = vpop.f32.mrb[34].mxu0  ;;  %v7156_v49 = vpack.c.bf16 %v7016_v45, %v7016_v45 }
 0x7a2   :  { %v7198_v47 = vsel %vm2271_vm1, %v7154_v46, 0  ;;  %v7020_v48 = vpop.f32.mrb[46].mxu1  ;;  %v6893_v33 = vpop.f32.mrb[35].mxu0  ;;  %v7157_v54 = vpack.c.bf16 %v7018_v30, %v7018_v30  ;;  %v7160_v60 = vpack.c.bf16 %v6891_v31, %v6891_v31 }
 0x7a3   :  { %v7022_v50 = vpop.f32.mrb[47].mxu1  ;;  %8410 = vmatprep.subr.msk.bf16.mxu1 %vm2271_vm1, %v7155_v15  ;;  %v7204_v39 = vsel %vm2271_vm1, %v7156_v49, 0  ;;  %v7161_v61 = vpack.c.bf16 %v6893_v33, %v6893_v33  ;;  %v7162_v63 = vpack.c.bf16 %v7020_v48, %v7020_v48 }
 0x7a4   :  { %7216 = vmatpush1.bf16.msra.mxu1 %v7198_v47  ;;  %v7339_v44 = vsel %vm2271_vm1, %v7160_v60, 0  ;;  %v7163_v55 = vpack.c.bf16 %v7022_v50, %v7022_v50 }
 0x7a5   :  { %8412 = vmatprep.subr.msk.bf16.mxu1 %vm2271_vm1, %v7157_v54  ;;  %v7345_v25 = vsel %vm2271_vm1, %v7162_v63, 0 }
 0x7a7   :  { %8411 = vmatmul.mubr.msk.bf16.vlgmr.msra.gmra.mrb[48].mxu1 %vm76_vm0, %v10057_v22 }
 0x7a8   :  { %7257 = vmatpush1.bf16.msra.mxu1 %v7204_v39  ;;  %7288 = vmatprep.mubr.bf16.mxu1 %v9940_v18 }
 0x7af   :  { %8413 = vmatmul.mubr.msk.bf16.vlgmr.msra.gmra.mrb[52].mxu1 %vm76_vm0, %v10057_v22 }
 0x7b0   :  { %7329 = vmatprep.mubr.bf16.mxu1 %v9940_v18 }
 0x85f   :  { %v7145_v51 = vpop.f32.mrb[36].mxu0 }
 0x860   :  { %v7158_v32 = vpack.c.bf16 %v7145_v51, %v7145_v51  ;;  %v7147_v52 = vpop.f32.mrb[37].mxu0 }
 0x861   :  { %v7159_v57 = vpack.c.bf16 %v7147_v52, %v7147_v52  ;;  %v7149_v58 = vpop.f32.mrb[38].mxu0 }
 0x862   :  { %v7210_v59 = vsel %vm2271_vm1, %v7158_v32, 0  ;;  %v7151_v56 = vpop.f32.mrb[39].mxu0  ;;  %v7164_v1 = vpack.c.bf16 %v7149_v58, %v7149_v58 }
 0x863   :  { %8414 = vmatprep.subr.msk.bf16.mxu1 %vm2271_vm1, %v7159_v57  ;;  %v7165_v0 = vpack.c.bf16 %v7151_v56, %v7151_v56 }
 0x864   :  { %7298 = vmatpush1.bf16.msra.mxu1 %v7210_v59 }
 0x865   :  { %8416 = vmatprep.subr.msk.bf16.mxu1 %vm2271_vm1, %v7161_v61 }
 0x867   :  { %8415 = vmatmul.mubr.msk.bf16.vlgmr.msra.gmra.mrb[56].mxu1 %vm76_vm0, %v10057_v22  ;;  %v7351_v22 = vsel %vm2271_vm1, %v7164_v1, 0 }
 0x868   :  { %7357 = vmatpush1.bf16.msra.mxu1 %v7339_v44  ;;  %7388 = vmatprep.mubr.bf16.mxu1 %v9940_v18 }
 0x869   :  { %8418 = vmatprep.subr.msk.bf16.mxu1 %vm2271_vm1, %v7163_v55 }
 0x86f   :  { %8417 = vmatmul.mubr.msk.bf16.vlgmr.msra.gmra.mrb[60].mxu1 %vm76_vm0, %v10079_v62 }
 0x870   :  { %7398 = vmatpush1.bf16.msra.mxu1 %v7345_v25  ;;  %7429 = vmatprep.mubr.bf16.mxu1 %v9940_v18 }
 0x871   :  { %8420 = vmatprep.subr.msk.bf16.mxu1 %vm2271_vm1, %v7165_v0 }
 0x877   :  { %8419 = vmatmul.mubr.msk.bf16.vlgmr.msra.gmra.mrb[64].mxu1 %vm76_vm0, %v10079_v62 }
 0x878   :  { %7439 = vmatpush1.bf16.msra.mxu1 %v7351_v22  ;;  %7470 = vmatprep.mubr.bf16.mxu1 %v9940_v18 }
 0x87a   :  { %v7249_v5 = vpop.f32.mrb[48].mxu1 }
 0x87b   :  { %v7250_v12 = vadd.f32 %v7249_v5, %v7170_v9  ;;  %v7251_v3 = vpop.f32.mrb[49].mxu1 }
 0x87c   :  { %v7252_v17 = vadd.f32 %v7251_v3, %v7174_v10  ;;  %v7253_v41 = vpop.f32.mrb[50].mxu1 }
 0x87d   :  { %v7479_v19 = vmax.f32 %v7250_v12, 0.0  ;;  %v7254_v6 = vpop.f32.mrb[51].mxu1 }
 0x87e   :  { %v7480_v20 = vmax.f32 %v7252_v17, 0.0 }
 0x87f   :  { %7491 = vst [vmem:[#allocation10] sm:$0xff] %v7479_v19  ;;  %8421 = vmatmul.mubr.msk.bf16.vlgmr.msra.gmra.mrb[68].mxu1 %vm76_vm0, %v10079_v62 }
 0x880   :  { %7492 = vst [vmem:[#allocation10 + $0x8] sm:$0xff] %v7480_v20 }
 0x882   :  { %v7290_v4 = vpop.f32.mrb[52].mxu1 }
 0x883   :  { %v7291_v28 = vadd.f32 %v7290_v4, %v7178_v27  ;;  %v7292_v18 = vpop.f32.mrb[53].mxu1 }
 0x884   :  { %v7293_v29 = vadd.f32 %v7292_v18, %v7182_v2  ;;  %v7294_v11 = vpop.f32.mrb[54].mxu1 }
 0x885   :  { %v7481_v13 = vmax.f32 %v7291_v28, 0.0  ;;  %v7295_v21 = vpop.f32.mrb[55].mxu1 }
 0x886   :  { %v7482_v34 = vmax.f32 %v7293_v29, 0.0 }
 0x887   :  { %7493 = vst [vmem:[#allocation10 + $0x10] sm:$0xff] %v7481_v13 }
 0x888   :  { %7494 = vst [vmem:[#allocation10 + $0x18] sm:$0xff] %v7482_v34 }
 0x93a   :  { %v7331_v62 = vpop.f32.mrb[56].mxu1 }
 0x93b   :  { %v7332_v37 = vadd.f32 %v7331_v62, %v7186_v35  ;;  %v7333_v16 = vpop.f32.mrb[57].mxu1 }
 0x93c   :  { %v7334_v38 = vadd.f32 %v7333_v16, %v7190_v26  ;;  %v7335_v24 = vpop.f32.mrb[58].mxu1 }
 0x93d   :  { %v7483_v23 = vmax.f32 %v7332_v37, 0.0  ;;  %v7336_v53 = vpop.f32.mrb[59].mxu1 }
 0x93e   :  { %v7484_v14 = vmax.f32 %v7334_v38, 0.0 }
 0x93f   :  { %7495 = vst [vmem:[#allocation10 + $0x20] sm:$0xff] %v7483_v23 }
 0x940   :  { %7496 = vst [vmem:[#allocation10 + $0x28] sm:$0xff] %v7484_v14 }
 0x942   :  { %v7390_v42 = vpop.f32.mrb[60].mxu1 }
 0x943   :  { %v7391_v43 = vadd.f32 %v7390_v42, %v7170_v9  ;;  %v7392_v46 = vpop.f32.mrb[61].mxu1 }
 0x944   :  { %v7393_v45 = vadd.f32 %v7392_v46, %v7174_v10  ;;  %v7394_v7 = vpop.f32.mrb[62].mxu1 }
 0x945   :  { %v7485_v15 = vmax.f32 %v7391_v43, 0.0  ;;  %v7395_v30 = vpop.f32.mrb[63].mxu1 }
 0x946   :  { %v7486_v36 = vmax.f32 %v7393_v45, 0.0 }
 0x947   :  { %7497 = vst [vmem:[#allocation10 + $0x30] sm:$0xff] %v7485_v15 }
 0x948   :  { %7498 = vst [vmem:[#allocation10 + $0x38] sm:$0xff] %v7486_v36 }
 0x94a   :  { %v7431_v40 = vpop.f32.mrb[64].mxu1 }
 0x94b   :  { %v7432_v31 = vadd.f32 %v7431_v40, %v7178_v27  ;;  %v7433_v47 = vpop.f32.mrb[65].mxu1 }
 0x94c   :  { %v7434_v48 = vadd.f32 %v7433_v47, %v7182_v2  ;;  %v7435_v33 = vpop.f32.mrb[66].mxu1 }
 0x94d   :  { %v7487_v49 = vmax.f32 %v7432_v31, 0.0  ;;  %v7436_v54 = vpop.f32.mrb[67].mxu1 }
 0x94e   :  { %v7488_v50 = vmax.f32 %v7434_v48, 0.0 }
 0x94f   :  { %7499 = vst [vmem:[#allocation10 + $0x40] sm:$0xff] %v7487_v49 }
 0x950   :  { %7500 = vst [vmem:[#allocation10 + $0x48] sm:$0xff] %v7488_v50 }
 0x952   :  { %v7472_v39 = vpop.f32.mrb[68].mxu1 }
 0x953   :  { %v7473_v51 = vadd.f32 %v7472_v39, %v7186_v35  ;;  %v7474_v32 = vpop.f32.mrb[69].mxu1 }
 0x954   :  { %v7475_v52 = vadd.f32 %v7474_v32, %v7190_v26  ;;  %v7476_v57 = vpop.f32.mrb[70].mxu1 }
 0x955   :  { %v7489_v58 = vmax.f32 %v7473_v51, 0.0  ;;  %v7477_v59 = vpop.f32.mrb[71].mxu1 }
 0x956   :  { %v7490_v56 = vmax.f32 %v7475_v52, 0.0 }
 0x957   :  { %7501 = vst [vmem:[#allocation10 + $0x50] sm:$0xff] %v7489_v58 }
 0x958   :  { %7502 = vst [vmem:[#allocation10 + $0x58] sm:$0xff] %v7490_v56 }
 0x959   :  { %9909 = shalt.err (!%p9906_p8)
}
 0x95a   :  { %s9910_s21 = scalar_lea.hbm %s10298_s4, 1536 }
 0x95b   :  { %p9911_p9 = scmp.ne.s32.totalorder %s10298_s4, %s9910_s21  ;;  %p9914_p10 = scmp.lt.u32.totalorder %s9910_s21, %s10298_s4 }
 0x95d   :  { %p9916_p11 = pnand %p9914_p10, %p9911_p9 }
 0x95f   :  { %9919 = shalt.err (!%p9916_p11)
}
 0x960   :  { %7514 = dma.vmem_to_hbm [thread:$0]  %s7509_s17, 1536, %s10298_s4, [#allocation4], %s9932_s1, %s9932_s1, %s9933_s13  }
 0x961   :  { %9926 = dma.done.wait [#allocation4], 1536  }
 0x962   :  { %9927 = vsyncadd [#allocation4], 4294965760 }
 0x963   :  { %7518 = vsyncpa [#allocation3], 1 }
 0x964   :  { %7519 = vsyncpa [#allocation6], 1 }
 0x965   :  { %7520 = vsyncpa [#allocation9], 1 }
 0x966   :  { %7521 = vsyncpa [#allocation4], 1 }

</bundles_post_ra>
